<compile_context>
chip_gen: v5e
topology: v5e:2x2
jax: 0.10.0
libtpu: 0.0.40
codegen_flags: <defaults>
</compile_context>

<pallas_src>
import jax
import jax.numpy as jnp
from jax import lax
from jax.experimental import pallas as pl
from jax.experimental.pallas import tpu as pltpu

KERNEL_SIZE = 3
NUM_FILTER = 32
EMBED_DIM = 16
RNN_SIZE = 128
ATTR_SIZE = 8 + 3 + 16 + 1        # driverID(8) + weekID(3) + timeID(16) + dist(1) = 28
NUM_FINAL_FCS = 3
FINAL_FC_SIZE = 128
LEAKY = 0.01                       # F.leaky_relu default negative slope
OUT_PAD = 128                      # lane-dense output width (prediction in col 0)
BATCH_BLOCK = 8                    # per-grid-block batch rows (sublane aligned)
ALPHA = 0.3
EPS = 10

CONFIG = dict(
    dist_mean=100.0, dist_std=50.0,
    lngs_mean=116.0, lngs_std=0.1,
    lats_mean=39.9, lats_std=0.1,
    dist_gap_mean=10.0, dist_gap_std=5.0,
    time_mean=1000.0, time_std=400.0,
    time_gap_mean=30.0, time_gap_std=10.0,
)


def _sigmoid_eup(x):
    # sigmoid(x) == 0.5 * (1 + tanh(x/2)): single EUP op (no exp + reciprocal).
    return 0.5 * (1.0 + jnp.tanh(0.5 * x))


# ---------------------------------------------------------------------------
# Fused kernel: GeoConv -> 2-layer LSTM -> online attention pooling ->
#               EntireEstimator, for one batch block of BATCH_BLOCK rows.
# ---------------------------------------------------------------------------
def deeptte_fused_kernel(locs_ref, ldist_ref, attr_ref,
                         wp_ref, bp_ref, wc_ref, bc_ref,
                         wih0c_ref, wih0d_ref, wih0a_ref, whh0_ref, b0_ref,
                         wl1_ref, b1_ref,
                         wa_ref, ba_ref,
                         w1a_ref, w1b_ref, b1e_ref,
                         wr_ref, br_ref, wo_ref, bo_ref,
                         out_ref, gx_ref):
    # locs_ref : (S, B, 4)   ldist_ref : (T, B, 1)   attr_ref : (B, 28)
    # out_ref  : (B, 128) (col 0 = prediction)
    # gx_ref   : VMEM scratch (T, B, 4H) -- per-step layer-0 input preactivations
    S, B, _ = locs_ref.shape
    T = ldist_ref.shape[0]
    H = RNN_SIZE
    G = 4 * H

    attr = attr_ref[...]                                               # (B, 28)

    # ---- GeoConv: tanh(Linear 4->16), 1-D conv (K shifted matmuls), ELU ----
    locs = locs_ref[...].reshape(S * B, 4)                             # layout no-op
    emb = jnp.tanh(jnp.dot(locs, wp_ref[...],
                           preferred_element_type=jnp.float32)
                   + bp_ref[...])                                      # (S*B, 16)
    acc = jnp.zeros((T * B, NUM_FILTER), jnp.float32)
    for k in range(KERNEL_SIZE):
        acc = acc + jnp.dot(emb[k * B:(k + T) * B], wc_ref[k],
                            preferred_element_type=jnp.float32)        # (T*B, 32)
    acc = acc + bc_ref[...]
    # ELU(alpha=1); exp argument clamped so the discarded branch never overflows
    conv = jnp.where(acc > 0, acc, jnp.exp(jnp.minimum(acc, 0.0)) - 1.0)

    # ---- layer-0 input preactivations for ALL timesteps (one M=T*B matmul);
    #      the time-invariant attr term + combined bias is pre-added once.
    ldist = ldist_ref[...].reshape(T * B, 1)
    gbig = (jnp.dot(conv, wih0c_ref[...],
                    preferred_element_type=jnp.float32)
            + ldist * wih0d_ref[...])                                  # (T*B, 4H)
    g_attr = (jnp.dot(attr, wih0a_ref[...], preferred_element_type=jnp.float32)
              + b0_ref[...])                                           # (B, 4H)
    gx_ref[...] = gbig.reshape(T, B, G) + g_attr[None]

    # attention query (time-invariant)
    attent = jnp.tanh(jnp.dot(attr, wa_ref[...],
                              preferred_element_type=jnp.float32)
                      + ba_ref[...])                                   # (B, H)

    def gates_to_hc(g, c):
        i = _sigmoid_eup(g[:, 0:H])
        f = _sigmoid_eup(g[:, H:2 * H])
        gg = jnp.tanh(g[:, 2 * H:3 * H])
        o = _sigmoid_eup(g[:, 3 * H:4 * H])
        c_new = f * c + i * gg
        return o * jnp.tanh(c_new), c_new

    def step(t, carry):
        h0, c0, h1, c1, m, l, pool = carry
        # layer 0: aligned tile load of the precomputed input gates + one matmul
        g0 = gx_ref[t] + jnp.dot(h0, whh0_ref[...],
                                 preferred_element_type=jnp.float32)
        h0n, c0n = gates_to_hc(g0, c0)
        # layer 1: ONE merged K=2H matmul ([x, h] @ [Wih1; Whh1])
        x1 = jnp.concatenate([h0n, h1], axis=-1)                       # (B, 2H)
        g1 = (jnp.dot(x1, wl1_ref[...], preferred_element_type=jnp.float32)
              + b1_ref[...])
        h1n, c1n = gates_to_hc(g1, c1)
        # online attention pooling: softmax(-score) with running-max shift
        s = -jnp.sum(h1n * attent, axis=-1, keepdims=True)             # (B, 1)
        m_new = jnp.maximum(m, s)
        corr = jnp.exp(m - m_new)
        p = jnp.exp(s - m_new)
        return (h0n, c0n, h1n, c1n, m_new,
                l * corr + p, pool * corr + p * h1n)

    zeros_h = jnp.zeros((B, H), jnp.float32)
    init = (zeros_h, zeros_h, zeros_h, zeros_h,
            jnp.full((B, 1), -jnp.inf, jnp.float32),
            jnp.zeros((B, 1), jnp.float32),
            zeros_h)
    _, _, _, _, _, l_f, pool = lax.fori_loop(0, T, step, init,
                                             unroll=min(T, 8))
    pooled = pool / l_f            # exact reciprocal (PyTorch softmax parity)

    # ---- EntireEstimator (input2hid split: attr block + pooled block) ----
    hid = (jnp.dot(attr, w1a_ref[...], preferred_element_type=jnp.float32)
           + jnp.dot(pooled, w1b_ref[...], preferred_element_type=jnp.float32)
           + b1e_ref[...])
    hid = jnp.where(hid > 0, hid, LEAKY * hid)
    for i in range(NUM_FINAL_FCS):
        res = (jnp.dot(hid, wr_ref[i], preferred_element_type=jnp.float32)
               + br_ref[i])
        res = jnp.where(res > 0, res, LEAKY * res)
        hid = hid + res
    # lane-dense (B, 128) store; only column 0 is meaningful (wo zero-padded)
    out_ref[...] = (jnp.dot(hid, wo_ref[...], preferred_element_type=jnp.float32)
                    + bo_ref[...])


def deeptte_fused(locs_sb, ldist_tb, attr_t, p, *, block_b=BATCH_BLOCK):
    S, Bp, _ = locs_sb.shape
    T = ldist_tb.shape[0]
    assert Bp % block_b == 0
    nb = Bp // block_b
    wspec = pl.BlockSpec(memory_space=pltpu.MemorySpace.VMEM)   # small weights
    in_specs = ([pl.BlockSpec((S, block_b, 4), lambda i: (0, i, 0)),
                 pl.BlockSpec((T, block_b, 1), lambda i: (0, i, 0)),
                 pl.BlockSpec((block_b, ATTR_SIZE), lambda i: (i, 0))]
                + [wspec] * 20)
    out_specs = pl.BlockSpec((block_b, OUT_PAD), lambda i: (i, 0))
    return pl.pallas_call(
        deeptte_fused_kernel,
        out_shape=jax.ShapeDtypeStruct((Bp, OUT_PAD), jnp.float32),
        grid=(nb,),
        in_specs=in_specs,
        out_specs=out_specs,
        scratch_shapes=[pltpu.VMEM((T, block_b, 4 * RNN_SIZE), jnp.float32)],
        compiler_params=pltpu.CompilerParams(
            dimension_semantics=("parallel",)),
    )(locs_sb, ldist_tb, attr_t,
      p['wp_t'], p['bp'], p['wc_k'], p['bc'],
      p['wih0_conv'], p['wih0_dist'], p['wih0_attr'], p['whh0_t'], p['b0'],
      p['wl1_t'], p['b1'],
      p['wa_t'], p['ba'],
      p['w1_attr'], p['w1_pool'], p['b1e'],
      p['wr_t'], p['br'], p['wo_pad'], p['bo_pad'])


# ---------------------------------------------------------------------------
# Parameter init (deterministic, xavier-uniform weights, zero biases)
# ---------------------------------------------------------------------------
def init_params(seed=0):
    key = jax.random.PRNGKey(seed)
    keys = iter(jax.random.split(key, 40))

    def xav(shape, fan_in, fan_out):
        lim = (6.0 / (fan_in + fan_out)) ** 0.5
        return jax.random.uniform(next(keys), shape, jnp.float32, -lim, lim)

    D_in = NUM_FILTER + 1 + ATTR_SIZE     # 61
    H = RNN_SIZE
    G = 4 * H
    p = {}
    p['driver_em'] = xav((24000, 8), 24000, 8)
    p['week_em'] = xav((7, 3), 7, 3)
    p['time_em'] = xav((1440, 16), 1440, 16)
    p['state_em'] = xav((2, 2), 2, 2)
    # GeoConv
    p['wp_t'] = xav((4, EMBED_DIM), 4, EMBED_DIM)
    p['bp'] = jnp.zeros((1, EMBED_DIM), jnp.float32)
    p['wc_k'] = xav((KERNEL_SIZE, EMBED_DIM, NUM_FILTER),
                    KERNEL_SIZE * EMBED_DIM, NUM_FILTER)
    p['bc'] = jnp.zeros((1, NUM_FILTER), jnp.float32)
    # LSTM layer 0 (gate order i,f,g,o; W_ih split into conv/dist/attr blocks
    # so the attr contribution can be hoisted out of the time loop)
    wih0 = xav((D_in, G), D_in, G)
    p['wih0_conv'] = wih0[:NUM_FILTER]                     # (32, 512)
    p['wih0_dist'] = wih0[NUM_FILTER:NUM_FILTER + 1]       # (1, 512)
    p['wih0_attr'] = wih0[NUM_FILTER + 1:]                 # (28, 512)
    p['whh0_t'] = xav((H, G), H, G)
    # TODO(synk): b0/b1 represent PyTorch's b_ih + b_hh summed (zeros here).
    p['b0'] = jnp.zeros((1, G), jnp.float32)
    # LSTM layer 1: W_ih and W_hh pre-stacked into a single (2H, 4H) weight so
    # the kernel does one merged K=2H matmul per timestep.
    wih1 = xav((H, G), H, G)
    whh1 = xav((H, G), H, G)
    p['wl1_t'] = jnp.concatenate([wih1, whh1], axis=0)     # (256, 512)
    p['b1'] = jnp.zeros((1, G), jnp.float32)
    # attention
    p['wa_t'] = xav((ATTR_SIZE, H), ATTR_SIZE, H)
    p['ba'] = jnp.zeros((1, H), jnp.float32)
    # EntireEstimator (input2hid split into attr / pooled blocks)
    w1 = xav((H + ATTR_SIZE, FINAL_FC_SIZE), H + ATTR_SIZE, FINAL_FC_SIZE)
    p['w1_attr'] = w1[:ATTR_SIZE]                          # (28, 128)
    p['w1_pool'] = w1[ATTR_SIZE:]                          # (128, 128)
    p['b1e'] = jnp.zeros((1, FINAL_FC_SIZE), jnp.float32)
    p['wr_t'] = xav((NUM_FINAL_FCS, FINAL_FC_SIZE, FINAL_FC_SIZE),
                    FINAL_FC_SIZE, FINAL_FC_SIZE)
    p['br'] = jnp.zeros((NUM_FINAL_FCS, 1, FINAL_FC_SIZE), jnp.float32)
    wo = xav((FINAL_FC_SIZE, 1), FINAL_FC_SIZE, 1)
    # zero-padded to 128 lanes so the kernel's output store is lane-dense
    p['wo_pad'] = jnp.zeros((FINAL_FC_SIZE, OUT_PAD), jnp.float32).at[:, 0:1].set(wo)
    p['bo_pad'] = jnp.zeros((1, OUT_PAD), jnp.float32)
    return p


# ---------------------------------------------------------------------------
# Full DeepTTE forward (eval mode: returns (entire_loss, entire_out))
# ---------------------------------------------------------------------------
def deeptte_forward(params, attr, traj, truth):
    cfg = CONFIG
    dist = (attr['dist'] - cfg['dist_mean']) / cfg['dist_std']
    lngs = (traj['lngs'] - cfg['lngs_mean']) / cfg['lngs_std']
    lats = (traj['lats'] - cfg['lats_mean']) / cfg['lats_std']
    dist_gap = (traj['dist_gap'] - cfg['dist_gap_mean']) / cfg['dist_gap_std']
    B, S = lngs.shape
    T = S - KERNEL_SIZE + 1

    # Attr net (embedding gathers stay in XLA)
    d_emb = params['driver_em'][attr['driverID']]
    w_emb = params['week_em'][attr['weekID']]
    t_emb = params['time_em'][attr['timeID']]
    attr_t = jnp.concatenate([d_emb, w_emb, t_emb, dist[:, None]], axis=1)  # (B, 28)

    # GeoConv inputs, time-major (S, B, 4) so the kernel's batch grid blocks
    # cleanly and all in-kernel slices are sublane-aligned.
    st_emb = params['state_em'][traj['states']]                             # (B, S, 2)
    locs_sb = jnp.concatenate(
        [lngs.T[:, :, None], lats.T[:, :, None], jnp.transpose(st_emb, (1, 0, 2))],
        axis=2)                                                             # (S, B, 4)

    # get_local_seq on the (already-normalized) dist_gap, re-normalized again,
    # exactly as in the reference code.
    local_dist = ((dist_gap[:, KERNEL_SIZE - 1:] - dist_gap[:, :T])
                  - cfg['dist_gap_mean']) / cfg['dist_gap_std']             # (B, T)
    ldist_tb = local_dist.T[:, :, None]                                     # (T, B, 1)

    # Pad batch to a multiple of 8 sublanes; padded rows are sliced off below.
    Bp = pl.cdiv(B, BATCH_BLOCK) * BATCH_BLOCK
    pad = Bp - B
    attr_p = jnp.pad(attr_t, ((0, pad), (0, 0)))
    locs_p = jnp.pad(locs_sb, ((0, 0), (0, pad), (0, 0)))
    ldist_p = jnp.pad(ldist_tb, ((0, 0), (0, pad), (0, 0)))

    out_pad = deeptte_fused(locs_p, ldist_p, attr_p, params)                 # (Bp, 128)
    entire_out = out_pad[:B, :1] * cfg['time_std'] + cfg['time_mean']
    label = truth.reshape(-1, 1)
    entire_loss = jnp.mean(jnp.abs(entire_out - label) / label)
    # TODO(synk): pack_padded_sequence with variable lengths not implemented;
    # demo uses full-length sequences, for which packing/unpacking is a no-op.
    # TODO(synk): training branch (LocalEstimator local loss on packed per-step
    # hiddens) not implemented; eval-mode return only.
    return entire_loss, entire_out


if __name__ == "__main__":
    params = init_params(0)

    key = jax.random.PRNGKey(0)
    B, S = 2, 8
    ks = iter(jax.random.split(key, 10))
    attr = {
        'driverID': jax.random.randint(next(ks), (B,), 0, 24000),
        'weekID': jax.random.randint(next(ks), (B,), 0, 7),
        'timeID': jax.random.randint(next(ks), (B,), 0, 1440),
        'dist': jax.random.uniform(next(ks), (B,), jnp.float32, 50.0, 200.0),
    }
    traj = {
        'lngs': 116.0 + 0.1 * jax.random.normal(next(ks), (B, S), jnp.float32),
        'lats': 39.9 + 0.1 * jax.random.normal(next(ks), (B, S), jnp.float32),
        'states': jax.random.randint(next(ks), (B, S), 0, 2),
        'dist_gap': jax.random.uniform(next(ks), (B, S), jnp.float32, 1.0, 20.0),
    }
    truth = jax.random.uniform(next(ks), (B,), jnp.float32, 500.0, 2000.0)

    fwd = jax.jit(deeptte_forward)
    loss, entire_out = fwd(params, attr, traj, truth)
    jax.block_until_ready((loss, entire_out))
    assert entire_out.shape == (B, 1)
    assert bool(jnp.isfinite(loss)) and bool(jnp.all(jnp.isfinite(entire_out)))
    print("KERNEL_OK")
</pallas_src>

<mosaic_0001>
module attributes {stable_mosaic.version = 11 : i64} {
  func.func @deeptte_fused_kernel(%arg0: i32, %arg1: memref<8x8x4xf32, #tpu.memory_space<vmem>>, %arg2: memref<6x8x1xf32, #tpu.memory_space<vmem>>, %arg3: memref<8x28xf32, #tpu.memory_space<vmem>>, %arg4: memref<4x16xf32, #tpu.memory_space<vmem>>, %arg5: memref<1x16xf32, #tpu.memory_space<vmem>>, %arg6: memref<3x16x32xf32, #tpu.memory_space<vmem>>, %arg7: memref<1x32xf32, #tpu.memory_space<vmem>>, %arg8: memref<32x512xf32, #tpu.memory_space<vmem>>, %arg9: memref<1x512xf32, #tpu.memory_space<vmem>>, %arg10: memref<28x512xf32, #tpu.memory_space<vmem>>, %arg11: memref<128x512xf32, #tpu.memory_space<vmem>>, %arg12: memref<1x512xf32, #tpu.memory_space<vmem>>, %arg13: memref<256x512xf32, #tpu.memory_space<vmem>>, %arg14: memref<1x512xf32, #tpu.memory_space<vmem>>, %arg15: memref<28x128xf32, #tpu.memory_space<vmem>>, %arg16: memref<1x128xf32, #tpu.memory_space<vmem>>, %arg17: memref<28x128xf32, #tpu.memory_space<vmem>>, %arg18: memref<128x128xf32, #tpu.memory_space<vmem>>, %arg19: memref<1x128xf32, #tpu.memory_space<vmem>>, %arg20: memref<3x128x128xf32, #tpu.memory_space<vmem>>, %arg21: memref<3x1x128xf32, #tpu.memory_space<vmem>>, %arg22: memref<128x128xf32, #tpu.memory_space<vmem>>, %arg23: memref<1x128xf32, #tpu.memory_space<vmem>>, %arg24: memref<8x128xf32, #tpu.memory_space<vmem>>, %arg25: memref<6x8x512xf32, #tpu.memory_space<vmem>>) attributes {dimension_semantics = [#tpu.dimension_semantics<parallel>], iteration_bounds = array<i64: 1>, scalar_prefetch = 0 : i64, scratch_operands = 1 : i64, tpu.core_type = #tpu.core_type<tc>, window_params = [{transform_indices = @transform_0, window_bounds = array<i64: 8, 8, 4>}, {transform_indices = @transform_1, window_bounds = array<i64: 6, 8, 1>}, {transform_indices = @transform_2, window_bounds = array<i64: 8, 28>}, {pipeline_mode = #tpu.pipeline_mode<synchronous>, transform_indices = @transform_3, window_bounds = array<i64: 4, 16>}, {pipeline_mode = #tpu.pipeline_mode<synchronous>, transform_indices = @transform_4, window_bounds = array<i64: 1, 16>}, {pipeline_mode = #tpu.pipeline_mode<synchronous>, transform_indices = @transform_5, window_bounds = array<i64: 3, 16, 32>}, {pipeline_mode = #tpu.pipeline_mode<synchronous>, transform_indices = @transform_6, window_bounds = array<i64: 1, 32>}, {pipeline_mode = #tpu.pipeline_mode<synchronous>, transform_indices = @transform_7, window_bounds = array<i64: 32, 512>}, {pipeline_mode = #tpu.pipeline_mode<synchronous>, transform_indices = @transform_8, window_bounds = array<i64: 1, 512>}, {pipeline_mode = #tpu.pipeline_mode<synchronous>, transform_indices = @transform_9, window_bounds = array<i64: 28, 512>}, {pipeline_mode = #tpu.pipeline_mode<synchronous>, transform_indices = @transform_10, window_bounds = array<i64: 128, 512>}, {pipeline_mode = #tpu.pipeline_mode<synchronous>, transform_indices = @transform_11, window_bounds = array<i64: 1, 512>}, {pipeline_mode = #tpu.pipeline_mode<synchronous>, transform_indices = @transform_12, window_bounds = array<i64: 256, 512>}, {pipeline_mode = #tpu.pipeline_mode<synchronous>, transform_indices = @transform_13, window_bounds = array<i64: 1, 512>}, {pipeline_mode = #tpu.pipeline_mode<synchronous>, transform_indices = @transform_14, window_bounds = array<i64: 28, 128>}, {pipeline_mode = #tpu.pipeline_mode<synchronous>, transform_indices = @transform_15, window_bounds = array<i64: 1, 128>}, {pipeline_mode = #tpu.pipeline_mode<synchronous>, transform_indices = @transform_16, window_bounds = array<i64: 28, 128>}, {pipeline_mode = #tpu.pipeline_mode<synchronous>, transform_indices = @transform_17, window_bounds = array<i64: 128, 128>}, {pipeline_mode = #tpu.pipeline_mode<synchronous>, transform_indices = @transform_18, window_bounds = array<i64: 1, 128>}, {pipeline_mode = #tpu.pipeline_mode<synchronous>, transform_indices = @transform_19, window_bounds = array<i64: 3, 128, 128>}, {pipeline_mode = #tpu.pipeline_mode<synchronous>, transform_indices = @transform_20, window_bounds = array<i64: 3, 1, 128>}, {pipeline_mode = #tpu.pipeline_mode<synchronous>, transform_indices = @transform_21, window_bounds = array<i64: 128, 128>}, {pipeline_mode = #tpu.pipeline_mode<synchronous>, transform_indices = @transform_22, window_bounds = array<i64: 1, 128>}, {transform_indices = @transform_23, window_bounds = array<i64: 8, 128>}]} {
    %c0 = arith.constant 0 : index
    %c0_0 = arith.constant 0 : index
    %0 = vector.load %arg3[%c0, %c0_0] : memref<8x28xf32, #tpu.memory_space<vmem>>, vector<8x28xf32>
    %c0_1 = arith.constant 0 : index
    %c0_2 = arith.constant 0 : index
    %c0_3 = arith.constant 0 : index
    %1 = vector.load %arg1[%c0_1, %c0_2, %c0_3] : memref<8x8x4xf32, #tpu.memory_space<vmem>>, vector<8x8x4xf32>
    %2 = vector.shape_cast %1 : vector<8x8x4xf32> to vector<64x4xf32>
    %c0_4 = arith.constant 0 : index
    %c0_5 = arith.constant 0 : index
    %3 = vector.load %arg4[%c0_4, %c0_5] : memref<4x16xf32, #tpu.memory_space<vmem>>, vector<4x16xf32>
    %cst = arith.constant dense<0.000000e+00> : vector<64x16xf32>
    %4 = tpu.matmul %2, %3, %cst {dimension_numbers = #tpu.dot_dimension_numbers<[1], [0], [0], [1], [0, 0, 1, 1], [], []>} : vector<64x4xf32>, vector<4x16xf32>, vector<64x16xf32> -> vector<64x16xf32>
    %c0_6 = arith.constant 0 : index
    %c0_7 = arith.constant 0 : index
    %5 = vector.load %arg5[%c0_6, %c0_7] : memref<1x16xf32, #tpu.memory_space<vmem>>, vector<1x16xf32>
    %6 = vector.broadcast %5 : vector<1x16xf32> to vector<64x16xf32>
    %7 = arith.addf %4, %6 : vector<64x16xf32>
    %8 = math.tanh %7 : vector<64x16xf32>
    %cst_8 = arith.constant 0.000000e+00 : f32
    %9 = vector.broadcast %cst_8 : f32 to vector<48x32xf32>
    %10 = vector.extract_strided_slice %8 {offsets = [0, 0], sizes = [48, 16], strides = [1, 1]} : vector<64x16xf32> to vector<48x16xf32>
    %c0_9 = arith.constant 0 : index
    %c0_10 = arith.constant 0 : index
    %c0_11 = arith.constant 0 : index
    %11 = vector.load %arg6[%c0_9, %c0_10, %c0_11] : memref<3x16x32xf32, #tpu.memory_space<vmem>>, vector<1x16x32xf32>
    %12 = vector.shape_cast %11 : vector<1x16x32xf32> to vector<16x32xf32>
    %cst_12 = arith.constant dense<0.000000e+00> : vector<48x32xf32>
    %13 = tpu.matmul %10, %12, %cst_12 {dimension_numbers = #tpu.dot_dimension_numbers<[1], [0], [0], [1], [0, 0, 1, 1], [], []>} : vector<48x16xf32>, vector<16x32xf32>, vector<48x32xf32> -> vector<48x32xf32>
    %14 = arith.addf %9, %13 : vector<48x32xf32>
    %15 = vector.extract_strided_slice %8 {offsets = [8, 0], sizes = [48, 16], strides = [1, 1]} : vector<64x16xf32> to vector<48x16xf32>
    %c1 = arith.constant 1 : index
    %c0_13 = arith.constant 0 : index
    %c0_14 = arith.constant 0 : index
    %16 = vector.load %arg6[%c1, %c0_13, %c0_14] : memref<3x16x32xf32, #tpu.memory_space<vmem>>, vector<1x16x32xf32>
    %17 = vector.shape_cast %16 : vector<1x16x32xf32> to vector<16x32xf32>
    %cst_15 = arith.constant dense<0.000000e+00> : vector<48x32xf32>
    %18 = tpu.matmul %15, %17, %cst_15 {dimension_numbers = #tpu.dot_dimension_numbers<[1], [0], [0], [1], [0, 0, 1, 1], [], []>} : vector<48x16xf32>, vector<16x32xf32>, vector<48x32xf32> -> vector<48x32xf32>
    %19 = arith.addf %14, %18 : vector<48x32xf32>
    %20 = vector.extract_strided_slice %8 {offsets = [16, 0], sizes = [48, 16], strides = [1, 1]} : vector<64x16xf32> to vector<48x16xf32>
    %c2 = arith.constant 2 : index
    %c0_16 = arith.constant 0 : index
    %c0_17 = arith.constant 0 : index
    %21 = vector.load %arg6[%c2, %c0_16, %c0_17] : memref<3x16x32xf32, #tpu.memory_space<vmem>>, vector<1x16x32xf32>
    %22 = vector.shape_cast %21 : vector<1x16x32xf32> to vector<16x32xf32>
    %cst_18 = arith.constant dense<0.000000e+00> : vector<48x32xf32>
    %23 = tpu.matmul %20, %22, %cst_18 {dimension_numbers = #tpu.dot_dimension_numbers<[1], [0], [0], [1], [0, 0, 1, 1], [], []>} : vector<48x16xf32>, vector<16x32xf32>, vector<48x32xf32> -> vector<48x32xf32>
    %24 = arith.addf %19, %23 : vector<48x32xf32>
    %c0_19 = arith.constant 0 : index
    %c0_20 = arith.constant 0 : index
    %25 = vector.load %arg7[%c0_19, %c0_20] : memref<1x32xf32, #tpu.memory_space<vmem>>, vector<1x32xf32>
    %26 = vector.broadcast %25 : vector<1x32xf32> to vector<48x32xf32>
    %27 = arith.addf %24, %26 : vector<48x32xf32>
    %cst_21 = arith.constant 0.000000e+00 : f32
    %28 = vector.broadcast %cst_21 : f32 to vector<48x32xf32>
    %29 = arith.cmpf ogt, %27, %28 : vector<48x32xf32>
    %cst_22 = arith.constant 0.000000e+00 : f32
    %30 = vector.broadcast %cst_22 : f32 to vector<48x32xf32>
    %31 = arith.minimumf %27, %30 : vector<48x32xf32>
    %32 = math.exp %31 : vector<48x32xf32>
    %cst_23 = arith.constant 1.000000e+00 : f32
    %33 = vector.broadcast %cst_23 : f32 to vector<48x32xf32>
    %34 = arith.subf %32, %33 : vector<48x32xf32>
    %35 = arith.select %29, %27, %34 : vector<48x32xi1>, vector<48x32xf32>
    %c0_24 = arith.constant 0 : index
    %c0_25 = arith.constant 0 : index
    %c0_26 = arith.constant 0 : index
    %36 = vector.load %arg2[%c0_24, %c0_25, %c0_26] : memref<6x8x1xf32, #tpu.memory_space<vmem>>, vector<6x8x1xf32>
    %37 = vector.shape_cast %36 : vector<6x8x1xf32> to vector<48x1xf32>
    %c0_27 = arith.constant 0 : index
    %c0_28 = arith.constant 0 : index
    %38 = vector.load %arg8[%c0_27, %c0_28] : memref<32x512xf32, #tpu.memory_space<vmem>>, vector<32x512xf32>
    %cst_29 = arith.constant dense<0.000000e+00> : vector<48x512xf32>
    %39 = tpu.matmul %35, %38, %cst_29 {dimension_numbers = #tpu.dot_dimension_numbers<[1], [0], [0], [1], [0, 0, 1, 1], [], []>} : vector<48x32xf32>, vector<32x512xf32>, vector<48x512xf32> -> vector<48x512xf32>
    %c0_30 = arith.constant 0 : index
    %c0_31 = arith.constant 0 : index
    %40 = vector.load %arg9[%c0_30, %c0_31] : memref<1x512xf32, #tpu.memory_space<vmem>>, vector<1x512xf32>
    %41 = vector.broadcast %37 : vector<48x1xf32> to vector<48x512xf32>
    %42 = vector.broadcast %40 : vector<1x512xf32> to vector<48x512xf32>
    %43 = arith.mulf %41, %42 : vector<48x512xf32>
    %44 = arith.addf %39, %43 : vector<48x512xf32>
    %c0_32 = arith.constant 0 : index
    %c0_33 = arith.constant 0 : index
    %45 = vector.load %arg10[%c0_32, %c0_33] : memref<28x512xf32, #tpu.memory_space<vmem>>, vector<28x512xf32>
    %cst_34 = arith.constant dense<0.000000e+00> : vector<8x512xf32>
    %46 = tpu.matmul %0, %45, %cst_34 {dimension_numbers = #tpu.dot_dimension_numbers<[1], [0], [0], [1], [0, 0, 1, 1], [], []>} : vector<8x28xf32>, vector<28x512xf32>, vector<8x512xf32> -> vector<8x512xf32>
    %c0_35 = arith.constant 0 : index
    %c0_36 = arith.constant 0 : index
    %47 = vector.load %arg12[%c0_35, %c0_36] : memref<1x512xf32, #tpu.memory_space<vmem>>, vector<1x512xf32>
    %48 = vector.broadcast %47 : vector<1x512xf32> to vector<8x512xf32>
    %49 = arith.addf %46, %48 : vector<8x512xf32>
    %50 = vector.shape_cast %44 : vector<48x512xf32> to vector<6x8x512xf32>
    %51 = vector.shape_cast %49 : vector<8x512xf32> to vector<1x8x512xf32>
    %52 = vector.broadcast %51 : vector<1x8x512xf32> to vector<6x8x512xf32>
    %53 = arith.addf %50, %52 : vector<6x8x512xf32>
    %c0_37 = arith.constant 0 : index
    %c0_38 = arith.constant 0 : index
    %c0_39 = arith.constant 0 : index
    %54 = vector.load %arg25[%c0_37, %c0_38, %c0_39] : memref<6x8x512xf32, #tpu.memory_space<vmem>>, vector<6x8x512xf32>
    tpu.vector_store %arg25[%c0_37, %c0_38, %c0_39], %53 {strides = array<i32>} : memref<6x8x512xf32, #tpu.memory_space<vmem>>, vector<6x8x512xf32>,
    %c0_40 = arith.constant 0 : index
    %c0_41 = arith.constant 0 : index
    %55 = vector.load %arg15[%c0_40, %c0_41] : memref<28x128xf32, #tpu.memory_space<vmem>>, vector<28x128xf32>
    %cst_42 = arith.constant dense<0.000000e+00> : vector<8x128xf32>
    %56 = tpu.matmul %0, %55, %cst_42 {dimension_numbers = #tpu.dot_dimension_numbers<[1], [0], [0], [1], [0, 0, 1, 1], [], []>} : vector<8x28xf32>, vector<28x128xf32>, vector<8x128xf32> -> vector<8x128xf32>
    %c0_43 = arith.constant 0 : index
    %c0_44 = arith.constant 0 : index
    %57 = vector.load %arg16[%c0_43, %c0_44] : memref<1x128xf32, #tpu.memory_space<vmem>>, vector<1x128xf32>
    %58 = vector.broadcast %57 : vector<1x128xf32> to vector<8x128xf32>
    %59 = arith.addf %56, %58 : vector<8x128xf32>
    %60 = math.tanh %59 : vector<8x128xf32>
    %cst_45 = arith.constant 0.000000e+00 : f32
    %61 = vector.broadcast %cst_45 : f32 to vector<8x128xf32>
    %cst_46 = arith.constant 0xFF800000 : f32
    %62 = vector.broadcast %cst_46 : f32 to vector<8x1xf32>
    %cst_47 = arith.constant 0.000000e+00 : f32
    %63 = vector.broadcast %cst_47 : f32 to vector<8x1xf32>
    %c0_i32 = arith.constant 0 : i32
    %64 = arith.index_cast %c0_i32 : i32 to index
    %c0_48 = arith.constant 0 : index
    %c0_49 = arith.constant 0 : index
    %65 = vector.load %arg25[%64, %c0_48, %c0_49] : memref<6x8x512xf32, #tpu.memory_space<vmem>>, vector<1x8x512xf32>
    %66 = vector.shape_cast %65 : vector<1x8x512xf32> to vector<8x512xf32>
    %c0_50 = arith.constant 0 : index
    %c0_51 = arith.constant 0 : index
    %67 = vector.load %arg11[%c0_50, %c0_51] : memref<128x512xf32, #tpu.memory_space<vmem>>, vector<128x512xf32>
    %cst_52 = arith.constant dense<0.000000e+00> : vector<8x512xf32>
    %68 = tpu.matmul %61, %67, %cst_52 {dimension_numbers = #tpu.dot_dimension_numbers<[1], [0], [0], [1], [0, 0, 1, 1], [], []>} : vector<8x128xf32>, vector<128x512xf32>, vector<8x512xf32> -> vector<8x512xf32>
    %69 = arith.addf %66, %68 : vector<8x512xf32>
    %70 = vector.extract_strided_slice %69 {offsets = [0, 0], sizes = [8, 128], strides = [1, 1]} : vector<8x512xf32> to vector<8x128xf32>
    %cst_53 = arith.constant 5.000000e-01 : f32
    %71 = vector.broadcast %cst_53 : f32 to vector<8x128xf32>
    %72 = arith.mulf %71, %70 : vector<8x128xf32>
    %73 = math.tanh %72 : vector<8x128xf32>
    %cst_54 = arith.constant 1.000000e+00 : f32
    %74 = vector.broadcast %cst_54 : f32 to vector<8x128xf32>
    %75 = arith.addf %74, %73 : vector<8x128xf32>
    %cst_55 = arith.constant 5.000000e-01 : f32
    %76 = vector.broadcast %cst_55 : f32 to vector<8x128xf32>
    %77 = arith.mulf %76, %75 : vector<8x128xf32>
    %78 = vector.extract_strided_slice %69 {offsets = [0, 128], sizes = [8, 128], strides = [1, 1]} : vector<8x512xf32> to vector<8x128xf32>
    %cst_56 = arith.constant 5.000000e-01 : f32
    %79 = vector.broadcast %cst_56 : f32 to vector<8x128xf32>
    %80 = arith.mulf %79, %78 : vector<8x128xf32>
    %81 = math.tanh %80 : vector<8x128xf32>
    %cst_57 = arith.constant 1.000000e+00 : f32
    %82 = vector.broadcast %cst_57 : f32 to vector<8x128xf32>
    %83 = arith.addf %82, %81 : vector<8x128xf32>
    %cst_58 = arith.constant 5.000000e-01 : f32
    %84 = vector.broadcast %cst_58 : f32 to vector<8x128xf32>
    %85 = arith.mulf %84, %83 : vector<8x128xf32>
    %86 = vector.extract_strided_slice %69 {offsets = [0, 256], sizes = [8, 128], strides = [1, 1]} : vector<8x512xf32> to vector<8x128xf32>
    %87 = math.tanh %86 : vector<8x128xf32>
    %88 = vector.extract_strided_slice %69 {offsets = [0, 384], sizes = [8, 128], strides = [1, 1]} : vector<8x512xf32> to vector<8x128xf32>
    %cst_59 = arith.constant 5.000000e-01 : f32
    %89 = vector.broadcast %cst_59 : f32 to vector<8x128xf32>
    %90 = arith.mulf %89, %88 : vector<8x128xf32>
    %91 = math.tanh %90 : vector<8x128xf32>
    %cst_60 = arith.constant 1.000000e+00 : f32
    %92 = vector.broadcast %cst_60 : f32 to vector<8x128xf32>
    %93 = arith.addf %92, %91 : vector<8x128xf32>
    %cst_61 = arith.constant 5.000000e-01 : f32
    %94 = vector.broadcast %cst_61 : f32 to vector<8x128xf32>
    %95 = arith.mulf %94, %93 : vector<8x128xf32>
    %96 = arith.mulf %85, %61 : vector<8x128xf32>
    %97 = arith.mulf %77, %87 : vector<8x128xf32>
    %98 = arith.addf %96, %97 : vector<8x128xf32>
    %99 = math.tanh %98 : vector<8x128xf32>
    %100 = arith.mulf %95, %99 : vector<8x128xf32>
    %101 = tpu.concatenate %100, %61 in 1 : vector<8x128xf32>, vector<8x128xf32> -> vector<8x256xf32>
    %c0_62 = arith.constant 0 : index
    %c0_63 = arith.constant 0 : index
    %102 = vector.load %arg13[%c0_62, %c0_63] : memref<256x512xf32, #tpu.memory_space<vmem>>, vector<256x512xf32>
    %cst_64 = arith.constant dense<0.000000e+00> : vector<8x512xf32>
    %103 = tpu.matmul %101, %102, %cst_64 {dimension_numbers = #tpu.dot_dimension_numbers<[1], [0], [0], [1], [0, 0, 1, 1], [], []>} : vector<8x256xf32>, vector<256x512xf32>, vector<8x512xf32> -> vector<8x512xf32>
    %c0_65 = arith.constant 0 : index
    %c0_66 = arith.constant 0 : index
    %104 = vector.load %arg14[%c0_65, %c0_66] : memref<1x512xf32, #tpu.memory_space<vmem>>, vector<1x512xf32>
    %105 = vector.broadcast %104 : vector<1x512xf32> to vector<8x512xf32>
    %106 = arith.addf %103, %105 : vector<8x512xf32>
    %107 = vector.extract_strided_slice %106 {offsets = [0, 0], sizes = [8, 128], strides = [1, 1]} : vector<8x512xf32> to vector<8x128xf32>
    %cst_67 = arith.constant 5.000000e-01 : f32
    %108 = vector.broadcast %cst_67 : f32 to vector<8x128xf32>
    %109 = arith.mulf %108, %107 : vector<8x128xf32>
    %110 = math.tanh %109 : vector<8x128xf32>
    %cst_68 = arith.constant 1.000000e+00 : f32
    %111 = vector.broadcast %cst_68 : f32 to vector<8x128xf32>
    %112 = arith.addf %111, %110 : vector<8x128xf32>
    %cst_69 = arith.constant 5.000000e-01 : f32
    %113 = vector.broadcast %cst_69 : f32 to vector<8x128xf32>
    %114 = arith.mulf %113, %112 : vector<8x128xf32>
    %115 = vector.extract_strided_slice %106 {offsets = [0, 128], sizes = [8, 128], strides = [1, 1]} : vector<8x512xf32> to vector<8x128xf32>
    %cst_70 = arith.constant 5.000000e-01 : f32
    %116 = vector.broadcast %cst_70 : f32 to vector<8x128xf32>
    %117 = arith.mulf %116, %115 : vector<8x128xf32>
    %118 = math.tanh %117 : vector<8x128xf32>
    %cst_71 = arith.constant 1.000000e+00 : f32
    %119 = vector.broadcast %cst_71 : f32 to vector<8x128xf32>
    %120 = arith.addf %119, %118 : vector<8x128xf32>
    %cst_72 = arith.constant 5.000000e-01 : f32
    %121 = vector.broadcast %cst_72 : f32 to vector<8x128xf32>
    %122 = arith.mulf %121, %120 : vector<8x128xf32>
    %123 = vector.extract_strided_slice %106 {offsets = [0, 256], sizes = [8, 128], strides = [1, 1]} : vector<8x512xf32> to vector<8x128xf32>
    %124 = math.tanh %123 : vector<8x128xf32>
    %125 = vector.extract_strided_slice %106 {offsets = [0, 384], sizes = [8, 128], strides = [1, 1]} : vector<8x512xf32> to vector<8x128xf32>
    %cst_73 = arith.constant 5.000000e-01 : f32
    %126 = vector.broadcast %cst_73 : f32 to vector<8x128xf32>
    %127 = arith.mulf %126, %125 : vector<8x128xf32>
    %128 = math.tanh %127 : vector<8x128xf32>
    %cst_74 = arith.constant 1.000000e+00 : f32
    %129 = vector.broadcast %cst_74 : f32 to vector<8x128xf32>
    %130 = arith.addf %129, %128 : vector<8x128xf32>
    %cst_75 = arith.constant 5.000000e-01 : f32
    %131 = vector.broadcast %cst_75 : f32 to vector<8x128xf32>
    %132 = arith.mulf %131, %130 : vector<8x128xf32>
    %133 = arith.mulf %122, %61 : vector<8x128xf32>
    %134 = arith.mulf %114, %124 : vector<8x128xf32>
    %135 = arith.addf %133, %134 : vector<8x128xf32>
    %136 = math.tanh %135 : vector<8x128xf32>
    %137 = arith.mulf %132, %136 : vector<8x128xf32>
    %138 = arith.mulf %137, %60 : vector<8x128xf32>
    %cst_76 = arith.constant dense<0.000000e+00> : vector<8xf32>
    %139 = vector.multi_reduction <add>, %138, %cst_76 [1] : vector<8x128xf32> to vector<8xf32>
    %140 = vector.shape_cast %139 : vector<8xf32> to vector<8x1xf32>
    %cst_77 = arith.constant 0.000000e+00 : f32
    %141 = vector.broadcast %cst_77 : f32 to vector<8x1xf32>
    %142 = arith.subf %141, %140 : vector<8x1xf32>
    %143 = arith.maximumf %62, %142 : vector<8x1xf32>
    %144 = arith.subf %62, %143 : vector<8x1xf32>
    %145 = math.exp %144 : vector<8x1xf32>
    %146 = arith.subf %142, %143 : vector<8x1xf32>
    %147 = math.exp %146 : vector<8x1xf32>
    %148 = arith.mulf %63, %145 : vector<8x1xf32>
    %149 = arith.addf %148, %147 : vector<8x1xf32>
    %150 = vector.broadcast %145 : vector<8x1xf32> to vector<8x128xf32>
    %151 = arith.mulf %61, %150 : vector<8x128xf32>
    %152 = vector.broadcast %147 : vector<8x1xf32> to vector<8x128xf32>
    %153 = arith.mulf %152, %137 : vector<8x128xf32>
    %154 = arith.addf %151, %153 : vector<8x128xf32>
    %c1_i32 = arith.constant 1 : i32
    %155 = arith.index_cast %c1_i32 : i32 to index
    %c0_78 = arith.constant 0 : index
    %c0_79 = arith.constant 0 : index
    %156 = vector.load %arg25[%155, %c0_78, %c0_79] : memref<6x8x512xf32, #tpu.memory_space<vmem>>, vector<1x8x512xf32>
    %157 = vector.shape_cast %156 : vector<1x8x512xf32> to vector<8x512xf32>
    %c0_80 = arith.constant 0 : index
    %c0_81 = arith.constant 0 : index
    %158 = vector.load %arg11[%c0_80, %c0_81] : memref<128x512xf32, #tpu.memory_space<vmem>>, vector<128x512xf32>
    %cst_82 = arith.constant dense<0.000000e+00> : vector<8x512xf32>
    %159 = tpu.matmul %100, %158, %cst_82 {dimension_numbers = #tpu.dot_dimension_numbers<[1], [0], [0], [1], [0, 0, 1, 1], [], []>} : vector<8x128xf32>, vector<128x512xf32>, vector<8x512xf32> -> vector<8x512xf32>
    %160 = arith.addf %157, %159 : vector<8x512xf32>
    %161 = vector.extract_strided_slice %160 {offsets = [0, 0], sizes = [8, 128], strides = [1, 1]} : vector<8x512xf32> to vector<8x128xf32>
    %cst_83 = arith.constant 5.000000e-01 : f32
    %162 = vector.broadcast %cst_83 : f32 to vector<8x128xf32>
    %163 = arith.mulf %162, %161 : vector<8x128xf32>
    %164 = math.tanh %163 : vector<8x128xf32>
    %cst_84 = arith.constant 1.000000e+00 : f32
    %165 = vector.broadcast %cst_84 : f32 to vector<8x128xf32>
    %166 = arith.addf %165, %164 : vector<8x128xf32>
    %cst_85 = arith.constant 5.000000e-01 : f32
    %167 = vector.broadcast %cst_85 : f32 to vector<8x128xf32>
    %168 = arith.mulf %167, %166 : vector<8x128xf32>
    %169 = vector.extract_strided_slice %160 {offsets = [0, 128], sizes = [8, 128], strides = [1, 1]} : vector<8x512xf32> to vector<8x128xf32>
    %cst_86 = arith.constant 5.000000e-01 : f32
    %170 = vector.broadcast %cst_86 : f32 to vector<8x128xf32>
    %171 = arith.mulf %170, %169 : vector<8x128xf32>
    %172 = math.tanh %171 : vector<8x128xf32>
    %cst_87 = arith.constant 1.000000e+00 : f32
    %173 = vector.broadcast %cst_87 : f32 to vector<8x128xf32>
    %174 = arith.addf %173, %172 : vector<8x128xf32>
    %cst_88 = arith.constant 5.000000e-01 : f32
    %175 = vector.broadcast %cst_88 : f32 to vector<8x128xf32>
    %176 = arith.mulf %175, %174 : vector<8x128xf32>
    %177 = vector.extract_strided_slice %160 {offsets = [0, 256], sizes = [8, 128], strides = [1, 1]} : vector<8x512xf32> to vector<8x128xf32>
    %178 = math.tanh %177 : vector<8x128xf32>
    %179 = vector.extract_strided_slice %160 {offsets = [0, 384], sizes = [8, 128], strides = [1, 1]} : vector<8x512xf32> to vector<8x128xf32>
    %cst_89 = arith.constant 5.000000e-01 : f32
    %180 = vector.broadcast %cst_89 : f32 to vector<8x128xf32>
    %181 = arith.mulf %180, %179 : vector<8x128xf32>
    %182 = math.tanh %181 : vector<8x128xf32>
    %cst_90 = arith.constant 1.000000e+00 : f32
    %183 = vector.broadcast %cst_90 : f32 to vector<8x128xf32>
    %184 = arith.addf %183, %182 : vector<8x128xf32>
    %cst_91 = arith.constant 5.000000e-01 : f32
    %185 = vector.broadcast %cst_91 : f32 to vector<8x128xf32>
    %186 = arith.mulf %185, %184 : vector<8x128xf32>
    %187 = arith.mulf %176, %98 : vector<8x128xf32>
    %188 = arith.mulf %168, %178 : vector<8x128xf32>
    %189 = arith.addf %187, %188 : vector<8x128xf32>
    %190 = math.tanh %189 : vector<8x128xf32>
    %191 = arith.mulf %186, %190 : vector<8x128xf32>
    %192 = tpu.concatenate %191, %137 in 1 : vector<8x128xf32>, vector<8x128xf32> -> vector<8x256xf32>
    %c0_92 = arith.constant 0 : index
    %c0_93 = arith.constant 0 : index
    %193 = vector.load %arg13[%c0_92, %c0_93] : memref<256x512xf32, #tpu.memory_space<vmem>>, vector<256x512xf32>
    %cst_94 = arith.constant dense<0.000000e+00> : vector<8x512xf32>
    %194 = tpu.matmul %192, %193, %cst_94 {dimension_numbers = #tpu.dot_dimension_numbers<[1], [0], [0], [1], [0, 0, 1, 1], [], []>} : vector<8x256xf32>, vector<256x512xf32>, vector<8x512xf32> -> vector<8x512xf32>
    %c0_95 = arith.constant 0 : index
    %c0_96 = arith.constant 0 : index
    %195 = vector.load %arg14[%c0_95, %c0_96] : memref<1x512xf32, #tpu.memory_space<vmem>>, vector<1x512xf32>
    %196 = vector.broadcast %195 : vector<1x512xf32> to vector<8x512xf32>
    %197 = arith.addf %194, %196 : vector<8x512xf32>
    %198 = vector.extract_strided_slice %197 {offsets = [0, 0], sizes = [8, 128], strides = [1, 1]} : vector<8x512xf32> to vector<8x128xf32>
    %cst_97 = arith.constant 5.000000e-01 : f32
    %199 = vector.broadcast %cst_97 : f32 to vector<8x128xf32>
    %200 = arith.mulf %199, %198 : vector<8x128xf32>
    %201 = math.tanh %200 : vector<8x128xf32>
    %cst_98 = arith.constant 1.000000e+00 : f32
    %202 = vector.broadcast %cst_98 : f32 to vector<8x128xf32>
    %203 = arith.addf %202, %201 : vector<8x128xf32>
    %cst_99 = arith.constant 5.000000e-01 : f32
    %204 = vector.broadcast %cst_99 : f32 to vector<8x128xf32>
    %205 = arith.mulf %204, %203 : vector<8x128xf32>
    %206 = vector.extract_strided_slice %197 {offsets = [0, 128], sizes = [8, 128], strides = [1, 1]} : vector<8x512xf32> to vector<8x128xf32>
    %cst_100 = arith.constant 5.000000e-01 : f32
    %207 = vector.broadcast %cst_100 : f32 to vector<8x128xf32>
    %208 = arith.mulf %207, %206 : vector<8x128xf32>
    %209 = math.tanh %208 : vector<8x128xf32>
    %cst_101 = arith.constant 1.000000e+00 : f32
    %210 = vector.broadcast %cst_101 : f32 to vector<8x128xf32>
    %211 = arith.addf %210, %209 : vector<8x128xf32>
    %cst_102 = arith.constant 5.000000e-01 : f32
    %212 = vector.broadcast %cst_102 : f32 to vector<8x128xf32>
    %213 = arith.mulf %212, %211 : vector<8x128xf32>
    %214 = vector.extract_strided_slice %197 {offsets = [0, 256], sizes = [8, 128], strides = [1, 1]} : vector<8x512xf32> to vector<8x128xf32>
    %215 = math.tanh %214 : vector<8x128xf32>
    %216 = vector.extract_strided_slice %197 {offsets = [0, 384], sizes = [8, 128], strides = [1, 1]} : vector<8x512xf32> to vector<8x128xf32>
    %cst_103 = arith.constant 5.000000e-01 : f32
    %217 = vector.broadcast %cst_103 : f32 to vector<8x128xf32>
    %218 = arith.mulf %217, %216 : vector<8x128xf32>
    %219 = math.tanh %218 : vector<8x128xf32>
    %cst_104 = arith.constant 1.000000e+00 : f32
    %220 = vector.broadcast %cst_104 : f32 to vector<8x128xf32>
    %221 = arith.addf %220, %219 : vector<8x128xf32>
    %cst_105 = arith.constant 5.000000e-01 : f32
    %222 = vector.broadcast %cst_105 : f32 to vector<8x128xf32>
    %223 = arith.mulf %222, %221 : vector<8x128xf32>
    %224 = arith.mulf %213, %135 : vector<8x128xf32>
    %225 = arith.mulf %205, %215 : vector<8x128xf32>
    %226 = arith.addf %224, %225 : vector<8x128xf32>
    %227 = math.tanh %226 : vector<8x128xf32>
    %228 = arith.mulf %223, %227 : vector<8x128xf32>
    %229 = arith.mulf %228, %60 : vector<8x128xf32>
    %cst_106 = arith.constant dense<0.000000e+00> : vector<8xf32>
    %230 = vector.multi_reduction <add>, %229, %cst_106 [1] : vector<8x128xf32> to vector<8xf32>
    %231 = vector.shape_cast %230 : vector<8xf32> to vector<8x1xf32>
    %cst_107 = arith.constant 0.000000e+00 : f32
    %232 = vector.broadcast %cst_107 : f32 to vector<8x1xf32>
    %233 = arith.subf %232, %231 : vector<8x1xf32>
    %234 = arith.maximumf %143, %233 : vector<8x1xf32>
    %235 = arith.subf %143, %234 : vector<8x1xf32>
    %236 = math.exp %235 : vector<8x1xf32>
    %237 = arith.subf %233, %234 : vector<8x1xf32>
    %238 = math.exp %237 : vector<8x1xf32>
    %239 = arith.mulf %149, %236 : vector<8x1xf32>
    %240 = arith.addf %239, %238 : vector<8x1xf32>
    %241 = vector.broadcast %236 : vector<8x1xf32> to vector<8x128xf32>
    %242 = arith.mulf %154, %241 : vector<8x128xf32>
    %243 = vector.broadcast %238 : vector<8x1xf32> to vector<8x128xf32>
    %244 = arith.mulf %243, %228 : vector<8x128xf32>
    %245 = arith.addf %242, %244 : vector<8x128xf32>
    %c2_i32 = arith.constant 2 : i32
    %246 = arith.index_cast %c2_i32 : i32 to index
    %c0_108 = arith.constant 0 : index
    %c0_109 = arith.constant 0 : index
    %247 = vector.load %arg25[%246, %c0_108, %c0_109] : memref<6x8x512xf32, #tpu.memory_space<vmem>>, vector<1x8x512xf32>
    %248 = vector.shape_cast %247 : vector<1x8x512xf32> to vector<8x512xf32>
    %c0_110 = arith.constant 0 : index
    %c0_111 = arith.constant 0 : index
    %249 = vector.load %arg11[%c0_110, %c0_111] : memref<128x512xf32, #tpu.memory_space<vmem>>, vector<128x512xf32>
    %cst_112 = arith.constant dense<0.000000e+00> : vector<8x512xf32>
    %250 = tpu.matmul %191, %249, %cst_112 {dimension_numbers = #tpu.dot_dimension_numbers<[1], [0], [0], [1], [0, 0, 1, 1], [], []>} : vector<8x128xf32>, vector<128x512xf32>, vector<8x512xf32> -> vector<8x512xf32>
    %251 = arith.addf %248, %250 : vector<8x512xf32>
    %252 = vector.extract_strided_slice %251 {offsets = [0, 0], sizes = [8, 128], strides = [1, 1]} : vector<8x512xf32> to vector<8x128xf32>
    %cst_113 = arith.constant 5.000000e-01 : f32
    %253 = vector.broadcast %cst_113 : f32 to vector<8x128xf32>
    %254 = arith.mulf %253, %252 : vector<8x128xf32>
    %255 = math.tanh %254 : vector<8x128xf32>
    %cst_114 = arith.constant 1.000000e+00 : f32
    %256 = vector.broadcast %cst_114 : f32 to vector<8x128xf32>
    %257 = arith.addf %256, %255 : vector<8x128xf32>
    %cst_115 = arith.constant 5.000000e-01 : f32
    %258 = vector.broadcast %cst_115 : f32 to vector<8x128xf32>
    %259 = arith.mulf %258, %257 : vector<8x128xf32>
    %260 = vector.extract_strided_slice %251 {offsets = [0, 128], sizes = [8, 128], strides = [1, 1]} : vector<8x512xf32> to vector<8x128xf32>
    %cst_116 = arith.constant 5.000000e-01 : f32
    %261 = vector.broadcast %cst_116 : f32 to vector<8x128xf32>
    %262 = arith.mulf %261, %260 : vector<8x128xf32>
    %263 = math.tanh %262 : vector<8x128xf32>
    %cst_117 = arith.constant 1.000000e+00 : f32
    %264 = vector.broadcast %cst_117 : f32 to vector<8x128xf32>
    %265 = arith.addf %264, %263 : vector<8x128xf32>
    %cst_118 = arith.constant 5.000000e-01 : f32
    %266 = vector.broadcast %cst_118 : f32 to vector<8x128xf32>
    %267 = arith.mulf %266, %265 : vector<8x128xf32>
    %268 = vector.extract_strided_slice %251 {offsets = [0, 256], sizes = [8, 128], strides = [1, 1]} : vector<8x512xf32> to vector<8x128xf32>
    %269 = math.tanh %268 : vector<8x128xf32>
    %270 = vector.extract_strided_slice %251 {offsets = [0, 384], sizes = [8, 128], strides = [1, 1]} : vector<8x512xf32> to vector<8x128xf32>
    %cst_119 = arith.constant 5.000000e-01 : f32
    %271 = vector.broadcast %cst_119 : f32 to vector<8x128xf32>
    %272 = arith.mulf %271, %270 : vector<8x128xf32>
    %273 = math.tanh %272 : vector<8x128xf32>
    %cst_120 = arith.constant 1.000000e+00 : f32
    %274 = vector.broadcast %cst_120 : f32 to vector<8x128xf32>
    %275 = arith.addf %274, %273 : vector<8x128xf32>
    %cst_121 = arith.constant 5.000000e-01 : f32
    %276 = vector.broadcast %cst_121 : f32 to vector<8x128xf32>
    %277 = arith.mulf %276, %275 : vector<8x128xf32>
    %278 = arith.mulf %267, %189 : vector<8x128xf32>
    %279 = arith.mulf %259, %269 : vector<8x128xf32>
    %280 = arith.addf %278, %279 : vector<8x128xf32>
    %281 = math.tanh %280 : vector<8x128xf32>
    %282 = arith.mulf %277, %281 : vector<8x128xf32>
    %283 = tpu.concatenate %282, %228 in 1 : vector<8x128xf32>, vector<8x128xf32> -> vector<8x256xf32>
    %c0_122 = arith.constant 0 : index
    %c0_123 = arith.constant 0 : index
    %284 = vector.load %arg13[%c0_122, %c0_123] : memref<256x512xf32, #tpu.memory_space<vmem>>, vector<256x512xf32>
    %cst_124 = arith.constant dense<0.000000e+00> : vector<8x512xf32>
    %285 = tpu.matmul %283, %284, %cst_124 {dimension_numbers = #tpu.dot_dimension_numbers<[1], [0], [0], [1], [0, 0, 1, 1], [], []>} : vector<8x256xf32>, vector<256x512xf32>, vector<8x512xf32> -> vector<8x512xf32>
    %c0_125 = arith.constant 0 : index
    %c0_126 = arith.constant 0 : index
    %286 = vector.load %arg14[%c0_125, %c0_126] : memref<1x512xf32, #tpu.memory_space<vmem>>, vector<1x512xf32>
    %287 = vector.broadcast %286 : vector<1x512xf32> to vector<8x512xf32>
    %288 = arith.addf %285, %287 : vector<8x512xf32>
    %289 = vector.extract_strided_slice %288 {offsets = [0, 0], sizes = [8, 128], strides = [1, 1]} : vector<8x512xf32> to vector<8x128xf32>
    %cst_127 = arith.constant 5.000000e-01 : f32
    %290 = vector.broadcast %cst_127 : f32 to vector<8x128xf32>
    %291 = arith.mulf %290, %289 : vector<8x128xf32>
    %292 = math.tanh %291 : vector<8x128xf32>
    %cst_128 = arith.constant 1.000000e+00 : f32
    %293 = vector.broadcast %cst_128 : f32 to vector<8x128xf32>
    %294 = arith.addf %293, %292 : vector<8x128xf32>
    %cst_129 = arith.constant 5.000000e-01 : f32
    %295 = vector.broadcast %cst_129 : f32 to vector<8x128xf32>
    %296 = arith.mulf %295, %294 : vector<8x128xf32>
    %297 = vector.extract_strided_slice %288 {offsets = [0, 128], sizes = [8, 128], strides = [1, 1]} : vector<8x512xf32> to vector<8x128xf32>
    %cst_130 = arith.constant 5.000000e-01 : f32
    %298 = vector.broadcast %cst_130 : f32 to vector<8x128xf32>
    %299 = arith.mulf %298, %297 : vector<8x128xf32>
    %300 = math.tanh %299 : vector<8x128xf32>
    %cst_131 = arith.constant 1.000000e+00 : f32
    %301 = vector.broadcast %cst_131 : f32 to vector<8x128xf32>
    %302 = arith.addf %301, %300 : vector<8x128xf32>
    %cst_132 = arith.constant 5.000000e-01 : f32
    %303 = vector.broadcast %cst_132 : f32 to vector<8x128xf32>
    %304 = arith.mulf %303, %302 : vector<8x128xf32>
    %305 = vector.extract_strided_slice %288 {offsets = [0, 256], sizes = [8, 128], strides = [1, 1]} : vector<8x512xf32> to vector<8x128xf32>
    %306 = math.tanh %305 : vector<8x128xf32>
    %307 = vector.extract_strided_slice %288 {offsets = [0, 384], sizes = [8, 128], strides = [1, 1]} : vector<8x512xf32> to vector<8x128xf32>
    %cst_133 = arith.constant 5.000000e-01 : f32
    %308 = vector.broadcast %cst_133 : f32 to vector<8x128xf32>
    %309 = arith.mulf %308, %307 : vector<8x128xf32>
    %310 = math.tanh %309 : vector<8x128xf32>
    %cst_134 = arith.constant 1.000000e+00 : f32
    %311 = vector.broadcast %cst_134 : f32 to vector<8x128xf32>
    %312 = arith.addf %311, %310 : vector<8x128xf32>
    %cst_135 = arith.constant 5.000000e-01 : f32
    %313 = vector.broadcast %cst_135 : f32 to vector<8x128xf32>
    %314 = arith.mulf %313, %312 : vector<8x128xf32>
    %315 = arith.mulf %304, %226 : vector<8x128xf32>
    %316 = arith.mulf %296, %306 : vector<8x128xf32>
    %317 = arith.addf %315, %316 : vector<8x128xf32>
    %318 = math.tanh %317 : vector<8x128xf32>
    %319 = arith.mulf %314, %318 : vector<8x128xf32>
    %320 = arith.mulf %319, %60 : vector<8x128xf32>
    %cst_136 = arith.constant dense<0.000000e+00> : vector<8xf32>
    %321 = vector.multi_reduction <add>, %320, %cst_136 [1] : vector<8x128xf32> to vector<8xf32>
    %322 = vector.shape_cast %321 : vector<8xf32> to vector<8x1xf32>
    %cst_137 = arith.constant 0.000000e+00 : f32
    %323 = vector.broadcast %cst_137 : f32 to vector<8x1xf32>
    %324 = arith.subf %323, %322 : vector<8x1xf32>
    %325 = arith.maximumf %234, %324 : vector<8x1xf32>
    %326 = arith.subf %234, %325 : vector<8x1xf32>
    %327 = math.exp %326 : vector<8x1xf32>
    %328 = arith.subf %324, %325 : vector<8x1xf32>
    %329 = math.exp %328 : vector<8x1xf32>
    %330 = arith.mulf %240, %327 : vector<8x1xf32>
    %331 = arith.addf %330, %329 : vector<8x1xf32>
    %332 = vector.broadcast %327 : vector<8x1xf32> to vector<8x128xf32>
    %333 = arith.mulf %245, %332 : vector<8x128xf32>
    %334 = vector.broadcast %329 : vector<8x1xf32> to vector<8x128xf32>
    %335 = arith.mulf %334, %319 : vector<8x128xf32>
    %336 = arith.addf %333, %335 : vector<8x128xf32>
    %c3_i32 = arith.constant 3 : i32
    %337 = arith.index_cast %c3_i32 : i32 to index
    %c0_138 = arith.constant 0 : index
    %c0_139 = arith.constant 0 : index
    %338 = vector.load %arg25[%337, %c0_138, %c0_139] : memref<6x8x512xf32, #tpu.memory_space<vmem>>, vector<1x8x512xf32>
    %339 = vector.shape_cast %338 : vector<1x8x512xf32> to vector<8x512xf32>
    %c0_140 = arith.constant 0 : index
    %c0_141 = arith.constant 0 : index
    %340 = vector.load %arg11[%c0_140, %c0_141] : memref<128x512xf32, #tpu.memory_space<vmem>>, vector<128x512xf32>
    %cst_142 = arith.constant dense<0.000000e+00> : vector<8x512xf32>
    %341 = tpu.matmul %282, %340, %cst_142 {dimension_numbers = #tpu.dot_dimension_numbers<[1], [0], [0], [1], [0, 0, 1, 1], [], []>} : vector<8x128xf32>, vector<128x512xf32>, vector<8x512xf32> -> vector<8x512xf32>
    %342 = arith.addf %339, %341 : vector<8x512xf32>
    %343 = vector.extract_strided_slice %342 {offsets = [0, 0], sizes = [8, 128], strides = [1, 1]} : vector<8x512xf32> to vector<8x128xf32>
    %cst_143 = arith.constant 5.000000e-01 : f32
    %344 = vector.broadcast %cst_143 : f32 to vector<8x128xf32>
    %345 = arith.mulf %344, %343 : vector<8x128xf32>
    %346 = math.tanh %345 : vector<8x128xf32>
    %cst_144 = arith.constant 1.000000e+00 : f32
    %347 = vector.broadcast %cst_144 : f32 to vector<8x128xf32>
    %348 = arith.addf %347, %346 : vector<8x128xf32>
    %cst_145 = arith.constant 5.000000e-01 : f32
    %349 = vector.broadcast %cst_145 : f32 to vector<8x128xf32>
    %350 = arith.mulf %349, %348 : vector<8x128xf32>
    %351 = vector.extract_strided_slice %342 {offsets = [0, 128], sizes = [8, 128], strides = [1, 1]} : vector<8x512xf32> to vector<8x128xf32>
    %cst_146 = arith.constant 5.000000e-01 : f32
    %352 = vector.broadcast %cst_146 : f32 to vector<8x128xf32>
    %353 = arith.mulf %352, %351 : vector<8x128xf32>
    %354 = math.tanh %353 : vector<8x128xf32>
    %cst_147 = arith.constant 1.000000e+00 : f32
    %355 = vector.broadcast %cst_147 : f32 to vector<8x128xf32>
    %356 = arith.addf %355, %354 : vector<8x128xf32>
    %cst_148 = arith.constant 5.000000e-01 : f32
    %357 = vector.broadcast %cst_148 : f32 to vector<8x128xf32>
    %358 = arith.mulf %357, %356 : vector<8x128xf32>
    %359 = vector.extract_strided_slice %342 {offsets = [0, 256], sizes = [8, 128], strides = [1, 1]} : vector<8x512xf32> to vector<8x128xf32>
    %360 = math.tanh %359 : vector<8x128xf32>
    %361 = vector.extract_strided_slice %342 {offsets = [0, 384], sizes = [8, 128], strides = [1, 1]} : vector<8x512xf32> to vector<8x128xf32>
    %cst_149 = arith.constant 5.000000e-01 : f32
    %362 = vector.broadcast %cst_149 : f32 to vector<8x128xf32>
    %363 = arith.mulf %362, %361 : vector<8x128xf32>
    %364 = math.tanh %363 : vector<8x128xf32>
    %cst_150 = arith.constant 1.000000e+00 : f32
    %365 = vector.broadcast %cst_150 : f32 to vector<8x128xf32>
    %366 = arith.addf %365, %364 : vector<8x128xf32>
    %cst_151 = arith.constant 5.000000e-01 : f32
    %367 = vector.broadcast %cst_151 : f32 to vector<8x128xf32>
    %368 = arith.mulf %367, %366 : vector<8x128xf32>
    %369 = arith.mulf %358, %280 : vector<8x128xf32>
    %370 = arith.mulf %350, %360 : vector<8x128xf32>
    %371 = arith.addf %369, %370 : vector<8x128xf32>
    %372 = math.tanh %371 : vector<8x128xf32>
    %373 = arith.mulf %368, %372 : vector<8x128xf32>
    %374 = tpu.concatenate %373, %319 in 1 : vector<8x128xf32>, vector<8x128xf32> -> vector<8x256xf32>
    %c0_152 = arith.constant 0 : index
    %c0_153 = arith.constant 0 : index
    %375 = vector.load %arg13[%c0_152, %c0_153] : memref<256x512xf32, #tpu.memory_space<vmem>>, vector<256x512xf32>
    %cst_154 = arith.constant dense<0.000000e+00> : vector<8x512xf32>
    %376 = tpu.matmul %374, %375, %cst_154 {dimension_numbers = #tpu.dot_dimension_numbers<[1], [0], [0], [1], [0, 0, 1, 1], [], []>} : vector<8x256xf32>, vector<256x512xf32>, vector<8x512xf32> -> vector<8x512xf32>
    %c0_155 = arith.constant 0 : index
    %c0_156 = arith.constant 0 : index
    %377 = vector.load %arg14[%c0_155, %c0_156] : memref<1x512xf32, #tpu.memory_space<vmem>>, vector<1x512xf32>
    %378 = vector.broadcast %377 : vector<1x512xf32> to vector<8x512xf32>
    %379 = arith.addf %376, %378 : vector<8x512xf32>
    %380 = vector.extract_strided_slice %379 {offsets = [0, 0], sizes = [8, 128], strides = [1, 1]} : vector<8x512xf32> to vector<8x128xf32>
    %cst_157 = arith.constant 5.000000e-01 : f32
    %381 = vector.broadcast %cst_157 : f32 to vector<8x128xf32>
    %382 = arith.mulf %381, %380 : vector<8x128xf32>
    %383 = math.tanh %382 : vector<8x128xf32>
    %cst_158 = arith.constant 1.000000e+00 : f32
    %384 = vector.broadcast %cst_158 : f32 to vector<8x128xf32>
    %385 = arith.addf %384, %383 : vector<8x128xf32>
    %cst_159 = arith.constant 5.000000e-01 : f32
    %386 = vector.broadcast %cst_159 : f32 to vector<8x128xf32>
    %387 = arith.mulf %386, %385 : vector<8x128xf32>
    %388 = vector.extract_strided_slice %379 {offsets = [0, 128], sizes = [8, 128], strides = [1, 1]} : vector<8x512xf32> to vector<8x128xf32>
    %cst_160 = arith.constant 5.000000e-01 : f32
    %389 = vector.broadcast %cst_160 : f32 to vector<8x128xf32>
    %390 = arith.mulf %389, %388 : vector<8x128xf32>
    %391 = math.tanh %390 : vector<8x128xf32>
    %cst_161 = arith.constant 1.000000e+00 : f32
    %392 = vector.broadcast %cst_161 : f32 to vector<8x128xf32>
    %393 = arith.addf %392, %391 : vector<8x128xf32>
    %cst_162 = arith.constant 5.000000e-01 : f32
    %394 = vector.broadcast %cst_162 : f32 to vector<8x128xf32>
    %395 = arith.mulf %394, %393 : vector<8x128xf32>
    %396 = vector.extract_strided_slice %379 {offsets = [0, 256], sizes = [8, 128], strides = [1, 1]} : vector<8x512xf32> to vector<8x128xf32>
    %397 = math.tanh %396 : vector<8x128xf32>
    %398 = vector.extract_strided_slice %379 {offsets = [0, 384], sizes = [8, 128], strides = [1, 1]} : vector<8x512xf32> to vector<8x128xf32>
    %cst_163 = arith.constant 5.000000e-01 : f32
    %399 = vector.broadcast %cst_163 : f32 to vector<8x128xf32>
    %400 = arith.mulf %399, %398 : vector<8x128xf32>
    %401 = math.tanh %400 : vector<8x128xf32>
    %cst_164 = arith.constant 1.000000e+00 : f32
    %402 = vector.broadcast %cst_164 : f32 to vector<8x128xf32>
    %403 = arith.addf %402, %401 : vector<8x128xf32>
    %cst_165 = arith.constant 5.000000e-01 : f32
    %404 = vector.broadcast %cst_165 : f32 to vector<8x128xf32>
    %405 = arith.mulf %404, %403 : vector<8x128xf32>
    %406 = arith.mulf %395, %317 : vector<8x128xf32>
    %407 = arith.mulf %387, %397 : vector<8x128xf32>
    %408 = arith.addf %406, %407 : vector<8x128xf32>
    %409 = math.tanh %408 : vector<8x128xf32>
    %410 = arith.mulf %405, %409 : vector<8x128xf32>
    %411 = arith.mulf %410, %60 : vector<8x128xf32>
    %cst_166 = arith.constant dense<0.000000e+00> : vector<8xf32>
    %412 = vector.multi_reduction <add>, %411, %cst_166 [1] : vector<8x128xf32> to vector<8xf32>
    %413 = vector.shape_cast %412 : vector<8xf32> to vector<8x1xf32>
    %cst_167 = arith.constant 0.000000e+00 : f32
    %414 = vector.broadcast %cst_167 : f32 to vector<8x1xf32>
    %415 = arith.subf %414, %413 : vector<8x1xf32>
    %416 = arith.maximumf %325, %415 : vector<8x1xf32>
    %417 = arith.subf %325, %416 : vector<8x1xf32>
    %418 = math.exp %417 : vector<8x1xf32>
    %419 = arith.subf %415, %416 : vector<8x1xf32>
    %420 = math.exp %419 : vector<8x1xf32>
    %421 = arith.mulf %331, %418 : vector<8x1xf32>
    %422 = arith.addf %421, %420 : vector<8x1xf32>
    %423 = vector.broadcast %418 : vector<8x1xf32> to vector<8x128xf32>
    %424 = arith.mulf %336, %423 : vector<8x128xf32>
    %425 = vector.broadcast %420 : vector<8x1xf32> to vector<8x128xf32>
    %426 = arith.mulf %425, %410 : vector<8x128xf32>
    %427 = arith.addf %424, %426 : vector<8x128xf32>
    %c4_i32 = arith.constant 4 : i32
    %428 = arith.index_cast %c4_i32 : i32 to index
    %c0_168 = arith.constant 0 : index
    %c0_169 = arith.constant 0 : index
    %429 = vector.load %arg25[%428, %c0_168, %c0_169] : memref<6x8x512xf32, #tpu.memory_space<vmem>>, vector<1x8x512xf32>
    %430 = vector.shape_cast %429 : vector<1x8x512xf32> to vector<8x512xf32>
    %c0_170 = arith.constant 0 : index
    %c0_171 = arith.constant 0 : index
    %431 = vector.load %arg11[%c0_170, %c0_171] : memref<128x512xf32, #tpu.memory_space<vmem>>, vector<128x512xf32>
    %cst_172 = arith.constant dense<0.000000e+00> : vector<8x512xf32>
    %432 = tpu.matmul %373, %431, %cst_172 {dimension_numbers = #tpu.dot_dimension_numbers<[1], [0], [0], [1], [0, 0, 1, 1], [], []>} : vector<8x128xf32>, vector<128x512xf32>, vector<8x512xf32> -> vector<8x512xf32>
    %433 = arith.addf %430, %432 : vector<8x512xf32>
    %434 = vector.extract_strided_slice %433 {offsets = [0, 0], sizes = [8, 128], strides = [1, 1]} : vector<8x512xf32> to vector<8x128xf32>
    %cst_173 = arith.constant 5.000000e-01 : f32
    %435 = vector.broadcast %cst_173 : f32 to vector<8x128xf32>
    %436 = arith.mulf %435, %434 : vector<8x128xf32>
    %437 = math.tanh %436 : vector<8x128xf32>
    %cst_174 = arith.constant 1.000000e+00 : f32
    %438 = vector.broadcast %cst_174 : f32 to vector<8x128xf32>
    %439 = arith.addf %438, %437 : vector<8x128xf32>
    %cst_175 = arith.constant 5.000000e-01 : f32
    %440 = vector.broadcast %cst_175 : f32 to vector<8x128xf32>
    %441 = arith.mulf %440, %439 : vector<8x128xf32>
    %442 = vector.extract_strided_slice %433 {offsets = [0, 128], sizes = [8, 128], strides = [1, 1]} : vector<8x512xf32> to vector<8x128xf32>
    %cst_176 = arith.constant 5.000000e-01 : f32
    %443 = vector.broadcast %cst_176 : f32 to vector<8x128xf32>
    %444 = arith.mulf %443, %442 : vector<8x128xf32>
    %445 = math.tanh %444 : vector<8x128xf32>
    %cst_177 = arith.constant 1.000000e+00 : f32
    %446 = vector.broadcast %cst_177 : f32 to vector<8x128xf32>
    %447 = arith.addf %446, %445 : vector<8x128xf32>
    %cst_178 = arith.constant 5.000000e-01 : f32
    %448 = vector.broadcast %cst_178 : f32 to vector<8x128xf32>
    %449 = arith.mulf %448, %447 : vector<8x128xf32>
    %450 = vector.extract_strided_slice %433 {offsets = [0, 256], sizes = [8, 128], strides = [1, 1]} : vector<8x512xf32> to vector<8x128xf32>
    %451 = math.tanh %450 : vector<8x128xf32>
    %452 = vector.extract_strided_slice %433 {offsets = [0, 384], sizes = [8, 128], strides = [1, 1]} : vector<8x512xf32> to vector<8x128xf32>
    %cst_179 = arith.constant 5.000000e-01 : f32
    %453 = vector.broadcast %cst_179 : f32 to vector<8x128xf32>
    %454 = arith.mulf %453, %452 : vector<8x128xf32>
    %455 = math.tanh %454 : vector<8x128xf32>
    %cst_180 = arith.constant 1.000000e+00 : f32
    %456 = vector.broadcast %cst_180 : f32 to vector<8x128xf32>
    %457 = arith.addf %456, %455 : vector<8x128xf32>
    %cst_181 = arith.constant 5.000000e-01 : f32
    %458 = vector.broadcast %cst_181 : f32 to vector<8x128xf32>
    %459 = arith.mulf %458, %457 : vector<8x128xf32>
    %460 = arith.mulf %449, %371 : vector<8x128xf32>
    %461 = arith.mulf %441, %451 : vector<8x128xf32>
    %462 = arith.addf %460, %461 : vector<8x128xf32>
    %463 = math.tanh %462 : vector<8x128xf32>
    %464 = arith.mulf %459, %463 : vector<8x128xf32>
    %465 = tpu.concatenate %464, %410 in 1 : vector<8x128xf32>, vector<8x128xf32> -> vector<8x256xf32>
    %c0_182 = arith.constant 0 : index
    %c0_183 = arith.constant 0 : index
    %466 = vector.load %arg13[%c0_182, %c0_183] : memref<256x512xf32, #tpu.memory_space<vmem>>, vector<256x512xf32>
    %cst_184 = arith.constant dense<0.000000e+00> : vector<8x512xf32>
    %467 = tpu.matmul %465, %466, %cst_184 {dimension_numbers = #tpu.dot_dimension_numbers<[1], [0], [0], [1], [0, 0, 1, 1], [], []>} : vector<8x256xf32>, vector<256x512xf32>, vector<8x512xf32> -> vector<8x512xf32>
    %c0_185 = arith.constant 0 : index
    %c0_186 = arith.constant 0 : index
    %468 = vector.load %arg14[%c0_185, %c0_186] : memref<1x512xf32, #tpu.memory_space<vmem>>, vector<1x512xf32>
    %469 = vector.broadcast %468 : vector<1x512xf32> to vector<8x512xf32>
    %470 = arith.addf %467, %469 : vector<8x512xf32>
    %471 = vector.extract_strided_slice %470 {offsets = [0, 0], sizes = [8, 128], strides = [1, 1]} : vector<8x512xf32> to vector<8x128xf32>
    %cst_187 = arith.constant 5.000000e-01 : f32
    %472 = vector.broadcast %cst_187 : f32 to vector<8x128xf32>
    %473 = arith.mulf %472, %471 : vector<8x128xf32>
    %474 = math.tanh %473 : vector<8x128xf32>
    %cst_188 = arith.constant 1.000000e+00 : f32
    %475 = vector.broadcast %cst_188 : f32 to vector<8x128xf32>
    %476 = arith.addf %475, %474 : vector<8x128xf32>
    %cst_189 = arith.constant 5.000000e-01 : f32
    %477 = vector.broadcast %cst_189 : f32 to vector<8x128xf32>
    %478 = arith.mulf %477, %476 : vector<8x128xf32>
    %479 = vector.extract_strided_slice %470 {offsets = [0, 128], sizes = [8, 128], strides = [1, 1]} : vector<8x512xf32> to vector<8x128xf32>
    %cst_190 = arith.constant 5.000000e-01 : f32
    %480 = vector.broadcast %cst_190 : f32 to vector<8x128xf32>
    %481 = arith.mulf %480, %479 : vector<8x128xf32>
    %482 = math.tanh %481 : vector<8x128xf32>
    %cst_191 = arith.constant 1.000000e+00 : f32
    %483 = vector.broadcast %cst_191 : f32 to vector<8x128xf32>
    %484 = arith.addf %483, %482 : vector<8x128xf32>
    %cst_192 = arith.constant 5.000000e-01 : f32
    %485 = vector.broadcast %cst_192 : f32 to vector<8x128xf32>
    %486 = arith.mulf %485, %484 : vector<8x128xf32>
    %487 = vector.extract_strided_slice %470 {offsets = [0, 256], sizes = [8, 128], strides = [1, 1]} : vector<8x512xf32> to vector<8x128xf32>
    %488 = math.tanh %487 : vector<8x128xf32>
    %489 = vector.extract_strided_slice %470 {offsets = [0, 384], sizes = [8, 128], strides = [1, 1]} : vector<8x512xf32> to vector<8x128xf32>
    %cst_193 = arith.constant 5.000000e-01 : f32
    %490 = vector.broadcast %cst_193 : f32 to vector<8x128xf32>
    %491 = arith.mulf %490, %489 : vector<8x128xf32>
    %492 = math.tanh %491 : vector<8x128xf32>
    %cst_194 = arith.constant 1.000000e+00 : f32
    %493 = vector.broadcast %cst_194 : f32 to vector<8x128xf32>
    %494 = arith.addf %493, %492 : vector<8x128xf32>
    %cst_195 = arith.constant 5.000000e-01 : f32
    %495 = vector.broadcast %cst_195 : f32 to vector<8x128xf32>
    %496 = arith.mulf %495, %494 : vector<8x128xf32>
    %497 = arith.mulf %486, %408 : vector<8x128xf32>
    %498 = arith.mulf %478, %488 : vector<8x128xf32>
    %499 = arith.addf %497, %498 : vector<8x128xf32>
    %500 = math.tanh %499 : vector<8x128xf32>
    %501 = arith.mulf %496, %500 : vector<8x128xf32>
    %502 = arith.mulf %501, %60 : vector<8x128xf32>
    %cst_196 = arith.constant dense<0.000000e+00> : vector<8xf32>
    %503 = vector.multi_reduction <add>, %502, %cst_196 [1] : vector<8x128xf32> to vector<8xf32>
    %504 = vector.shape_cast %503 : vector<8xf32> to vector<8x1xf32>
    %cst_197 = arith.constant 0.000000e+00 : f32
    %505 = vector.broadcast %cst_197 : f32 to vector<8x1xf32>
    %506 = arith.subf %505, %504 : vector<8x1xf32>
    %507 = arith.maximumf %416, %506 : vector<8x1xf32>
    %508 = arith.subf %416, %507 : vector<8x1xf32>
    %509 = math.exp %508 : vector<8x1xf32>
    %510 = arith.subf %506, %507 : vector<8x1xf32>
    %511 = math.exp %510 : vector<8x1xf32>
    %512 = arith.mulf %422, %509 : vector<8x1xf32>
    %513 = arith.addf %512, %511 : vector<8x1xf32>
    %514 = vector.broadcast %509 : vector<8x1xf32> to vector<8x128xf32>
    %515 = arith.mulf %427, %514 : vector<8x128xf32>
    %516 = vector.broadcast %511 : vector<8x1xf32> to vector<8x128xf32>
    %517 = arith.mulf %516, %501 : vector<8x128xf32>
    %518 = arith.addf %515, %517 : vector<8x128xf32>
    %c5_i32 = arith.constant 5 : i32
    %519 = arith.index_cast %c5_i32 : i32 to index
    %c0_198 = arith.constant 0 : index
    %c0_199 = arith.constant 0 : index
    %520 = vector.load %arg25[%519, %c0_198, %c0_199] : memref<6x8x512xf32, #tpu.memory_space<vmem>>, vector<1x8x512xf32>
    %521 = vector.shape_cast %520 : vector<1x8x512xf32> to vector<8x512xf32>
    %c0_200 = arith.constant 0 : index
    %c0_201 = arith.constant 0 : index
    %522 = vector.load %arg11[%c0_200, %c0_201] : memref<128x512xf32, #tpu.memory_space<vmem>>, vector<128x512xf32>
    %cst_202 = arith.constant dense<0.000000e+00> : vector<8x512xf32>
    %523 = tpu.matmul %464, %522, %cst_202 {dimension_numbers = #tpu.dot_dimension_numbers<[1], [0], [0], [1], [0, 0, 1, 1], [], []>} : vector<8x128xf32>, vector<128x512xf32>, vector<8x512xf32> -> vector<8x512xf32>
    %524 = arith.addf %521, %523 : vector<8x512xf32>
    %525 = vector.extract_strided_slice %524 {offsets = [0, 0], sizes = [8, 128], strides = [1, 1]} : vector<8x512xf32> to vector<8x128xf32>
    %cst_203 = arith.constant 5.000000e-01 : f32
    %526 = vector.broadcast %cst_203 : f32 to vector<8x128xf32>
    %527 = arith.mulf %526, %525 : vector<8x128xf32>
    %528 = math.tanh %527 : vector<8x128xf32>
    %cst_204 = arith.constant 1.000000e+00 : f32
    %529 = vector.broadcast %cst_204 : f32 to vector<8x128xf32>
    %530 = arith.addf %529, %528 : vector<8x128xf32>
    %cst_205 = arith.constant 5.000000e-01 : f32
    %531 = vector.broadcast %cst_205 : f32 to vector<8x128xf32>
    %532 = arith.mulf %531, %530 : vector<8x128xf32>
    %533 = vector.extract_strided_slice %524 {offsets = [0, 128], sizes = [8, 128], strides = [1, 1]} : vector<8x512xf32> to vector<8x128xf32>
    %cst_206 = arith.constant 5.000000e-01 : f32
    %534 = vector.broadcast %cst_206 : f32 to vector<8x128xf32>
    %535 = arith.mulf %534, %533 : vector<8x128xf32>
    %536 = math.tanh %535 : vector<8x128xf32>
    %cst_207 = arith.constant 1.000000e+00 : f32
    %537 = vector.broadcast %cst_207 : f32 to vector<8x128xf32>
    %538 = arith.addf %537, %536 : vector<8x128xf32>
    %cst_208 = arith.constant 5.000000e-01 : f32
    %539 = vector.broadcast %cst_208 : f32 to vector<8x128xf32>
    %540 = arith.mulf %539, %538 : vector<8x128xf32>
    %541 = vector.extract_strided_slice %524 {offsets = [0, 256], sizes = [8, 128], strides = [1, 1]} : vector<8x512xf32> to vector<8x128xf32>
    %542 = math.tanh %541 : vector<8x128xf32>
    %543 = vector.extract_strided_slice %524 {offsets = [0, 384], sizes = [8, 128], strides = [1, 1]} : vector<8x512xf32> to vector<8x128xf32>
    %cst_209 = arith.constant 5.000000e-01 : f32
    %544 = vector.broadcast %cst_209 : f32 to vector<8x128xf32>
    %545 = arith.mulf %544, %543 : vector<8x128xf32>
    %546 = math.tanh %545 : vector<8x128xf32>
    %cst_210 = arith.constant 1.000000e+00 : f32
    %547 = vector.broadcast %cst_210 : f32 to vector<8x128xf32>
    %548 = arith.addf %547, %546 : vector<8x128xf32>
    %cst_211 = arith.constant 5.000000e-01 : f32
    %549 = vector.broadcast %cst_211 : f32 to vector<8x128xf32>
    %550 = arith.mulf %549, %548 : vector<8x128xf32>
    %551 = arith.mulf %540, %462 : vector<8x128xf32>
    %552 = arith.mulf %532, %542 : vector<8x128xf32>
    %553 = arith.addf %551, %552 : vector<8x128xf32>
    %554 = math.tanh %553 : vector<8x128xf32>
    %555 = arith.mulf %550, %554 : vector<8x128xf32>
    %556 = tpu.concatenate %555, %501 in 1 : vector<8x128xf32>, vector<8x128xf32> -> vector<8x256xf32>
    %c0_212 = arith.constant 0 : index
    %c0_213 = arith.constant 0 : index
    %557 = vector.load %arg13[%c0_212, %c0_213] : memref<256x512xf32, #tpu.memory_space<vmem>>, vector<256x512xf32>
    %cst_214 = arith.constant dense<0.000000e+00> : vector<8x512xf32>
    %558 = tpu.matmul %556, %557, %cst_214 {dimension_numbers = #tpu.dot_dimension_numbers<[1], [0], [0], [1], [0, 0, 1, 1], [], []>} : vector<8x256xf32>, vector<256x512xf32>, vector<8x512xf32> -> vector<8x512xf32>
    %c0_215 = arith.constant 0 : index
    %c0_216 = arith.constant 0 : index
    %559 = vector.load %arg14[%c0_215, %c0_216] : memref<1x512xf32, #tpu.memory_space<vmem>>, vector<1x512xf32>
    %560 = vector.broadcast %559 : vector<1x512xf32> to vector<8x512xf32>
    %561 = arith.addf %558, %560 : vector<8x512xf32>
    %562 = vector.extract_strided_slice %561 {offsets = [0, 0], sizes = [8, 128], strides = [1, 1]} : vector<8x512xf32> to vector<8x128xf32>
    %cst_217 = arith.constant 5.000000e-01 : f32
    %563 = vector.broadcast %cst_217 : f32 to vector<8x128xf32>
    %564 = arith.mulf %563, %562 : vector<8x128xf32>
    %565 = math.tanh %564 : vector<8x128xf32>
    %cst_218 = arith.constant 1.000000e+00 : f32
    %566 = vector.broadcast %cst_218 : f32 to vector<8x128xf32>
    %567 = arith.addf %566, %565 : vector<8x128xf32>
    %cst_219 = arith.constant 5.000000e-01 : f32
    %568 = vector.broadcast %cst_219 : f32 to vector<8x128xf32>
    %569 = arith.mulf %568, %567 : vector<8x128xf32>
    %570 = vector.extract_strided_slice %561 {offsets = [0, 128], sizes = [8, 128], strides = [1, 1]} : vector<8x512xf32> to vector<8x128xf32>
    %cst_220 = arith.constant 5.000000e-01 : f32
    %571 = vector.broadcast %cst_220 : f32 to vector<8x128xf32>
    %572 = arith.mulf %571, %570 : vector<8x128xf32>
    %573 = math.tanh %572 : vector<8x128xf32>
    %cst_221 = arith.constant 1.000000e+00 : f32
    %574 = vector.broadcast %cst_221 : f32 to vector<8x128xf32>
    %575 = arith.addf %574, %573 : vector<8x128xf32>
    %cst_222 = arith.constant 5.000000e-01 : f32
    %576 = vector.broadcast %cst_222 : f32 to vector<8x128xf32>
    %577 = arith.mulf %576, %575 : vector<8x128xf32>
    %578 = vector.extract_strided_slice %561 {offsets = [0, 256], sizes = [8, 128], strides = [1, 1]} : vector<8x512xf32> to vector<8x128xf32>
    %579 = math.tanh %578 : vector<8x128xf32>
    %580 = vector.extract_strided_slice %561 {offsets = [0, 384], sizes = [8, 128], strides = [1, 1]} : vector<8x512xf32> to vector<8x128xf32>
    %cst_223 = arith.constant 5.000000e-01 : f32
    %581 = vector.broadcast %cst_223 : f32 to vector<8x128xf32>
    %582 = arith.mulf %581, %580 : vector<8x128xf32>
    %583 = math.tanh %582 : vector<8x128xf32>
    %cst_224 = arith.constant 1.000000e+00 : f32
    %584 = vector.broadcast %cst_224 : f32 to vector<8x128xf32>
    %585 = arith.addf %584, %583 : vector<8x128xf32>
    %cst_225 = arith.constant 5.000000e-01 : f32
    %586 = vector.broadcast %cst_225 : f32 to vector<8x128xf32>
    %587 = arith.mulf %586, %585 : vector<8x128xf32>
    %588 = arith.mulf %577, %499 : vector<8x128xf32>
    %589 = arith.mulf %569, %579 : vector<8x128xf32>
    %590 = arith.addf %588, %589 : vector<8x128xf32>
    %591 = math.tanh %590 : vector<8x128xf32>
    %592 = arith.mulf %587, %591 : vector<8x128xf32>
    %593 = arith.mulf %592, %60 : vector<8x128xf32>
    %cst_226 = arith.constant dense<0.000000e+00> : vector<8xf32>
    %594 = vector.multi_reduction <add>, %593, %cst_226 [1] : vector<8x128xf32> to vector<8xf32>
    %595 = vector.shape_cast %594 : vector<8xf32> to vector<8x1xf32>
    %cst_227 = arith.constant 0.000000e+00 : f32
    %596 = vector.broadcast %cst_227 : f32 to vector<8x1xf32>
    %597 = arith.subf %596, %595 : vector<8x1xf32>
    %598 = arith.maximumf %507, %597 : vector<8x1xf32>
    %599 = arith.subf %507, %598 : vector<8x1xf32>
    %600 = math.exp %599 : vector<8x1xf32>
    %601 = arith.subf %597, %598 : vector<8x1xf32>
    %602 = math.exp %601 : vector<8x1xf32>
    %603 = arith.mulf %513, %600 : vector<8x1xf32>
    %604 = arith.addf %603, %602 : vector<8x1xf32>
    %605 = vector.broadcast %600 : vector<8x1xf32> to vector<8x128xf32>
    %606 = arith.mulf %518, %605 : vector<8x128xf32>
    %607 = vector.broadcast %602 : vector<8x1xf32> to vector<8x128xf32>
    %608 = arith.mulf %607, %592 : vector<8x128xf32>
    %609 = arith.addf %606, %608 : vector<8x128xf32>
    %c6_i32 = arith.constant 6 : i32
    %610 = vector.broadcast %604 : vector<8x1xf32> to vector<8x128xf32>
    %611 = arith.divf %609, %610 : vector<8x128xf32>
    %c0_228 = arith.constant 0 : index
    %c0_229 = arith.constant 0 : index
    %612 = vector.load %arg17[%c0_228, %c0_229] : memref<28x128xf32, #tpu.memory_space<vmem>>, vector<28x128xf32>
    %cst_230 = arith.constant dense<0.000000e+00> : vector<8x128xf32>
    %613 = tpu.matmul %0, %612, %cst_230 {dimension_numbers = #tpu.dot_dimension_numbers<[1], [0], [0], [1], [0, 0, 1, 1], [], []>} : vector<8x28xf32>, vector<28x128xf32>, vector<8x128xf32> -> vector<8x128xf32>
    %c0_231 = arith.constant 0 : index
    %c0_232 = arith.constant 0 : index
    %614 = vector.load %arg18[%c0_231, %c0_232] : memref<128x128xf32, #tpu.memory_space<vmem>>, vector<128x128xf32>
    %cst_233 = arith.constant dense<0.000000e+00> : vector<8x128xf32>
    %615 = tpu.matmul %611, %614, %cst_233 {dimension_numbers = #tpu.dot_dimension_numbers<[1], [0], [0], [1], [0, 0, 1, 1], [], []>} : vector<8x128xf32>, vector<128x128xf32>, vector<8x128xf32> -> vector<8x128xf32>
    %616 = arith.addf %613, %615 : vector<8x128xf32>
    %c0_234 = arith.constant 0 : index
    %c0_235 = arith.constant 0 : index
    %617 = vector.load %arg19[%c0_234, %c0_235] : memref<1x128xf32, #tpu.memory_space<vmem>>, vector<1x128xf32>
    %618 = vector.broadcast %617 : vector<1x128xf32> to vector<8x128xf32>
    %619 = arith.addf %616, %618 : vector<8x128xf32>
    %cst_236 = arith.constant 0.000000e+00 : f32
    %620 = vector.broadcast %cst_236 : f32 to vector<8x128xf32>
    %621 = arith.cmpf ogt, %619, %620 : vector<8x128xf32>
    %cst_237 = arith.constant 0.00999999977 : f32
    %622 = vector.broadcast %cst_237 : f32 to vector<8x128xf32>
    %623 = arith.mulf %622, %619 : vector<8x128xf32>
    %624 = arith.select %621, %619, %623 : vector<8x128xi1>, vector<8x128xf32>
    %c0_238 = arith.constant 0 : index
    %c0_239 = arith.constant 0 : index
    %c0_240 = arith.constant 0 : index
    %625 = vector.load %arg20[%c0_238, %c0_239, %c0_240] : memref<3x128x128xf32, #tpu.memory_space<vmem>>, vector<1x128x128xf32>
    %626 = vector.shape_cast %625 : vector<1x128x128xf32> to vector<128x128xf32>
    %cst_241 = arith.constant dense<0.000000e+00> : vector<8x128xf32>
    %627 = tpu.matmul %624, %626, %cst_241 {dimension_numbers = #tpu.dot_dimension_numbers<[1], [0], [0], [1], [0, 0, 1, 1], [], []>} : vector<8x128xf32>, vector<128x128xf32>, vector<8x128xf32> -> vector<8x128xf32>
    %c0_242 = arith.constant 0 : index
    %c0_243 = arith.constant 0 : index
    %c0_244 = arith.constant 0 : index
    %628 = vector.load %arg21[%c0_242, %c0_243, %c0_244] : memref<3x1x128xf32, #tpu.memory_space<vmem>>, vector<1x1x128xf32>
    %629 = vector.shape_cast %628 : vector<1x1x128xf32> to vector<1x128xf32>
    %630 = vector.broadcast %629 : vector<1x128xf32> to vector<8x128xf32>
    %631 = arith.addf %627, %630 : vector<8x128xf32>
    %cst_245 = arith.constant 0.000000e+00 : f32
    %632 = vector.broadcast %cst_245 : f32 to vector<8x128xf32>
    %633 = arith.cmpf ogt, %631, %632 : vector<8x128xf32>
    %cst_246 = arith.constant 0.00999999977 : f32
    %634 = vector.broadcast %cst_246 : f32 to vector<8x128xf32>
    %635 = arith.mulf %634, %631 : vector<8x128xf32>
    %636 = arith.select %633, %631, %635 : vector<8x128xi1>, vector<8x128xf32>
    %637 = arith.addf %624, %636 : vector<8x128xf32>
    %c1_247 = arith.constant 1 : index
    %c0_248 = arith.constant 0 : index
    %c0_249 = arith.constant 0 : index
    %638 = vector.load %arg20[%c1_247, %c0_248, %c0_249] : memref<3x128x128xf32, #tpu.memory_space<vmem>>, vector<1x128x128xf32>
    %639 = vector.shape_cast %638 : vector<1x128x128xf32> to vector<128x128xf32>
    %cst_250 = arith.constant dense<0.000000e+00> : vector<8x128xf32>
    %640 = tpu.matmul %637, %639, %cst_250 {dimension_numbers = #tpu.dot_dimension_numbers<[1], [0], [0], [1], [0, 0, 1, 1], [], []>} : vector<8x128xf32>, vector<128x128xf32>, vector<8x128xf32> -> vector<8x128xf32>
    %c1_251 = arith.constant 1 : index
    %c0_252 = arith.constant 0 : index
    %c0_253 = arith.constant 0 : index
    %641 = vector.load %arg21[%c1_251, %c0_252, %c0_253] : memref<3x1x128xf32, #tpu.memory_space<vmem>>, vector<1x1x128xf32>
    %642 = vector.shape_cast %641 : vector<1x1x128xf32> to vector<1x128xf32>
    %643 = vector.broadcast %642 : vector<1x128xf32> to vector<8x128xf32>
    %644 = arith.addf %640, %643 : vector<8x128xf32>
    %cst_254 = arith.constant 0.000000e+00 : f32
    %645 = vector.broadcast %cst_254 : f32 to vector<8x128xf32>
    %646 = arith.cmpf ogt, %644, %645 : vector<8x128xf32>
    %cst_255 = arith.constant 0.00999999977 : f32
    %647 = vector.broadcast %cst_255 : f32 to vector<8x128xf32>
    %648 = arith.mulf %647, %644 : vector<8x128xf32>
    %649 = arith.select %646, %644, %648 : vector<8x128xi1>, vector<8x128xf32>
    %650 = arith.addf %637, %649 : vector<8x128xf32>
    %c2_256 = arith.constant 2 : index
    %c0_257 = arith.constant 0 : index
    %c0_258 = arith.constant 0 : index
    %651 = vector.load %arg20[%c2_256, %c0_257, %c0_258] : memref<3x128x128xf32, #tpu.memory_space<vmem>>, vector<1x128x128xf32>
    %652 = vector.shape_cast %651 : vector<1x128x128xf32> to vector<128x128xf32>
    %cst_259 = arith.constant dense<0.000000e+00> : vector<8x128xf32>
    %653 = tpu.matmul %650, %652, %cst_259 {dimension_numbers = #tpu.dot_dimension_numbers<[1], [0], [0], [1], [0, 0, 1, 1], [], []>} : vector<8x128xf32>, vector<128x128xf32>, vector<8x128xf32> -> vector<8x128xf32>
    %c2_260 = arith.constant 2 : index
    %c0_261 = arith.constant 0 : index
    %c0_262 = arith.constant 0 : index
    %654 = vector.load %arg21[%c2_260, %c0_261, %c0_262] : memref<3x1x128xf32, #tpu.memory_space<vmem>>, vector<1x1x128xf32>
    %655 = vector.shape_cast %654 : vector<1x1x128xf32> to vector<1x128xf32>
    %656 = vector.broadcast %655 : vector<1x128xf32> to vector<8x128xf32>
    %657 = arith.addf %653, %656 : vector<8x128xf32>
    %cst_263 = arith.constant 0.000000e+00 : f32
    %658 = vector.broadcast %cst_263 : f32 to vector<8x128xf32>
    %659 = arith.cmpf ogt, %657, %658 : vector<8x128xf32>
    %cst_264 = arith.constant 0.00999999977 : f32
    %660 = vector.broadcast %cst_264 : f32 to vector<8x128xf32>
    %661 = arith.mulf %660, %657 : vector<8x128xf32>
    %662 = arith.select %659, %657, %661 : vector<8x128xi1>, vector<8x128xf32>
    %663 = arith.addf %650, %662 : vector<8x128xf32>
    %c0_265 = arith.constant 0 : index
    %c0_266 = arith.constant 0 : index
    %664 = vector.load %arg22[%c0_265, %c0_266] : memref<128x128xf32, #tpu.memory_space<vmem>>, vector<128x128xf32>
    %cst_267 = arith.constant dense<0.000000e+00> : vector<8x128xf32>
    %665 = tpu.matmul %663, %664, %cst_267 {dimension_numbers = #tpu.dot_dimension_numbers<[1], [0], [0], [1], [0, 0, 1, 1], [], []>} : vector<8x128xf32>, vector<128x128xf32>, vector<8x128xf32> -> vector<8x128xf32>
    %c0_268 = arith.constant 0 : index
    %c0_269 = arith.constant 0 : index
    %666 = vector.load %arg23[%c0_268, %c0_269] : memref<1x128xf32, #tpu.memory_space<vmem>>, vector<1x128xf32>
    %667 = vector.broadcast %666 : vector<1x128xf32> to vector<8x128xf32>
    %668 = arith.addf %665, %667 : vector<8x128xf32>
    %c0_270 = arith.constant 0 : index
    %c0_271 = arith.constant 0 : index
    %669 = vector.load %arg24[%c0_270, %c0_271] : memref<8x128xf32, #tpu.memory_space<vmem>>, vector<8x128xf32>
    tpu.vector_store %arg24[%c0_270, %c0_271], %668 {strides = array<i32>} : memref<8x128xf32, #tpu.memory_space<vmem>>, vector<8x128xf32>,
    return
  }
  func.func @transform_0(%arg0: i32) -> (i32, i32, i32) {
    %c0_i32 = arith.constant 0 : i32
    %c0_i32_0 = arith.constant 0 : i32
    %c0_i32_1 = arith.constant 0 : i32
    return %c0_i32, %arg0, %c0_i32_0 : i32, i32, i32
  }
  func.func @transform_1(%arg0: i32) -> (i32, i32, i32) {
    %c0_i32 = arith.constant 0 : i32
    %c0_i32_0 = arith.constant 0 : i32
    %c0_i32_1 = arith.constant 0 : i32
    return %c0_i32, %arg0, %c0_i32_0 : i32, i32, i32
  }
  func.func @transform_2(%arg0: i32) -> (i32, i32) {
    %c0_i32 = arith.constant 0 : i32
    %c0_i32_0 = arith.constant 0 : i32
    return %arg0, %c0_i32 : i32, i32
  }
  func.func @transform_3(%arg0: i32) -> (i32, i32) {
    %c0_i32 = arith.constant 0 : i32
    %c0_i32_0 = arith.constant 0 : i32
    %c0_i32_1 = arith.constant 0 : i32
    return %c0_i32, %c0_i32_0 : i32, i32
  }
  func.func @transform_4(%arg0: i32) -> (i32, i32) {
    %c0_i32 = arith.constant 0 : i32
    %c0_i32_0 = arith.constant 0 : i32
    %c0_i32_1 = arith.constant 0 : i32
    return %c0_i32, %c0_i32_0 : i32, i32
  }
  func.func @transform_5(%arg0: i32) -> (i32, i32, i32) {
    %c0_i32 = arith.constant 0 : i32
    %c0_i32_0 = arith.constant 0 : i32
    %c0_i32_1 = arith.constant 0 : i32
    %c0_i32_2 = arith.constant 0 : i32
    return %c0_i32, %c0_i32_0, %c0_i32_1 : i32, i32, i32
  }
  func.func @transform_6(%arg0: i32) -> (i32, i32) {
    %c0_i32 = arith.constant 0 : i32
    %c0_i32_0 = arith.constant 0 : i32
    %c0_i32_1 = arith.constant 0 : i32
    return %c0_i32, %c0_i32_0 : i32, i32
  }
  func.func @transform_7(%arg0: i32) -> (i32, i32) {
    %c0_i32 = arith.constant 0 : i32
    %c0_i32_0 = arith.constant 0 : i32
    %c0_i32_1 = arith.constant 0 : i32
    return %c0_i32, %c0_i32_0 : i32, i32
  }
  func.func @transform_8(%arg0: i32) -> (i32, i32) {
    %c0_i32 = arith.constant 0 : i32
    %c0_i32_0 = arith.constant 0 : i32
    %c0_i32_1 = arith.constant 0 : i32
    return %c0_i32, %c0_i32_0 : i32, i32
  }
  func.func @transform_9(%arg0: i32) -> (i32, i32) {
    %c0_i32 = arith.constant 0 : i32
    %c0_i32_0 = arith.constant 0 : i32
    %c0_i32_1 = arith.constant 0 : i32
    return %c0_i32, %c0_i32_0 : i32, i32
  }
  func.func @transform_10(%arg0: i32) -> (i32, i32) {
    %c0_i32 = arith.constant 0 : i32
    %c0_i32_0 = arith.constant 0 : i32
    %c0_i32_1 = arith.constant 0 : i32
    return %c0_i32, %c0_i32_0 : i32, i32
  }
  func.func @transform_11(%arg0: i32) -> (i32, i32) {
    %c0_i32 = arith.constant 0 : i32
    %c0_i32_0 = arith.constant 0 : i32
    %c0_i32_1 = arith.constant 0 : i32
    return %c0_i32, %c0_i32_0 : i32, i32
  }
  func.func @transform_12(%arg0: i32) -> (i32, i32) {
    %c0_i32 = arith.constant 0 : i32
    %c0_i32_0 = arith.constant 0 : i32
    %c0_i32_1 = arith.constant 0 : i32
    return %c0_i32, %c0_i32_0 : i32, i32
  }
  func.func @transform_13(%arg0: i32) -> (i32, i32) {
    %c0_i32 = arith.constant 0 : i32
    %c0_i32_0 = arith.constant 0 : i32
    %c0_i32_1 = arith.constant 0 : i32
    return %c0_i32, %c0_i32_0 : i32, i32
  }
  func.func @transform_14(%arg0: i32) -> (i32, i32) {
    %c0_i32 = arith.constant 0 : i32
    %c0_i32_0 = arith.constant 0 : i32
    %c0_i32_1 = arith.constant 0 : i32
    return %c0_i32, %c0_i32_0 : i32, i32
  }
  func.func @transform_15(%arg0: i32) -> (i32, i32) {
    %c0_i32 = arith.constant 0 : i32
    %c0_i32_0 = arith.constant 0 : i32
    %c0_i32_1 = arith.constant 0 : i32
    return %c0_i32, %c0_i32_0 : i32, i32
  }
  func.func @transform_16(%arg0: i32) -> (i32, i32) {
    %c0_i32 = arith.constant 0 : i32
    %c0_i32_0 = arith.constant 0 : i32
    %c0_i32_1 = arith.constant 0 : i32
    return %c0_i32, %c0_i32_0 : i32, i32
  }
  func.func @transform_17(%arg0: i32) -> (i32, i32) {
    %c0_i32 = arith.constant 0 : i32
    %c0_i32_0 = arith.constant 0 : i32
    %c0_i32_1 = arith.constant 0 : i32
    return %c0_i32, %c0_i32_0 : i32, i32
  }
  func.func @transform_18(%arg0: i32) -> (i32, i32) {
    %c0_i32 = arith.constant 0 : i32
    %c0_i32_0 = arith.constant 0 : i32
    %c0_i32_1 = arith.constant 0 : i32
    return %c0_i32, %c0_i32_0 : i32, i32
  }
  func.func @transform_19(%arg0: i32) -> (i32, i32, i32) {
    %c0_i32 = arith.constant 0 : i32
    %c0_i32_0 = arith.constant 0 : i32
    %c0_i32_1 = arith.constant 0 : i32
    %c0_i32_2 = arith.constant 0 : i32
    return %c0_i32, %c0_i32_0, %c0_i32_1 : i32, i32, i32
  }
  func.func @transform_20(%arg0: i32) -> (i32, i32, i32) {
    %c0_i32 = arith.constant 0 : i32
    %c0_i32_0 = arith.constant 0 : i32
    %c0_i32_1 = arith.constant 0 : i32
    %c0_i32_2 = arith.constant 0 : i32
    return %c0_i32, %c0_i32_0, %c0_i32_1 : i32, i32, i32
  }
  func.func @transform_21(%arg0: i32) -> (i32, i32) {
    %c0_i32 = arith.constant 0 : i32
    %c0_i32_0 = arith.constant 0 : i32
    %c0_i32_1 = arith.constant 0 : i32
    return %c0_i32, %c0_i32_0 : i32, i32
  }
  func.func @transform_22(%arg0: i32) -> (i32, i32) {
    %c0_i32 = arith.constant 0 : i32
    %c0_i32_0 = arith.constant 0 : i32
    %c0_i32_1 = arith.constant 0 : i32
    return %c0_i32, %c0_i32_0 : i32, i32
  }
  func.func @transform_23(%arg0: i32) -> (i32, i32) {
    %c0_i32 = arith.constant 0 : i32
    %c0_i32_0 = arith.constant 0 : i32
    return %arg0, %c0_i32 : i32, i32
  }
}

</mosaic_0001>

<bundles_post_ra>
// kernel: deeptte_forward.1
= control target key start
LH: loop header
LB: loop body
LE: loop exit
PB: predicated region body
PF: predicated region fallthrough
CT: control target
= control target key end

     0   :  { %vm113_vm0 = vcmask 1043456   ;;  %vm88_vm1 = vcmask 31744   ;;  %vm171_vm2 = vcmask 130048   ;;  %v3788_v61 = vmov 0   ;;  %s8858_s3 = inlined_call_operand.vmem [shape: f32[4,16], index: 3, kind: input, shape index: {}]   ;;  %s8859_s0 = inlined_call_operand.vmem [shape: f32[8,8,4], index: 0, kind: input, shape index: {}]   ;;  %s8860_s4 = inlined_call_operand.vmem [shape: f32[1,16], index: 4, kind: input, shape index: {}]   ;;  %s8861_s5 = inlined_call_operand.vmem [shape: f32[3,16,32], index: 5, kind: input, shape index: {}]   ;;  %s8862_s6 = inlined_call_operand.vmem [shape: f32[1,32], index: 6, kind: input, shape index: {}]   ;;  %s8863_s7 = inlined_call_operand.vmem [shape: f32[32,512], index: 7, kind: input, shape index: {}]   ;;  %s8864_s9 = inlined_call_operand.vmem [shape: f32[28,512], index: 9, kind: input, shape index: {}]   ;;  %s8865_s1 = inlined_call_operand.vmem [shape: f32[6,8,1], index: 1, kind: input, shape index: {}]   ;;  %s8866_s10 = inlined_call_operand.vmem [shape: f32[128,512], index: 10, kind: input, shape index: {}]   ;;  %s8867_s14 = inlined_call_operand.vmem [shape: f32[28,128], index: 14, kind: input, shape index: {}]   ;;  %s8868_s2 = inlined_call_operand.vmem [shape: f32[8,28], index: 2, kind: input, shape index: {}]   ;;  %s8869_s15 = inlined_call_operand.vmem [shape: f32[1,128], index: 15, kind: input, shape index: {}]   ;;  %s8870_s12 = inlined_call_operand.vmem [shape: f32[256,512], index: 12, kind: input, shape index: {}]   ;;  %s8871_s8 = inlined_call_operand.vmem [shape: f32[1,512], index: 8, kind: input, shape index: {}]   ;;  %s8872_s11 = inlined_call_operand.vmem [shape: f32[1,512], index: 11, kind: input, shape index: {}]   ;;  %s8873_s13 = inlined_call_operand.vmem [shape: f32[1,512], index: 13, kind: input, shape index: {}]   ;;  %s8874_s17 = inlined_call_operand.vmem [shape: f32[128,128], index: 17, kind: input, shape index: {}]   ;;  %s8875_s16 = inlined_call_operand.vmem [shape: f32[28,128], index: 16, kind: input, shape index: {}]   ;;  %s8876_s19 = inlined_call_operand.vmem [shape: f32[3,128,128], index: 19, kind: input, shape index: {}]   ;;  %s8877_s18 = inlined_call_operand.vmem [shape: f32[1,128], index: 18, kind: input, shape index: {}]   ;;  %s8878_s20 = inlined_call_operand.vmem [shape: f32[3,1,128], index: 20, kind: input, shape index: {}]   ;;  %s8879_s21 = inlined_call_operand.vmem [shape: f32[128,128], index: 21, kind: input, shape index: {}]   ;;  %s8880_s22 = inlined_call_operand.vmem [shape: f32[1,128], index: 22, kind: input, shape index: {}]   ;;  %s8881_s23 = inlined_call_operand.vmem [shape: f32[8,128], index: 23, kind: output, shape index: {}]  }
   0x1   :  { %9246 = sst [smem:[#allocation135_spill]] %s8858_s3  ;;  %3184 = vset.pattern.permute.xlu0 %v3788_v61  ;;  %3185 = vset.pattern.permute.xlu1 %v3788_v61  ;;  %vm442_vm3 = vcmask 261120   ;;  %vm627_vm10 = vcmask 228352  }
   0x2   :  { %9247 = sst [smem:[#allocation136_spill]] %s8859_s0  ;;  %3186 = vset.pattern.permute.xlu2 %v3788_v61 }
   0x3   :  { %9248 = sst [smem:[#allocation137_spill]] %s8860_s4 }
   0x4   :  { %9249 = sst [smem:[#allocation138_spill]] %s8861_s5 }
   0x5   :  { %9250 = sst [smem:[#allocation139_spill]] %s8862_s6 }
   0x6   :  { %9251 = sst [smem:[#allocation140_spill]] %s8863_s7 }
   0x7   :  { %9252 = sst [smem:[#allocation141_spill]] %s8864_s9 }
   0x8   :  { %9253 = sst [smem:[#allocation142_spill]] %s8865_s1 }
   0x9   :  { %s9254_s24 = sld [smem:[#allocation135_spill]] }
   0xa   :  { %s9255_s0 = sld [smem:[#allocation136_spill]] }
   0xb   :  { %s9256_s9 = sld [smem:[#allocation138_spill]] }
   0xc   :  { %s9257_s26 = sld [smem:[#allocation137_spill]] }
   0xd   :  { %s9258_s27 = sld [smem:[#allocation140_spill]] }
   0xe   :  { %s9259_s3 = sld [smem:[#allocation141_spill]] }
   0xf   :  { %v83_v0 = vld [vmem:[%s9254_s24] sm:$0xf]  ;;  %s9260_s24 = sld [smem:[#allocation142_spill]] }
  0x10   :  { %v75_v1 = vld [vmem:[%s9255_s0] sm:$0xff]  ;;  %3075 = vmatpush.msk.msra.mxu0 %vm113_vm0, %v83_v0  ;;  %v76_v2 = vld [vmem:[%s9255_s0 + $0x8] sm:$0xff]  ;;  %v77_v3 = vld [vmem:[%s9255_s0 + $0x10] sm:$0xff] }
  0x11   :  { %3076 = vmatmul.msk.f32.vlgmr.msra.gmra.mxu0 %vm88_vm1, %v75_v1  ;;  %v78_v4 = vld [vmem:[%s9255_s0 + $0x18] sm:$0xff]  ;;  %v79_v5 = vld [vmem:[%s9255_s0 + $0x20] sm:$0xff]  ;;  %v80_v6 = vld [vmem:[%s9255_s0 + $0x28] sm:$0xff] }
  0x12   :  { %v81_v7 = vld [vmem:[%s9255_s0 + $0x30] sm:$0xff]  ;;  %v82_v8 = vld [vmem:[%s9255_s0 + $0x38] sm:$0xff]  ;;  %v167_v9 = vld [vmem:[%s9256_s9 + $0x8] sm:$0xff] }
  0x13   :  { %242 = vmatpush.msra.mxu2 %v167_v9  ;;  %v166_v10 = vld [vmem:[%s9256_s9] sm:$0xff]  ;;  %v3085_v11 = vld [vmem:[%s9256_s9 + $0x18] sm:$0xff]  ;;  %v3084_v12 = vld [vmem:[%s9256_s9 + $0x10] sm:$0xff] }
  0x14   :  { %204 = vmatpush.msra.mxu1 %v3085_v11  ;;  %v3099_v13 = vld [vmem:[%s9256_s9 + $0x28] sm:$0xff]  ;;  %v3098_v14 = vld [vmem:[%s9256_s9 + $0x20] sm:$0xff]  ;;  %v377_v32 = vld [vmem:[%s9258_s27 + $0x78] sm:$0xff] }
  0x15   :  { %243 = vmatpush.msra.mxu2 %v166_v10  ;;  %283 = vmatpush.msra.mxu3 %v3099_v13  ;;  %v3187_v15 = vld [vmem:[%s9257_s26] ss:$0 sm:$0xff]  ;;  %v375_v30 = vld [vmem:[%s9258_s27 + $0x68] sm:$0xff]  ;;  %v376_v34 = vld [vmem:[%s9258_s27 + $0x70] sm:$0xff]  ;;  %s9261_s26 = sld [smem:[#allocation139_spill]] }
  0x16   :  { %205 = vmatpush.msra.mxu1 %v3084_v12  ;;  %v374_v31 = vld [vmem:[%s9258_s27 + $0x60] sm:$0xff]  ;;  %v371_v33 = vld [vmem:[%s9258_s27 + $0x48] sm:$0xff]  ;;  %578 = vmatpush.msrb.mxu0 %v377_v32  ;;  %v372_v47 = vld [vmem:[%s9258_s27 + $0x50] sm:$0xff] }
  0x17   :  { %284 = vmatpush.msra.mxu3 %v3098_v14  ;;  %508 = vmatpush.msrb.mxu2 %v375_v30  ;;  %v370_v45 = vld [vmem:[%s9258_s27 + $0x40] sm:$0xff]  ;;  %v367_v46 = vld [vmem:[%s9258_s27 + $0x28] sm:$0xff]  ;;  %v373_v49 = vld [vmem:[%s9258_s27 + $0x58] sm:$0xff] }
  0x18   :  { %473 = vmatpush.msrb.mxu1 %v374_v31  ;;  %v366_v48 = vld [vmem:[%s9258_s27 + $0x20] sm:$0xff]  ;;  %579 = vmatpush.msrb.mxu0 %v373_v49  ;;  %v363_v50 = vld [vmem:[%s9258_s27 + $0x8] sm:$0xff]  ;;  %v368_v51 = vld [vmem:[%s9258_s27 + $0x30] sm:$0xff] }
  0x19   :  { %3077 = vmatmul.msk.f32.gmra.mxu0 %vm88_vm1, %v76_v2  ;;  %543 = vmatpush.msrb.mxu3 %v376_v34  ;;  %v369_v52 = vld [vmem:[%s9258_s27 + $0x38] sm:$0xff]  ;;  %v362_v53 = vld [vmem:[%s9258_s27] sm:$0xff]  ;;  %v364_v54 = vld [vmem:[%s9258_s27 + $0x10] sm:$0xff] }
  0x1a   :  { %509 = vmatpush.msrb.mxu2 %v371_v33  ;;  %474 = vmatpush.msrb.mxu1 %v370_v45  ;;  %v365_v55 = vld [vmem:[%s9258_s27 + $0x18] sm:$0xff]  ;;  %v614_v58 = vld [vmem:[%s9259_s3 + $0x68] sm:$0xf]  ;;  %v613_v59 = vld [vmem:[%s9259_s3 + $0x60] sm:$0xf] }
  0x1b   :  { %544 = vmatpush.msrb.mxu3 %v372_v47  ;;  %580 = vmatpush.msrb.mxu0 %v369_v52  ;;  %v356_v62 = vld [vmem:[%s9260_s24] sm:$0xff]  ;;  %v611_v12 = vld [vmem:[%s9259_s3 + $0x50] sm:$0xff]  ;;  %v606_v34 = vld [vmem:[%s9259_s3 + $0x28] sm:$0xff] }
  0x1c   :  { %510 = vmatpush.msrb.mxu2 %v367_v46  ;;  %475 = vmatpush.msrb.mxu1 %v366_v48  ;;  %v4047_v1 = vld [vmem:[%s9261_s26] ss:$0 sm:$0xff]  ;;  %v602_v45 = vld [vmem:[%s9259_s3 + $0x8] sm:$0xff] }
  0x1d   :  { %545 = vmatpush.msrb.mxu3 %v368_v51  ;;  %581 = vmatpush.msrb.mxu0 %v365_v55  ;;  %v851_v32 = vld [vmem:[%s8866_s10 + $0x160] sm:$0xff]  ;;  %v4134_v46 = vld [vmem:[%s8866_s10 + $0x1a8] sm:$0xff] }
  0x1e   :  { %511 = vmatpush.msrb.mxu2 %v363_v50  ;;  %476 = vmatpush.msrb.mxu1 %v362_v53  ;;  %v839_v47 = vld [vmem:[%s8866_s10 + $0x100] sm:$0xff] }
  0x1f   :  { %546 = vmatpush.msrb.mxu3 %v364_v54  ;;  %381 = vperm.xlu0 %3184, %v356_v62   ;;  %v601_v48 = vld [vmem:[%s9259_s3] sm:$0xff] }
  0x20   :  { %v831_v62 = vld [vmem:[%s8866_s10 + $0xc0] sm:$0xff] }
  0x21   :  { %3078 = vmatmul.msk.f32.gmra.mxu0 %vm88_vm1, %v77_v3 }
  0x29   :  { %3079 = vmatmul.msk.f32.gmra.mxu0 %vm88_vm1, %v78_v4  ;;  %v610_v4 = vld [vmem:[%s9259_s3 + $0x48] sm:$0xff] }
  0x31   :  { %3080 = vmatmul.msk.f32.gmra.mxu0 %vm88_vm1, %v79_v5  ;;  %v615_v5 = vld [vmem:[%s9259_s3 + $0x70] sm:$0xf] }
  0x39   :  { %3081 = vmatmul.msk.f32.gmra.mxu0 %vm88_vm1, %v80_v6 }
  0x41   :  { %3082 = vmatmul.msk.f32.gmra.mxu0 %vm88_vm1, %v81_v7  ;;  %v357_v7 = vld [vmem:[%s9260_s24 + $0x8] sm:$0xff] }
  0x42   :  { %386 = vperm.xlu0 %3184, %v357_v7  }
  0x49   :  { %3083 = vmatmul.msk.f32.gmra.mxu0 %vm88_vm1, %v82_v8 }
  0x8e   :  { %v134_v16 = vpop.f32.mrf.mxu0 }
  0x8f   :  { %v135_v17 = vadd.f32 %v3187_v15, %v134_v16 }
  0x91   :  { %3195 = vtanh.f32 %v135_v17  ;;  %v609_v17 = vld [vmem:[%s9259_s3 + $0x40] sm:$0xff] }
  0x96   :  { %v137_v18 = vpop.f32.mrf.mxu0 }
  0x97   :  { %v3196_v19 = vpop.eup %3195  ;;  %v138_v20 = vadd.f32 %v3187_v15, %v137_v18  ;;  %v607_v18 = vld [vmem:[%s9259_s3 + $0x30] sm:$0xff] }
  0x98   :  { %3092 = vmatmul.msk.f32.vlgmr.msra.gmra.mxu2 %vm171_vm2, %v3196_v19  ;;  %v863_v19 = vld [vmem:[%s8866_s10 + $0x1c0] sm:$0xff] }
  0x99   :  { %3197 = vtanh.f32 %v138_v20  ;;  %3138 = vmatpush.msk.msra.mxu2 %vm113_vm0, %v614_v58  ;;  %v835_v58 = vld [vmem:[%s8866_s10 + $0xe0] sm:$0xff] }
  0x9b   :  { %676 = vmatpush.msra.mxu2 %v610_v4  ;;  %v773_v4 = vld [vmem:[%s8867_s14 + $0x10] sm:$0xff] }
  0x9d   :  { %677 = vmatpush.msra.mxu2 %v606_v34 }
  0x9e   :  { %v140_v21 = vpop.f32.mrf.mxu0 }
  0x9f   :  { %v3198_v22 = vpop.eup %3197  ;;  %v141_v23 = vadd.f32 %v3187_v15, %v140_v21  ;;  %v603_v21 = vld [vmem:[%s9259_s3 + $0x10] sm:$0xff]  ;;  %678 = vmatpush.msra.mxu2 %v602_v45 }
  0xa0   :  { %3086 = vmatmul.msk.f32.vlgmr.msra.gmra.mxu1 %vm171_vm2, %v3198_v22  ;;  %3093 = vmatmul.msk.f32.gmra.mxu2 %vm171_vm2, %v3198_v22  ;;  %v358_v22 = vld [vmem:[%s9260_s24 + $0x10] sm:$0xff] }
  0xa1   :  { %3199 = vtanh.f32 %v141_v23  ;;  %3136 = vmatpush.msk.msra.mxu1 %vm113_vm0, %v613_v59  ;;  %v859_v23 = vld [vmem:[%s8866_s10 + $0x1a0] sm:$0xff]  ;;  %391 = vperm.xlu1 %3185, %v358_v22   ;;  %v4225_v22 = vld [vmem:[%s8866_s10 + $0x108] sm:$0xff] }
  0xa3   :  { %656 = vmatpush.msra.mxu1 %v609_v17  ;;  %v823_v17 = vld [vmem:[%s8866_s10 + $0x80] sm:$0xff] }
  0xa6   :  { %v143_v24 = vpop.f32.mrf.mxu0 }
  0xa7   :  { %v3200_v25 = vpop.eup %3199  ;;  %v144_v26 = vadd.f32 %v3187_v15, %v143_v24 }
  0xa8   :  { %3087 = vmatmul.msk.f32.gmra.mxu1 %vm171_vm2, %v3200_v25  ;;  %3094 = vmatmul.msk.f32.gmra.mxu2 %vm171_vm2, %v3200_v25 }
  0xa9   :  { %3201 = vtanh.f32 %v144_v26  ;;  %3100 = vmatmul.msk.f32.vlgmr.msra.gmra.mxu3 %vm171_vm2, %v3200_v25  ;;  %v855_v25 = vld [vmem:[%s8866_s10 + $0x180] sm:$0xff] }
  0xaa   :  { %3140 = vmatpush.msk.msra.mxu3 %vm113_vm0, %v615_v5  ;;  %v4186_v5 = vld [vmem:[%s8866_s10 + $0x148] sm:$0xff] }
  0xac   :  { %696 = vmatpush.msra.mxu3 %v611_v12 }
  0xae   :  { %v146_v27 = vpop.f32.mrf.mxu0  ;;  %697 = vmatpush.msra.mxu3 %v607_v18 }
  0xaf   :  { %v3202_v28 = vpop.eup %3201  ;;  %v147_v29 = vadd.f32 %v3187_v15, %v146_v27 }
  0xb0   :  { %3088 = vmatmul.msk.f32.gmra.mxu1 %vm171_vm2, %v3202_v28  ;;  %3095 = vmatmul.msk.f32.gmra.mxu2 %vm171_vm2, %v3202_v28 }
  0xb1   :  { %3203 = vtanh.f32 %v147_v29  ;;  %3101 = vmatmul.msk.f32.gmra.mxu3 %vm171_vm2, %v3202_v28 }
  0xb2   :  { %698 = vmatpush.msra.mxu3 %v603_v21 }
  0xb6   :  { %v149_v35 = vpop.f32.mrf.mxu0 }
  0xb7   :  { %v3204_v36 = vpop.eup %3203  ;;  %v150_v37 = vadd.f32 %v3187_v15, %v149_v35  ;;  %v605_v35 = vld [vmem:[%s9259_s3 + $0x20] sm:$0xff] }
  0xb8   :  { %3089 = vmatmul.msk.f32.gmra.mxu1 %vm171_vm2, %v3204_v36  ;;  %3096 = vmatmul.msk.f32.gmra.mxu2 %vm171_vm2, %v3204_v36 }
  0xb9   :  { %3205 = vtanh.f32 %v150_v37  ;;  %3102 = vmatmul.msk.f32.gmra.mxu3 %vm171_vm2, %v3204_v36  ;;  %657 = vmatpush.msra.mxu1 %v605_v35  ;;  %v4246_v35 = vld [vmem:[%s8866_s10 + $0xc8] sm:$0xff] }
  0xbb   :  { %658 = vmatpush.msra.mxu1 %v601_v48  ;;  %v4275_v48 = vld [vmem:[%s8866_s10 + $0x68] sm:$0xff] }
  0xbc   :  { %9262 = vst [vmem:[#allocation3_spill] sm:$0xff] %v4275_v48 }
  0xbe   :  { %v152_v38 = vpop.f32.mrf.mxu0 }
  0xbf   :  { %v3206_v39 = vpop.eup %3205  ;;  %v153_v40 = vadd.f32 %v3187_v15, %v152_v38  ;;  %v4103_v38 = vld [vmem:[%s8866_s10 + $0x1e8] sm:$0xff] }
  0xc0   :  { %3090 = vmatmul.msk.f32.gmra.mxu1 %vm171_vm2, %v3206_v39  ;;  %3097 = vmatmul.msk.f32.gmra.mxu2 %vm171_vm2, %v3206_v39 }
  0xc1   :  { %3207 = vtanh.f32 %v153_v40  ;;  %3103 = vmatmul.msk.f32.gmra.mxu3 %vm171_vm2, %v3206_v39  ;;  %v847_v39 = vld [vmem:[%s8866_s10 + $0x140] sm:$0xff] }
  0xc6   :  { %v155_v41 = vpop.f32.mrf.mxu0 }
  0xc7   :  { %v3208_v42 = vpop.eup %3207  ;;  %v156_v43 = vadd.f32 %v3187_v15, %v155_v41  ;;  %v867_v15 = vld [vmem:[%s8866_s10 + $0x1e0] sm:$0xff]  ;;  %v4118_v41 = vld [vmem:[%s8866_s10 + $0x1c8] sm:$0xff] }
  0xc8   :  { %3091 = vmatmul.msk.f32.gmra.mxu1 %vm171_vm2, %v3208_v42  ;;  %871 = vmatpush.msra.mxu0 %v867_v15 }
  0xc9   :  { %3209 = vtanh.f32 %v156_v43  ;;  %3104 = vmatmul.msk.f32.gmra.mxu3 %vm171_vm2, %v3208_v42  ;;  %v359_v42 = vld [vmem:[%s9260_s24 + $0x18] sm:$0xff]  ;;  %v843_v43 = vld [vmem:[%s8866_s10 + $0x120] sm:$0xff] }
  0xca   :  { %872 = vmatpush.msra.mxu0 %v863_v19  ;;  %396 = vperm.xlu1 %3185, %v359_v42   ;;  %v604_v19 = vld [vmem:[%s9259_s3 + $0x18] sm:$0xff] }
  0xcc   :  { %873 = vmatpush.msra.mxu0 %v859_v23  ;;  %v819_v23 = vld [vmem:[%s8866_s10 + $0x60] sm:$0xff] }
  0xce   :  { %874 = vmatpush.msra.mxu0 %v855_v25 }
  0xcf   :  { %v3210_v44 = vpop.eup %3209 }
  0xd0   :  { %875 = vmatpush.msra.mxu0 %v851_v32 }
  0xd1   :  { %3105 = vmatmul.msk.f32.gmra.mxu3 %vm171_vm2, %v3210_v44 }
  0xd2   :  { %876 = vmatpush.msra.mxu0 %v847_v39  ;;  %v4259_v39 = vld [vmem:[%s8866_s10 + $0xa8] sm:$0xff] }
  0xd4   :  { %877 = vmatpush.msra.mxu0 %v843_v43 }
  0xd6   :  { %878 = vmatpush.msra.mxu0 %v839_v47 }
  0xd8   :  { %879 = vmatpush.msra.mxu0 %v835_v58  ;;  %v74_v58 = vld [vmem:[%s8868_s2] sm:$0xff] }
  0xda   :  { %880 = vmatpush.msra.mxu0 %v831_v62  ;;  %v865_v62 = vld [vmem:[%s8866_s10 + $0x1d0] sm:$0xff] }
 0x11b   :  { %v245_v57 = vpop.f32.mrf.mxu2 }
 0x11d   :  { %v207_v56 = vpop.f32.mrf.mxu1 }
 0x11e   :  { %v246_v0 = vadd.f32 %v245_v57, %v207_v56  ;;  %v4149_v57 = vld [vmem:[%s8866_s10 + $0x188] sm:$0xff] }
 0x123   :  { %v248_v63 = vpop.f32.mrf.mxu2 }
 0x125   :  { %v210_v60 = vpop.f32.mrf.mxu1 }
 0x126   :  { %v249_v10 = vadd.f32 %v248_v63, %v210_v60  ;;  %v4162_v60 = vld [vmem:[%s8866_s10 + $0x168] sm:$0xff]  ;;  %v616_v63 = vld [vmem:[%s9259_s3 + $0x78] sm:$0xf] }
 0x12b   :  { %v251_v13 = vpop.f32.mrf.mxu2 }
 0x12c   :  { %v286_v2 = vpop.f32.mrf.mxu3 }
 0x12d   :  { %v304_v3 = vadd.f32 %v286_v2, %v246_v0  ;;  %v213_v9 = vpop.f32.mrf.mxu1  ;;  %v774_v0 = vld [vmem:[%s8867_s14 + $0x18] sm:$0xf] }
 0x12e   :  { %v252_v27 = vadd.f32 %v251_v13, %v213_v9 }
 0x12f   :  { %v314_v6 = vadd.f32 %v4047_v1, %v304_v3  ;;  %v612_v3 = vld [vmem:[%s9259_s3 + $0x58] sm:$0xff] }
 0x131   :  { %v326_v8 = vmin.f32 %v314_v6, 0.0  ;;  %vm320_vm4 = vcmp.gt.f32.partialorder %v314_v6, 0.0 }
 0x133   :  { %v332_v11 = vmul.f32 1.442695, %v326_v8  ;;  %v254_v36 = vpop.f32.mrf.mxu2 }
 0x134   :  { %v289_v14 = vpop.f32.mrf.mxu3 }
 0x135   :  { %3211 = vpow2.f32 %v332_v11  ;;  %v305_v16 = vadd.f32 %v289_v14, %v249_v10  ;;  %v216_v29 = vpop.f32.mrf.mxu1  ;;  %v608_v10 = vld [vmem:[%s9259_s3 + $0x38] sm:$0xff]  ;;  %v772_v11 = vld [vmem:[%s8867_s14 + $0x8] sm:$0xff] }
 0x136   :  { %v255_v50 = vadd.f32 %v254_v36, %v216_v29  ;;  %v811_v36 = vld [vmem:[%s8866_s10 + $0x20] sm:$0xff] }
 0x137   :  { %v4076_v20 = vadd.f32 %v4047_v1, %v305_v16  ;;  %v4206_v16 = vld [vmem:[%s8866_s10 + $0x128] sm:$0xff] }
 0x139   :  { %v327_v24 = vmin.f32 %v4076_v20, 0.0  ;;  %vm321_vm5 = vcmp.gt.f32.partialorder %v4076_v20, 0.0 }
 0x13b   :  { %v3212_v26 = vpop.eup %3211  ;;  %v334_v28 = vmul.f32 1.442695, %v327_v24  ;;  %v257_v61 = vpop.f32.mrf.mxu2 }
 0x13c   :  { %v292_v30 = vpop.f32.mrf.mxu3  ;;  %v3106_v31 = vadd.f32 -1.0, %v3212_v26  ;;  %v4234_v26 = vld [vmem:[%s8866_s10 + $0xe8] sm:$0xff] }
 0x13d   :  { %3213 = vpow2.f32 %v334_v28  ;;  %v306_v33 = vadd.f32 %v292_v30, %v252_v27  ;;  %v219_v55 = vpop.f32.mrf.mxu1  ;;  %v815_v27 = vld [vmem:[%s8866_s10 + $0x40] sm:$0xff] }
 0x13e   :  { %v350_v37 = vsel %vm320_vm4, %v314_v6, %v3106_v31  ;;  %v827_v6 = vld [vmem:[%s8866_s10 + $0xa0] sm:$0xff]  ;;  %v258_v8 = vadd.f32 %v257_v61, %v219_v55  ;;  %v4300_v55 = vld [vmem:[%s8866_s10 + $0x8] sm:$0xff]  ;;  %v4319_v61 = vld [vmem:[%s8866_s10 + $0x1f8] sm:$0xff] }
 0x13f   :  { %v4109_v40 = vadd.f32 %v4047_v1, %v306_v33  ;;  %3112 = vmatmul.msk.f32.vlgmr.msrb.gmra.mxu1 %vm442_vm3, %v350_v37  ;;  %3118 = vmatmul.msk.f32.vlgmr.msrb.gmra.mxu2 %vm442_vm3, %v350_v37  ;;  %9265 = vst [vmem:[#allocation6_spill] sm:$0xff] %v4300_v55 }
 0x140   :  { %3124 = vmatmul.msk.f32.vlgmr.msrb.gmra.mxu3 %vm442_vm3, %v350_v37  ;;  %3130 = vmatmul.msk.f32.vlgmr.msrb.gmra.mxu0 %vm442_vm3, %v350_v37 }
 0x141   :  { %v328_v44 = vmin.f32 %v4109_v40, 0.0  ;;  %891 = vmatpush.msrb.mxu3 %v4103_v38  ;;  %3142 = vmatpush.msk.msrb.mxu1 %vm113_vm0, %v616_v63  ;;  %vm322_vm6 = vcmp.gt.f32.partialorder %v4109_v40, 0.0  ;;  %v4330_v63 = vld [vmem:[%s8866_s10 + $0x1d8] sm:$0xff] }
 0x142   :  { %3144 = vmatpush.msk.msrb.mxu2 %vm113_vm0, %v774_v0  ;;  %881 = vmatpush.msra.mxu0 %v827_v6  ;;  %v8887_v0 = vmov 0.0   ;;  %v4349_v6 = vld [vmem:[%s8866_s10 + $0x198] sm:$0xff] }
 0x143   :  { %v3214_v49 = vpop.eup %3213  ;;  %v336_v51 = vmul.f32 1.442695, %v328_v44  ;;  %892 = vmatpush.msrb.mxu3 %v4118_v41  ;;  %716 = vmatpush.msrb.mxu1 %v612_v3  ;;  %v260_v25 = vpop.f32.mrf.mxu2  ;;  %v4340_v3 = vld [vmem:[%s8866_s10 + $0x1b8] sm:$0xff] }
 0x144   :  { %v295_v52 = vpop.f32.mrf.mxu3  ;;  %v3107_v53 = vadd.f32 -1.0, %v3214_v49  ;;  %795 = vmatpush.msrb.mxu2 %v773_v4  ;;  %882 = vmatpush.msra.mxu0 %v823_v17  ;;  %v4284_v49 = vld [vmem:[%s8866_s10 + $0x48] sm:$0xff]  ;;  %v857_v4 = vld [vmem:[%s8866_s10 + $0x190] sm:$0xff]  ;;  %v4397_v17 = vld [vmem:[%s8866_s10 + $0xf8] sm:$0xff] }
 0x145   :  { %3215 = vpow2.f32 %v336_v51  ;;  %v307_v54 = vadd.f32 %v295_v52, %v255_v50  ;;  %893 = vmatpush.msrb.mxu3 %v4134_v46  ;;  %717 = vmatpush.msrb.mxu1 %v608_v10  ;;  %v222_v21 = vpop.f32.mrf.mxu1  ;;  %9263 = vst [vmem:[#allocation4_spill] sm:$0xff] %v4284_v49  ;;  %v360_v50 = vld [vmem:[%s9260_s24 + $0x20] sm:$0xff]  ;;  %v4293_v51 = vld [vmem:[%s8866_s10 + $0x28] sm:$0xff]  ;;  %v4369_v10 = vld [vmem:[%s8866_s10 + $0x158] sm:$0xff] }
 0x146   :  { %v351_v56 = vsel %vm321_vm5, %v4076_v20, %v3107_v53  ;;  %796 = vmatpush.msrb.mxu2 %v772_v11  ;;  %v771_v20 = vld [vmem:[%s8867_s14] sm:$0xff]  ;;  %v261_v29 = vadd.f32 %v260_v25, %v222_v21  ;;  %883 = vmatpush.msra.mxu0 %v819_v23  ;;  %9264 = vst [vmem:[#allocation5_spill] sm:$0xff] %v4293_v51  ;;  %v845_v11 = vld [vmem:[%s8866_s10 + $0x130] sm:$0xff]  ;;  %v4415_v21 = vld [vmem:[%s8866_s10 + $0xb8] sm:$0xff] }
 0x147   :  { %v4155_v59 = vadd.f32 %v4047_v1, %v307_v54  ;;  %3113 = vmatmul.msk.f32.gmra.mxu1 %vm442_vm3, %v351_v56  ;;  %3119 = vmatmul.msk.f32.gmra.mxu2 %vm442_vm3, %v351_v56  ;;  %v825_v23 = vld [vmem:[%s8866_s10 + $0x90] sm:$0xff] }
 0x148   :  { %3125 = vmatmul.msk.f32.gmra.mxu3 %vm442_vm3, %v351_v56  ;;  %3131 = vmatmul.msk.f32.gmra.mxu0 %vm442_vm3, %v351_v56  ;;  %v361_v56 = vld [vmem:[%s9260_s24 + $0x28] sm:$0xff]  ;;  %v821_v25 = vld [vmem:[%s8866_s10 + $0x70] sm:$0xff] }
 0x149   :  { %v329_v2 = vmin.f32 %v4155_v59, 0.0  ;;  %894 = vmatpush.msrb.mxu3 %v4149_v57  ;;  %718 = vmatpush.msrb.mxu1 %v604_v19  ;;  %vm323_vm7 = vcmp.gt.f32.partialorder %v4155_v59, 0.0  ;;  %v4406_v19 = vld [vmem:[%s8866_s10 + $0xd8] sm:$0xff] }
 0x14a   :  { %797 = vmatpush.msrb.mxu2 %v771_v20  ;;  %884 = vmatpush.msra.mxu0 %v815_v27  ;;  %v829_v20 = vld [vmem:[%s8866_s10 + $0xb0] sm:$0xff]  ;;  %v4433_v27 = vld [vmem:[%s8866_s10 + $0x78] sm:$0xff] }
 0x14b   :  { %v3216_v7 = vpop.eup %3215  ;;  %v338_v9 = vmul.f32 1.442695, %v329_v2  ;;  %895 = vmatpush.msrb.mxu3 %v4162_v60  ;;  %401 = vperm.xlu2 %3186, %v360_v50   ;;  %v861_v2 = vld [vmem:[%s8866_s10 + $0x1b0] sm:$0xff]  ;;  %9266 = vst [vmem:[#allocation7_spill] sm:$0xff] %v4433_v27  ;;  %v4522_v50 = vld [vmem:[%s8870_s12 + $0x368] sm:$0xff] }
 0x14c   :  { %v298_v12 = vpop.f32.mrf.mxu3  ;;  %v3108_v13 = vadd.f32 -1.0, %v3216_v7  ;;  %885 = vmatpush.msra.mxu0 %v811_v36  ;;  %v853_v7 = vld [vmem:[%s8866_s10 + $0x170] sm:$0xff]  ;;  %v4474_v36 = vld [vmem:[%s8870_s12 + $0x3e8] sm:$0xff]  ;;  %9279 = vst [vmem:[#allocation20_spill] sm:$0xff] %v4522_v50 }
 0x14d   :  { %3217 = vpow2.f32 %v338_v9  ;;  %v308_v14 = vadd.f32 %v298_v12, %v258_v8  ;;  %896 = vmatpush.msrb.mxu3 %v4186_v5  ;;  %v4358_v8 = vld [vmem:[%s8866_s10 + $0x178] sm:$0xff]  ;;  %v849_v9 = vld [vmem:[%s8866_s10 + $0x150] sm:$0xff]  ;;  %9271 = vst [vmem:[#allocation12_spill] sm:$0xff] %v4474_v36 }
 0x14e   :  { %v352_v15 = vsel %vm322_vm6, %v4109_v40, %v3108_v13  ;;  %v807_v40 = vld [vmem:[%s8866_s10] sm:$0xff]  ;;  %v4378_v12 = vld [vmem:[%s8866_s10 + $0x138] sm:$0xff]  ;;  %v841_v13 = vld [vmem:[%s8866_s10 + $0x110] sm:$0xff] }
 0x14f   :  { %v318_v18 = vadd.f32 %v4047_v1, %v308_v14  ;;  %3114 = vmatmul.msk.f32.gmra.mxu1 %vm442_vm3, %v352_v15  ;;  %3120 = vmatmul.msk.f32.gmra.mxu2 %vm442_vm3, %v352_v15  ;;  %v4388_v14 = vld [vmem:[%s8866_s10 + $0x118] sm:$0xff] }
 0x150   :  { %3126 = vmatmul.msk.f32.gmra.mxu3 %vm442_vm3, %v352_v15  ;;  %3132 = vmatmul.msk.f32.gmra.mxu0 %vm442_vm3, %v352_v15  ;;  %v837_v15 = vld [vmem:[%s8866_s10 + $0xf0] sm:$0xff] }
 0x151   :  { %v330_v24 = vmin.f32 %v318_v18, 0.0  ;;  %897 = vmatpush.msrb.mxu3 %v4206_v16  ;;  %886 = vmatpush.msra.mxu0 %v807_v40  ;;  %vm324_vm8 = vcmp.gt.f32.partialorder %v318_v18, 0.0  ;;  %v4486_v40 = vld [vmem:[%s8870_s12 + $0x3c8] sm:$0xff] }
 0x152   :  { %9273 = vst [vmem:[#allocation14_spill] sm:$0xff] %v4486_v40 }
 0x153   :  { %v3218_v28 = vpop.eup %3217  ;;  %v340_v30 = vmul.f32 1.442695, %v330_v24  ;;  %898 = vmatpush.msrb.mxu3 %v4225_v22  ;;  %406 = vperm.xlu2 %3186, %v361_v56   ;;  %v4424_v24 = vld [vmem:[%s8866_s10 + $0x98] sm:$0xff]  ;;  %v4546_v56 = vld [vmem:[%s8870_s12 + $0x328] sm:$0xff] }
 0x154   :  { %v301_v31 = vpop.f32.mrf.mxu3  ;;  %v3109_v32 = vadd.f32 -1.0, %v3218_v28  ;;  %v817_v28 = vld [vmem:[%s8866_s10 + $0x50] sm:$0xff]  ;;  %9283 = vst [vmem:[#allocation24_spill] sm:$0xff] %v4546_v56 }
 0x155   :  { %3219 = vpow2.f32 %v340_v30  ;;  %v309_v33 = vadd.f32 %v301_v31, %v261_v29  ;;  %899 = vmatpush.msrb.mxu3 %v4234_v26  ;;  %v4442_v29 = vld [vmem:[%s8866_s10 + $0x58] sm:$0xff]  ;;  %v813_v30 = vld [vmem:[%s8866_s10 + $0x30] sm:$0xff] }
 0x156   :  { %v353_v34 = vsel %vm323_vm7, %v4155_v59, %v3109_v32  ;;  %v869_v59 = vld [vmem:[%s8866_s10 + $0x1f0] sm:$0xff]  ;;  %9267 = vst [vmem:[#allocation8_spill] sm:$0xff] %v4442_v29  ;;  %v4451_v31 = vld [vmem:[%s8866_s10 + $0x38] sm:$0xff] }
 0x157   :  { %v319_v37 = vadd.f32 %v4047_v1, %v309_v33  ;;  %3115 = vmatmul.msk.f32.gmra.mxu1 %vm442_vm3, %v353_v34  ;;  %3121 = vmatmul.msk.f32.gmra.mxu2 %vm442_vm3, %v353_v34  ;;  %v4268_v1 = vld [vmem:[%s8866_s10 + $0x88] sm:$0xff]  ;;  %9268 = vst [vmem:[#allocation9_spill] sm:$0xff] %v4451_v31  ;;  %v809_v32 = vld [vmem:[%s8866_s10 + $0x10] sm:$0xff]  ;;  %v4460_v33 = vld [vmem:[%s8866_s10 + $0x18] sm:$0xff] }
 0x158   :  { %3127 = vmatmul.msk.f32.gmra.mxu3 %vm442_vm3, %v353_v34  ;;  %3133 = vmatmul.msk.f32.gmra.mxu0 %vm442_vm3, %v353_v34  ;;  %9269 = vst [vmem:[#allocation10_spill] sm:$0xff] %v4460_v33  ;;  %v4469_v34 = vld [vmem:[%s8870_s12 + $0x3e0] sm:$0xff] }
 0x159   :  { %v331_v42 = vmin.f32 %v319_v37, 0.0  ;;  %900 = vmatpush.msrb.mxu3 %v4246_v35  ;;  %vm325_vm9 = vcmp.gt.f32.partialorder %v319_v37, 0.0  ;;  %9270 = vst [vmem:[#allocation11_spill] sm:$0xff] %v4469_v34 }
 0x15b   :  { %v3220_v43 = vpop.eup %3219  ;;  %v342_v44 = vmul.f32 1.442695, %v331_v42  ;;  %901 = vmatpush.msrb.mxu3 %v4259_v39  ;;  %v4493_v42 = vld [vmem:[%s8870_s12 + $0x3a0] sm:$0xff] }
 0x15c   :  { %v3110_v45 = vadd.f32 -1.0, %v3220_v43  ;;  %9274 = vst [vmem:[#allocation15_spill] sm:$0xff] %v4493_v42  ;;  %v4498_v43 = vld [vmem:[%s8870_s12 + $0x3a8] sm:$0xff] }
 0x15d   :  { %3221 = vpow2.f32 %v342_v44  ;;  %902 = vmatpush.msrb.mxu3 %v4268_v1  ;;  %9275 = vst [vmem:[#allocation16_spill] sm:$0xff] %v4498_v43  ;;  %v4505_v44 = vld [vmem:[%s8870_s12 + $0x380] sm:$0xff] }
 0x15e   :  { %v354_v47 = vsel %vm324_vm8, %v318_v18, %v3110_v45  ;;  %v833_v18 = vld [vmem:[%s8866_s10 + $0xd0] sm:$0xff]  ;;  %9276 = vst [vmem:[#allocation17_spill] sm:$0xff] %v4505_v44  ;;  %v4510_v45 = vld [vmem:[%s8870_s12 + $0x388] sm:$0xff] }
 0x15f   :  { %3116 = vmatmul.msk.f32.gmra.mxu1 %vm442_vm3, %v354_v47  ;;  %3122 = vmatmul.msk.f32.gmra.mxu2 %vm442_vm3, %v354_v47  ;;  %9277 = vst [vmem:[#allocation18_spill] sm:$0xff] %v4510_v45 }
 0x160   :  { %3128 = vmatmul.msk.f32.gmra.mxu3 %vm442_vm3, %v354_v47  ;;  %3134 = vmatmul.msk.f32.gmra.mxu0 %vm442_vm3, %v354_v47  ;;  %v4517_v47 = vld [vmem:[%s8870_s12 + $0x360] sm:$0xff] }
 0x161   :  { %903 = vmatpush.msrb.mxu3 %v4275_v48  ;;  %9278 = vst [vmem:[#allocation19_spill] sm:$0xff] %v4517_v47  ;;  %v5165_v48 = vld [vmem:[%s8870_s12 + $0x1b0] sm:$0xff] }
 0x163   :  { %v3222_v52 = vpop.eup %3221  ;;  %904 = vmatpush.msrb.mxu3 %v4284_v49 }
 0x164   :  { %v3111_v53 = vadd.f32 -1.0, %v3222_v52  ;;  %v4527_v52 = vld [vmem:[%s8870_s12 + $0x340] sm:$0xff] }
 0x165   :  { %905 = vmatpush.msrb.mxu3 %v4293_v51  ;;  %9280 = vst [vmem:[#allocation21_spill] sm:$0xff] %v4527_v52 }
 0x166   :  { %v355_v54 = vsel %vm325_vm9, %v319_v37, %v3111_v53  ;;  %v4479_v37 = vld [vmem:[%s8870_s12 + $0x3c0] sm:$0xff]  ;;  %v4532_v53 = vld [vmem:[%s8870_s12 + $0x348] sm:$0xff] }
 0x167   :  { %3117 = vmatmul.msk.f32.gmra.mxu1 %vm442_vm3, %v355_v54  ;;  %3123 = vmatmul.msk.f32.gmra.mxu2 %vm442_vm3, %v355_v54  ;;  %9272 = vst [vmem:[#allocation13_spill] sm:$0xff] %v4479_v37 }
 0x168   :  { %3129 = vmatmul.msk.f32.gmra.mxu3 %vm442_vm3, %v355_v54  ;;  %3135 = vmatmul.msk.f32.gmra.mxu0 %vm442_vm3, %v355_v54  ;;  %9281 = vst [vmem:[#allocation22_spill] sm:$0xff] %v4532_v53  ;;  %v4541_v54 = vld [vmem:[%s8870_s12 + $0x320] sm:$0xff] }
 0x169   :  { %906 = vmatpush.msrb.mxu3 %v4300_v55  ;;  %9282 = vst [vmem:[#allocation23_spill] sm:$0xff] %v4541_v54 }
 0x16f   :  { %3137 = vmatmul.msk.f32.vlgmr.msra.gmra.mxu1 %vm627_vm10, %v74_v58  ;;  %3139 = vmatmul.msk.f32.vlgmr.msra.gmra.mxu2 %vm627_vm10, %v74_v58 }
 0x170   :  { %3141 = vmatmul.msk.f32.vlgmr.msra.gmra.mxu3 %vm627_vm10, %v74_v58  ;;  %911 = vmatpush.msra.mxu1 %v869_v59  ;;  %v4558_v59 = vld [vmem:[%s8870_s12 + $0x308] sm:$0xff] }
 0x171   :  { %931 = vmatpush.msra.mxu2 %v4319_v61  ;;  %887 = vmatmul.f32.vlgmr.msra.gmra.mxu0 %v8887_v0  ;;  %9285 = vst [vmem:[#allocation26_spill] sm:$0xff] %v4558_v59 }
 0x172   :  { %912 = vmatpush.msra.mxu1 %v865_v62  ;;  %1131 = vmatpush.msra.mxu3 %v4469_v34  ;;  %v4565_v62 = vld [vmem:[%s8870_s12 + $0x2e0] sm:$0xff] }
 0x173   :  { %932 = vmatpush.msra.mxu2 %v4330_v63  ;;  %9286 = vst [vmem:[#allocation27_spill] sm:$0xff] %v4565_v62 }
 0x174   :  { %913 = vmatpush.msra.mxu1 %v861_v2  ;;  %1132 = vmatpush.msra.mxu3 %v4479_v37  ;;  %v4570_v2 = vld [vmem:[%s8870_s12 + $0x2e8] sm:$0xff] }
 0x175   :  { %933 = vmatpush.msra.mxu2 %v4340_v3  ;;  %9287 = vst [vmem:[#allocation28_spill] sm:$0xff] %v4570_v2 }
 0x176   :  { %914 = vmatpush.msra.mxu1 %v857_v4  ;;  %1133 = vmatpush.msra.mxu3 %v4493_v42  ;;  %v4575_v4 = vld [vmem:[%s8870_s12 + $0x2c0] sm:$0xff] }
 0x177   :  { %934 = vmatpush.msra.mxu2 %v4349_v6  ;;  %3143 = vmatmul.msk.f32.vlgmr.msrb.gmra.mxu1 %vm627_vm10, %v74_v58  ;;  %9288 = vst [vmem:[#allocation29_spill] sm:$0xff] %v4575_v4 }
 0x178   :  { %907 = vmatmul.f32.vlgmr.msrb.gmra.mxu3 %v8887_v0  ;;  %915 = vmatpush.msra.mxu1 %v853_v7  ;;  %v4580_v7 = vld [vmem:[%s8870_s12 + $0x2c8] sm:$0xff] }
 0x179   :  { %935 = vmatpush.msra.mxu2 %v4358_v8  ;;  %1134 = vmatpush.msra.mxu3 %v4505_v44  ;;  %9289 = vst [vmem:[#allocation30_spill] sm:$0xff] %v4580_v7 }
 0x17a   :  { %916 = vmatpush.msra.mxu1 %v849_v9  ;;  %3145 = vmatmul.msk.f32.vlgmr.msrb.gmra.mxu2 %vm627_vm10, %v74_v58  ;;  %v4553_v58 = vld [vmem:[%s8870_s12 + $0x300] sm:$0xff] }
 0x17b   :  { %936 = vmatpush.msra.mxu2 %v4369_v10  ;;  %1135 = vmatpush.msra.mxu3 %v4517_v47  ;;  %9284 = vst [vmem:[#allocation25_spill] sm:$0xff] %v4553_v58  ;;  %v4589_v9 = vld [vmem:[%s8870_s12 + $0x2a0] sm:$0xff] }
 0x17c   :  { %917 = vmatpush.msra.mxu1 %v845_v11  ;;  %9290 = vst [vmem:[#allocation31_spill] sm:$0xff] %v4589_v9  ;;  %v4594_v11 = vld [vmem:[%s8870_s12 + $0x2a8] sm:$0xff] }
 0x17d   :  { %937 = vmatpush.msra.mxu2 %v4378_v12  ;;  %1136 = vmatpush.msra.mxu3 %v4527_v52  ;;  %9291 = vst [vmem:[#allocation32_spill] sm:$0xff] %v4594_v11  ;;  %v4824_v52 = vld [vmem:[%s8870_s12 + $0x350] sm:$0xff] }
 0x17e   :  { %918 = vmatpush.msra.mxu1 %v841_v13  ;;  %9326 = vst [vmem:[#allocation67_spill] sm:$0xff] %v4824_v52 }
 0x17f   :  { %938 = vmatpush.msra.mxu2 %v4388_v14  ;;  %1137 = vmatpush.msra.mxu3 %v4541_v54  ;;  %v4763_v54 = vld [vmem:[%s8870_s12 + $0x180] sm:$0xff] }
 0x180   :  { %919 = vmatpush.msra.mxu1 %v837_v15  ;;  %9316 = vst [vmem:[#allocation57_spill] sm:$0xff] %v4763_v54 }
 0x181   :  { %939 = vmatpush.msra.mxu2 %v4397_v17  ;;  %1138 = vmatpush.msra.mxu3 %v4553_v58 }
 0x182   :  { %920 = vmatpush.msra.mxu1 %v833_v18  ;;  %v4605_v18 = vld [vmem:[%s8870_s12 + $0x280] sm:$0xff] }
 0x183   :  { %940 = vmatpush.msra.mxu2 %v4406_v19  ;;  %1139 = vmatpush.msra.mxu3 %v4565_v62  ;;  %9293 = vst [vmem:[#allocation34_spill] sm:$0xff] %v4605_v18  ;;  %v4727_v62 = vld [vmem:[%s8870_s12 + $0x1a0] sm:$0xff] }
 0x184   :  { %921 = vmatpush.msra.mxu1 %v829_v20  ;;  %v4610_v20 = vld [vmem:[%s8870_s12 + $0x288] sm:$0xff]  ;;  %9312 = vst [vmem:[#allocation53_spill] sm:$0xff] %v4727_v62 }
 0x185   :  { %941 = vmatpush.msra.mxu2 %v4415_v21  ;;  %1140 = vmatpush.msra.mxu3 %v4575_v4  ;;  %9294 = vst [vmem:[#allocation35_spill] sm:$0xff] %v4610_v20  ;;  %v4707_v4 = vld [vmem:[%s8870_s12 + $0x1c8] sm:$0xff] }
 0x186   :  { %922 = vmatpush.msra.mxu1 %v825_v23  ;;  %v4617_v23 = vld [vmem:[%s8870_s12 + $0x260] sm:$0xff]  ;;  %9309 = vst [vmem:[#allocation50_spill] sm:$0xff] %v4707_v4 }
 0x187   :  { %942 = vmatpush.msra.mxu2 %v4424_v24  ;;  %1141 = vmatpush.msra.mxu3 %v4589_v9  ;;  %9295 = vst [vmem:[#allocation36_spill] sm:$0xff] %v4617_v23  ;;  %v4673_v9 = vld [vmem:[%s8870_s12 + $0x208] sm:$0xff] }
 0x188   :  { %923 = vmatpush.msra.mxu1 %v821_v25  ;;  %v4622_v25 = vld [vmem:[%s8870_s12 + $0x268] sm:$0xff]  ;;  %9303 = vst [vmem:[#allocation44_spill] sm:$0xff] %v4673_v9 }
 0x189   :  { %943 = vmatpush.msra.mxu2 %v4433_v27  ;;  %1142 = vmatpush.msra.mxu3 %v4605_v18  ;;  %9296 = vst [vmem:[#allocation37_spill] sm:$0xff] %v4622_v25  ;;  %v4650_v18 = vld [vmem:[%s8870_s12 + $0x228] sm:$0xff] }
 0x18a   :  { %924 = vmatpush.msra.mxu1 %v817_v28  ;;  %v4627_v28 = vld [vmem:[%s8870_s12 + $0x240] sm:$0xff]  ;;  %9301 = vst [vmem:[#allocation42_spill] sm:$0xff] %v4650_v18 }
 0x18b   :  { %944 = vmatpush.msra.mxu2 %v4442_v29  ;;  %9297 = vst [vmem:[#allocation38_spill] sm:$0xff] %v4627_v28  ;;  %1143 = vmatpush.msra.mxu3 %v4617_v23  ;;  %v9370_v29 = vmov 0.0  }
 0x18c   :  { %925 = vmatpush.msra.mxu1 %v813_v30  ;;  %v4632_v30 = vld [vmem:[%s8870_s12 + $0x248] sm:$0xff] }
 0x18d   :  { %945 = vmatpush.msra.mxu2 %v4451_v31  ;;  %9298 = vst [vmem:[#allocation39_spill] sm:$0xff] %v4632_v30  ;;  %1144 = vmatpush.msra.mxu3 %v4627_v28 }
 0x18e   :  { %926 = vmatpush.msra.mxu1 %v809_v32 }
 0x18f   :  { %946 = vmatpush.msra.mxu2 %v4460_v33  ;;  %927 = vmatmul.f32.vlgmr.msra.gmra.mxu1 %v8887_v0  ;;  %v5072_v33 = vld [vmem:[%s8870_s12 + $0x20] sm:$0xff] }
 0x190   :  { %947 = vmatmul.f32.vlgmr.msra.gmra.mxu2 %v8887_v0  ;;  %9360 = vst [vmem:[#allocation101_spill] sm:$0xff] %v5072_v33 }
 0x191   :  { %1171 = vmatpush.msrb.mxu2 %v4474_v36  ;;  %v4981_v36 = vpop.permute.xlu0 %381 }
 0x193   :  { %1172 = vmatpush.msrb.mxu2 %v4486_v40 }
 0x195   :  { %1173 = vmatpush.msrb.mxu2 %v4498_v43  ;;  %v4894_v43 = vld [vmem:[%s8870_s12 + $0x318] sm:$0xff] }
 0x196   :  { %9335 = vst [vmem:[#allocation76_spill] sm:$0xff] %v4894_v43 }
 0x197   :  { %1174 = vmatpush.msrb.mxu2 %v4510_v45  ;;  %v4872_v45 = vld [vmem:[%s8870_s12 + $0x100] sm:$0xff] }
 0x198   :  { %9332 = vst [vmem:[#allocation73_spill] sm:$0xff] %v4872_v45 }
 0x199   :  { %1175 = vmatpush.msrb.mxu2 %v4522_v50 }
 0x19b   :  { %1176 = vmatpush.msrb.mxu2 %v4532_v53 }
 0x19d   :  { %1177 = vmatpush.msrb.mxu2 %v4546_v56 }
 0x19f   :  { %1178 = vmatpush.msrb.mxu2 %v4558_v59  ;;  %v4744_v59 = vld [vmem:[%s8870_s12 + $0x3b8] sm:$0xff] }
 0x1a0   :  { %9315 = vst [vmem:[#allocation56_spill] sm:$0xff] %v4744_v59 }
 0x1a1   :  { %1179 = vmatpush.msrb.mxu2 %v4570_v2 }
 0x1a3   :  { %1180 = vmatpush.msrb.mxu2 %v4580_v7  ;;  %v4690_v7 = vld [vmem:[%s8870_s12 + $0x3f0] sm:$0xff] }
 0x1a4   :  { %9306 = vst [vmem:[#allocation47_spill] sm:$0xff] %v4690_v7 }
 0x1a5   :  { %1181 = vmatpush.msrb.mxu2 %v4594_v11  ;;  %v4668_v11 = vld [vmem:[%s8870_s12 + $0x200] sm:$0xff] }
 0x1a6   :  { %9302 = vst [vmem:[#allocation43_spill] sm:$0xff] %v4668_v11 }
 0x1a7   :  { %1182 = vmatpush.msrb.mxu2 %v4610_v20  ;;  %v4645_v20 = vld [vmem:[%s8870_s12 + $0x220] sm:$0xff] }
 0x1a8   :  { %9300 = vst [vmem:[#allocation41_spill] sm:$0xff] %v4645_v20  ;;  %1145 = vmatpush.msra.mxu3 %v4645_v20  ;;  %v4685_v20 = vld [vmem:[%s8870_s12 + $0x1e8] sm:$0xff] }
 0x1a9   :  { %1183 = vmatpush.msrb.mxu2 %v4622_v25  ;;  %v4654_v25 = vpop.permute.xlu1 %391  ;;  %9305 = vst [vmem:[#allocation46_spill] sm:$0xff] %v4685_v20  ;;  %1151 = vmatpush.msrb.mxu1 %v4685_v20  ;;  %v4717_v20 = vld [vmem:[%s8870_s12 + $0x3d0] sm:$0xff] }
 0x1aa   :  { %1146 = vmatpush.msra.mxu3 %v4668_v11  ;;  %v4702_v11 = vld [vmem:[%s8870_s12 + $0x1c0] sm:$0xff]  ;;  %9310 = vst [vmem:[#allocation51_spill] sm:$0xff] %v4717_v20 }
 0x1ab   :  { %1184 = vmatpush.msrb.mxu2 %v4632_v30  ;;  %v4661_v30 = vld [vmem:[%s8871_s8] sm:$0xf]  ;;  %9308 = vst [vmem:[#allocation49_spill] sm:$0xff] %v4702_v11  ;;  %1152 = vmatpush.msrb.mxu1 %v4707_v4 }
 0x1ac   :  { %v4710_v2 = vperm.slane %v4661_v30, 3  ;;  %1211 = vmatpush.msrb.mxu3 %v4690_v7  ;;  %v4739_v7 = vld [vmem:[%s8870_s12 + $0x3b0] sm:$0xff]  ;;  %v4885_v44 = vperm.slane %v4661_v30, 1  ;;  %v4897_v42 = vperm.slane %v4661_v30, 2 }
 0x1ad   :  { %1185 = vmatpush.msrb.mxu2 %v4650_v18  ;;  %v4680_v18 = vld [vmem:[%s8870_s12 + $0x1e0] sm:$0xff]  ;;  %9314 = vst [vmem:[#allocation55_spill] sm:$0xff] %v4739_v7  ;;  %1147 = vmatmul.f32.vlgmr.msra.gmra.mxu3 %v9370_v29 }
 0x1ae   :  { %9304 = vst [vmem:[#allocation45_spill] sm:$0xff] %v4680_v18  ;;  %1111 = vmatpush.msrb.mxu0 %v4680_v18  ;;  %v4722_v18 = vld [vmem:[%s8870_s12 + $0x3d8] sm:$0xff]  ;;  %v429_v4 = vmul.f32 %v4710_v2, %v4654_v25  ;;  %1212 = vmatpush.msrb.mxu3 %v4717_v20 }
 0x1af   :  { %1186 = vmatpush.msrb.mxu2 %v4673_v9  ;;  %v4697_v9 = vld [vmem:[%s8870_s12 + $0x3f8] sm:$0xff]  ;;  %9311 = vst [vmem:[#allocation52_spill] sm:$0xff] %v4722_v18 }
 0x1b0   :  { %9307 = vst [vmem:[#allocation48_spill] sm:$0xff] %v4697_v9  ;;  %1112 = vmatpush.msrb.mxu0 %v4702_v11  ;;  %1213 = vmatpush.msrb.mxu3 %v4739_v7  ;;  %v4785_v7 = vld [vmem:[%s8870_s12 + $0x160] sm:$0xff] }
 0x1b1   :  { %1251 = vmatpush.msra.mxu2 %v4697_v9  ;;  %v4734_v9 = vld [vmem:[%s8870_s12 + $0x1a8] sm:$0xff]  ;;  %9320 = vst [vmem:[#allocation61_spill] sm:$0xff] %v4785_v7  ;;  %v397_v53 = vpop.permute.xlu1 %396 }
 0x1b2   :  { %9313 = vst [vmem:[#allocation54_spill] sm:$0xff] %v4734_v9  ;;  %1113 = vmatpush.msrb.mxu0 %v4727_v62  ;;  %1153 = vmatpush.msrb.mxu1 %v4734_v9  ;;  %v4773_v9 = vld [vmem:[%s8870_s12 + $0x390] sm:$0xff]  ;;  %v433_v47 = vmul.f32 %v4710_v2, %v397_v53 }
 0x1b3   :  { %1252 = vmatpush.msra.mxu2 %v4722_v18  ;;  %v4768_v18 = vld [vmem:[%s8870_s12 + $0x188] sm:$0xff]  ;;  %9318 = vst [vmem:[#allocation59_spill] sm:$0xff] %v4773_v9  ;;  %1214 = vmatpush.msrb.mxu3 %v4773_v9 }
 0x1b4   :  { %9317 = vst [vmem:[#allocation58_spill] sm:$0xff] %v4768_v18  ;;  %1114 = vmatpush.msrb.mxu0 %v4763_v54  ;;  %1154 = vmatpush.msrb.mxu1 %v4768_v18  ;;  %v4794_v18 = vld [vmem:[%s8870_s12 + $0x168] sm:$0xff]  ;;  %v4799_v54 = vld [vmem:[%s8870_s12 + $0x370] sm:$0xff] }
 0x1b5   :  { %1253 = vmatpush.msra.mxu2 %v4744_v59  ;;  %v4780_v59 = vld [vmem:[%s8870_s12 + $0x398] sm:$0xff]  ;;  %9321 = vst [vmem:[#allocation62_spill] sm:$0xff] %v4794_v18  ;;  %v4819_v9 = vld [vmem:[%s8870_s12 + $0x148] sm:$0xff]  ;;  %1215 = vmatpush.msrb.mxu3 %v4799_v54 }
 0x1b6   :  { %9319 = vst [vmem:[#allocation60_spill] sm:$0xff] %v4780_v59  ;;  %1115 = vmatpush.msrb.mxu0 %v4785_v7  ;;  %1155 = vmatpush.msrb.mxu1 %v4794_v18  ;;  %v4831_v18 = vld [vmem:[%s8870_s12 + $0x358] sm:$0xff] }
 0x1b7   :  { %1254 = vmatpush.msra.mxu2 %v4780_v59  ;;  %9322 = vst [vmem:[#allocation63_spill] sm:$0xff] %v4799_v54  ;;  %v4814_v59 = vld [vmem:[%s8870_s12 + $0x140] sm:$0xff]  ;;  %1216 = vmatpush.msrb.mxu3 %v4824_v52  ;;  %v4849_v54 = vld [vmem:[%s8870_s12 + $0x128] sm:$0xff] }
 0x1b8   :  { %9324 = vst [vmem:[#allocation65_spill] sm:$0xff] %v4814_v59  ;;  %1116 = vmatpush.msrb.mxu0 %v4814_v59  ;;  %1156 = vmatpush.msrb.mxu1 %v4819_v9 }
 0x1b9   :  { %9325 = vst [vmem:[#allocation66_spill] sm:$0xff] %v4819_v9  ;;  %v4854_v9 = vld [vmem:[%s8870_s12 + $0x330] sm:$0xff]  ;;  %1187 = vmatmul.f32.vlgmr.msrb.gmra.mxu2 %v9370_v29  ;;  %v5186_v29 = vld [vmem:[%s8870_s12 + $0x198] sm:$0xff] }
 0x1ba   :  { %9327 = vst [vmem:[#allocation68_spill] sm:$0xff] %v4831_v18  ;;  %1157 = vmatpush.msrb.mxu1 %v4849_v54  ;;  %1217 = vmatpush.msrb.mxu3 %v4854_v9 }
 0x1bb   :  { %9329 = vst [vmem:[#allocation70_spill] sm:$0xff] %v4849_v54  ;;  %v4877_v54 = vld [vmem:[%s8870_s12 + $0x108] sm:$0xff] }
 0x1bc   :  { %v4596_v13 = vpop.f32.mrf.mxu1  ;;  %9330 = vst [vmem:[#allocation71_spill] sm:$0xff] %v4854_v9  ;;  %1158 = vmatpush.msrb.mxu1 %v4877_v54 }
 0x1bd   :  { %v4600_v15 = vpop.f32.mrf.mxu0  ;;  %9333 = vst [vmem:[#allocation74_spill] sm:$0xff] %v4877_v54  ;;  %v432_v54 = vmul.f32 %v4897_v42, %v397_v53 }
 0x1be   :  { %9292 = vst [vmem:[#allocation33_spill] sm:$0xff] %v4600_v15  ;;  %v4865_v15 = vpop.permute.xlu2 %401 }
 0x1c2   :  { %v4636_v32 = vpop.f32.mrf.mxu2 }
 0x1c3   :  { %v4640_v0 = vpop.f32.mrf.mxu3 }
 0x1c4   :  { %9299 = vst [vmem:[#allocation40_spill] sm:$0xff] %v4640_v0  ;;  %v4652_v23 = vpop.f32.mrf.mxu1 }
 0x1c5   :  { %v4663_v28 = vpop.f32.mrf.mxu0 }
 0x1ca   :  { %v4746_v58 = vpop.f32.mrf.mxu2 }
 0x1cb   :  { %v4752_v11 = vpop.f32.mrf.mxu3 }
 0x1cc   :  { %v4756_v56 = vpop.f32.mrf.mxu1 }
 0x1cd   :  { %v589_v62 = vpop.f32.mrf.mxu0 }
 0x1ce   :  { %v4787_v20 = vadd.f32 %v589_v62, %v429_v4  ;;  %v4804_v62 = vld [vmem:[%s8870_s12 + $0x378] sm:$0xff]  ;;  %v4807_v4 = vperm.slane %v4661_v30, 0  ;;  %v4916_v30 = vld [vmem:[%s8870_s12 + $0x2f0] sm:$0xff] }
 0x1cf   :  { %9323 = vst [vmem:[#allocation64_spill] sm:$0xff] %v4804_v62  ;;  %1255 = vmatpush.msra.mxu2 %v4804_v62  ;;  %v4844_v62 = vld [vmem:[%s8870_s12 + $0x120] sm:$0xff] }
 0x1d0   :  { %v430_v7 = vmul.f32 %v4807_v4, %v397_v53  ;;  %9328 = vst [vmem:[#allocation69_spill] sm:$0xff] %v4844_v62  ;;  %1117 = vmatpush.msrb.mxu0 %v4844_v62  ;;  %v4882_v62 = vld [vmem:[%s8870_s12 + $0x310] sm:$0xff]  ;;  %v426_v49 = vmul.f32 %v4807_v4, %v4654_v25 }
 0x1d1   :  { %1256 = vmatpush.msra.mxu2 %v4831_v18  ;;  %v4863_v18 = vld [vmem:[%s8870_s12 + $0x338] sm:$0xff]  ;;  %9334 = vst [vmem:[#allocation75_spill] sm:$0xff] %v4882_v62  ;;  %1218 = vmatpush.msrb.mxu3 %v4882_v62  ;;  %v4960_v62 = vld [vmem:[%s8870_s12 + $0xa0] sm:$0xff] }
 0x1d2   :  { %v4836_v50 = vpop.f32.mrf.mxu2  ;;  %9331 = vst [vmem:[#allocation72_spill] sm:$0xff] %v4863_v18  ;;  %1118 = vmatpush.msrb.mxu0 %v4872_v45  ;;  %v4932_v45 = vld [vmem:[%s8870_s12 + $0xc0] sm:$0xff] }
 0x1d3   :  { %v4856_v59 = vpop.f32.mrf.mxu3  ;;  %1257 = vmatpush.msra.mxu2 %v4863_v18  ;;  %9338 = vst [vmem:[#allocation79_spill] sm:$0xff] %v4916_v30  ;;  %1219 = vmatpush.msrb.mxu3 %v4916_v30 }
 0x1d4   :  { %v487_v52 = vpop.f32.mrf.mxu1  ;;  %9340 = vst [vmem:[#allocation81_spill] sm:$0xff] %v4932_v45 }
 0x1d5   :  { %v4887_v9 = vadd.f32 %v487_v52, %v430_v7  ;;  %v592_v18 = vpop.f32.mrf.mxu0  ;;  %1258 = vmatpush.msra.mxu2 %v4894_v43  ;;  %v4906_v52 = vld [vmem:[%s8870_s12 + $0xe0] sm:$0xff]  ;;  %v4911_v7 = vld [vmem:[%s8870_s12 + $0xe8] sm:$0xff]  ;;  %v437_v43 = vmul.f32 %v4710_v2, %v4865_v15  ;;  %9344 = vst [vmem:[#allocation85_spill] sm:$0xff] %v4960_v62 }
 0x1d6   :  { %v4899_v40 = vadd.f32 %v592_v18, %v433_v47  ;;  %9336 = vst [vmem:[#allocation77_spill] sm:$0xff] %v4906_v52  ;;  %v431_v47 = vmul.f32 %v4885_v44, %v397_v53  ;;  %1119 = vmatpush.msrb.mxu0 %v4906_v52  ;;  %1159 = vmatpush.msrb.mxu1 %v4911_v7  ;;  %v4924_v18 = vld [vmem:[%s8870_s12 + $0x2f8] sm:$0xff]  ;;  %v4942_v52 = vld [vmem:[%s8870_s12 + $0x2d0] sm:$0xff] }
 0x1d7   :  { %9337 = vst [vmem:[#allocation78_spill] sm:$0xff] %v4911_v7  ;;  %1259 = vmatpush.msra.mxu2 %v4924_v18  ;;  %v4937_v7 = vld [vmem:[%s8870_s12 + $0xc8] sm:$0xff]  ;;  %v434_v53 = vmul.f32 %v4807_v4, %v4865_v15  ;;  %1220 = vmatpush.msrb.mxu3 %v4942_v52 }
 0x1d8   :  { %9339 = vst [vmem:[#allocation80_spill] sm:$0xff] %v4924_v18  ;;  %1120 = vmatpush.msrb.mxu0 %v4932_v45  ;;  %1160 = vmatpush.msrb.mxu1 %v4937_v7  ;;  %v4951_v18 = vld [vmem:[%s8870_s12 + $0x2d8] sm:$0xff]  ;;  %v4970_v45 = vld [vmem:[%s8870_s12 + $0x2b0] sm:$0xff] }
 0x1d9   :  { %9341 = vst [vmem:[#allocation82_spill] sm:$0xff] %v4937_v7  ;;  %1260 = vmatpush.msra.mxu2 %v4951_v18  ;;  %v4965_v7 = vld [vmem:[%s8870_s12 + $0xa8] sm:$0xff]  ;;  %1221 = vmatpush.msrb.mxu3 %v4970_v45 }
 0x1da   :  { %9342 = vst [vmem:[#allocation83_spill] sm:$0xff] %v4942_v52  ;;  %v522_v30 = vpop.f32.mrf.mxu2  ;;  %1121 = vmatpush.msrb.mxu0 %v4960_v62  ;;  %1161 = vmatpush.msrb.mxu1 %v4965_v7  ;;  %v5009_v62 = vld [vmem:[%s8870_s12 + $0x298] sm:$0xff] }
 0x1db   :  { %9343 = vst [vmem:[#allocation84_spill] sm:$0xff] %v4951_v18  ;;  %v4972_v37 = vadd.f32 %v522_v30, %v431_v47  ;;  %v557_v52 = vpop.f32.mrf.mxu3  ;;  %v4979_v18 = vld [vmem:[%s8870_s12 + $0x2b8] sm:$0xff]  ;;  %v4990_v30 = vld [vmem:[%s8870_s12 + $0x80] sm:$0xff]  ;;  %v4995_v47 = vld [vmem:[%s8870_s12 + $0x88] sm:$0xff] }
 0x1dc   :  { %9345 = vst [vmem:[#allocation86_spill] sm:$0xff] %v4965_v7  ;;  %v4983_v34 = vadd.f32 %v557_v52, %v432_v54  ;;  %v490_v0 = vpop.f32.mrf.mxu1  ;;  %1261 = vmatpush.msra.mxu2 %v4979_v18  ;;  %v5000_v54 = vld [vmem:[%s8870_s12 + $0x290] sm:$0xff]  ;;  %1122 = vmatpush.msrb.mxu0 %v4990_v30 }
 0x1dd   :  { %9346 = vst [vmem:[#allocation87_spill] sm:$0xff] %v4970_v45  ;;  %v5002_v52 = vadd.f32 %v490_v0, %v434_v53  ;;  %v595_v7 = vpop.f32.mrf.mxu0  ;;  %1162 = vmatpush.msrb.mxu1 %v4995_v47  ;;  %v407_v45 = vpop.permute.xlu2 %406  ;;  %1222 = vmatpush.msrb.mxu3 %v5000_v54  ;;  %v5018_v0 = vld [vmem:[%s8870_s12 + $0x60] sm:$0xff]  ;;  %v5023_v53 = vld [vmem:[%s8870_s12 + $0x68] sm:$0xff] }
 0x1de   :  { %9347 = vst [vmem:[#allocation88_spill] sm:$0xff] %v4979_v18  ;;  %v5011_v18 = vadd.f32 %v595_v7, %v437_v43  ;;  %1262 = vmatpush.msra.mxu2 %v5009_v62  ;;  %v5028_v43 = vld [vmem:[%s8870_s12 + $0x270] sm:$0xff]  ;;  %v435_v7 = vmul.f32 %v4885_v44, %v4865_v15  ;;  %1123 = vmatpush.msrb.mxu0 %v5018_v0 }
 0x1df   :  { %9348 = vst [vmem:[#allocation89_spill] sm:$0xff] %v4990_v30  ;;  %1163 = vmatpush.msrb.mxu1 %v5023_v53  ;;  %v436_v30 = vmul.f32 %v4897_v42, %v4865_v15  ;;  %1223 = vmatpush.msrb.mxu3 %v5028_v43  ;;  %v438_v15 = vmul.f32 %v4807_v4, %v407_v45 }
 0x1e0   :  { %9349 = vst [vmem:[#allocation90_spill] sm:$0xff] %v4995_v47  ;;  %v5037_v47 = vld [vmem:[%s8870_s12 + $0x278] sm:$0xff] }
 0x1e1   :  { %9350 = vst [vmem:[#allocation91_spill] sm:$0xff] %v5000_v54  ;;  %1263 = vmatpush.msra.mxu2 %v5037_v47  ;;  %v441_v54 = vmul.f32 %v4710_v2, %v407_v45 }
 0x1e2   :  { %9351 = vst [vmem:[#allocation92_spill] sm:$0xff] %v5009_v62  ;;  %v5046_v62 = vld [vmem:[%s8870_s12 + $0x40] sm:$0xff] }
 0x1e3   :  { %9352 = vst [vmem:[#allocation93_spill] sm:$0xff] %v5018_v0  ;;  %v5056_v0 = vld [vmem:[%s8870_s12 + $0x250] sm:$0xff]  ;;  %1124 = vmatpush.msrb.mxu0 %v5046_v62 }
 0x1e4   :  { %9353 = vst [vmem:[#allocation94_spill] sm:$0xff] %v5023_v53  ;;  %v5051_v53 = vld [vmem:[%s8870_s12 + $0x48] sm:$0xff]  ;;  %1224 = vmatpush.msrb.mxu3 %v5056_v0  ;;  %v493_v51 = vpop.f32.mrf.mxu1 }
 0x1e5   :  { %9354 = vst [vmem:[#allocation95_spill] sm:$0xff] %v5028_v43  ;;  %1164 = vmatpush.msrb.mxu1 %v5051_v53  ;;  %v525_v43 = vpop.f32.mrf.mxu2  ;;  %1125 = vmatpush.msrb.mxu0 %v5072_v33  ;;  %v5119_v33 = vld [vmem:[%s8870_s12 + $0x218] sm:$0xff] }
 0x1e6   :  { %9355 = vst [vmem:[#allocation96_spill] sm:$0xff] %v5037_v47  ;;  %v5064_v47 = vld [vmem:[%s8870_s12 + $0x258] sm:$0xff]  ;;  %v5084_v55 = vadd.f32 %v525_v43, %v435_v7  ;;  %v5100_v43 = vld [vmem:[%s8870_s12] sm:$0xff]  ;;  %v5105_v7 = vld [vmem:[%s8870_s12 + $0x8] sm:$0xff] }
 0x1e7   :  { %9356 = vst [vmem:[#allocation97_spill] sm:$0xff] %v5046_v62  ;;  %1264 = vmatpush.msra.mxu2 %v5064_v47  ;;  %v5082_v62 = vld [vmem:[%s8870_s12 + $0x230] sm:$0xff]  ;;  %1126 = vmatpush.msrb.mxu0 %v5100_v43 }
 0x1e8   :  { %9357 = vst [vmem:[#allocation98_spill] sm:$0xff] %v5051_v53  ;;  %v5077_v53 = vld [vmem:[%s8870_s12 + $0x28] sm:$0xff]  ;;  %1225 = vmatpush.msrb.mxu3 %v5082_v62 }
 0x1e9   :  { %9358 = vst [vmem:[#allocation99_spill] sm:$0xff] %v5056_v0  ;;  %v560_v0 = vpop.f32.mrf.mxu3  ;;  %1165 = vmatpush.msrb.mxu1 %v5077_v53 }
 0x1ea   :  { %9359 = vst [vmem:[#allocation100_spill] sm:$0xff] %v5064_v47  ;;  %v5091_v47 = vld [vmem:[%s8870_s12 + $0x238] sm:$0xff]  ;;  %v5093_v31 = vadd.f32 %v560_v0, %v436_v30  ;;  %v5110_v30 = vld [vmem:[%s8870_s12 + $0x210] sm:$0xff]  ;;  %v5112_v0 = vadd.f32 %v493_v51, %v438_v15  ;;  %v387_v15 = vpop.permute.xlu0 %386 }
 0x1eb   :  { %9361 = vst [vmem:[#allocation102_spill] sm:$0xff] %v5077_v53  ;;  %1265 = vmatpush.msra.mxu2 %v5091_v47  ;;  %v598_v53 = vpop.f32.mrf.mxu0  ;;  %1166 = vmatpush.msrb.mxu1 %v5105_v7  ;;  %v5129_v51 = vld [vmem:[%s8870_s12 + $0x1f8] sm:$0xff] }
 0x1ec   :  { %9362 = vst [vmem:[#allocation103_spill] sm:$0xff] %v5082_v62  ;;  %v5131_v62 = vadd.f32 %v598_v53, %v441_v54  ;;  %1226 = vmatpush.msrb.mxu3 %v5110_v30  ;;  %v5146_v54 = vld [vmem:[%s8870_s12 + $0x1d0] sm:$0xff]  ;;  %v5151_v53 = vld [vmem:[%s8870_s12 + $0x1d8] sm:$0xff] }
 0x1ed   :  { %9363 = vst [vmem:[#allocation104_spill] sm:$0xff] %v5091_v47  ;;  %v5124_v47 = vld [vmem:[%s8870_s12 + $0x1f0] sm:$0xff]  ;;  %1266 = vmatpush.msra.mxu2 %v5119_v33  ;;  %1231 = vmatpush.msra.mxu1 %v5129_v51 }
 0x1ee   :  { %9364 = vst [vmem:[#allocation105_spill] sm:$0xff] %v5100_v43  ;;  %v439_v43 = vmul.f32 %v4885_v44, %v407_v45  ;;  %1191 = vmatpush.msra.mxu0 %v5124_v47  ;;  %1328 = vmatpush.msra.mxu3 %v4103_v38 }
 0x1ef   :  { %9365 = vst [vmem:[#allocation106_spill] sm:$0xff] %v5105_v7  ;;  %v5136_v7 = vld [vmem:[%s8872_s11] sm:$0xf]  ;;  %1368 = vmatpush.msrb.mxu2 %v4319_v61  ;;  %1232 = vmatpush.msra.mxu1 %v5151_v53  ;;  %v5181_v61 = vld [vmem:[%s8870_s12 + $0x190] sm:$0xff] }
 0x1f0   :  { %9366 = vst [vmem:[#allocation107_spill] sm:$0xff] %v5110_v30  ;;  %v440_v30 = vmul.f32 %v4897_v42, %v407_v45  ;;  %v619_v27 = vperm.slane %v5136_v7, 0  ;;  %v5170_v45 = vld [vmem:[%s8870_s12 + $0x1b8] sm:$0xff]  ;;  %1192 = vmatpush.msra.mxu0 %v5146_v54  ;;  %1329 = vmatpush.msra.mxu3 %v4118_v41 }
 0x1f1   :  { %9367 = vst [vmem:[#allocation108_spill] sm:$0xff] %v5119_v33  ;;  %v422_v33 = vmul.f32 %v4807_v4, %v387_v15  ;;  %v563_v38 = vpop.f32.mrf.mxu3  ;;  %1369 = vmatpush.msrb.mxu2 %v4330_v63  ;;  %1233 = vmatpush.msra.mxu1 %v5170_v45  ;;  %v485_v63 = vadd.f32 %v4756_v56, %v426_v49  ;;  %v5222_v56 = vld [vmem:[%s8870_s12 + $0x150] sm:$0xff] }
 0x1f2   :  { %9368 = vst [vmem:[#allocation109_spill] sm:$0xff] %v5124_v47  ;;  %1193 = vmatpush.msra.mxu0 %v5165_v48  ;;  %1330 = vmatpush.msra.mxu3 %v4134_v46  ;;  %v423_v49 = vmul.f32 %v4885_v44, %v387_v15  ;;  %v427_v46 = vmul.f32 %v4885_v44, %v4654_v25 }
 0x1f3   :  { %9369 = vst [vmem:[#allocation110_spill] sm:$0xff] %v5129_v51  ;;  %v528_v51 = vpop.f32.mrf.mxu2  ;;  %v482_v41 = vadd.f32 %v4652_v23, %v422_v33  ;;  %1370 = vmatpush.msrb.mxu2 %v4340_v3  ;;  %v418_v33 = vmul.f32 %v4807_v4, %v4981_v36  ;;  %1234 = vmatpush.msra.mxu1 %v5186_v29  ;;  %v620_v3 = vperm.slane %v5136_v7, 1  ;;  %v5227_v23 = vld [vmem:[%s8870_s12 + $0x158] sm:$0xff] }
 0x1f4   :  { %9371 = vst [vmem:[#allocation111_spill] sm:$0xff] %v5146_v54  ;;  %v5174_v47 = vadd.f32 %v528_v51, %v439_v43  ;;  %v5188_v54 = vadd.f32 %v563_v38, %v440_v30  ;;  %v5201_v30 = vld [vmem:[%s8870_s12 + $0x170] sm:$0xff]  ;;  %v5206_v51 = vld [vmem:[%s8870_s12 + $0x178] sm:$0xff]  ;;  %1194 = vmatpush.msra.mxu0 %v5181_v61  ;;  %1331 = vmatpush.msra.mxu3 %v4149_v57  ;;  %v621_v57 = vperm.slane %v5136_v7, 2 }
 0x1f5   :  { %9372 = vst [vmem:[#allocation112_spill] sm:$0xff] %v5151_v53  ;;  %v660_v53 = vpop.f32.mrf.mxu1  ;;  %1371 = vmatpush.msrb.mxu2 %v4349_v6  ;;  %1235 = vmatpush.msra.mxu1 %v5206_v51 }
 0x1f6   :  { %v5194_v43 = vadd.f32 %v660_v53, %v619_v27  ;;  %v424_v27 = vmul.f32 %v4897_v42, %v387_v15  ;;  %1195 = vmatpush.msra.mxu0 %v5201_v30  ;;  %1332 = vmatpush.msra.mxu3 %v4162_v60  ;;  %v479_v60 = vadd.f32 %v4596_v13, %v418_v33 }
 0x1f7   :  { %1372 = vmatpush.msrb.mxu2 %v4358_v8  ;;  %1236 = vmatpush.msra.mxu1 %v5227_v23  ;;  %v517_v8 = vadd.f32 %v4746_v58, %v423_v49  ;;  %v520_v58 = vadd.f32 %v4836_v50, %v427_v46  ;;  %v5303_v50 = vld [vmem:[%s8870_s12 + $0xf8] sm:$0xff] }
 0x1f8   :  { %v5230_v4 = vadd.f32 %v5194_v43, %v482_v41  ;;  %v5233_v53 = vadd.f32 %v5194_v43, %v485_v63  ;;  %v5240_v6 = vadd.f32 %v5194_v43, %v4887_v9  ;;  %v5244_v38 = vadd.f32 %v5194_v43, %v5002_v52  ;;  %v5257_v9 = vld [vmem:[%s8870_s12 + $0x130] sm:$0xff]  ;;  %v5262_v52 = vld [vmem:[%s8870_s12 + $0x138] sm:$0xff]  ;;  %1196 = vmatpush.msra.mxu0 %v5222_v56 }
 0x1f9   :  { %v5248_v41 = vadd.f32 %v5194_v43, %v5112_v0  ;;  %v425_v63 = vmul.f32 %v4710_v2, %v387_v15  ;;  %v419_v0 = vmul.f32 %v4885_v44, %v4981_v36  ;;  %1333 = vmatpush.msra.mxu3 %v4186_v5  ;;  %1373 = vmatpush.msrb.mxu2 %v4369_v10  ;;  %v5277_v44 = vld [vmem:[%s8870_s12 + $0x110] sm:$0xff] }
 0x1fa   :  { %9373 = vst [vmem:[#allocation113_spill] sm:$0xff] %v5233_v53  ;;  %v622_v53 = vperm.slane %v5136_v7, 3  ;;  %v428_v7 = vmul.f32 %v4897_v42, %v4654_v25  ;;  %v5282_v25 = vld [vmem:[%s8870_s12 + $0x118] sm:$0xff]  ;;  %v552_v13 = vadd.f32 %v4752_v11, %v424_v27  ;;  %1197 = vmatpush.msra.mxu0 %v5257_v9  ;;  %1237 = vmatpush.msra.mxu1 %v5262_v52  ;;  %v5298_v11 = vld [vmem:[%s8870_s12 + $0xf0] sm:$0xff] }
 0x1fb   :  { %9374 = vst [vmem:[#allocation114_spill] sm:$0xff] %v5240_v6  ;;  %v680_v15 = vpop.f32.mrf.mxu2  ;;  %v587_v5 = vadd.f32 %v4663_v28, %v425_v63  ;;  %1334 = vmatpush.msra.mxu3 %v4206_v16  ;;  %1374 = vmatpush.msrb.mxu2 %v4378_v12  ;;  %v514_v46 = vadd.f32 %v4636_v32, %v419_v0  ;;  %v9448_v6 = vld [vmem:[#allocation72_spill] sm:$0xff] }
 0x1fc   :  { %9375 = vst [vmem:[#allocation115_spill] sm:$0xff] %v5244_v38  ;;  %v700_v38 = vpop.f32.mrf.mxu3  ;;  %v555_v28 = vadd.f32 %v4856_v59, %v428_v7  ;;  %1198 = vmatpush.msra.mxu0 %v5277_v44  ;;  %1238 = vmatpush.msra.mxu1 %v5282_v25  ;;  %v5326_v59 = vld [vmem:[%s8870_s12 + $0xd8] sm:$0xff] }
 0x1fd   :  { %9376 = vst [vmem:[#allocation116_spill] sm:$0xff] %v5248_v41  ;;  %v681_v41 = vadd.f32 %v680_v15, %v620_v3  ;;  %v5286_v33 = vadd.f32 %v700_v38, %v621_v57  ;;  %v720_v49 = vpop.f32.mrf.mxu1  ;;  %1335 = vmatpush.msra.mxu3 %v4225_v22  ;;  %1375 = vmatpush.msrb.mxu2 %v4388_v14  ;;  %v5321_v3 = vld [vmem:[%s8870_s12 + $0xd0] sm:$0xff]  ;;  %v5357_v38 = vld [vmem:[%s8870_s12 + $0xb8] sm:$0xff] }
 0x1fe   :  { %v5291_v10 = vadd.f32 %v720_v49, %v622_v53  ;;  %1199 = vmatpush.msra.mxu0 %v5298_v11  ;;  %1239 = vmatpush.msra.mxu1 %v5303_v50  ;;  %v5428_v7 = vld [vmem:[%s8870_s12 + $0x58] sm:$0xff]  ;;  %v9393_v49 = vld [vmem:[#allocation8_spill] sm:$0xff] }
 0x1ff   :  { %v5305_v27 = vadd.f32 %v681_v41, %v517_v8  ;;  %v5311_v16 = vadd.f32 %v5286_v33, %v552_v13  ;;  %v5313_v12 = vadd.f32 %v681_v41, %v520_v58  ;;  %v5338_v22 = vadd.f32 %v5286_v33, %v555_v28  ;;  %1336 = vmatpush.msra.mxu3 %v4234_v26  ;;  %v5442_v8 = vld [vmem:[%s8870_s12 + $0x38] sm:$0xff]  ;;  %v9392_v58 = vld [vmem:[#allocation4_spill] sm:$0xff] }
 0x200   :  { %v5329_v53 = vadd.f32 %v5291_v10, %v587_v5  ;;  %v5333_v32 = vadd.f32 %v5291_v10, %v4787_v20  ;;  %v5341_v14 = vadd.f32 %v681_v41, %v4972_v37  ;;  %v5345_v57 = vadd.f32 %v5291_v10, %v4899_v40  ;;  %1376 = vmatpush.msrb.mxu2 %v4397_v17  ;;  %v5352_v20 = vld [vmem:[%s8870_s12 + $0xb0] sm:$0xff]  ;;  %v5456_v28 = vld [vmem:[%s8870_s12 + $0x18] sm:$0xff] }
 0x201   :  { %9377 = vst [vmem:[#allocation117_spill] sm:$0xff] %v5313_v12  ;;  %v5361_v37 = vadd.f32 %v5286_v33, %v4983_v34  ;;  %v5364_v40 = vadd.f32 %v681_v41, %v5084_v55  ;;  %v5368_v26 = vadd.f32 %v5291_v10, %v5011_v18  ;;  %1200 = vmatpush.msra.mxu0 %v5321_v3  ;;  %v5451_v5 = vld [vmem:[%s8870_s12 + $0x10] sm:$0xff]  ;;  %v9456_v12 = vld [vmem:[#allocation80_spill] sm:$0xff] }
 0x202   :  { %9378 = vst [vmem:[#allocation118_spill] sm:$0xff] %v5333_v32  ;;  %1240 = vmatpush.msra.mxu1 %v5326_v59  ;;  %v5374_v17 = vadd.f32 %v5286_v33, %v5093_v31  ;;  %v5377_v63 = vadd.f32 %v681_v41, %v5174_v47  ;;  %v5381_v34 = vadd.f32 %v5291_v10, %v5131_v62  ;;  %v5389_v31 = vld [vmem:[%s8870_s12 + $0x90] sm:$0xff]  ;;  %v5394_v47 = vld [vmem:[%s8870_s12 + $0x98] sm:$0xff]  ;;  %v9454_v32 = vld [vmem:[#allocation79_spill] sm:$0xff] }
 0x203   :  { %9379 = vst [vmem:[#allocation119_spill] sm:$0xff] %v5338_v22  ;;  %v723_v55 = vadd.f32 %v5194_v43, %v479_v60  ;;  %v724_v0 = vadd.f32 %v681_v41, %v514_v46  ;;  %1337 = vmatpush.msra.mxu3 %v4246_v35  ;;  %1377 = vmatpush.msrb.mxu2 %v4406_v19  ;;  %v888_v43 = vpop.f32.mrf.mxu0  ;;  %v5409_v19 = vld [vmem:[%s8870_s12 + $0x70] sm:$0xff]  ;;  %v9452_v22 = vld [vmem:[#allocation76_spill] sm:$0xff] }
 0x204   :  { %9380 = vst [vmem:[#allocation120_spill] sm:$0xff] %v5341_v14  ;;  %v908_v18 = vpop.f32.mrf.mxu3  ;;  %v5398_v62 = vadd.f32 %v5286_v33, %v5188_v54  ;;  %1201 = vmatpush.msra.mxu0 %v5352_v20  ;;  %1241 = vmatpush.msra.mxu1 %v5357_v38  ;;  %v5414_v54 = vld [vmem:[%s8870_s12 + $0x78] sm:$0xff]  ;;  %v5437_v60 = vld [vmem:[%s8870_s12 + $0x30] sm:$0xff]  ;;  %v420_v46 = vmul.f32 %v4897_v42, %v4981_v36  ;;  %v9450_v14 = vld [vmem:[#allocation75_spill] sm:$0xff] }
 0x205   :  { %9381 = vst [vmem:[#allocation121_spill] sm:$0xff] %v5345_v57  ;;  %v952_v35 = vadd.f32 %v908_v18, %v724_v0  ;;  %1338 = vmatpush.msra.mxu3 %v4259_v39  ;;  %1378 = vmatpush.msrb.mxu2 %v4415_v21  ;;  %v951_v41 = vadd.f32 %v888_v43, %v723_v55  ;;  %v9389_v39 = vmov 0.0   ;;  %v5423_v21 = vld [vmem:[%s8870_s12 + $0x50] sm:$0xff]  ;;  %v9396_v18 = vld [vmem:[#allocation6_spill] sm:$0xff]  ;;  %v9446_v57 = vld [vmem:[#allocation71_spill] sm:$0xff] }
 0x206   :  { %9382 = vst [vmem:[#allocation122_spill] sm:$0xff] %v5361_v37  ;;  %1202 = vmatpush.msra.mxu0 %v5389_v31  ;;  %1242 = vmatpush.msra.mxu1 %v5394_v47  ;;  %v9394_v55 = vld [vmem:[#allocation5_spill] sm:$0xff]  ;;  %v9397_v43 = vld [vmem:[#allocation10_spill] sm:$0xff]  ;;  %v9444_v37 = vld [vmem:[#allocation68_spill] sm:$0xff] }
 0x207   :  { %9383 = vst [vmem:[#allocation123_spill] sm:$0xff] %v5364_v40  ;;  %1339 = vmatpush.msra.mxu3 %v4268_v1  ;;  %1379 = vmatpush.msrb.mxu2 %v4424_v24  ;;  %v959_v15 = vmul.f32 0.5, %v952_v35  ;;  %v9390_v1 = vld [vmem:[#allocation3_spill] sm:$0xff]  ;;  %v955_v13 = vmul.f32 0.5, %v951_v41  ;;  %v9395_v0 = vld [vmem:[#allocation9_spill] sm:$0xff]  ;;  %v9398_v35 = vld [vmem:[#allocation40_spill] sm:$0xff]  ;;  %v5469_v41 = vpop.f32.mrf.mxu2 }
 0x208   :  { %9384 = vst [vmem:[#allocation124_spill] sm:$0xff] %v5368_v26  ;;  %1227 = vmatmul.f32.vlgmr.msrb.gmra.mxu3 %v9389_v39  ;;  %1267 = vmatmul.f32.vlgmr.msra.gmra.mxu2 %v9389_v39  ;;  %v9391_v24 = vld [vmem:[#allocation7_spill] sm:$0xff]  ;;  %v549_v42 = vadd.f32 %v9398_v35, %v420_v46  ;;  %v9441_v26 = vld [vmem:[#allocation64_spill] sm:$0xff] }
 0x209   :  { %9385 = vst [vmem:[#allocation125_spill] sm:$0xff] %v5374_v17  ;;  %1203 = vmatpush.msra.mxu0 %v5409_v19  ;;  %1243 = vmatpush.msra.mxu1 %v5414_v54  ;;  %3223 = vtanh.f32 %v959_v15  ;;  %v9399_v39 = vld [vmem:[#allocation11_spill] sm:$0xff]  ;;  %v9400_v15 = vld [vmem:[#allocation12_spill] sm:$0xff] }
 0x20a   :  { %9386 = vst [vmem:[#allocation126_spill] sm:$0xff] %v5377_v63  ;;  %1340 = vmatpush.msra.mxu3 %v9390_v1  ;;  %1380 = vmatpush.msrb.mxu2 %v9391_v24  ;;  %3225 = vtanh.f32 %v955_v13  ;;  %v725_v24 = vadd.f32 %v5286_v33, %v549_v42  ;;  %v9401_v13 = vld [vmem:[#allocation13_spill] sm:$0xff]  ;;  %v9403_v46 = vld [vmem:[#allocation15_spill] sm:$0xff]  ;;  %v9439_v63 = vld [vmem:[#allocation60_spill] sm:$0xff] }
 0x20b   :  { %9387 = vst [vmem:[#allocation127_spill] sm:$0xff] %v5381_v34  ;;  %1204 = vmatpush.msra.mxu0 %v5423_v21  ;;  %1244 = vmatpush.msra.mxu1 %v5428_v7  ;;  %v9407_v33 = vld [vmem:[#allocation33_spill] sm:$0xff]  ;;  %v9438_v34 = vld [vmem:[#allocation59_spill] sm:$0xff] }
 0x20c   :  { %9388 = vst [vmem:[#allocation128_spill] sm:$0xff] %v5398_v62  ;;  %1341 = vmatpush.msra.mxu3 %v9392_v58  ;;  %1381 = vmatpush.msrb.mxu2 %v9393_v49  ;;  %v9402_v58 = vld [vmem:[#allocation14_spill] sm:$0xff]  ;;  %v421_v49 = vmul.f32 %v4710_v2, %v4981_v36  ;;  %v9409_v62 = vld [vmem:[#allocation20_spill] sm:$0xff]  ;;  %v9440_v17 = vld [vmem:[#allocation63_spill] sm:$0xff] }
 0x20d   :  { %1205 = vmatpush.msra.mxu0 %v5437_v60  ;;  %1245 = vmatpush.msra.mxu1 %v5442_v8  ;;  %v9442_v40 = vld [vmem:[#allocation67_spill] sm:$0xff] }
 0x20e   :  { %1342 = vmatpush.msra.mxu3 %v9394_v55  ;;  %1382 = vmatpush.msrb.mxu2 %v9395_v0  ;;  %v928_v55 = vpop.f32.mrf.mxu1  ;;  %v584_v42 = vadd.f32 %v9407_v33, %v421_v49 }
 0x20f   :  { %1206 = vmatpush.msra.mxu0 %v5451_v5  ;;  %1246 = vmatpush.msra.mxu1 %v5456_v28  ;;  %v3224_v1 = vpop.eup %3223 }
 0x210   :  { %1343 = vmatpush.msra.mxu3 %v9396_v18  ;;  %1383 = vmatpush.msrb.mxu2 %v9397_v43  ;;  %v3226_v0 = vpop.eup %3225  ;;  %v953_v18 = vadd.f32 %v928_v55, %v725_v24  ;;  %v9404_v43 = vld [vmem:[#allocation16_spill] sm:$0xff]  ;;  %v961_v35 = vadd.f32 1.0, %v3224_v1  ;;  %v726_v2 = vadd.f32 %v5291_v10, %v584_v42  ;;  %v9410_v55 = vld [vmem:[#allocation21_spill] sm:$0xff] }
 0x211   :  { %v9417_v42 = vld [vmem:[#allocation28_spill] sm:$0xff] }
 0x212   :  { %1430 = vmatpush.msrb.mxu3 %v9399_v39  ;;  %1470 = vmatpush.msra.mxu2 %v9400_v15  ;;  %3227 = vtanh.f32 %v953_v18  ;;  %v9405_v39 = vld [vmem:[#allocation17_spill] sm:$0xff]  ;;  %v9406_v15 = vld [vmem:[#allocation18_spill] sm:$0xff]  ;;  %v962_v36 = vmul.f32 0.5, %v961_v35  ;;  %v9416_v35 = vld [vmem:[#allocation27_spill] sm:$0xff] }
 0x213   :  { %v948_v24 = vpop.f32.mrf.mxu2 }
 0x214   :  { %1431 = vmatpush.msrb.mxu3 %v9401_v13  ;;  %1471 = vmatpush.msra.mxu2 %v9402_v58  ;;  %v957_v13 = vadd.f32 1.0, %v3226_v0  ;;  %v9408_v58 = vld [vmem:[#allocation19_spill] sm:$0xff]  ;;  %v954_v18 = vadd.f32 %v948_v24, %v726_v2  ;;  %v968_v49 = vmul.f32 0.0, %v962_v36  ;;  %v9419_v2 = vld [vmem:[#allocation30_spill] sm:$0xff]  ;;  %v9421_v24 = vld [vmem:[#allocation32_spill] sm:$0xff] }
 0x215   :  { %v9420_v36 = vld [vmem:[#allocation31_spill] sm:$0xff] }
 0x216   :  { %1432 = vmatpush.msrb.mxu3 %v9403_v46  ;;  %1472 = vmatpush.msra.mxu2 %v9404_v43  ;;  %v9411_v46 = vld [vmem:[#allocation22_spill] sm:$0xff]  ;;  %v958_v1 = vmul.f32 0.5, %v957_v13  ;;  %v964_v33 = vmul.f32 0.5, %v954_v18  ;;  %v9418_v13 = vld [vmem:[#allocation29_spill] sm:$0xff]  ;;  %v9423_v18 = vld [vmem:[#allocation35_spill] sm:$0xff] }
 0x218   :  { %1433 = vmatpush.msrb.mxu3 %v9405_v39  ;;  %1473 = vmatpush.msra.mxu2 %v9406_v15  ;;  %v3228_v43 = vpop.eup %3227  ;;  %v9412_v39 = vld [vmem:[#allocation23_spill] sm:$0xff]  ;;  %v9413_v15 = vld [vmem:[#allocation24_spill] sm:$0xff]  ;;  %3229 = vtanh.f32 %v964_v33  ;;  %v9426_v33 = vld [vmem:[#allocation38_spill] sm:$0xff] }
 0x219   :  { %v969_v0 = vmul.f32 %v3228_v43, %v958_v1  ;;  %v9422_v1 = vld [vmem:[#allocation34_spill] sm:$0xff] }
 0x21a   :  { %1434 = vmatpush.msrb.mxu3 %v9408_v58  ;;  %1474 = vmatpush.msra.mxu2 %v9409_v62  ;;  %v9414_v58 = vld [vmem:[#allocation25_spill] sm:$0xff]  ;;  %v9415_v62 = vld [vmem:[#allocation26_spill] sm:$0xff] }
 0x21b   :  { %v5492_v10 = vadd.f32 %v969_v0, %v968_v49  ;;  %v9425_v49 = vld [vmem:[#allocation37_spill] sm:$0xff] }
 0x21c   :  { %1435 = vmatpush.msrb.mxu3 %v9410_v55  ;;  %1475 = vmatpush.msra.mxu2 %v9411_v46 }
 0x21d   :  { %3231 = vtanh.f32 %v5492_v10 }
 0x21e   :  { %1436 = vmatpush.msrb.mxu3 %v9412_v39  ;;  %1476 = vmatpush.msra.mxu2 %v9413_v15  ;;  %v3230_v55 = vpop.eup %3229  ;;  %v9424_v15 = vld [vmem:[#allocation36_spill] sm:$0xff] }
 0x21f   :  { %v966_v46 = vadd.f32 1.0, %v3230_v55  ;;  %v9430_v55 = vld [vmem:[#allocation43_spill] sm:$0xff] }
 0x220   :  { %1437 = vmatpush.msrb.mxu3 %v9414_v58  ;;  %1477 = vmatpush.msra.mxu2 %v9415_v62  ;;  %v9427_v58 = vld [vmem:[#allocation39_spill] sm:$0xff] }
 0x221   :  { %v967_v39 = vmul.f32 0.5, %v966_v46  ;;  %v5514_v62 = vld [vmem:[%s8866_s10 + $0x1e0] sm:$0xff]  ;;  %v5549_v46 = vld [vmem:[%s8866_s10 + $0x1b0] sm:$0xff] }
 0x222   :  { %1438 = vmatpush.msrb.mxu3 %v9416_v35  ;;  %1478 = vmatpush.msra.mxu2 %v9417_v42  ;;  %v5521_v35 = vld [vmem:[%s8866_s10 + $0x1f0] sm:$0xff]  ;;  %v5528_v42 = vld [vmem:[%s8866_s10 + $0x1c0] sm:$0xff] }
 0x223   :  { %v3232_v43 = vpop.eup %3231 }
 0x224   :  { %1439 = vmatpush.msrb.mxu3 %v9418_v13  ;;  %1479 = vmatpush.msra.mxu2 %v9419_v2  ;;  %v5505_v0 = vmul.f32 %v3232_v43, %v967_v39  ;;  %v9428_v13 = vld [vmem:[#allocation41_spill] sm:$0xff]  ;;  %v9432_v43 = vld [vmem:[#allocation47_spill] sm:$0xff] }
 0x225   :  { %v5535_v2 = vld [vmem:[%s8866_s10 + $0x1d0] sm:$0xff] }
 0x226   :  { %1440 = vmatpush.msrb.mxu3 %v9420_v36  ;;  %1480 = vmatpush.msra.mxu2 %v9421_v24  ;;  %v9429_v36 = vld [vmem:[#allocation42_spill] sm:$0xff]  ;;  %v5542_v24 = vld [vmem:[%s8866_s10 + $0x1a0] sm:$0xff]  ;;  %v5563_v39 = vld [vmem:[%s8866_s10 + $0x190] sm:$0xff] }
 0x227   :  { %1127 = vmatmul.f32.vlgmr.msrb.gmra.mxu0 %v5505_v0  ;;  %1167 = vmatmul.f32.vlgmr.msrb.gmra.mxu1 %v5505_v0 }
 0x228   :  { %1441 = vmatpush.msrb.mxu3 %v9422_v1  ;;  %1481 = vmatpush.msra.mxu2 %v9423_v18  ;;  %v9431_v1 = vld [vmem:[#allocation44_spill] sm:$0xff]  ;;  %v5556_v18 = vld [vmem:[%s8866_s10 + $0x180] sm:$0xff] }
 0x229   :  { %1308 = vmatpush.msrb.mxu0 %v5514_v62  ;;  %1344 = vmatmul.f32.vlgmr.msra.gmra.mxu3 %v5505_v0 }
 0x22a   :  { %1442 = vmatpush.msrb.mxu3 %v9424_v15  ;;  %1482 = vmatpush.msra.mxu2 %v9425_v49  ;;  %v5571_v15 = vld [vmem:[%s8866_s10 + $0x160] sm:$0xff]  ;;  %v5577_v49 = vld [vmem:[%s8866_s10 + $0x170] sm:$0xff] }
 0x22b   :  { %1348 = vmatpush.msrb.mxu1 %v5521_v35  ;;  %1384 = vmatmul.f32.vlgmr.msrb.gmra.mxu2 %v5505_v0 }
 0x22c   :  { %1443 = vmatpush.msrb.mxu3 %v9426_v33  ;;  %1483 = vmatpush.msra.mxu2 %v9427_v58  ;;  %v9433_v33 = vld [vmem:[#allocation48_spill] sm:$0xff]  ;;  %v5584_v58 = vld [vmem:[%s8866_s10 + $0x140] sm:$0xff] }
 0x22d   :  { %1309 = vmatpush.msrb.mxu0 %v5528_v42  ;;  %1349 = vmatpush.msrb.mxu1 %v5535_v2 }
 0x22e   :  { %1444 = vmatpush.msrb.mxu3 %v9428_v13  ;;  %1484 = vmatpush.msra.mxu2 %v9429_v36  ;;  %v9434_v13 = vld [vmem:[#allocation51_spill] sm:$0xff]  ;;  %v5591_v36 = vld [vmem:[%s8866_s10 + $0x150] sm:$0xff] }
 0x22f   :  { %1310 = vmatpush.msrb.mxu0 %v5542_v24  ;;  %1350 = vmatpush.msrb.mxu1 %v5549_v46 }
 0x230   :  { %1445 = vmatpush.msrb.mxu3 %v9430_v55  ;;  %1485 = vmatpush.msra.mxu2 %v9431_v1  ;;  %v9435_v55 = vld [vmem:[#allocation52_spill] sm:$0xff]  ;;  %v5598_v1 = vld [vmem:[%s8866_s10 + $0x120] sm:$0xff] }
 0x231   :  { %1311 = vmatpush.msrb.mxu0 %v5556_v18  ;;  %1351 = vmatpush.msrb.mxu1 %v5563_v39 }
 0x232   :  { %1510 = vmatpush.msra.mxu3 %v9432_v43  ;;  %1207 = vmatmul.f32.vlgmr.msra.gmra.mxu0 %v5505_v0  ;;  %v9436_v43 = vld [vmem:[#allocation55_spill] sm:$0xff] }
 0x233   :  { %1247 = vmatmul.f32.vlgmr.msra.gmra.mxu1 %v5505_v0  ;;  %1312 = vmatpush.msrb.mxu0 %v5571_v15 }
 0x234   :  { %1352 = vmatpush.msrb.mxu1 %v5577_v49  ;;  %1550 = vmatpush.msrb.mxu2 %v9433_v33  ;;  %v5605_v33 = vld [vmem:[%s8866_s10 + $0x130] sm:$0xff] }
 0x235   :  { %1313 = vmatpush.msrb.mxu0 %v5584_v58  ;;  %1511 = vmatpush.msra.mxu3 %v9434_v13  ;;  %v9437_v13 = vld [vmem:[#allocation56_spill] sm:$0xff] }
 0x236   :  { %1353 = vmatpush.msrb.mxu1 %v5591_v36  ;;  %1551 = vmatpush.msrb.mxu2 %v9435_v55  ;;  %v5612_v55 = vld [vmem:[%s8866_s10 + $0x100] sm:$0xff] }
 0x237   :  { %1314 = vmatpush.msrb.mxu0 %v5598_v1  ;;  %1512 = vmatpush.msra.mxu3 %v9436_v43  ;;  %v5619_v43 = vld [vmem:[%s8866_s10 + $0x110] sm:$0xff] }
 0x238   :  { %1354 = vmatpush.msrb.mxu1 %v5605_v33  ;;  %1552 = vmatpush.msrb.mxu2 %v9437_v13  ;;  %v5626_v13 = vld [vmem:[%s8866_s10 + $0xe0] sm:$0xff] }
 0x239   :  { %1315 = vmatpush.msrb.mxu0 %v5612_v55  ;;  %1513 = vmatpush.msra.mxu3 %v9438_v34  ;;  %v5633_v34 = vld [vmem:[%s8866_s10 + $0xf0] sm:$0xff] }
 0x23a   :  { %1355 = vmatpush.msrb.mxu1 %v5619_v43  ;;  %1553 = vmatpush.msrb.mxu2 %v9439_v63  ;;  %v5640_v63 = vld [vmem:[%s8866_s10 + $0xc0] sm:$0xff] }
 0x23b   :  { %1316 = vmatpush.msrb.mxu0 %v5626_v13  ;;  %1514 = vmatpush.msra.mxu3 %v9440_v17  ;;  %v5647_v17 = vld [vmem:[%s8866_s10 + $0xd0] sm:$0xff] }
 0x23c   :  { %1356 = vmatpush.msrb.mxu1 %v5633_v34  ;;  %1554 = vmatpush.msrb.mxu2 %v9441_v26  ;;  %9443 = vst [vmem:[#allocation3_spill] sm:$0xff] %v5647_v17  ;;  %v5654_v26 = vld [vmem:[%s8866_s10 + $0xa0] sm:$0xff] }
 0x23d   :  { %1317 = vmatpush.msrb.mxu0 %v5640_v63  ;;  %1515 = vmatpush.msra.mxu3 %v9442_v40  ;;  %9445 = vst [vmem:[#allocation7_spill] sm:$0xff] %v5654_v26  ;;  %v5661_v40 = vld [vmem:[%s8866_s10 + $0xb0] sm:$0xff] }
 0x23e   :  { %1357 = vmatpush.msrb.mxu1 %v5647_v17  ;;  %1555 = vmatpush.msrb.mxu2 %v9444_v37  ;;  %9447 = vst [vmem:[#allocation4_spill] sm:$0xff] %v5661_v40  ;;  %v5668_v37 = vld [vmem:[%s8866_s10 + $0x80] sm:$0xff]  ;;  %v9477_v17 = vld [vmem:[#allocation54_spill] sm:$0xff] }
 0x23f   :  { %1318 = vmatpush.msrb.mxu0 %v5654_v26  ;;  %1516 = vmatpush.msra.mxu3 %v9446_v57  ;;  %9449 = vst [vmem:[#allocation8_spill] sm:$0xff] %v5668_v37  ;;  %v5675_v57 = vld [vmem:[%s8866_s10 + $0x90] sm:$0xff] }
 0x240   :  { %1358 = vmatpush.msrb.mxu1 %v5661_v40  ;;  %1556 = vmatpush.msrb.mxu2 %v9448_v6  ;;  %9451 = vst [vmem:[#allocation5_spill] sm:$0xff] %v5675_v57  ;;  %v5682_v6 = vld [vmem:[%s8866_s10 + $0x60] sm:$0xff]  ;;  %v9474_v40 = vld [vmem:[#allocation96_spill] sm:$0xff]  ;;  %v9475_v26 = vld [vmem:[#allocation53_spill] sm:$0xff] }
 0x241   :  { %1319 = vmatpush.msrb.mxu0 %v5668_v37  ;;  %1517 = vmatpush.msra.mxu3 %v9450_v14  ;;  %9453 = vst [vmem:[#allocation9_spill] sm:$0xff] %v5682_v6  ;;  %v5689_v14 = vld [vmem:[%s8866_s10 + $0x70] sm:$0xff]  ;;  %v9473_v37 = vld [vmem:[#allocation50_spill] sm:$0xff] }
 0x242   :  { %1359 = vmatpush.msrb.mxu1 %v5675_v57  ;;  %1557 = vmatpush.msrb.mxu2 %v9452_v22  ;;  %9455 = vst [vmem:[#allocation6_spill] sm:$0xff] %v5689_v14  ;;  %v5696_v22 = vld [vmem:[%s8866_s10 + $0x40] sm:$0xff] }
 0x243   :  { %1320 = vmatpush.msrb.mxu0 %v5682_v6  ;;  %1518 = vmatpush.msra.mxu3 %v9454_v32  ;;  %9457 = vst [vmem:[#allocation10_spill] sm:$0xff] %v5696_v22  ;;  %v9458_v57 = vld [vmem:[#allocation83_spill] sm:$0xff]  ;;  %v5703_v32 = vld [vmem:[%s8866_s10 + $0x50] sm:$0xff]  ;;  %v9460_v6 = vld [vmem:[#allocation84_spill] sm:$0xff] }
 0x244   :  { %1360 = vmatpush.msrb.mxu1 %v5689_v14  ;;  %1558 = vmatpush.msrb.mxu2 %v9456_v12  ;;  %9459 = vst [vmem:[#allocation40_spill] sm:$0xff] %v5703_v32  ;;  %v5710_v12 = vld [vmem:[%s8866_s10 + $0x20] sm:$0xff] }
 0x245   :  { %1321 = vmatpush.msrb.mxu0 %v5696_v22  ;;  %1519 = vmatpush.msra.mxu3 %v9458_v57  ;;  %9461 = vst [vmem:[#allocation11_spill] sm:$0xff] %v5710_v12  ;;  %v9462_v14 = vld [vmem:[#allocation87_spill] sm:$0xff]  ;;  %v5717_v57 = vld [vmem:[%s8866_s10 + $0x30] sm:$0xff]  ;;  %v9464_v22 = vld [vmem:[#allocation88_spill] sm:$0xff] }
 0x246   :  { %1361 = vmatpush.msrb.mxu1 %v5703_v32  ;;  %1559 = vmatpush.msrb.mxu2 %v9460_v6  ;;  %9463 = vst [vmem:[#allocation12_spill] sm:$0xff] %v5717_v57  ;;  %v5724_v6 = vld [vmem:[%s8866_s10] sm:$0xff] }
 0x247   :  { %1322 = vmatpush.msrb.mxu0 %v5710_v12  ;;  %1520 = vmatpush.msra.mxu3 %v9462_v14  ;;  %9465 = vst [vmem:[#allocation13_spill] sm:$0xff] %v5724_v6  ;;  %v9466_v32 = vld [vmem:[#allocation91_spill] sm:$0xff]  ;;  %v5731_v14 = vld [vmem:[%s8866_s10 + $0x10] sm:$0xff]  ;;  %v9470_v12 = vld [vmem:[#allocation92_spill] sm:$0xff] }
 0x248   :  { %1362 = vmatpush.msrb.mxu1 %v5717_v57  ;;  %1560 = vmatpush.msrb.mxu2 %v9464_v22  ;;  %9467 = vst [vmem:[#allocation14_spill] sm:$0xff] %v5731_v14  ;;  %v9468_v22 = vld [vmem:[#allocation45_spill] sm:$0xff]  ;;  %v9469_v57 = vld [vmem:[#allocation46_spill] sm:$0xff] }
 0x249   :  { %1323 = vmatpush.msrb.mxu0 %v5724_v6  ;;  %1521 = vmatpush.msra.mxu3 %v9466_v32  ;;  %v9471_v6 = vld [vmem:[#allocation49_spill] sm:$0xff]  ;;  %v9472_v32 = vld [vmem:[#allocation95_spill] sm:$0xff] }
 0x24a   :  { %1363 = vmatpush.msrb.mxu1 %v5731_v14  ;;  %1324 = vmatmul.f32.vlgmr.msrb.gmra.mxu0 %v5505_v0  ;;  %v9476_v14 = vld [vmem:[#allocation99_spill] sm:$0xff] }
 0x24b   :  { %1364 = vmatmul.f32.vlgmr.msrb.gmra.mxu1 %v5505_v0  ;;  %1410 = vmatpush.msra.mxu0 %v9468_v22  ;;  %v9478_v0 = vld [vmem:[#allocation100_spill] sm:$0xff]  ;;  %v9479_v22 = vld [vmem:[#allocation57_spill] sm:$0xff] }
 0x24c   :  { %1450 = vmatpush.msra.mxu1 %v9469_v57  ;;  %1561 = vmatpush.msrb.mxu2 %v9470_v12  ;;  %v9480_v57 = vld [vmem:[#allocation103_spill] sm:$0xff]  ;;  %v9481_v12 = vld [vmem:[#allocation58_spill] sm:$0xff] }
 0x24d   :  { %1411 = vmatpush.msra.mxu0 %v9471_v6  ;;  %1522 = vmatpush.msra.mxu3 %v9472_v32  ;;  %v9482_v6 = vld [vmem:[#allocation104_spill] sm:$0xff]  ;;  %v9483_v32 = vld [vmem:[#allocation61_spill] sm:$0xff] }
 0x24e   :  { %1451 = vmatpush.msra.mxu1 %v9473_v37  ;;  %1562 = vmatpush.msrb.mxu2 %v9474_v40  ;;  %v9484_v37 = vld [vmem:[#allocation107_spill] sm:$0xff]  ;;  %v9485_v40 = vld [vmem:[#allocation62_spill] sm:$0xff] }
 0x24f   :  { %1412 = vmatpush.msra.mxu0 %v9475_v26  ;;  %1523 = vmatpush.msra.mxu3 %v9476_v14  ;;  %v9486_v26 = vld [vmem:[#allocation108_spill] sm:$0xff]  ;;  %v9487_v14 = vld [vmem:[#allocation65_spill] sm:$0xff] }
 0x250   :  { %1452 = vmatpush.msra.mxu1 %v9477_v17  ;;  %1563 = vmatpush.msrb.mxu2 %v9478_v0  ;;  %v9488_v17 = vld [vmem:[#allocation66_spill] sm:$0xff]  ;;  %v9489_v0 = vld [vmem:[#allocation69_spill] sm:$0xff] }
 0x251   :  { %1413 = vmatpush.msra.mxu0 %v9479_v22  ;;  %1524 = vmatpush.msra.mxu3 %v9480_v57  ;;  %v9490_v22 = vld [vmem:[#allocation70_spill] sm:$0xff]  ;;  %v9491_v57 = vld [vmem:[#allocation73_spill] sm:$0xff] }
 0x252   :  { %1453 = vmatpush.msra.mxu1 %v9481_v12  ;;  %1564 = vmatpush.msrb.mxu2 %v9482_v6  ;;  %v9492_v12 = vld [vmem:[#allocation74_spill] sm:$0xff]  ;;  %v9493_v6 = vld [vmem:[#allocation77_spill] sm:$0xff] }
 0x253   :  { %1414 = vmatpush.msra.mxu0 %v9483_v32  ;;  %1525 = vmatpush.msra.mxu3 %v9484_v37  ;;  %v9494_v32 = vld [vmem:[#allocation78_spill] sm:$0xff]  ;;  %v9495_v37 = vld [vmem:[#allocation81_spill] sm:$0xff] }
 0x254   :  { %1454 = vmatpush.msra.mxu1 %v9485_v40  ;;  %1565 = vmatpush.msrb.mxu2 %v9486_v26  ;;  %v9496_v40 = vld [vmem:[#allocation82_spill] sm:$0xff]  ;;  %v9497_v26 = vld [vmem:[#allocation85_spill] sm:$0xff] }
 0x255   :  { %1415 = vmatpush.msra.mxu0 %v9487_v14  ;;  %v9498_v14 = vld [vmem:[#allocation86_spill] sm:$0xff] }
 0x256   :  { %1455 = vmatpush.msra.mxu1 %v9488_v17  ;;  %v9499_v17 = vld [vmem:[#allocation89_spill] sm:$0xff] }
 0x257   :  { %1416 = vmatpush.msra.mxu0 %v9489_v0  ;;  %v9500_v0 = vld [vmem:[#allocation90_spill] sm:$0xff] }
 0x258   :  { %1456 = vmatpush.msra.mxu1 %v9490_v22  ;;  %v9501_v22 = vld [vmem:[#allocation93_spill] sm:$0xff] }
 0x259   :  { %1417 = vmatpush.msra.mxu0 %v9491_v57  ;;  %v9502_v57 = vld [vmem:[#allocation94_spill] sm:$0xff] }
 0x25a   :  { %1457 = vmatpush.msra.mxu1 %v9492_v12  ;;  %v9503_v12 = vld [vmem:[#allocation97_spill] sm:$0xff] }
 0x25b   :  { %1418 = vmatpush.msra.mxu0 %v9493_v6  ;;  %v9504_v6 = vld [vmem:[#allocation98_spill] sm:$0xff] }
 0x25c   :  { %1458 = vmatpush.msra.mxu1 %v9494_v32  ;;  %v9505_v32 = vld [vmem:[#allocation101_spill] sm:$0xff] }
 0x25d   :  { %1419 = vmatpush.msra.mxu0 %v9495_v37  ;;  %v9506_v37 = vld [vmem:[#allocation102_spill] sm:$0xff] }
 0x25e   :  { %1459 = vmatpush.msra.mxu1 %v9496_v40  ;;  %v9507_v40 = vld [vmem:[#allocation105_spill] sm:$0xff] }
 0x25f   :  { %1420 = vmatpush.msra.mxu0 %v9497_v26  ;;  %v9508_v26 = vld [vmem:[#allocation106_spill] sm:$0xff] }
 0x260   :  { %1460 = vmatpush.msra.mxu1 %v9498_v14  ;;  %v9509_v14 = vld [vmem:[#allocation109_spill] sm:$0xff] }
 0x261   :  { %1421 = vmatpush.msra.mxu0 %v9499_v17  ;;  %v9510_v17 = vld [vmem:[#allocation110_spill] sm:$0xff] }
 0x262   :  { %1461 = vmatpush.msra.mxu1 %v9500_v0  ;;  %v9511_v0 = vld [vmem:[#allocation111_spill] sm:$0xff] }
 0x263   :  { %1422 = vmatpush.msra.mxu0 %v9501_v22  ;;  %v9512_v22 = vld [vmem:[#allocation112_spill] sm:$0xff] }
 0x264   :  { %1462 = vmatpush.msra.mxu1 %v9502_v57 }
 0x265   :  { %1423 = vmatpush.msra.mxu0 %v9503_v12 }
 0x266   :  { %1463 = vmatpush.msra.mxu1 %v9504_v6 }
 0x267   :  { %1424 = vmatpush.msra.mxu0 %v9505_v32 }
 0x268   :  { %1464 = vmatpush.msra.mxu1 %v9506_v37 }
 0x269   :  { %1425 = vmatpush.msra.mxu0 %v9507_v40 }
 0x26a   :  { %1465 = vmatpush.msra.mxu1 %v9508_v26 }
 0x26b   :  { %1490 = vmatpush.msrb.mxu0 %v9509_v14 }
 0x26c   :  { %1530 = vmatpush.msrb.mxu1 %v9510_v17 }
 0x26d   :  { %1491 = vmatpush.msrb.mxu0 %v9511_v0  ;;  %v3189_v0 = vld [vmem:[%s8869_s15] ss:$0 sm:$0xff] }
 0x26e   :  { %1531 = vmatpush.msrb.mxu1 %v9512_v22 }
 0x26f   :  { %1492 = vmatpush.msrb.mxu0 %v5165_v48  ;;  %v1101_v48 = vld [vmem:[%s8873_s13] sm:$0xf] }
 0x270   :  { %1532 = vmatpush.msrb.mxu1 %v5170_v45  ;;  %v5814_v45 = vperm.slane %v1101_v48, 1 }
 0x271   :  { %1493 = vmatpush.msrb.mxu0 %v5181_v61  ;;  %v1148_v61 = vpop.f32.mrf.mxu3 }
 0x272   :  { %1533 = vmatpush.msrb.mxu1 %v5186_v29  ;;  %v5812_v29 = vperm.slane %v1101_v48, 0 }
 0x273   :  { %1494 = vmatpush.msrb.mxu0 %v5201_v30 }
 0x274   :  { %1534 = vmatpush.msrb.mxu1 %v5206_v51 }
 0x275   :  { %1495 = vmatpush.msrb.mxu0 %v5222_v56  ;;  %v1188_v56 = vpop.f32.mrf.mxu2 }
 0x276   :  { %1535 = vmatpush.msrb.mxu1 %v5227_v23 }
 0x277   :  { %1496 = vmatpush.msrb.mxu0 %v5257_v9 }
 0x278   :  { %1536 = vmatpush.msrb.mxu1 %v5262_v52 }
 0x279   :  { %1497 = vmatpush.msrb.mxu0 %v5277_v44 }
 0x27a   :  { %1537 = vmatpush.msrb.mxu1 %v5282_v25 }
 0x27b   :  { %1498 = vmatpush.msrb.mxu0 %v5298_v11 }
 0x27c   :  { %1538 = vmatpush.msrb.mxu1 %v5303_v50  ;;  %v5818_v50 = vperm.slane %v1101_v48, 2 }
 0x27d   :  { %1499 = vmatpush.msrb.mxu0 %v5321_v3  ;;  %v5820_v3 = vperm.slane %v1101_v48, 3 }
 0x27e   :  { %1539 = vmatpush.msrb.mxu1 %v5326_v59  ;;  %9513 = vst [vmem:[#allocation15_spill] sm:$0xff] %v5818_v50 }
 0x27f   :  { %1500 = vmatpush.msrb.mxu0 %v5352_v20 }
 0x280   :  { %1540 = vmatpush.msrb.mxu1 %v5357_v38 }
 0x281   :  { %1501 = vmatpush.msrb.mxu0 %v5389_v31 }
 0x282   :  { %1541 = vmatpush.msrb.mxu1 %v5394_v47 }
 0x283   :  { %1502 = vmatpush.msrb.mxu0 %v5409_v19 }
 0x284   :  { %1542 = vmatpush.msrb.mxu1 %v5414_v54 }
 0x285   :  { %1503 = vmatpush.msrb.mxu0 %v5423_v21 }
 0x286   :  { %1543 = vmatpush.msrb.mxu1 %v5428_v7 }
 0x287   :  { %1504 = vmatpush.msrb.mxu0 %v5437_v60 }
 0x288   :  { %1544 = vmatpush.msrb.mxu1 %v5442_v8 }
 0x289   :  { %1505 = vmatpush.msrb.mxu0 %v5451_v5 }
 0x28a   :  { %1545 = vmatpush.msrb.mxu1 %v5456_v28 }
 0x28b   :  { %v1228_v31 = vpop.f32.mrf.mxu3  ;;  %v1268_v57 = vpop.f32.mrf.mxu2 }
 0x2a4   :  { %v1128_v30 = vpop.f32.mrf.mxu0  ;;  %v1168_v51 = vpop.f32.mrf.mxu1 }
 0x2a5   :  { %v1129_v23 = vadd.f32 %v1128_v30, %v5812_v29  ;;  %v1169_v9 = vadd.f32 %v1168_v51, %v5814_v45 }
 0x2a7   :  { %v1149_v52 = vadd.f32 %v1148_v61, %v1129_v23  ;;  %v1189_v44 = vadd.f32 %v1188_v56, %v1169_v9  ;;  %v800_v23 = vadd.f32 %v3189_v0, %v5469_v41 }
 0x2a9   :  { %v1271_v25 = vmul.f32 0.5, %v1149_v52  ;;  %v1275_v11 = vmul.f32 0.5, %v1189_v44 }
 0x2ab   :  { %3233 = vtanh.f32 %v1271_v25 }
 0x2ac   :  { %3235 = vtanh.f32 %v1275_v11  ;;  %v1345_v61 = vpop.f32.mrf.mxu3 }
 0x2ad   :  { %v1389_v9 = vadd.f32 %v1345_v61, %v5305_v27 }
 0x2af   :  { %v1208_v59 = vpop.f32.mrf.mxu0  ;;  %v1396_v25 = vmul.f32 0.5, %v1389_v9  ;;  %v5908_v9 = vld [vmem:[%s8866_s10 + $0x148] sm:$0xff] }
 0x2b0   :  { %v1209_v20 = vadd.f32 %v1208_v59, %v5818_v50  ;;  %v1248_v38 = vpop.f32.mrf.mxu1 }
 0x2b1   :  { %v1249_v47 = vadd.f32 %v1248_v38, %v5820_v3  ;;  %v3234_v32 = vpop.eup %3233 }
 0x2b2   :  { %v1229_v12 = vadd.f32 %v1228_v31, %v1209_v20  ;;  %v3236_v37 = vpop.eup %3235  ;;  %v1273_v26 = vadd.f32 1.0, %v3234_v32 }
 0x2b3   :  { %v1269_v6 = vadd.f32 %v1268_v57, %v1249_v47  ;;  %v1277_v14 = vadd.f32 1.0, %v3236_v37  ;;  %v1385_v47 = vpop.f32.mrf.mxu2 }
 0x2b4   :  { %3237 = vtanh.f32 %v1229_v12  ;;  %v1274_v22 = vmul.f32 0.5, %v1273_v26  ;;  %v1391_v32 = vadd.f32 %v1385_v47, %v5329_v53  ;;  %v5858_v26 = vld [vmem:[%s8866_s10 + $0x1c8] sm:$0xff] }
 0x2b5   :  { %v1280_v40 = vmul.f32 0.5, %v1269_v6  ;;  %v1278_v17 = vmul.f32 0.5, %v1277_v14  ;;  %v5844_v6 = vld [vmem:[%s8866_s10 + $0x1e8] sm:$0xff]  ;;  %v5864_v14 = vld [vmem:[%s8866_s10 + $0x1d8] sm:$0xff] }
 0x2b6   :  { %v5870_v53 = vld [vmem:[%s8866_s10 + $0x1a8] sm:$0xff]  ;;  %v1401_v0 = vmul.f32 0.5, %v1391_v32 }
 0x2b7   :  { %3239 = vtanh.f32 %v1280_v40  ;;  %v1284_v30 = vmul.f32 0.0, %v1278_v17 }
 0x2ba   :  { %v3238_v48 = vpop.eup %3237 }
 0x2bb   :  { %v1285_v51 = vmul.f32 %v3238_v48, %v1274_v22  ;;  %v5882_v22 = vld [vmem:[%s8866_s10 + $0x188] sm:$0xff]  ;;  %v5888_v48 = vld [vmem:[%s8866_s10 + $0x198] sm:$0xff] }
 0x2bd   :  { %v3240_v56 = vpop.eup %3239  ;;  %v5829_v52 = vadd.f32 %v1285_v51, %v1284_v30  ;;  %v5896_v30 = vld [vmem:[%s8866_s10 + $0x168] sm:$0xff]  ;;  %v5902_v51 = vld [vmem:[%s8866_s10 + $0x178] sm:$0xff] }
 0x2be   :  { %v1282_v44 = vadd.f32 1.0, %v3240_v56 }
 0x2bf   :  { %3241 = vtanh.f32 %v5829_v52 }
 0x2c0   :  { %3243 = vtanh.f32 %v800_v23  ;;  %v1283_v11 = vmul.f32 0.5, %v1282_v44  ;;  %v5914_v44 = vld [vmem:[%s8866_s10 + $0x158] sm:$0xff] }
 0x2c1   :  { %3245 = vtanh.f32 %v1396_v25 }
 0x2c5   :  { %v3242_v59 = vpop.eup %3241 }
 0x2c6   :  { %v5832_v20 = vmul.f32 %v3242_v59, %v1283_v11  ;;  %v5834_v31 = vpop.eup %3243  ;;  %v5920_v59 = vld [vmem:[%s8866_s10 + $0x128] sm:$0xff] }
 0x2c7   :  { %v1325_v38 = vpop.f32.mrf.mxu0  ;;  %v3246_v37 = vpop.eup %3245 }
 0x2c8   :  { %9514 = vst [vmem:[#allocation16_spill] sm:$0xff] %v5832_v20  ;;  %v1388_v41 = vadd.f32 %v1325_v38, %v5230_v4  ;;  %v1365_v57 = vpop.f32.mrf.mxu1  ;;  %1446 = vmatmul.f32.vlgmr.msrb.gmra.mxu3 %v5832_v20  ;;  %1486 = vmatmul.f32.vlgmr.msra.gmra.mxu2 %v5832_v20  ;;  %v1289_v27 = vmul.f32 %v5834_v31, %v5832_v20  ;;  %v5850_v4 = vld [vmem:[%s8866_s10 + $0x1f8] sm:$0xff]  ;;  %v1398_v17 = vadd.f32 1.0, %v3246_v37 }
 0x2c9   :  { %1629 = vmatpush.msrb.mxu3 %v5844_v6  ;;  %1669 = vmatpush.msra.mxu2 %v5850_v4  ;;  %v1390_v40 = vadd.f32 %v1365_v57, %v5311_v16  ;;  %v5876_v16 = vld [vmem:[%s8866_s10 + $0x1b8] sm:$0xff]  ;;  %v5933_v57 = vld [vmem:[%s8866_s10 + $0x108] sm:$0xff] }
 0x2ca   :  { %v1392_v12 = vmul.f32 0.5, %v1388_v41  ;;  %1290 = vadd.xlane.f32.xlu0 %v1289_v27  ;;  %v1399_v56 = vmul.f32 0.5, %v1398_v17  ;;  %v5926_v38 = vld [vmem:[%s8866_s10 + $0x138] sm:$0xff]  ;;  %v5960_v17 = vld [vmem:[%s8866_s10 + $0xc8] sm:$0xff] }
 0x2cb   :  { %1630 = vmatpush.msrb.mxu3 %v5858_v26  ;;  %1670 = vmatpush.msra.mxu2 %v5864_v14  ;;  %v5939_v27 = vld [vmem:[%s8866_s10 + $0x118] sm:$0xff] }
 0x2cc   :  { %3247 = vtanh.f32 %v1392_v12  ;;  %v1405_v47 = vmul.f32 %v1399_v56, %v5492_v10  ;;  %v5947_v10 = vld [vmem:[%s8866_s10 + $0xe8] sm:$0xff]  ;;  %v5953_v37 = vld [vmem:[%s8866_s10 + $0xf8] sm:$0xff] }
 0x2cd   :  { %1631 = vmatpush.msrb.mxu3 %v5870_v53  ;;  %1671 = vmatpush.msra.mxu2 %v5876_v16  ;;  %3249 = vtanh.f32 %v1390_v40  ;;  %v5978_v56 = vld [vmem:[%s8866_s10 + $0xb8] sm:$0xff] }
 0x2ce   :  { %3251 = vtanh.f32 %v1401_v0  ;;  %v5966_v0 = vld [vmem:[%s8866_s10 + $0xd8] sm:$0xff] }
 0x2cf   :  { %1632 = vmatpush.msrb.mxu3 %v5882_v22  ;;  %1672 = vmatpush.msra.mxu2 %v5888_v48 }
 0x2d0   :  { %1526 = vmatmul.f32.vlgmr.msra.gmra.mxu3 %v5832_v20  ;;  %1566 = vmatmul.f32.vlgmr.msrb.gmra.mxu2 %v5832_v20  ;;  %v6010_v20 = vld [vmem:[%s8866_s10 + $0x48] sm:$0xff] }
 0x2d1   :  { %1633 = vmatpush.msrb.mxu3 %v5896_v30  ;;  %1673 = vmatpush.msra.mxu2 %v5902_v51  ;;  %9515 = vst [vmem:[#allocation17_spill] sm:$0xff] %v6010_v20 }
 0x2d2   :  { %v3248_v61 = vpop.eup %3247 }
 0x2d3   :  { %v1394_v23 = vadd.f32 1.0, %v3248_v61  ;;  %1634 = vmatpush.msrb.mxu3 %v5908_v9  ;;  %1674 = vmatpush.msra.mxu2 %v5914_v44  ;;  %v3250_v11 = vpop.eup %3249  ;;  %v5972_v61 = vld [vmem:[%s8866_s10 + $0xa8] sm:$0xff] }
 0x2d4   :  { %v3252_v12 = vpop.eup %3251 }
 0x2d5   :  { %v1395_v25 = vmul.f32 0.5, %v1394_v23  ;;  %1635 = vmatpush.msrb.mxu3 %v5920_v59  ;;  %1675 = vmatpush.msra.mxu2 %v5926_v38  ;;  %v1403_v40 = vadd.f32 1.0, %v3252_v12  ;;  %v5998_v12 = vld [vmem:[%s8866_s10 + $0x68] sm:$0xff] }
 0x2d7   :  { %v1406_v41 = vmul.f32 %v3250_v11, %v1395_v25  ;;  %1636 = vmatpush.msrb.mxu3 %v5933_v57  ;;  %1676 = vmatpush.msra.mxu2 %v5939_v27  ;;  %v1404_v23 = vmul.f32 0.5, %v1403_v40  ;;  %v5984_v25 = vld [vmem:[%s8866_s10 + $0x88] sm:$0xff]  ;;  %v5990_v11 = vld [vmem:[%s8866_s10 + $0x98] sm:$0xff] }
 0x2d8   :  { %v6004_v40 = vld [vmem:[%s8866_s10 + $0x78] sm:$0xff] }
 0x2d9   :  { %v5942_v32 = vadd.f32 %v1406_v41, %v1405_v47  ;;  %1637 = vmatpush.msrb.mxu3 %v5947_v10  ;;  %1677 = vmatpush.msra.mxu2 %v5953_v37 }
 0x2db   :  { %3253 = vtanh.f32 %v5942_v32  ;;  %1638 = vmatpush.msrb.mxu3 %v5960_v17  ;;  %1678 = vmatpush.msra.mxu2 %v5966_v0 }
 0x2dd   :  { %1639 = vmatpush.msrb.mxu3 %v5972_v61  ;;  %1679 = vmatpush.msra.mxu2 %v5978_v56 }
 0x2df   :  { %1640 = vmatpush.msrb.mxu3 %v5984_v25  ;;  %1680 = vmatpush.msra.mxu2 %v5990_v11 }
 0x2e1   :  { %v3254_v47 = vpop.eup %3253  ;;  %1641 = vmatpush.msrb.mxu3 %v5998_v12  ;;  %1681 = vmatpush.msra.mxu2 %v6004_v40 }
 0x2e2   :  { %v5993_v41 = vmul.f32 %v3254_v47, %v1404_v23  ;;  %v6016_v23 = vld [vmem:[%s8866_s10 + $0x58] sm:$0xff]  ;;  %v6026_v47 = vld [vmem:[%s8866_s10 + $0x28] sm:$0xff] }
 0x2e3   :  { %1642 = vmatpush.msrb.mxu3 %v6010_v20  ;;  %1682 = vmatpush.msra.mxu2 %v6016_v23  ;;  %v6032_v20 = vld [vmem:[%s8866_s10 + $0x38] sm:$0xff] }
 0x2e4   :  { %1426 = vmatmul.f32.vlgmr.msra.gmra.mxu0 %v5993_v41  ;;  %1466 = vmatmul.f32.vlgmr.msra.gmra.mxu1 %v5993_v41 }
 0x2e5   :  { %1609 = vmatpush.msra.mxu0 %v5514_v62  ;;  %1649 = vmatpush.msra.mxu1 %v5521_v35  ;;  %v6040_v62 = vld [vmem:[%s8866_s10 + $0x8] sm:$0xff]  ;;  %v6046_v35 = vld [vmem:[%s8866_s10 + $0x18] sm:$0xff] }
 0x2e6   :  { %1643 = vmatpush.msrb.mxu3 %v6026_v47  ;;  %1683 = vmatpush.msra.mxu2 %v6032_v20 }
 0x2e7   :  { %1610 = vmatpush.msra.mxu0 %v5528_v42  ;;  %1650 = vmatpush.msra.mxu1 %v5535_v2  ;;  %v6057_v42 = vld [vmem:[%s8870_s12 + $0x3e0] sm:$0xff]  ;;  %v6068_v2 = vld [vmem:[%s8870_s12 + $0x3e8] sm:$0xff] }
 0x2e8   :  { %1644 = vmatpush.msrb.mxu3 %v6040_v62  ;;  %1684 = vmatpush.msra.mxu2 %v6046_v35 }
 0x2e9   :  { %1611 = vmatpush.msra.mxu0 %v5542_v24  ;;  %1645 = vmatmul.f32.vlgmr.msrb.gmra.mxu3 %v5993_v41  ;;  %v6075_v24 = vld [vmem:[%s8870_s12 + $0x3c0] sm:$0xff] }
 0x2ea   :  { %1651 = vmatpush.msra.mxu1 %v5549_v46  ;;  %1685 = vmatmul.f32.vlgmr.msra.gmra.mxu2 %v5993_v41  ;;  %v6082_v46 = vld [vmem:[%s8870_s12 + $0x3c8] sm:$0xff] }
 0x2eb   :  { %1612 = vmatpush.msra.mxu0 %v5556_v18  ;;  %1731 = vmatpush.msra.mxu3 %v6057_v42  ;;  %v6089_v18 = vld [vmem:[%s8870_s12 + $0x3a0] sm:$0xff] }
 0x2ec   :  { %1652 = vmatpush.msra.mxu1 %v5563_v39  ;;  %1506 = vmatmul.f32.vlgmr.msrb.gmra.mxu0 %v5993_v41  ;;  %v6096_v39 = vld [vmem:[%s8870_s12 + $0x3a8] sm:$0xff] }
 0x2ed   :  { %1546 = vmatmul.f32.vlgmr.msrb.gmra.mxu1 %v5993_v41  ;;  %1613 = vmatpush.msra.mxu0 %v5571_v15  ;;  %v6103_v15 = vld [vmem:[%s8870_s12 + $0x380] sm:$0xff] }
 0x2ee   :  { %1653 = vmatpush.msra.mxu1 %v5577_v49  ;;  %1771 = vmatpush.msrb.mxu2 %v6068_v2  ;;  %v6110_v49 = vld [vmem:[%s8870_s12 + $0x388] sm:$0xff] }
 0x2ef   :  { %1614 = vmatpush.msra.mxu0 %v5584_v58  ;;  %1732 = vmatpush.msra.mxu3 %v6075_v24  ;;  %9516 = vst [vmem:[#allocation18_spill] sm:$0xff] %v6110_v49  ;;  %v6117_v58 = vld [vmem:[%s8870_s12 + $0x360] sm:$0xff] }
 0x2f0   :  { %1654 = vmatpush.msra.mxu1 %v5591_v36  ;;  %1772 = vmatpush.msrb.mxu2 %v6082_v46  ;;  %9517 = vst [vmem:[#allocation33_spill] sm:$0xff] %v6117_v58  ;;  %v6124_v36 = vld [vmem:[%s8870_s12 + $0x368] sm:$0xff] }
 0x2f1   :  { %1615 = vmatpush.msra.mxu0 %v5598_v1  ;;  %1733 = vmatpush.msra.mxu3 %v6089_v18  ;;  %9518 = vst [vmem:[#allocation19_spill] sm:$0xff] %v6124_v36  ;;  %v6131_v1 = vld [vmem:[%s8870_s12 + $0x340] sm:$0xff] }
 0x2f2   :  { %1655 = vmatpush.msra.mxu1 %v5605_v33  ;;  %1773 = vmatpush.msrb.mxu2 %v6096_v39  ;;  %9519 = vst [vmem:[#allocation20_spill] sm:$0xff] %v6131_v1  ;;  %v9520_v33 = vld [vmem:[#allocation3_spill] sm:$0xff] }
 0x2f3   :  { %1616 = vmatpush.msra.mxu0 %v5612_v55  ;;  %1734 = vmatpush.msra.mxu3 %v6103_v15  ;;  %v6138_v55 = vld [vmem:[%s8870_s12 + $0x348] sm:$0xff] }
 0x2f4   :  { %1656 = vmatpush.msra.mxu1 %v5619_v43  ;;  %1774 = vmatpush.msrb.mxu2 %v6110_v49  ;;  %9521 = vst [vmem:[#allocation21_spill] sm:$0xff] %v6138_v55  ;;  %v9522_v43 = vld [vmem:[#allocation7_spill] sm:$0xff] }
 0x2f5   :  { %1617 = vmatpush.msra.mxu0 %v5626_v13  ;;  %1735 = vmatpush.msra.mxu3 %v6117_v58  ;;  %v6145_v13 = vld [vmem:[%s8870_s12 + $0x320] sm:$0xff] }
 0x2f6   :  { %1657 = vmatpush.msra.mxu1 %v5633_v34  ;;  %1775 = vmatpush.msrb.mxu2 %v6124_v36  ;;  %9523 = vst [vmem:[#allocation22_spill] sm:$0xff] %v6145_v13  ;;  %v9524_v34 = vld [vmem:[#allocation4_spill] sm:$0xff] }
 0x2f7   :  { %1618 = vmatpush.msra.mxu0 %v5640_v63  ;;  %1736 = vmatpush.msra.mxu3 %v6131_v1  ;;  %v6152_v63 = vld [vmem:[%s8870_s12 + $0x328] sm:$0xff] }
 0x2f8   :  { %1658 = vmatpush.msra.mxu1 %v9520_v33  ;;  %1776 = vmatpush.msrb.mxu2 %v6138_v55  ;;  %9525 = vst [vmem:[#allocation23_spill] sm:$0xff] %v6152_v63  ;;  %v9526_v33 = vld [vmem:[#allocation8_spill] sm:$0xff]  ;;  %v9528_v55 = vld [vmem:[#allocation5_spill] sm:$0xff] }
 0x2f9   :  { %1619 = vmatpush.msra.mxu0 %v9522_v43  ;;  %1737 = vmatpush.msra.mxu3 %v6145_v13  ;;  %v6159_v43 = vld [vmem:[%s8870_s12 + $0x300] sm:$0xff]  ;;  %v9530_v13 = vld [vmem:[#allocation9_spill] sm:$0xff] }
 0x2fa   :  { %1659 = vmatpush.msra.mxu1 %v9524_v34  ;;  %1777 = vmatpush.msrb.mxu2 %v6152_v63  ;;  %9527 = vst [vmem:[#allocation24_spill] sm:$0xff] %v6159_v43  ;;  %v6166_v34 = vld [vmem:[%s8870_s12 + $0x308] sm:$0xff]  ;;  %v9532_v63 = vld [vmem:[#allocation6_spill] sm:$0xff] }
 0x2fb   :  { %1620 = vmatpush.msra.mxu0 %v9526_v33  ;;  %1738 = vmatpush.msra.mxu3 %v6159_v43  ;;  %9529 = vst [vmem:[#allocation25_spill] sm:$0xff] %v6166_v34  ;;  %v6173_v33 = vld [vmem:[%s8870_s12 + $0x2e0] sm:$0xff]  ;;  %v9534_v43 = vld [vmem:[#allocation10_spill] sm:$0xff] }
 0x2fc   :  { %1660 = vmatpush.msra.mxu1 %v9528_v55  ;;  %1778 = vmatpush.msrb.mxu2 %v6166_v34  ;;  %9531 = vst [vmem:[#allocation26_spill] sm:$0xff] %v6173_v33  ;;  %v6180_v55 = vld [vmem:[%s8870_s12 + $0x2e8] sm:$0xff] }
 0x2fd   :  { %1621 = vmatpush.msra.mxu0 %v9530_v13  ;;  %1739 = vmatpush.msra.mxu3 %v6173_v33  ;;  %9533 = vst [vmem:[#allocation27_spill] sm:$0xff] %v6180_v55  ;;  %v6187_v13 = vld [vmem:[%s8870_s12 + $0x2c0] sm:$0xff]  ;;  %v9536_v34 = vld [vmem:[#allocation40_spill] sm:$0xff] }
 0x2fe   :  { %1661 = vmatpush.msra.mxu1 %v9532_v63  ;;  %1779 = vmatpush.msrb.mxu2 %v6180_v55  ;;  %9535 = vst [vmem:[#allocation28_spill] sm:$0xff] %v6187_v13  ;;  %v6194_v63 = vld [vmem:[%s8870_s12 + $0x2c8] sm:$0xff]  ;;  %v9538_v33 = vld [vmem:[#allocation11_spill] sm:$0xff] }
 0x2ff   :  { %1622 = vmatpush.msra.mxu0 %v9534_v43  ;;  %1740 = vmatpush.msra.mxu3 %v6187_v13  ;;  %9537 = vst [vmem:[#allocation29_spill] sm:$0xff] %v6194_v63  ;;  %v6201_v43 = vld [vmem:[%s8870_s12 + $0x2a0] sm:$0xff]  ;;  %v9540_v55 = vld [vmem:[#allocation12_spill] sm:$0xff]  ;;  %v9542_v13 = vld [vmem:[#allocation13_spill] sm:$0xff] }
 0x300   :  { %1662 = vmatpush.msra.mxu1 %v9536_v34  ;;  %1780 = vmatpush.msrb.mxu2 %v6194_v63  ;;  %9539 = vst [vmem:[#allocation30_spill] sm:$0xff] %v6201_v43  ;;  %v6208_v34 = vld [vmem:[%s8870_s12 + $0x2a8] sm:$0xff]  ;;  %v9544_v63 = vld [vmem:[#allocation14_spill] sm:$0xff] }
 0x301   :  { %1623 = vmatpush.msra.mxu0 %v9538_v33  ;;  %1741 = vmatpush.msra.mxu3 %v6201_v43  ;;  %9541 = vst [vmem:[#allocation31_spill] sm:$0xff] %v6208_v34  ;;  %v6215_v33 = vld [vmem:[%s8870_s12 + $0x280] sm:$0xff] }
 0x302   :  { %1663 = vmatpush.msra.mxu1 %v9540_v55  ;;  %1781 = vmatpush.msrb.mxu2 %v6208_v34  ;;  %9543 = vst [vmem:[#allocation32_spill] sm:$0xff] %v6215_v33  ;;  %v6224_v55 = vld [vmem:[%s8870_s12 + $0x288] sm:$0xff] }
 0x303   :  { %1624 = vmatpush.msra.mxu0 %v9542_v13  ;;  %1742 = vmatpush.msra.mxu3 %v6215_v33  ;;  %9545 = vst [vmem:[#allocation34_spill] sm:$0xff] %v6224_v55  ;;  %v6230_v13 = vld [vmem:[%s8870_s12 + $0x260] sm:$0xff] }
 0x304   :  { %1664 = vmatpush.msra.mxu1 %v9544_v63  ;;  %1625 = vmatmul.f32.vlgmr.msra.gmra.mxu0 %v5993_v41  ;;  %9546 = vst [vmem:[#allocation35_spill] sm:$0xff] %v6230_v13  ;;  %v6236_v63 = vld [vmem:[%s8870_s12 + $0x1e0] sm:$0xff] }
 0x305   :  { %1665 = vmatmul.f32.vlgmr.msra.gmra.mxu1 %v5993_v41  ;;  %1782 = vmatpush.msrb.mxu2 %v6224_v55  ;;  %9547 = vst [vmem:[#allocation36_spill] sm:$0xff] %v6236_v63  ;;  %v6242_v41 = vld [vmem:[%s8870_s12 + $0x268] sm:$0xff] }
 0x306   :  { %1743 = vmatpush.msra.mxu3 %v6230_v13  ;;  %1711 = vmatpush.msrb.mxu0 %v6236_v63  ;;  %9548 = vst [vmem:[#allocation37_spill] sm:$0xff] %v6242_v41  ;;  %v6248_v55 = vld [vmem:[%s8870_s12 + $0x1e8] sm:$0xff]  ;;  %v6254_v13 = vld [vmem:[%s8870_s12 + $0x240] sm:$0xff] }
 0x307   :  { %1783 = vmatpush.msrb.mxu2 %v6242_v41  ;;  %9549 = vst [vmem:[#allocation38_spill] sm:$0xff] %v6248_v55  ;;  %1751 = vmatpush.msrb.mxu1 %v6248_v55  ;;  %v6260_v63 = vld [vmem:[%s8870_s12 + $0x1c0] sm:$0xff]  ;;  %v6266_v41 = vld [vmem:[%s8870_s12 + $0x248] sm:$0xff] }
 0x308   :  { %9550 = vst [vmem:[#allocation39_spill] sm:$0xff] %v6254_v13  ;;  %1744 = vmatpush.msra.mxu3 %v6254_v13  ;;  %1712 = vmatpush.msrb.mxu0 %v6260_v63  ;;  %v6272_v55 = vld [vmem:[%s8870_s12 + $0x1c8] sm:$0xff]  ;;  %v6278_v13 = vld [vmem:[%s8870_s12 + $0x220] sm:$0xff] }
 0x309   :  { %9551 = vst [vmem:[#allocation41_spill] sm:$0xff] %v6260_v63  ;;  %1784 = vmatpush.msrb.mxu2 %v6266_v41  ;;  %1752 = vmatpush.msrb.mxu1 %v6272_v55  ;;  %v6284_v63 = vld [vmem:[%s8870_s12 + $0x1a0] sm:$0xff] }
 0x30a   :  { %9552 = vst [vmem:[#allocation42_spill] sm:$0xff] %v6266_v41  ;;  %1745 = vmatpush.msra.mxu3 %v6278_v13  ;;  %1713 = vmatpush.msrb.mxu0 %v6284_v63  ;;  %v6290_v41 = vld [vmem:[%s8870_s12 + $0x228] sm:$0xff] }
 0x30b   :  { %9553 = vst [vmem:[#allocation43_spill] sm:$0xff] %v6272_v55  ;;  %1785 = vmatpush.msrb.mxu2 %v6290_v41  ;;  %v6296_v55 = vld [vmem:[%s8870_s12 + $0x1a8] sm:$0xff] }
 0x30c   :  { %9554 = vst [vmem:[#allocation44_spill] sm:$0xff] %v6278_v13  ;;  %1753 = vmatpush.msrb.mxu1 %v6296_v55  ;;  %v6302_v13 = vld [vmem:[%s8870_s12 + $0x200] sm:$0xff] }
 0x30d   :  { %9555 = vst [vmem:[#allocation47_spill] sm:$0xff] %v6284_v63  ;;  %1746 = vmatpush.msra.mxu3 %v6302_v13  ;;  %v6308_v63 = vld [vmem:[%s8870_s12 + $0x180] sm:$0xff] }
 0x30e   :  { %9556 = vst [vmem:[#allocation48_spill] sm:$0xff] %v6290_v41  ;;  %1714 = vmatpush.msrb.mxu0 %v6308_v63  ;;  %v6314_v41 = vld [vmem:[%s8870_s12 + $0x208] sm:$0xff] }
 0x30f   :  { %9557 = vst [vmem:[#allocation51_spill] sm:$0xff] %v6296_v55  ;;  %1786 = vmatpush.msrb.mxu2 %v6314_v41  ;;  %v6320_v55 = vld [vmem:[%s8870_s12 + $0x3f0] sm:$0xff] }
 0x310   :  { %9558 = vst [vmem:[#allocation52_spill] sm:$0xff] %v6302_v13  ;;  %1811 = vmatpush.msrb.mxu3 %v6320_v55  ;;  %v6326_v13 = vld [vmem:[%s8870_s12 + $0x3f8] sm:$0xff] }
 0x311   :  { %9559 = vst [vmem:[#allocation55_spill] sm:$0xff] %v6308_v63  ;;  %1851 = vmatpush.msra.mxu2 %v6326_v13  ;;  %v6332_v63 = vld [vmem:[%s8870_s12 + $0x188] sm:$0xff] }
 0x312   :  { %9560 = vst [vmem:[#allocation56_spill] sm:$0xff] %v6314_v41  ;;  %1754 = vmatpush.msrb.mxu1 %v6332_v63  ;;  %v6338_v41 = vld [vmem:[%s8870_s12 + $0x3d0] sm:$0xff] }
 0x313   :  { %9561 = vst [vmem:[#allocation59_spill] sm:$0xff] %v6320_v55  ;;  %1812 = vmatpush.msrb.mxu3 %v6338_v41  ;;  %v6344_v55 = vld [vmem:[%s8870_s12 + $0x160] sm:$0xff] }
 0x314   :  { %9562 = vst [vmem:[#allocation60_spill] sm:$0xff] %v6326_v13  ;;  %1715 = vmatpush.msrb.mxu0 %v6344_v55  ;;  %v6350_v13 = vld [vmem:[%s8870_s12 + $0x3d8] sm:$0xff] }
 0x315   :  { %9563 = vst [vmem:[#allocation63_spill] sm:$0xff] %v6332_v63  ;;  %1852 = vmatpush.msra.mxu2 %v6350_v13  ;;  %v6356_v63 = vld [vmem:[%s8870_s12 + $0x168] sm:$0xff] }
 0x316   :  { %9564 = vst [vmem:[#allocation64_spill] sm:$0xff] %v6338_v41  ;;  %1755 = vmatpush.msrb.mxu1 %v6356_v63  ;;  %v6362_v41 = vld [vmem:[%s8870_s12 + $0x3b0] sm:$0xff] }
 0x317   :  { %9565 = vst [vmem:[#allocation67_spill] sm:$0xff] %v6344_v55  ;;  %1813 = vmatpush.msrb.mxu3 %v6362_v41  ;;  %v6368_v55 = vld [vmem:[%s8870_s12 + $0x140] sm:$0xff] }
 0x318   :  { %9566 = vst [vmem:[#allocation68_spill] sm:$0xff] %v6350_v13  ;;  %1716 = vmatpush.msrb.mxu0 %v6368_v55  ;;  %v6374_v13 = vld [vmem:[%s8870_s12 + $0x3b8] sm:$0xff] }
 0x319   :  { %9567 = vst [vmem:[#allocation71_spill] sm:$0xff] %v6356_v63  ;;  %1853 = vmatpush.msra.mxu2 %v6374_v13  ;;  %v6380_v63 = vld [vmem:[%s8870_s12 + $0x148] sm:$0xff] }
 0x31a   :  { %9568 = vst [vmem:[#allocation72_spill] sm:$0xff] %v6362_v41  ;;  %1756 = vmatpush.msrb.mxu1 %v6380_v63  ;;  %v6386_v41 = vld [vmem:[%s8870_s12 + $0x390] sm:$0xff] }
 0x31b   :  { %9569 = vst [vmem:[#allocation75_spill] sm:$0xff] %v6368_v55  ;;  %1814 = vmatpush.msrb.mxu3 %v6386_v41  ;;  %v6392_v55 = vld [vmem:[%s8870_s12 + $0x120] sm:$0xff] }
 0x31c   :  { %9570 = vst [vmem:[#allocation76_spill] sm:$0xff] %v6374_v13  ;;  %1717 = vmatpush.msrb.mxu0 %v6392_v55  ;;  %v6398_v13 = vld [vmem:[%s8870_s12 + $0x398] sm:$0xff] }
 0x31d   :  { %9571 = vst [vmem:[#allocation79_spill] sm:$0xff] %v6380_v63  ;;  %1854 = vmatpush.msra.mxu2 %v6398_v13  ;;  %v6404_v63 = vld [vmem:[%s8870_s12 + $0x128] sm:$0xff] }
 0x31e   :  { %9572 = vst [vmem:[#allocation80_spill] sm:$0xff] %v6386_v41  ;;  %1757 = vmatpush.msrb.mxu1 %v6404_v63  ;;  %v6410_v41 = vld [vmem:[%s8870_s12 + $0x370] sm:$0xff] }
 0x31f   :  { %9573 = vst [vmem:[#allocation83_spill] sm:$0xff] %v6392_v55  ;;  %1815 = vmatpush.msrb.mxu3 %v6410_v41  ;;  %v6416_v55 = vld [vmem:[%s8870_s12 + $0x100] sm:$0xff] }
 0x320   :  { %9574 = vst [vmem:[#allocation84_spill] sm:$0xff] %v6398_v13  ;;  %1718 = vmatpush.msrb.mxu0 %v6416_v55  ;;  %v6422_v13 = vld [vmem:[%s8870_s12 + $0x378] sm:$0xff] }
 0x321   :  { %9575 = vst [vmem:[#allocation87_spill] sm:$0xff] %v6404_v63  ;;  %1855 = vmatpush.msra.mxu2 %v6422_v13  ;;  %v6428_v63 = vld [vmem:[%s8870_s12 + $0x108] sm:$0xff] }
 0x322   :  { %9576 = vst [vmem:[#allocation88_spill] sm:$0xff] %v6410_v41  ;;  %1758 = vmatpush.msrb.mxu1 %v6428_v63  ;;  %v6434_v41 = vld [vmem:[%s8870_s12 + $0x350] sm:$0xff] }
 0x323   :  { %9577 = vst [vmem:[#allocation91_spill] sm:$0xff] %v6416_v55  ;;  %1816 = vmatpush.msrb.mxu3 %v6434_v41  ;;  %v6440_v55 = vld [vmem:[%s8870_s12 + $0xe0] sm:$0xff] }
 0x324   :  { %9578 = vst [vmem:[#allocation45_spill] sm:$0xff] %v6422_v13  ;;  %1719 = vmatpush.msrb.mxu0 %v6440_v55  ;;  %v6446_v13 = vld [vmem:[%s8870_s12 + $0x358] sm:$0xff] }
 0x325   :  { %9579 = vst [vmem:[#allocation46_spill] sm:$0xff] %v6428_v63  ;;  %1856 = vmatpush.msra.mxu2 %v6446_v13  ;;  %v6452_v63 = vld [vmem:[%s8870_s12 + $0xe8] sm:$0xff] }
 0x326   :  { %9580 = vst [vmem:[#allocation92_spill] sm:$0xff] %v6434_v41  ;;  %1759 = vmatpush.msrb.mxu1 %v6452_v63  ;;  %v6458_v41 = vld [vmem:[%s8870_s12 + $0x330] sm:$0xff] }
 0x327   :  { %9581 = vst [vmem:[#allocation49_spill] sm:$0xff] %v6440_v55  ;;  %1817 = vmatpush.msrb.mxu3 %v6458_v41  ;;  %v6464_v55 = vld [vmem:[%s8870_s12 + $0xc0] sm:$0xff] }
 0x328   :  { %9582 = vst [vmem:[#allocation95_spill] sm:$0xff] %v6446_v13  ;;  %1720 = vmatpush.msrb.mxu0 %v6464_v55  ;;  %v6470_v13 = vld [vmem:[%s8870_s12 + $0x338] sm:$0xff] }
 0x329   :  { %9583 = vst [vmem:[#allocation50_spill] sm:$0xff] %v6452_v63  ;;  %1857 = vmatpush.msra.mxu2 %v6470_v13  ;;  %v6476_v63 = vld [vmem:[%s8870_s12 + $0xc8] sm:$0xff] }
 0x32a   :  { %9584 = vst [vmem:[#allocation96_spill] sm:$0xff] %v6458_v41  ;;  %1760 = vmatpush.msrb.mxu1 %v6476_v63  ;;  %v6482_v41 = vld [vmem:[%s8870_s12 + $0x310] sm:$0xff] }
 0x32b   :  { %9585 = vst [vmem:[#allocation53_spill] sm:$0xff] %v6464_v55  ;;  %1818 = vmatpush.msrb.mxu3 %v6482_v41  ;;  %v6488_v55 = vld [vmem:[%s8870_s12 + $0xa0] sm:$0xff] }
 0x32c   :  { %9586 = vst [vmem:[#allocation99_spill] sm:$0xff] %v6470_v13  ;;  %1721 = vmatpush.msrb.mxu0 %v6488_v55  ;;  %v6494_v13 = vld [vmem:[%s8870_s12 + $0x318] sm:$0xff] }
 0x32d   :  { %9587 = vst [vmem:[#allocation54_spill] sm:$0xff] %v6476_v63  ;;  %1858 = vmatpush.msra.mxu2 %v6494_v13  ;;  %v6500_v63 = vld [vmem:[%s8870_s12 + $0xa8] sm:$0xff] }
 0x32e   :  { %9588 = vst [vmem:[#allocation100_spill] sm:$0xff] %v6482_v41  ;;  %1761 = vmatpush.msrb.mxu1 %v6500_v63  ;;  %v6506_v41 = vld [vmem:[%s8870_s12 + $0x2f0] sm:$0xff] }
 0x32f   :  { %9589 = vst [vmem:[#allocation57_spill] sm:$0xff] %v6488_v55  ;;  %1819 = vmatpush.msrb.mxu3 %v6506_v41  ;;  %v6512_v55 = vld [vmem:[%s8870_s12 + $0x80] sm:$0xff] }
 0x330   :  { %9590 = vst [vmem:[#allocation103_spill] sm:$0xff] %v6494_v13  ;;  %1722 = vmatpush.msrb.mxu0 %v6512_v55  ;;  %v6518_v13 = vld [vmem:[%s8870_s12 + $0x2f8] sm:$0xff] }
 0x331   :  { %9591 = vst [vmem:[#allocation58_spill] sm:$0xff] %v6500_v63  ;;  %1859 = vmatpush.msra.mxu2 %v6518_v13  ;;  %v6524_v63 = vld [vmem:[%s8870_s12 + $0x88] sm:$0xff] }
 0x332   :  { %9592 = vst [vmem:[#allocation104_spill] sm:$0xff] %v6506_v41  ;;  %1762 = vmatpush.msrb.mxu1 %v6524_v63  ;;  %v6530_v41 = vld [vmem:[%s8870_s12 + $0x2d0] sm:$0xff] }
 0x333   :  { %9593 = vst [vmem:[#allocation61_spill] sm:$0xff] %v6512_v55  ;;  %1820 = vmatpush.msrb.mxu3 %v6530_v41  ;;  %v6536_v55 = vld [vmem:[%s8870_s12 + $0x60] sm:$0xff] }
 0x334   :  { %9594 = vst [vmem:[#allocation107_spill] sm:$0xff] %v6518_v13  ;;  %1723 = vmatpush.msrb.mxu0 %v6536_v55  ;;  %v6542_v13 = vld [vmem:[%s8870_s12 + $0x2d8] sm:$0xff] }
 0x335   :  { %9595 = vst [vmem:[#allocation62_spill] sm:$0xff] %v6524_v63  ;;  %1860 = vmatpush.msra.mxu2 %v6542_v13  ;;  %v6548_v63 = vld [vmem:[%s8870_s12 + $0x68] sm:$0xff] }
 0x336   :  { %9596 = vst [vmem:[#allocation108_spill] sm:$0xff] %v6530_v41  ;;  %1763 = vmatpush.msrb.mxu1 %v6548_v63  ;;  %v6554_v41 = vld [vmem:[%s8870_s12 + $0x2b0] sm:$0xff] }
 0x337   :  { %9597 = vst [vmem:[#allocation65_spill] sm:$0xff] %v6536_v55  ;;  %1821 = vmatpush.msrb.mxu3 %v6554_v41  ;;  %v6560_v55 = vld [vmem:[%s8870_s12 + $0x40] sm:$0xff] }
 0x338   :  { %9598 = vst [vmem:[#allocation66_spill] sm:$0xff] %v6542_v13  ;;  %1724 = vmatpush.msrb.mxu0 %v6560_v55  ;;  %v6566_v13 = vld [vmem:[%s8870_s12 + $0x2b8] sm:$0xff] }
 0x339   :  { %9599 = vst [vmem:[#allocation69_spill] sm:$0xff] %v6548_v63  ;;  %1861 = vmatpush.msra.mxu2 %v6566_v13  ;;  %v6572_v63 = vld [vmem:[%s8870_s12 + $0x48] sm:$0xff] }
 0x33a   :  { %9600 = vst [vmem:[#allocation70_spill] sm:$0xff] %v6554_v41  ;;  %1764 = vmatpush.msrb.mxu1 %v6572_v63  ;;  %v6578_v41 = vld [vmem:[%s8870_s12 + $0x290] sm:$0xff] }
 0x33b   :  { %9601 = vst [vmem:[#allocation73_spill] sm:$0xff] %v6560_v55  ;;  %1822 = vmatpush.msrb.mxu3 %v6578_v41  ;;  %v6584_v55 = vld [vmem:[%s8870_s12 + $0x20] sm:$0xff] }
 0x33c   :  { %9602 = vst [vmem:[#allocation74_spill] sm:$0xff] %v6566_v13  ;;  %1725 = vmatpush.msrb.mxu0 %v6584_v55  ;;  %v6590_v13 = vld [vmem:[%s8870_s12 + $0x298] sm:$0xff] }
 0x33d   :  { %9603 = vst [vmem:[#allocation77_spill] sm:$0xff] %v6572_v63  ;;  %1862 = vmatpush.msra.mxu2 %v6590_v13  ;;  %v6596_v63 = vld [vmem:[%s8870_s12 + $0x28] sm:$0xff] }
 0x33e   :  { %9604 = vst [vmem:[#allocation78_spill] sm:$0xff] %v6578_v41  ;;  %1765 = vmatpush.msrb.mxu1 %v6596_v63  ;;  %v6602_v41 = vld [vmem:[%s8870_s12 + $0x270] sm:$0xff] }
 0x33f   :  { %9605 = vst [vmem:[#allocation81_spill] sm:$0xff] %v6584_v55  ;;  %1823 = vmatpush.msrb.mxu3 %v6602_v41  ;;  %v6608_v55 = vld [vmem:[%s8870_s12] sm:$0xff] }
 0x340   :  { %9606 = vst [vmem:[#allocation82_spill] sm:$0xff] %v6590_v13  ;;  %1726 = vmatpush.msrb.mxu0 %v6608_v55  ;;  %v6614_v13 = vld [vmem:[%s8870_s12 + $0x278] sm:$0xff] }
 0x341   :  { %9607 = vst [vmem:[#allocation85_spill] sm:$0xff] %v6596_v63  ;;  %1863 = vmatpush.msra.mxu2 %v6614_v13  ;;  %v6620_v63 = vld [vmem:[%s8870_s12 + $0x8] sm:$0xff] }
 0x342   :  { %9608 = vst [vmem:[#allocation86_spill] sm:$0xff] %v6602_v41  ;;  %1766 = vmatpush.msrb.mxu1 %v6620_v63  ;;  %v6626_v41 = vld [vmem:[%s8870_s12 + $0x250] sm:$0xff] }
 0x343   :  { %9609 = vst [vmem:[#allocation89_spill] sm:$0xff] %v6608_v55  ;;  %1824 = vmatpush.msrb.mxu3 %v6626_v41  ;;  %v6632_v55 = vld [vmem:[%s8870_s12 + $0x1f0] sm:$0xff] }
 0x344   :  { %9610 = vst [vmem:[#allocation90_spill] sm:$0xff] %v6614_v13  ;;  %1791 = vmatpush.msra.mxu0 %v6632_v55  ;;  %v6638_v13 = vld [vmem:[%s8870_s12 + $0x258] sm:$0xff] }
 0x345   :  { %9611 = vst [vmem:[#allocation93_spill] sm:$0xff] %v6620_v63  ;;  %1864 = vmatpush.msra.mxu2 %v6638_v13  ;;  %v6644_v63 = vld [vmem:[%s8870_s12 + $0x1f8] sm:$0xff] }
 0x346   :  { %9612 = vst [vmem:[#allocation94_spill] sm:$0xff] %v6626_v41  ;;  %1831 = vmatpush.msra.mxu1 %v6644_v63  ;;  %v6650_v41 = vld [vmem:[%s8870_s12 + $0x230] sm:$0xff] }
 0x347   :  { %9613 = vst [vmem:[#allocation97_spill] sm:$0xff] %v6632_v55  ;;  %1825 = vmatpush.msrb.mxu3 %v6650_v41  ;;  %v6656_v55 = vld [vmem:[%s8870_s12 + $0x1d0] sm:$0xff] }
 0x348   :  { %9614 = vst [vmem:[#allocation98_spill] sm:$0xff] %v6638_v13  ;;  %1792 = vmatpush.msra.mxu0 %v6656_v55  ;;  %v6662_v13 = vld [vmem:[%s8870_s12 + $0x238] sm:$0xff] }
 0x349   :  { %9615 = vst [vmem:[#allocation101_spill] sm:$0xff] %v6644_v63  ;;  %1865 = vmatpush.msra.mxu2 %v6662_v13  ;;  %v6668_v63 = vld [vmem:[%s8870_s12 + $0x1d8] sm:$0xff] }
 0x34a   :  { %9616 = vst [vmem:[#allocation102_spill] sm:$0xff] %v6650_v41  ;;  %1832 = vmatpush.msra.mxu1 %v6668_v63  ;;  %v6674_v41 = vld [vmem:[%s8870_s12 + $0x210] sm:$0xff] }
 0x34b   :  { %9617 = vst [vmem:[#allocation105_spill] sm:$0xff] %v6656_v55  ;;  %1826 = vmatpush.msrb.mxu3 %v6674_v41  ;;  %v6680_v55 = vld [vmem:[%s8870_s12 + $0x1b0] sm:$0xff] }
 0x34c   :  { %9618 = vst [vmem:[#allocation106_spill] sm:$0xff] %v6662_v13  ;;  %1793 = vmatpush.msra.mxu0 %v6680_v55  ;;  %v6686_v13 = vld [vmem:[%s8870_s12 + $0x218] sm:$0xff] }
 0x34d   :  { %9619 = vst [vmem:[#allocation109_spill] sm:$0xff] %v6668_v63  ;;  %1866 = vmatpush.msra.mxu2 %v6686_v13  ;;  %v6692_v63 = vld [vmem:[%s8870_s12 + $0x1b8] sm:$0xff] }
 0x34e   :  { %9620 = vst [vmem:[#allocation110_spill] sm:$0xff] %v6674_v41  ;;  %1833 = vmatpush.msra.mxu1 %v6692_v63  ;;  %v6698_v41 = vld [vmem:[%s8870_s12 + $0x190] sm:$0xff] }
 0x34f   :  { %9621 = vst [vmem:[#allocation111_spill] sm:$0xff] %v6680_v55  ;;  %1794 = vmatpush.msra.mxu0 %v6698_v41  ;;  %v6704_v55 = vld [vmem:[%s8870_s12 + $0x198] sm:$0xff] }
 0x350   :  { %9622 = vst [vmem:[#allocation112_spill] sm:$0xff] %v6686_v13  ;;  %1834 = vmatpush.msra.mxu1 %v6704_v55  ;;  %v6710_v13 = vld [vmem:[%s8870_s12 + $0x170] sm:$0xff] }
 0x351   :  { %9623 = vst [vmem:[#allocation3_spill] sm:$0xff] %v6692_v63  ;;  %1795 = vmatpush.msra.mxu0 %v6710_v13  ;;  %v6716_v63 = vld [vmem:[%s8870_s12 + $0x178] sm:$0xff] }
 0x352   :  { %9624 = vst [vmem:[#allocation7_spill] sm:$0xff] %v6698_v41  ;;  %1835 = vmatpush.msra.mxu1 %v6716_v63  ;;  %v6722_v41 = vld [vmem:[%s8870_s12 + $0x150] sm:$0xff] }
 0x353   :  { %9625 = vst [vmem:[#allocation4_spill] sm:$0xff] %v6704_v55  ;;  %1796 = vmatpush.msra.mxu0 %v6722_v41  ;;  %v6728_v55 = vld [vmem:[%s8870_s12 + $0x158] sm:$0xff] }
 0x354   :  { %9626 = vst [vmem:[#allocation8_spill] sm:$0xff] %v6710_v13  ;;  %1836 = vmatpush.msra.mxu1 %v6728_v55  ;;  %v6734_v13 = vld [vmem:[%s8870_s12 + $0x130] sm:$0xff] }
 0x355   :  { %9627 = vst [vmem:[#allocation5_spill] sm:$0xff] %v6716_v63  ;;  %1797 = vmatpush.msra.mxu0 %v6734_v13  ;;  %v6740_v63 = vld [vmem:[%s8870_s12 + $0x138] sm:$0xff] }
 0x356   :  { %9628 = vst [vmem:[#allocation9_spill] sm:$0xff] %v6722_v41  ;;  %1837 = vmatpush.msra.mxu1 %v6740_v63  ;;  %v6746_v41 = vld [vmem:[%s8870_s12 + $0x110] sm:$0xff] }
 0x357   :  { %9629 = vst [vmem:[#allocation6_spill] sm:$0xff] %v6728_v55  ;;  %1798 = vmatpush.msra.mxu0 %v6746_v41  ;;  %v6752_v55 = vld [vmem:[%s8870_s12 + $0x118] sm:$0xff] }
 0x358   :  { %9630 = vst [vmem:[#allocation10_spill] sm:$0xff] %v6734_v13  ;;  %1838 = vmatpush.msra.mxu1 %v6752_v55  ;;  %v6758_v13 = vld [vmem:[%s8870_s12 + $0xf0] sm:$0xff] }
 0x359   :  { %9631 = vst [vmem:[#allocation40_spill] sm:$0xff] %v6740_v63  ;;  %1799 = vmatpush.msra.mxu0 %v6758_v13  ;;  %v6764_v63 = vld [vmem:[%s8870_s12 + $0xf8] sm:$0xff] }
 0x35a   :  { %9632 = vst [vmem:[#allocation11_spill] sm:$0xff] %v6746_v41  ;;  %1839 = vmatpush.msra.mxu1 %v6764_v63  ;;  %v6770_v41 = vld [vmem:[%s8870_s12 + $0xd0] sm:$0xff] }
 0x35b   :  { %9633 = vst [vmem:[#allocation12_spill] sm:$0xff] %v6752_v55  ;;  %1800 = vmatpush.msra.mxu0 %v6770_v41  ;;  %v6776_v55 = vld [vmem:[%s8870_s12 + $0xd8] sm:$0xff] }
 0x35c   :  { %9634 = vst [vmem:[#allocation13_spill] sm:$0xff] %v6758_v13  ;;  %1840 = vmatpush.msra.mxu1 %v6776_v55  ;;  %v6782_v13 = vld [vmem:[%s8870_s12 + $0xb0] sm:$0xff] }
 0x35d   :  { %9635 = vst [vmem:[#allocation14_spill] sm:$0xff] %v6764_v63  ;;  %1801 = vmatpush.msra.mxu0 %v6782_v13  ;;  %v6788_v63 = vld [vmem:[%s8870_s12 + $0xb8] sm:$0xff] }
 0x35e   :  { %9636 = vst [vmem:[#allocation129_spill] sm:$0xff] %v6770_v41  ;;  %1841 = vmatpush.msra.mxu1 %v6788_v63  ;;  %v6794_v41 = vld [vmem:[%s8870_s12 + $0x90] sm:$0xff] }
 0x35f   :  { %9637 = vst [vmem:[#allocation130_spill] sm:$0xff] %v6776_v55  ;;  %1802 = vmatpush.msra.mxu0 %v6794_v41  ;;  %v6800_v55 = vld [vmem:[%s8870_s12 + $0x98] sm:$0xff] }
 0x360   :  { %9638 = vst [vmem:[#allocation131_spill] sm:$0xff] %v6782_v13  ;;  %1842 = vmatpush.msra.mxu1 %v6800_v55 }
 0x361   :  { %9639 = vst [vmem:[#allocation132_spill] sm:$0xff] %v6788_v63  ;;  %1803 = vmatpush.msra.mxu0 %v5409_v19  ;;  %v1427_v63 = vpop.f32.mrf.mxu0  ;;  %v1467_v13 = vpop.f32.mrf.mxu1 }
 0x362   :  { %9640 = vst [vmem:[#allocation133_spill] sm:$0xff] %v6794_v41  ;;  %1843 = vmatpush.msra.mxu1 %v5414_v54  ;;  %v1447_v41 = vpop.f32.mrf.mxu3  ;;  %v1428_v19 = vadd.f32 %v1427_v63, %v5812_v29  ;;  %v1468_v54 = vadd.f32 %v1467_v13, %v5814_v45 }
 0x363   :  { %9641 = vst [vmem:[#allocation134_spill] sm:$0xff] %v6800_v55  ;;  %1804 = vmatpush.msra.mxu0 %v5423_v21  ;;  %v1487_v55 = vpop.f32.mrf.mxu2 }
 0x364   :  { %1844 = vmatpush.msra.mxu1 %v5428_v7  ;;  %v1448_v33 = vadd.f32 %v1447_v41, %v1428_v19  ;;  %v1488_v21 = vadd.f32 %v1487_v55, %v1468_v54 }
 0x365   :  { %1805 = vmatpush.msra.mxu0 %v5437_v60 }
 0x366   :  { %1845 = vmatpush.msra.mxu1 %v5442_v8  ;;  %v1570_v34 = vmul.f32 0.5, %v1448_v33  ;;  %v1574_v7 = vmul.f32 0.5, %v1488_v21 }
 0x367   :  { %1806 = vmatpush.msra.mxu0 %v5451_v5 }
 0x368   :  { %1846 = vmatpush.msra.mxu1 %v5456_v28  ;;  %3255 = vtanh.f32 %v1570_v34 }
 0x369   :  { %3257 = vtanh.f32 %v1574_v7  ;;  %v1507_v60 = vpop.f32.mrf.mxu0 }
 0x36a   :  { %v1508_v8 = vadd.f32 %v1507_v60, %v5818_v50  ;;  %v1547_v5 = vpop.f32.mrf.mxu1  ;;  %v1527_v43 = vpop.f32.mrf.mxu3 }
 0x36b   :  { %v1548_v28 = vadd.f32 %v1547_v5, %v5820_v3  ;;  %v1567_v1 = vpop.f32.mrf.mxu2  ;;  %v9642_v5 = vld [vmem:[#allocation117_spill] sm:$0xff] }
 0x36c   :  { %v1528_v36 = vadd.f32 %v1527_v43, %v1508_v8 }
 0x36d   :  { %v1568_v58 = vadd.f32 %v1567_v1, %v1548_v28 }
 0x36e   :  { %v3256_v49 = vpop.eup %3255  ;;  %3259 = vtanh.f32 %v1528_v36 }
 0x36f   :  { %v3258_v63 = vpop.eup %3257  ;;  %v1572_v13 = vadd.f32 1.0, %v3256_v49  ;;  %v1579_v41 = vmul.f32 0.5, %v1568_v58 }
 0x370   :  { %v1576_v55 = vadd.f32 1.0, %v3258_v63 }
 0x371   :  { %3261 = vtanh.f32 %v1579_v41  ;;  %v1573_v34 = vmul.f32 0.5, %v1572_v13  ;;  %v9644_v13 = vld [vmem:[#allocation113_spill] sm:$0xff] }
 0x372   :  { %v1577_v33 = vmul.f32 0.5, %v1576_v55  ;;  %v1646_v7 = vpop.f32.mrf.mxu3 }
 0x373   :  { %v1690_v43 = vadd.f32 %v1646_v7, %v9642_v5  ;;  %v1686_v63 = vpop.f32.mrf.mxu2  ;;  %v9652_v5 = vld [vmem:[#allocation21_spill] sm:$0xff] }
 0x374   :  { %v3260_v19 = vpop.eup %3259  ;;  %v1583_v54 = vmul.f32 %v1577_v33, %v5829_v52 }
 0x375   :  { %v1584_v21 = vmul.f32 %v3260_v19, %v1573_v34  ;;  %v1697_v1 = vmul.f32 0.5, %v1690_v43  ;;  %v9645_v34 = vld [vmem:[#allocation118_spill] sm:$0xff]  ;;  %v7010_v43 = vld [vmem:[%s8866_s10 + $0xa0] sm:$0xff] }
 0x376   :  { %v1692_v19 = vadd.f32 %v1686_v63, %v9645_v34  ;;  %v7031_v63 = vld [vmem:[%s8866_s10 + $0x90] sm:$0xff]  ;;  %v7052_v34 = vld [vmem:[%s8866_s10 + $0x40] sm:$0xff] }
 0x377   :  { %v3262_v60 = vpop.eup %3261  ;;  %v6816_v50 = vadd.f32 %v1584_v21, %v1583_v54  ;;  %v9646_v21 = vld [vmem:[#allocation119_spill] sm:$0xff] }
 0x378   :  { %v1581_v36 = vadd.f32 1.0, %v3262_v60 }
 0x379   :  { %3263 = vtanh.f32 %v6816_v50 }
 0x37a   :  { %v1582_v49 = vmul.f32 0.5, %v1581_v36  ;;  %3265 = vtanh.f32 %v1697_v1  ;;  %v9653_v36 = vld [vmem:[#allocation22_spill] sm:$0xff]  ;;  %v7017_v1 = vld [vmem:[%s8866_s10 + $0xb0] sm:$0xff] }
 0x37f   :  { %v3264_v58 = vpop.eup %3263 }
 0x380   :  { %v6820_v8 = vmul.f32 %v3264_v58, %v1582_v49  ;;  %v3266_v54 = vpop.eup %3265  ;;  %v9654_v49 = vld [vmem:[#allocation23_spill] sm:$0xff] }
 0x381   :  { %v1626_v28 = vpop.f32.mrf.mxu0  ;;  %v1699_v60 = vadd.f32 1.0, %v3266_v54  ;;  %v7024_v58 = vld [vmem:[%s8866_s10 + $0x80] sm:$0xff]  ;;  %v7059_v54 = vld [vmem:[%s8866_s10 + $0x50] sm:$0xff] }
 0x382   :  { %9643 = vst [vmem:[#allocation117_spill] sm:$0xff] %v6820_v8  ;;  %v1689_v52 = vadd.f32 %v1626_v28, %v9644_v13  ;;  %1747 = vmatmul.f32.vlgmr.msra.gmra.mxu3 %v6820_v8  ;;  %1787 = vmatmul.f32.vlgmr.msrb.gmra.mxu2 %v6820_v8  ;;  %v1588_v41 = vmul.f32 %v5834_v31, %v6820_v8  ;;  %v1666_v55 = vpop.f32.mrf.mxu1  ;;  %v9655_v28 = vld [vmem:[#allocation24_spill] sm:$0xff]  ;;  %v9656_v13 = vld [vmem:[#allocation25_spill] sm:$0xff] }
 0x383   :  { %1930 = vmatpush.msra.mxu3 %v5844_v6  ;;  %1970 = vmatpush.msrb.mxu2 %v5850_v4  ;;  %v1691_v7 = vadd.f32 %v1666_v55, %v9646_v21  ;;  %v1702_v6 = vmul.f32 0.5, %v1692_v19  ;;  %v7045_v55 = vld [vmem:[%s8866_s10 + $0x70] sm:$0xff]  ;;  %v9659_v19 = vld [vmem:[#allocation28_spill] sm:$0xff] }
 0x384   :  { %v1693_v33 = vmul.f32 0.5, %v1689_v52  ;;  %1589 = vadd.xlane.f32.xlu1 %v1588_v41  ;;  %v7038_v52 = vld [vmem:[%s8866_s10 + $0x60] sm:$0xff]  ;;  %v9657_v41 = vld [vmem:[#allocation26_spill] sm:$0xff]  ;;  %v9660_v21 = vld [vmem:[#allocation29_spill] sm:$0xff] }
 0x385   :  { %1931 = vmatpush.msra.mxu3 %v5858_v26  ;;  %1971 = vmatpush.msrb.mxu2 %v5864_v14  ;;  %v1700_v26 = vmul.f32 0.5, %v1699_v60  ;;  %v9661_v60 = vld [vmem:[#allocation30_spill] sm:$0xff] }
 0x386   :  { %3267 = vtanh.f32 %v1693_v33  ;;  %v9658_v33 = vld [vmem:[#allocation27_spill] sm:$0xff] }
 0x387   :  { %1932 = vmatpush.msra.mxu3 %v5870_v53  ;;  %1972 = vmatpush.msrb.mxu2 %v5876_v16  ;;  %3269 = vtanh.f32 %v1691_v7  ;;  %v7066_v7 = vld [vmem:[%s8866_s10 + $0x20] sm:$0xff] }
 0x388   :  { %3271 = vtanh.f32 %v1702_v6  ;;  %v7073_v6 = vld [vmem:[%s8866_s10 + $0x30] sm:$0xff] }
 0x389   :  { %1933 = vmatpush.msra.mxu3 %v5882_v22  ;;  %1973 = vmatpush.msrb.mxu2 %v5888_v48  ;;  %v1706_v22 = vmul.f32 %v1700_v26, %v5942_v32  ;;  %v6876_v32 = vld [vmem:[%s8866_s10 + $0x1f0] sm:$0xff]  ;;  %v7080_v26 = vld [vmem:[%s8866_s10] sm:$0xff] }
 0x38a   :  { %1827 = vmatmul.f32.vlgmr.msrb.gmra.mxu3 %v6820_v8  ;;  %1867 = vmatmul.f32.vlgmr.msra.gmra.mxu2 %v6820_v8 }
 0x38b   :  { %1934 = vmatpush.msra.mxu3 %v5896_v30  ;;  %1974 = vmatpush.msrb.mxu2 %v5902_v51 }
 0x38c   :  { %v3268_v4 = vpop.eup %3267 }
 0x38d   :  { %v1695_v14 = vadd.f32 1.0, %v3268_v4  ;;  %1935 = vmatpush.msra.mxu3 %v5908_v9  ;;  %1975 = vmatpush.msrb.mxu2 %v5914_v44  ;;  %v3270_v16 = vpop.eup %3269  ;;  %v9662_v4 = vld [vmem:[#allocation31_spill] sm:$0xff] }
 0x38e   :  { %v3272_v30 = vpop.eup %3271 }
 0x38f   :  { %v1696_v53 = vmul.f32 0.5, %v1695_v14  ;;  %1936 = vmatpush.msra.mxu3 %v5920_v59  ;;  %1976 = vmatpush.msrb.mxu2 %v5926_v38  ;;  %v1704_v9 = vadd.f32 1.0, %v3272_v30  ;;  %v9663_v14 = vld [vmem:[#allocation32_spill] sm:$0xff]  ;;  %v9667_v30 = vld [vmem:[#allocation37_spill] sm:$0xff] }
 0x391   :  { %v1707_v48 = vmul.f32 %v3270_v16, %v1696_v53  ;;  %1937 = vmatpush.msra.mxu3 %v5933_v57  ;;  %1977 = vmatpush.msrb.mxu2 %v5939_v27  ;;  %v1705_v44 = vmul.f32 0.5, %v1704_v9  ;;  %v9647_v57 = vld [vmem:[#allocation17_spill] sm:$0xff]  ;;  %v6870_v27 = vld [vmem:[%s8866_s10 + $0x1e0] sm:$0xff]  ;;  %v9664_v16 = vld [vmem:[#allocation34_spill] sm:$0xff] }
 0x392   :  { %v7087_v53 = vld [vmem:[%s8866_s10 + $0x10] sm:$0xff]  ;;  %v9668_v9 = vld [vmem:[#allocation38_spill] sm:$0xff] }
 0x393   :  { %v6848_v51 = vadd.f32 %v1707_v48, %v1706_v22  ;;  %1938 = vmatpush.msra.mxu3 %v5947_v10  ;;  %1978 = vmatpush.msrb.mxu2 %v5953_v37  ;;  %v6884_v10 = vld [vmem:[%s8866_s10 + $0x1c0] sm:$0xff]  ;;  %v6890_v37 = vld [vmem:[%s8866_s10 + $0x1d0] sm:$0xff]  ;;  %v9666_v48 = vld [vmem:[#allocation36_spill] sm:$0xff] }
 0x394   :  { %v9665_v22 = vld [vmem:[#allocation35_spill] sm:$0xff] }
 0x395   :  { %3273 = vtanh.f32 %v6848_v51  ;;  %1939 = vmatpush.msra.mxu3 %v5960_v17  ;;  %1979 = vmatpush.msrb.mxu2 %v5966_v0  ;;  %v6905_v17 = vld [vmem:[%s8866_s10 + $0x1b0] sm:$0xff]  ;;  %v6912_v0 = vld [vmem:[%s8866_s10 + $0x180] sm:$0xff] }
 0x397   :  { %1940 = vmatpush.msra.mxu3 %v5972_v61  ;;  %1980 = vmatpush.msrb.mxu2 %v5978_v56  ;;  %v6919_v61 = vld [vmem:[%s8866_s10 + $0x190] sm:$0xff]  ;;  %v6927_v56 = vld [vmem:[%s8866_s10 + $0x160] sm:$0xff] }
 0x399   :  { %1941 = vmatpush.msra.mxu3 %v5984_v25  ;;  %1981 = vmatpush.msrb.mxu2 %v5990_v11  ;;  %v6933_v25 = vld [vmem:[%s8866_s10 + $0x170] sm:$0xff]  ;;  %v6940_v11 = vld [vmem:[%s8866_s10 + $0x140] sm:$0xff] }
 0x39b   :  { %v3274_v59 = vpop.eup %3273  ;;  %1942 = vmatpush.msra.mxu3 %v5998_v12  ;;  %1982 = vmatpush.msrb.mxu2 %v6004_v40  ;;  %v6947_v12 = vld [vmem:[%s8866_s10 + $0x150] sm:$0xff]  ;;  %v6954_v40 = vld [vmem:[%s8866_s10 + $0x120] sm:$0xff] }
 0x39c   :  { %v6861_v38 = vmul.f32 %v3274_v59, %v1705_v44  ;;  %v9669_v44 = vld [vmem:[#allocation39_spill] sm:$0xff]  ;;  %v9670_v59 = vld [vmem:[#allocation41_spill] sm:$0xff] }
 0x39d   :  { %1943 = vmatpush.msra.mxu3 %v9647_v57  ;;  %1983 = vmatpush.msrb.mxu2 %v6016_v23  ;;  %v6961_v23 = vld [vmem:[%s8866_s10 + $0x130] sm:$0xff]  ;;  %v9671_v57 = vld [vmem:[#allocation42_spill] sm:$0xff] }
 0x39e   :  { %1727 = vmatmul.f32.vlgmr.msrb.gmra.mxu0 %v6861_v38  ;;  %1767 = vmatmul.f32.vlgmr.msrb.gmra.mxu1 %v6861_v38 }
 0x39f   :  { %1910 = vmatpush.msrb.mxu0 %v6870_v27  ;;  %1950 = vmatpush.msrb.mxu1 %v6876_v32 }
 0x3a0   :  { %1944 = vmatpush.msra.mxu3 %v6026_v47  ;;  %1984 = vmatpush.msrb.mxu2 %v6032_v20  ;;  %v6898_v20 = vld [vmem:[%s8866_s10 + $0x1a0] sm:$0xff] }
 0x3a1   :  { %1911 = vmatpush.msrb.mxu0 %v6884_v10  ;;  %1951 = vmatpush.msrb.mxu1 %v6890_v37  ;;  %v6968_v47 = vld [vmem:[%s8866_s10 + $0x100] sm:$0xff] }
 0x3a2   :  { %1945 = vmatpush.msra.mxu3 %v6040_v62  ;;  %1985 = vmatpush.msrb.mxu2 %v6046_v35  ;;  %v6975_v62 = vld [vmem:[%s8866_s10 + $0x110] sm:$0xff]  ;;  %v9648_v35 = vld [vmem:[#allocation18_spill] sm:$0xff] }
 0x3a3   :  { %1912 = vmatpush.msrb.mxu0 %v6898_v20  ;;  %1946 = vmatmul.f32.vlgmr.msra.gmra.mxu3 %v6861_v38 }
 0x3a4   :  { %1952 = vmatpush.msrb.mxu1 %v6905_v17  ;;  %1986 = vmatmul.f32.vlgmr.msrb.gmra.mxu2 %v6861_v38 }
 0x3a5   :  { %1913 = vmatpush.msrb.mxu0 %v6912_v0  ;;  %2032 = vmatpush.msrb.mxu3 %v6057_v42  ;;  %v6982_v42 = vld [vmem:[%s8866_s10 + $0xe0] sm:$0xff] }
 0x3a6   :  { %1953 = vmatpush.msrb.mxu1 %v6919_v61  ;;  %1807 = vmatmul.f32.vlgmr.msra.gmra.mxu0 %v6861_v38 }
 0x3a7   :  { %1847 = vmatmul.f32.vlgmr.msra.gmra.mxu1 %v6861_v38  ;;  %1914 = vmatpush.msrb.mxu0 %v6927_v56 }
 0x3a8   :  { %1954 = vmatpush.msrb.mxu1 %v6933_v25  ;;  %2072 = vmatpush.msra.mxu2 %v6068_v2  ;;  %v9649_v2 = vld [vmem:[#allocation33_spill] sm:$0xff] }
 0x3a9   :  { %1915 = vmatpush.msrb.mxu0 %v6940_v11  ;;  %2033 = vmatpush.msrb.mxu3 %v6075_v24  ;;  %v6989_v24 = vld [vmem:[%s8866_s10 + $0xf0] sm:$0xff] }
 0x3aa   :  { %1955 = vmatpush.msrb.mxu1 %v6947_v12  ;;  %2073 = vmatpush.msra.mxu2 %v6082_v46  ;;  %v9650_v46 = vld [vmem:[#allocation19_spill] sm:$0xff] }
 0x3ab   :  { %1916 = vmatpush.msrb.mxu0 %v6954_v40  ;;  %2034 = vmatpush.msrb.mxu3 %v6089_v18  ;;  %v6996_v18 = vld [vmem:[%s8866_s10 + $0xc0] sm:$0xff] }
 0x3ac   :  { %1956 = vmatpush.msrb.mxu1 %v6961_v23  ;;  %2074 = vmatpush.msra.mxu2 %v6096_v39  ;;  %v9651_v39 = vld [vmem:[#allocation20_spill] sm:$0xff] }
 0x3ad   :  { %1917 = vmatpush.msrb.mxu0 %v6968_v47  ;;  %2035 = vmatpush.msrb.mxu3 %v6103_v15  ;;  %v7003_v15 = vld [vmem:[%s8866_s10 + $0xd0] sm:$0xff] }
 0x3ae   :  { %1957 = vmatpush.msrb.mxu1 %v6975_v62  ;;  %2075 = vmatpush.msra.mxu2 %v9648_v35  ;;  %v9672_v35 = vld [vmem:[#allocation43_spill] sm:$0xff] }
 0x3af   :  { %1918 = vmatpush.msrb.mxu0 %v6982_v42  ;;  %2036 = vmatpush.msrb.mxu3 %v9649_v2  ;;  %v9673_v2 = vld [vmem:[#allocation44_spill] sm:$0xff] }
 0x3b0   :  { %1958 = vmatpush.msrb.mxu1 %v6989_v24  ;;  %2076 = vmatpush.msra.mxu2 %v9650_v46  ;;  %v9675_v46 = vld [vmem:[#allocation48_spill] sm:$0xff] }
 0x3b1   :  { %1919 = vmatpush.msrb.mxu0 %v6996_v18  ;;  %2037 = vmatpush.msrb.mxu3 %v9651_v39  ;;  %v9676_v39 = vld [vmem:[#allocation51_spill] sm:$0xff] }
 0x3b2   :  { %1959 = vmatpush.msrb.mxu1 %v7003_v15  ;;  %2077 = vmatpush.msra.mxu2 %v9652_v5  ;;  %v9677_v5 = vld [vmem:[#allocation52_spill] sm:$0xff] }
 0x3b3   :  { %1920 = vmatpush.msrb.mxu0 %v7010_v43  ;;  %2038 = vmatpush.msrb.mxu3 %v9653_v36  ;;  %v9678_v36 = vld [vmem:[#allocation55_spill] sm:$0xff] }
 0x3b4   :  { %1960 = vmatpush.msrb.mxu1 %v7017_v1  ;;  %2078 = vmatpush.msra.mxu2 %v9654_v49  ;;  %v9679_v49 = vld [vmem:[#allocation56_spill] sm:$0xff] }
 0x3b5   :  { %1921 = vmatpush.msrb.mxu0 %v7024_v58  ;;  %2039 = vmatpush.msrb.mxu3 %v9655_v28  ;;  %v9680_v28 = vld [vmem:[#allocation59_spill] sm:$0xff] }
 0x3b6   :  { %1961 = vmatpush.msrb.mxu1 %v7031_v63  ;;  %2079 = vmatpush.msra.mxu2 %v9656_v13  ;;  %v9681_v13 = vld [vmem:[#allocation60_spill] sm:$0xff] }
 0x3b7   :  { %1922 = vmatpush.msrb.mxu0 %v7038_v52  ;;  %2040 = vmatpush.msrb.mxu3 %v9657_v41  ;;  %v9682_v41 = vld [vmem:[#allocation63_spill] sm:$0xff] }
 0x3b8   :  { %1962 = vmatpush.msrb.mxu1 %v7045_v55  ;;  %2080 = vmatpush.msra.mxu2 %v9658_v33  ;;  %v9683_v33 = vld [vmem:[#allocation64_spill] sm:$0xff] }
 0x3b9   :  { %1923 = vmatpush.msrb.mxu0 %v7052_v34  ;;  %2041 = vmatpush.msrb.mxu3 %v9659_v19  ;;  %v9684_v19 = vld [vmem:[#allocation67_spill] sm:$0xff] }
 0x3ba   :  { %1963 = vmatpush.msrb.mxu1 %v7059_v54  ;;  %2081 = vmatpush.msra.mxu2 %v9660_v21  ;;  %v9685_v21 = vld [vmem:[#allocation68_spill] sm:$0xff] }
 0x3bb   :  { %1924 = vmatpush.msrb.mxu0 %v7066_v7  ;;  %2042 = vmatpush.msrb.mxu3 %v9661_v60  ;;  %v9686_v60 = vld [vmem:[#allocation71_spill] sm:$0xff] }
 0x3bc   :  { %1964 = vmatpush.msrb.mxu1 %v7073_v6  ;;  %2082 = vmatpush.msra.mxu2 %v9662_v4  ;;  %v9687_v4 = vld [vmem:[#allocation72_spill] sm:$0xff] }
 0x3bd   :  { %1925 = vmatpush.msrb.mxu0 %v7080_v26  ;;  %2043 = vmatpush.msrb.mxu3 %v9663_v14  ;;  %v9688_v14 = vld [vmem:[#allocation75_spill] sm:$0xff] }
 0x3be   :  { %1965 = vmatpush.msrb.mxu1 %v7087_v53  ;;  %1926 = vmatmul.f32.vlgmr.msrb.gmra.mxu0 %v6861_v38 }
 0x3bf   :  { %1966 = vmatmul.f32.vlgmr.msrb.gmra.mxu1 %v6861_v38  ;;  %2083 = vmatpush.msra.mxu2 %v9664_v16  ;;  %v9674_v38 = vld [vmem:[#allocation47_spill] sm:$0xff]  ;;  %v9689_v16 = vld [vmem:[#allocation76_spill] sm:$0xff] }
 0x3c0   :  { %2044 = vmatpush.msrb.mxu3 %v9665_v22  ;;  %2012 = vmatpush.msra.mxu0 %v9666_v48  ;;  %v9690_v22 = vld [vmem:[#allocation79_spill] sm:$0xff]  ;;  %v9691_v48 = vld [vmem:[#allocation80_spill] sm:$0xff] }
 0x3c1   :  { %2084 = vmatpush.msra.mxu2 %v9667_v30  ;;  %2052 = vmatpush.msra.mxu1 %v9668_v9  ;;  %v9692_v30 = vld [vmem:[#allocation83_spill] sm:$0xff]  ;;  %v9693_v9 = vld [vmem:[#allocation84_spill] sm:$0xff] }
 0x3c2   :  { %2045 = vmatpush.msrb.mxu3 %v9669_v44  ;;  %2013 = vmatpush.msra.mxu0 %v9670_v59  ;;  %v9694_v44 = vld [vmem:[#allocation87_spill] sm:$0xff]  ;;  %v9695_v59 = vld [vmem:[#allocation88_spill] sm:$0xff] }
 0x3c3   :  { %2085 = vmatpush.msra.mxu2 %v9671_v57  ;;  %2053 = vmatpush.msra.mxu1 %v9672_v35  ;;  %v9696_v57 = vld [vmem:[#allocation91_spill] sm:$0xff]  ;;  %v9697_v35 = vld [vmem:[#allocation45_spill] sm:$0xff] }
 0x3c4   :  { %2046 = vmatpush.msrb.mxu3 %v9673_v2  ;;  %2014 = vmatpush.msra.mxu0 %v9674_v38  ;;  %v9698_v2 = vld [vmem:[#allocation46_spill] sm:$0xff]  ;;  %v9699_v38 = vld [vmem:[#allocation92_spill] sm:$0xff] }
 0x3c5   :  { %2086 = vmatpush.msra.mxu2 %v9675_v46  ;;  %2054 = vmatpush.msra.mxu1 %v9676_v39  ;;  %v9700_v46 = vld [vmem:[#allocation49_spill] sm:$0xff]  ;;  %v9701_v39 = vld [vmem:[#allocation95_spill] sm:$0xff] }
 0x3c6   :  { %2047 = vmatpush.msrb.mxu3 %v9677_v5  ;;  %2015 = vmatpush.msra.mxu0 %v9678_v36  ;;  %v9702_v5 = vld [vmem:[#allocation50_spill] sm:$0xff]  ;;  %v9703_v36 = vld [vmem:[#allocation96_spill] sm:$0xff] }
 0x3c7   :  { %2087 = vmatpush.msra.mxu2 %v9679_v49  ;;  %2055 = vmatpush.msra.mxu1 %v9682_v41  ;;  %v9704_v49 = vld [vmem:[#allocation53_spill] sm:$0xff]  ;;  %v9707_v41 = vld [vmem:[#allocation100_spill] sm:$0xff] }
 0x3c8   :  { %2112 = vmatpush.msra.mxu3 %v9680_v28  ;;  %2016 = vmatpush.msra.mxu0 %v9684_v19  ;;  %v9705_v28 = vld [vmem:[#allocation99_spill] sm:$0xff] }
 0x3c9   :  { %2152 = vmatpush.msrb.mxu2 %v9681_v13  ;;  %2056 = vmatpush.msra.mxu1 %v9686_v60  ;;  %v9706_v13 = vld [vmem:[#allocation54_spill] sm:$0xff]  ;;  %v9709_v19 = vld [vmem:[#allocation103_spill] sm:$0xff]  ;;  %v9711_v60 = vld [vmem:[#allocation104_spill] sm:$0xff] }
 0x3ca   :  { %2113 = vmatpush.msra.mxu3 %v9683_v33  ;;  %2017 = vmatpush.msra.mxu0 %v9688_v14  ;;  %v9708_v33 = vld [vmem:[#allocation57_spill] sm:$0xff]  ;;  %v9713_v14 = vld [vmem:[#allocation107_spill] sm:$0xff] }
 0x3cb   :  { %2153 = vmatpush.msrb.mxu2 %v9685_v21  ;;  %2057 = vmatpush.msra.mxu1 %v9690_v22  ;;  %v9710_v21 = vld [vmem:[#allocation58_spill] sm:$0xff]  ;;  %v9715_v22 = vld [vmem:[#allocation108_spill] sm:$0xff] }
 0x3cc   :  { %2114 = vmatpush.msra.mxu3 %v9687_v4  ;;  %2018 = vmatpush.msra.mxu0 %v9692_v30  ;;  %v9712_v4 = vld [vmem:[#allocation61_spill] sm:$0xff]  ;;  %v9717_v30 = vld [vmem:[#allocation66_spill] sm:$0xff] }
 0x3cd   :  { %2154 = vmatpush.msrb.mxu2 %v9689_v16  ;;  %2058 = vmatpush.msra.mxu1 %v9694_v44  ;;  %v9714_v16 = vld [vmem:[#allocation62_spill] sm:$0xff] }
 0x3ce   :  { %2115 = vmatpush.msra.mxu3 %v9691_v48  ;;  %2019 = vmatpush.msra.mxu0 %v9696_v57  ;;  %v9716_v48 = vld [vmem:[#allocation65_spill] sm:$0xff]  ;;  %v9719_v44 = vld [vmem:[#allocation70_spill] sm:$0xff] }
 0x3cf   :  { %2155 = vmatpush.msrb.mxu2 %v9693_v9  ;;  %2059 = vmatpush.msra.mxu1 %v9698_v2  ;;  %v9718_v9 = vld [vmem:[#allocation69_spill] sm:$0xff]  ;;  %v9721_v57 = vld [vmem:[#allocation74_spill] sm:$0xff] }
 0x3d0   :  { %2116 = vmatpush.msra.mxu3 %v9695_v59  ;;  %2020 = vmatpush.msra.mxu0 %v9700_v46  ;;  %v9720_v59 = vld [vmem:[#allocation73_spill] sm:$0xff]  ;;  %v9723_v2 = vld [vmem:[#allocation78_spill] sm:$0xff] }
 0x3d1   :  { %2156 = vmatpush.msrb.mxu2 %v9697_v35  ;;  %2060 = vmatpush.msra.mxu1 %v9702_v5  ;;  %v9722_v35 = vld [vmem:[#allocation77_spill] sm:$0xff]  ;;  %v9725_v46 = vld [vmem:[#allocation82_spill] sm:$0xff] }
 0x3d2   :  { %2117 = vmatpush.msra.mxu3 %v9699_v38  ;;  %2021 = vmatpush.msra.mxu0 %v9704_v49  ;;  %v9724_v38 = vld [vmem:[#allocation81_spill] sm:$0xff]  ;;  %v9727_v5 = vld [vmem:[#allocation86_spill] sm:$0xff] }
 0x3d3   :  { %2157 = vmatpush.msrb.mxu2 %v9701_v39  ;;  %2061 = vmatpush.msra.mxu1 %v9706_v13  ;;  %v9726_v39 = vld [vmem:[#allocation85_spill] sm:$0xff]  ;;  %v9729_v49 = vld [vmem:[#allocation90_spill] sm:$0xff] }
 0x3d4   :  { %2118 = vmatpush.msra.mxu3 %v9703_v36  ;;  %2022 = vmatpush.msra.mxu0 %v9708_v33  ;;  %v9728_v36 = vld [vmem:[#allocation89_spill] sm:$0xff]  ;;  %v9731_v13 = vld [vmem:[#allocation94_spill] sm:$0xff] }
 0x3d5   :  { %2158 = vmatpush.msrb.mxu2 %v9705_v28  ;;  %2062 = vmatpush.msra.mxu1 %v9710_v21  ;;  %v9730_v28 = vld [vmem:[#allocation93_spill] sm:$0xff]  ;;  %v9733_v33 = vld [vmem:[#allocation98_spill] sm:$0xff] }
 0x3d6   :  { %2119 = vmatpush.msra.mxu3 %v9707_v41  ;;  %2023 = vmatpush.msra.mxu0 %v9712_v4  ;;  %v9732_v41 = vld [vmem:[#allocation97_spill] sm:$0xff]  ;;  %v9735_v21 = vld [vmem:[#allocation102_spill] sm:$0xff] }
 0x3d7   :  { %2159 = vmatpush.msrb.mxu2 %v9709_v19  ;;  %2063 = vmatpush.msra.mxu1 %v9714_v16  ;;  %v9734_v19 = vld [vmem:[#allocation101_spill] sm:$0xff]  ;;  %v9737_v4 = vld [vmem:[#allocation106_spill] sm:$0xff] }
 0x3d8   :  { %2120 = vmatpush.msra.mxu3 %v9711_v60  ;;  %2024 = vmatpush.msra.mxu0 %v9716_v48  ;;  %v9736_v60 = vld [vmem:[#allocation105_spill] sm:$0xff]  ;;  %v9739_v16 = vld [vmem:[#allocation110_spill] sm:$0xff]  ;;  %v9741_v48 = vld [vmem:[#allocation112_spill] sm:$0xff] }
 0x3d9   :  { %2160 = vmatpush.msrb.mxu2 %v9713_v14  ;;  %2064 = vmatpush.msra.mxu1 %v9718_v9  ;;  %v9738_v14 = vld [vmem:[#allocation109_spill] sm:$0xff]  ;;  %v9743_v9 = vld [vmem:[#allocation7_spill] sm:$0xff] }
 0x3da   :  { %2121 = vmatpush.msra.mxu3 %v9715_v22  ;;  %2025 = vmatpush.msra.mxu0 %v9720_v59  ;;  %v9740_v22 = vld [vmem:[#allocation111_spill] sm:$0xff]  ;;  %v9745_v59 = vld [vmem:[#allocation8_spill] sm:$0xff] }
 0x3db   :  { %2161 = vmatpush.msrb.mxu2 %v9717_v30  ;;  %2065 = vmatpush.msra.mxu1 %v9722_v35  ;;  %v9742_v30 = vld [vmem:[#allocation3_spill] sm:$0xff]  ;;  %v9747_v35 = vld [vmem:[#allocation9_spill] sm:$0xff] }
 0x3dc   :  { %2122 = vmatpush.msra.mxu3 %v9719_v44  ;;  %2026 = vmatpush.msra.mxu0 %v9724_v38  ;;  %v9744_v44 = vld [vmem:[#allocation4_spill] sm:$0xff]  ;;  %v9749_v38 = vld [vmem:[#allocation10_spill] sm:$0xff] }
 0x3dd   :  { %2162 = vmatpush.msrb.mxu2 %v9721_v57  ;;  %2066 = vmatpush.msra.mxu1 %v9726_v39  ;;  %v9746_v57 = vld [vmem:[#allocation5_spill] sm:$0xff]  ;;  %v9751_v39 = vld [vmem:[#allocation11_spill] sm:$0xff] }
 0x3de   :  { %2123 = vmatpush.msra.mxu3 %v9723_v2  ;;  %2027 = vmatpush.msra.mxu0 %v9728_v36  ;;  %v9748_v2 = vld [vmem:[#allocation6_spill] sm:$0xff]  ;;  %v9753_v36 = vld [vmem:[#allocation13_spill] sm:$0xff] }
 0x3df   :  { %2163 = vmatpush.msrb.mxu2 %v9725_v46  ;;  %2067 = vmatpush.msra.mxu1 %v9730_v28  ;;  %v9750_v46 = vld [vmem:[#allocation40_spill] sm:$0xff]  ;;  %v9755_v28 = vld [vmem:[#allocation129_spill] sm:$0xff] }
 0x3e0   :  { %2124 = vmatpush.msra.mxu3 %v9727_v5  ;;  %2092 = vmatpush.msrb.mxu0 %v9732_v41  ;;  %v9752_v5 = vld [vmem:[#allocation12_spill] sm:$0xff]  ;;  %v9757_v41 = vld [vmem:[#allocation131_spill] sm:$0xff] }
 0x3e1   :  { %2164 = vmatpush.msrb.mxu2 %v9729_v49  ;;  %2132 = vmatpush.msrb.mxu1 %v9734_v19  ;;  %v9754_v49 = vld [vmem:[#allocation14_spill] sm:$0xff]  ;;  %v9759_v19 = vld [vmem:[#allocation133_spill] sm:$0xff] }
 0x3e2   :  { %2125 = vmatpush.msra.mxu3 %v9731_v13  ;;  %2093 = vmatpush.msrb.mxu0 %v9736_v60  ;;  %v9756_v13 = vld [vmem:[#allocation130_spill] sm:$0xff]  ;;  %v7192_v60 = vld [vmem:[%s8870_s12 + $0x70] sm:$0xff] }
 0x3e3   :  { %2165 = vmatpush.msrb.mxu2 %v9733_v33  ;;  %2133 = vmatpush.msrb.mxu1 %v9738_v14  ;;  %v9758_v33 = vld [vmem:[#allocation132_spill] sm:$0xff]  ;;  %v7204_v14 = vld [vmem:[%s8870_s12 + $0x50] sm:$0xff] }
 0x3e4   :  { %2126 = vmatpush.msra.mxu3 %v9735_v21  ;;  %2094 = vmatpush.msrb.mxu0 %v9740_v22  ;;  %v9760_v21 = vld [vmem:[#allocation134_spill] sm:$0xff]  ;;  %v7216_v22 = vld [vmem:[%s8870_s12 + $0x30] sm:$0xff] }
 0x3e5   :  { %2166 = vmatpush.msrb.mxu2 %v9737_v4  ;;  %2134 = vmatpush.msrb.mxu1 %v9742_v30  ;;  %v7198_v4 = vld [vmem:[%s8870_s12 + $0x78] sm:$0xff]  ;;  %v7228_v30 = vld [vmem:[%s8870_s12 + $0x10] sm:$0xff] }
 0x3e6   :  { %2127 = vmatpush.msra.mxu3 %v9739_v16  ;;  %2095 = vmatpush.msrb.mxu0 %v9743_v9  ;;  %v7210_v16 = vld [vmem:[%s8870_s12 + $0x58] sm:$0xff]  ;;  %9761 = vst [vmem:[#allocation113_spill] sm:$0xff] %v7228_v30 }
 0x3e7   :  { %2167 = vmatpush.msrb.mxu2 %v9741_v48  ;;  %2135 = vmatpush.msrb.mxu1 %v9744_v44  ;;  %v7222_v48 = vld [vmem:[%s8870_s12 + $0x38] sm:$0xff] }
 0x3e8   :  { %2096 = vmatpush.msrb.mxu0 %v9745_v59  ;;  %v7234_v9 = vld [vmem:[%s8870_s12 + $0x18] sm:$0xff] }
 0x3e9   :  { %2136 = vmatpush.msrb.mxu1 %v9746_v57  ;;  %9762 = vst [vmem:[#allocation118_spill] sm:$0xff] %v7234_v9 }
 0x3ea   :  { %2097 = vmatpush.msrb.mxu0 %v9747_v35 }
 0x3eb   :  { %2137 = vmatpush.msrb.mxu1 %v9748_v2 }
 0x3ec   :  { %2098 = vmatpush.msrb.mxu0 %v9749_v38 }
 0x3ed   :  { %2138 = vmatpush.msrb.mxu1 %v9750_v46 }
 0x3ee   :  { %2099 = vmatpush.msrb.mxu0 %v9751_v39 }
 0x3ef   :  { %2139 = vmatpush.msrb.mxu1 %v9752_v5 }
 0x3f0   :  { %2100 = vmatpush.msrb.mxu0 %v9753_v36 }
 0x3f1   :  { %2140 = vmatpush.msrb.mxu1 %v9754_v49 }
 0x3f2   :  { %2101 = vmatpush.msrb.mxu0 %v9755_v28  ;;  %v9763_v28 = vld [vmem:[#allocation15_spill] sm:$0xff] }
 0x3f3   :  { %2141 = vmatpush.msrb.mxu1 %v9756_v13 }
 0x3f4   :  { %2102 = vmatpush.msrb.mxu0 %v9757_v41 }
 0x3f5   :  { %2142 = vmatpush.msrb.mxu1 %v9758_v33 }
 0x3f6   :  { %2103 = vmatpush.msrb.mxu0 %v9759_v19 }
 0x3f7   :  { %2143 = vmatpush.msrb.mxu1 %v9760_v21 }
 0x3f8   :  { %2104 = vmatpush.msrb.mxu0 %v7192_v60 }
 0x3f9   :  { %2144 = vmatpush.msrb.mxu1 %v7198_v4 }
 0x3fa   :  { %2105 = vmatpush.msrb.mxu0 %v7204_v14 }
 0x3fb   :  { %2145 = vmatpush.msrb.mxu1 %v7210_v16 }
 0x3fc   :  { %2106 = vmatpush.msrb.mxu0 %v7216_v22 }
 0x3fd   :  { %2146 = vmatpush.msrb.mxu1 %v7222_v48 }
 0x3fe   :  { %2107 = vmatpush.msrb.mxu0 %v7228_v30 }
 0x3ff   :  { %2147 = vmatpush.msrb.mxu1 %v7234_v9 }
 0x405   :  { %v1748_v44 = vpop.f32.mrf.mxu3  ;;  %v1788_v35 = vpop.f32.mrf.mxu2 }
 0x40d   :  { %v1828_v33 = vpop.f32.mrf.mxu3  ;;  %v1868_v21 = vpop.f32.mrf.mxu2 }
 0x41b   :  { %v1728_v59 = vpop.f32.mrf.mxu0  ;;  %v1768_v57 = vpop.f32.mrf.mxu1 }
 0x41c   :  { %v1729_v2 = vadd.f32 %v1728_v59, %v5812_v29  ;;  %v1769_v38 = vadd.f32 %v1768_v57, %v5814_v45 }
 0x41e   :  { %v1749_v46 = vadd.f32 %v1748_v44, %v1729_v2  ;;  %v1789_v39 = vadd.f32 %v1788_v35, %v1769_v38 }
 0x420   :  { %v1871_v5 = vmul.f32 0.5, %v1749_v46  ;;  %v1875_v36 = vmul.f32 0.5, %v1789_v39 }
 0x422   :  { %3275 = vtanh.f32 %v1871_v5 }
 0x423   :  { %3277 = vtanh.f32 %v1875_v36  ;;  %v1808_v49 = vpop.f32.mrf.mxu0 }
 0x424   :  { %v1809_v13 = vadd.f32 %v1808_v49, %v9763_v28  ;;  %v1848_v41 = vpop.f32.mrf.mxu1 }
 0x425   :  { %v1849_v19 = vadd.f32 %v1848_v41, %v5820_v3  ;;  %v9764_v41 = vld [vmem:[#allocation120_spill] sm:$0xff] }
 0x426   :  { %v1829_v8 = vadd.f32 %v1828_v33, %v1809_v13  ;;  %v1947_v36 = vpop.f32.mrf.mxu3 }
 0x427   :  { %v1869_v9 = vadd.f32 %v1868_v21, %v1849_v19  ;;  %v1991_v13 = vadd.f32 %v1947_v36, %v9764_v41  ;;  %v7269_v36 = vld [vmem:[%s8866_s10 + $0x1c8] sm:$0xff] }
 0x428   :  { %v3276_v30 = vpop.eup %3275  ;;  %3279 = vtanh.f32 %v1829_v8 }
 0x429   :  { %v3278_v59 = vpop.eup %3277  ;;  %v1873_v57 = vadd.f32 1.0, %v3276_v30  ;;  %v1880_v44 = vmul.f32 0.5, %v1869_v9  ;;  %v1998_v33 = vmul.f32 0.5, %v1991_v13  ;;  %v9768_v13 = vld [vmem:[#allocation122_spill] sm:$0xff] }
 0x42a   :  { %v1877_v35 = vadd.f32 1.0, %v3278_v59  ;;  %v1987_v59 = vpop.f32.mrf.mxu2 }
 0x42b   :  { %3281 = vtanh.f32 %v1880_v44  ;;  %v1874_v38 = vmul.f32 0.5, %v1873_v57  ;;  %v9766_v57 = vld [vmem:[#allocation114_spill] sm:$0xff] }
 0x42c   :  { %v1878_v2 = vmul.f32 0.5, %v1877_v35 }
 0x42e   :  { %v3280_v46 = vpop.eup %3279  ;;  %v1884_v39 = vmul.f32 %v1878_v2, %v6816_v50  ;;  %v7256_v2 = vld [vmem:[%s8866_s10 + $0x1e8] sm:$0xff] }
 0x42f   :  { %v1885_v5 = vmul.f32 %v3280_v46, %v1874_v38  ;;  %v7262_v38 = vld [vmem:[%s8866_s10 + $0x1f8] sm:$0xff] }
 0x431   :  { %v3282_v49 = vpop.eup %3281  ;;  %v7242_v28 = vadd.f32 %v1885_v5, %v1884_v39  ;;  %v9767_v39 = vld [vmem:[#allocation121_spill] sm:$0xff] }
 0x432   :  { %v1882_v8 = vadd.f32 1.0, %v3282_v49  ;;  %v1993_v5 = vadd.f32 %v1987_v59, %v9767_v39  ;;  %v7275_v49 = vld [vmem:[%s8866_s10 + $0x1d8] sm:$0xff]  ;;  %v7294_v59 = vld [vmem:[%s8866_s10 + $0x188] sm:$0xff] }
 0x433   :  { %3283 = vtanh.f32 %v7242_v28 }
 0x434   :  { %v1883_v30 = vmul.f32 0.5, %v1882_v8  ;;  %3285 = vtanh.f32 %v1998_v33  ;;  %v7282_v33 = vld [vmem:[%s8866_s10 + $0x1a8] sm:$0xff] }
 0x439   :  { %v3284_v9 = vpop.eup %3283 }
 0x43a   :  { %v7246_v19 = vmul.f32 %v3284_v9, %v1883_v30  ;;  %v3286_v41 = vpop.eup %3285  ;;  %v7288_v30 = vld [vmem:[%s8866_s10 + $0x1b8] sm:$0xff] }
 0x43b   :  { %v1927_v21 = vpop.f32.mrf.mxu0  ;;  %v2000_v9 = vadd.f32 1.0, %v3286_v41  ;;  %v7326_v41 = vld [vmem:[%s8866_s10 + $0x158] sm:$0xff] }
 0x43c   :  { %9765 = vst [vmem:[#allocation119_spill] sm:$0xff] %v7246_v19  ;;  %v1990_v50 = vadd.f32 %v1927_v21, %v9766_v57  ;;  %2048 = vmatmul.f32.vlgmr.msrb.gmra.mxu3 %v7246_v19  ;;  %2088 = vmatmul.f32.vlgmr.msra.gmra.mxu2 %v7246_v19  ;;  %v1889_v44 = vmul.f32 %v5834_v31, %v7246_v19  ;;  %v1967_v35 = vpop.f32.mrf.mxu1  ;;  %v2003_v21 = vmul.f32 0.5, %v1993_v5  ;;  %v7300_v57 = vld [vmem:[%s8866_s10 + $0x198] sm:$0xff]  ;;  %v7320_v5 = vld [vmem:[%s8866_s10 + $0x148] sm:$0xff] }
 0x43d   :  { %2231 = vmatpush.msrb.mxu3 %v7256_v2  ;;  %2271 = vmatpush.msra.mxu2 %v7262_v38  ;;  %v1992_v8 = vadd.f32 %v1967_v35, %v9768_v13  ;;  %9769 = vst [vmem:[#allocation17_spill] sm:$0xff] %v7326_v41 }
 0x43e   :  { %v1994_v46 = vmul.f32 0.5, %v1990_v50  ;;  %1890 = vadd.xlane.f32.xlu2 %v1889_v44  ;;  %v7308_v50 = vld [vmem:[%s8866_s10 + $0x168] sm:$0xff]  ;;  %v7314_v44 = vld [vmem:[%s8866_s10 + $0x178] sm:$0xff] }
 0x43f   :  { %2232 = vmatpush.msrb.mxu3 %v7269_v36  ;;  %2272 = vmatpush.msra.mxu2 %v7275_v49 }
 0x440   :  { %3287 = vtanh.f32 %v1994_v46  ;;  %v2001_v46 = vmul.f32 0.5, %v2000_v9  ;;  %v7338_v9 = vld [vmem:[%s8866_s10 + $0x138] sm:$0xff] }
 0x441   :  { %2233 = vmatpush.msrb.mxu3 %v7282_v33  ;;  %2273 = vmatpush.msra.mxu2 %v7288_v30  ;;  %3289 = vtanh.f32 %v1992_v8  ;;  %v7332_v8 = vld [vmem:[%s8866_s10 + $0x128] sm:$0xff]  ;;  %9771 = vst [vmem:[#allocation33_spill] sm:$0xff] %v7338_v9 }
 0x442   :  { %3291 = vtanh.f32 %v2003_v21  ;;  %9770 = vst [vmem:[#allocation18_spill] sm:$0xff] %v7332_v8 }
 0x443   :  { %2234 = vmatpush.msrb.mxu3 %v7294_v59  ;;  %2274 = vmatpush.msra.mxu2 %v7300_v57 }
 0x444   :  { %2128 = vmatmul.f32.vlgmr.msra.gmra.mxu3 %v7246_v19  ;;  %2168 = vmatmul.f32.vlgmr.msrb.gmra.mxu2 %v7246_v19 }
 0x445   :  { %2235 = vmatpush.msrb.mxu3 %v7308_v50  ;;  %2275 = vmatpush.msra.mxu2 %v7314_v44 }
 0x446   :  { %v3288_v35 = vpop.eup %3287 }
 0x447   :  { %v1996_v39 = vadd.f32 1.0, %v3288_v35  ;;  %2236 = vmatpush.msrb.mxu3 %v7320_v5  ;;  %2276 = vmatpush.msra.mxu2 %v7326_v41  ;;  %v3290_v21 = vpop.eup %3289  ;;  %v2007_v35 = vmul.f32 %v2001_v46, %v6848_v51  ;;  %v7359_v51 = vld [vmem:[%s8866_s10 + $0xe8] sm:$0xff]  ;;  %v7365_v46 = vld [vmem:[%s8866_s10 + $0xf8] sm:$0xff] }
 0x448   :  { %v3292_v41 = vpop.eup %3291  ;;  %9772 = vst [vmem:[#allocation19_spill] sm:$0xff] %v7359_v51 }
 0x449   :  { %v1997_v13 = vmul.f32 0.5, %v1996_v39  ;;  %2237 = vmatpush.msrb.mxu3 %v7332_v8  ;;  %2277 = vmatpush.msra.mxu2 %v7338_v9  ;;  %v7345_v39 = vld [vmem:[%s8866_s10 + $0x108] sm:$0xff]  ;;  %v7351_v8 = vld [vmem:[%s8866_s10 + $0x118] sm:$0xff]  ;;  %9773 = vst [vmem:[#allocation20_spill] sm:$0xff] %v7365_v46 }
 0x44b   :  { %v2008_v19 = vmul.f32 %v3290_v21, %v1997_v13  ;;  %2238 = vmatpush.msrb.mxu3 %v7345_v39  ;;  %2278 = vmatpush.msra.mxu2 %v7351_v8  ;;  %v7378_v13 = vld [vmem:[%s8866_s10 + $0xd8] sm:$0xff]  ;;  %v2005_v21 = vadd.f32 1.0, %v3292_v41 }
 0x44c   :  { %9775 = vst [vmem:[#allocation22_spill] sm:$0xff] %v7378_v13  ;;  %v7402_v41 = vld [vmem:[%s8866_s10 + $0x98] sm:$0xff] }
 0x44d   :  { %v7354_v9 = vadd.f32 %v2008_v19, %v2007_v35  ;;  %2239 = vmatpush.msrb.mxu3 %v7359_v51  ;;  %2279 = vmatpush.msra.mxu2 %v7365_v46  ;;  %v7372_v19 = vld [vmem:[%s8866_s10 + $0xc8] sm:$0xff]  ;;  %v7390_v46 = vld [vmem:[%s8866_s10 + $0xb8] sm:$0xff] }
 0x44e   :  { %9774 = vst [vmem:[#allocation21_spill] sm:$0xff] %v7372_v19  ;;  %v7384_v35 = vld [vmem:[%s8866_s10 + $0xa8] sm:$0xff] }
 0x44f   :  { %3293 = vtanh.f32 %v7354_v9  ;;  %2240 = vmatpush.msrb.mxu3 %v7372_v19  ;;  %2280 = vmatpush.msra.mxu2 %v7378_v13  ;;  %9776 = vst [vmem:[#allocation23_spill] sm:$0xff] %v7384_v35  ;;  %v7396_v19 = vld [vmem:[%s8866_s10 + $0x88] sm:$0xff] }
 0x450   :  { %9777 = vst [vmem:[#allocation24_spill] sm:$0xff] %v7390_v46 }
 0x451   :  { %2241 = vmatpush.msrb.mxu3 %v7384_v35  ;;  %2281 = vmatpush.msra.mxu2 %v7390_v46  ;;  %9778 = vst [vmem:[#allocation25_spill] sm:$0xff] %v7396_v19  ;;  %v2006_v35 = vmul.f32 0.5, %v2005_v21  ;;  %v7408_v46 = vld [vmem:[%s8866_s10 + $0x68] sm:$0xff] }
 0x452   :  { %9779 = vst [vmem:[#allocation26_spill] sm:$0xff] %v7408_v46  ;;  %v7422_v21 = vld [vmem:[%s8866_s10 + $0x48] sm:$0xff] }
 0x453   :  { %2242 = vmatpush.msrb.mxu3 %v7396_v19  ;;  %2282 = vmatpush.msra.mxu2 %v7402_v41  ;;  %v7414_v19 = vld [vmem:[%s8866_s10 + $0x78] sm:$0xff] }
 0x455   :  { %v3294_v13 = vpop.eup %3293  ;;  %2243 = vmatpush.msrb.mxu3 %v7408_v46  ;;  %2283 = vmatpush.msra.mxu2 %v7414_v19  ;;  %v7428_v46 = vld [vmem:[%s8866_s10 + $0x58] sm:$0xff] }
 0x456   :  { %v7417_v51 = vmul.f32 %v3294_v13, %v2006_v35  ;;  %v7438_v13 = vld [vmem:[%s8866_s10 + $0x28] sm:$0xff]  ;;  %v7444_v35 = vld [vmem:[%s8866_s10 + $0x38] sm:$0xff] }
 0x457   :  { %2244 = vmatpush.msrb.mxu3 %v7422_v21  ;;  %2284 = vmatpush.msra.mxu2 %v7428_v46 }
 0x458   :  { %2028 = vmatmul.f32.vlgmr.msra.gmra.mxu0 %v7417_v51  ;;  %2068 = vmatmul.f32.vlgmr.msra.gmra.mxu1 %v7417_v51 }
 0x459   :  { %2211 = vmatpush.msra.mxu0 %v6870_v27  ;;  %2251 = vmatpush.msra.mxu1 %v6876_v32  ;;  %v7452_v27 = vld [vmem:[%s8866_s10 + $0x8] sm:$0xff]  ;;  %v7458_v32 = vld [vmem:[%s8866_s10 + $0x18] sm:$0xff] }
 0x45a   :  { %2245 = vmatpush.msrb.mxu3 %v7438_v13  ;;  %2285 = vmatpush.msra.mxu2 %v7444_v35 }
 0x45b   :  { %2212 = vmatpush.msra.mxu0 %v6884_v10  ;;  %2252 = vmatpush.msra.mxu1 %v6890_v37  ;;  %v7469_v10 = vld [vmem:[%s8870_s12 + $0x3e0] sm:$0xff]  ;;  %v7480_v37 = vld [vmem:[%s8870_s12 + $0x3e8] sm:$0xff] }
 0x45c   :  { %2246 = vmatpush.msrb.mxu3 %v7452_v27  ;;  %2286 = vmatpush.msra.mxu2 %v7458_v32 }
 0x45d   :  { %2213 = vmatpush.msra.mxu0 %v6898_v20  ;;  %2247 = vmatmul.f32.vlgmr.msrb.gmra.mxu3 %v7417_v51  ;;  %v7487_v20 = vld [vmem:[%s8870_s12 + $0x3c0] sm:$0xff] }
 0x45e   :  { %2253 = vmatpush.msra.mxu1 %v6905_v17  ;;  %2287 = vmatmul.f32.vlgmr.msra.gmra.mxu2 %v7417_v51  ;;  %v7494_v17 = vld [vmem:[%s8870_s12 + $0x3c8] sm:$0xff] }
 0x45f   :  { %2214 = vmatpush.msra.mxu0 %v6912_v0  ;;  %2333 = vmatpush.msra.mxu3 %v7469_v10  ;;  %v7501_v0 = vld [vmem:[%s8870_s12 + $0x3a0] sm:$0xff] }
 0x460   :  { %2254 = vmatpush.msra.mxu1 %v6919_v61  ;;  %2108 = vmatmul.f32.vlgmr.msrb.gmra.mxu0 %v7417_v51  ;;  %v7508_v61 = vld [vmem:[%s8870_s12 + $0x3a8] sm:$0xff] }
 0x461   :  { %2148 = vmatmul.f32.vlgmr.msrb.gmra.mxu1 %v7417_v51  ;;  %2215 = vmatpush.msra.mxu0 %v6927_v56  ;;  %v7515_v56 = vld [vmem:[%s8870_s12 + $0x380] sm:$0xff] }
 0x462   :  { %2255 = vmatpush.msra.mxu1 %v6933_v25  ;;  %2373 = vmatpush.msrb.mxu2 %v7480_v37  ;;  %v7522_v25 = vld [vmem:[%s8870_s12 + $0x388] sm:$0xff] }
 0x463   :  { %2216 = vmatpush.msra.mxu0 %v6940_v11  ;;  %2334 = vmatpush.msra.mxu3 %v7487_v20  ;;  %v7529_v11 = vld [vmem:[%s8870_s12 + $0x360] sm:$0xff] }
 0x464   :  { %2256 = vmatpush.msra.mxu1 %v6947_v12  ;;  %2374 = vmatpush.msrb.mxu2 %v7494_v17  ;;  %v7536_v12 = vld [vmem:[%s8870_s12 + $0x368] sm:$0xff] }
 0x465   :  { %2217 = vmatpush.msra.mxu0 %v6954_v40  ;;  %2335 = vmatpush.msra.mxu3 %v7501_v0  ;;  %v7543_v40 = vld [vmem:[%s8870_s12 + $0x340] sm:$0xff] }
 0x466   :  { %2257 = vmatpush.msra.mxu1 %v6961_v23  ;;  %2375 = vmatpush.msrb.mxu2 %v7508_v61  ;;  %v7550_v23 = vld [vmem:[%s8870_s12 + $0x348] sm:$0xff] }
 0x467   :  { %2218 = vmatpush.msra.mxu0 %v6968_v47  ;;  %2336 = vmatpush.msra.mxu3 %v7515_v56  ;;  %v7557_v47 = vld [vmem:[%s8870_s12 + $0x320] sm:$0xff] }
 0x468   :  { %2258 = vmatpush.msra.mxu1 %v6975_v62  ;;  %2376 = vmatpush.msrb.mxu2 %v7522_v25  ;;  %v7564_v62 = vld [vmem:[%s8870_s12 + $0x328] sm:$0xff] }
 0x469   :  { %2219 = vmatpush.msra.mxu0 %v6982_v42  ;;  %2337 = vmatpush.msra.mxu3 %v7529_v11  ;;  %v7571_v42 = vld [vmem:[%s8870_s12 + $0x300] sm:$0xff] }
 0x46a   :  { %2259 = vmatpush.msra.mxu1 %v6989_v24  ;;  %2377 = vmatpush.msrb.mxu2 %v7536_v12  ;;  %v7578_v24 = vld [vmem:[%s8870_s12 + $0x308] sm:$0xff] }
 0x46b   :  { %2220 = vmatpush.msra.mxu0 %v6996_v18  ;;  %2338 = vmatpush.msra.mxu3 %v7543_v40  ;;  %v7585_v18 = vld [vmem:[%s8870_s12 + $0x2e0] sm:$0xff] }
 0x46c   :  { %2260 = vmatpush.msra.mxu1 %v7003_v15  ;;  %2378 = vmatpush.msrb.mxu2 %v7550_v23  ;;  %v7592_v15 = vld [vmem:[%s8870_s12 + $0x2e8] sm:$0xff] }
 0x46d   :  { %2221 = vmatpush.msra.mxu0 %v7010_v43  ;;  %2339 = vmatpush.msra.mxu3 %v7557_v47  ;;  %9780 = vst [vmem:[#allocation27_spill] sm:$0xff] %v7592_v15  ;;  %v7599_v43 = vld [vmem:[%s8870_s12 + $0x2c0] sm:$0xff] }
 0x46e   :  { %2261 = vmatpush.msra.mxu1 %v7017_v1  ;;  %2379 = vmatpush.msrb.mxu2 %v7564_v62  ;;  %9781 = vst [vmem:[#allocation28_spill] sm:$0xff] %v7599_v43  ;;  %v7606_v1 = vld [vmem:[%s8870_s12 + $0x2c8] sm:$0xff] }
 0x46f   :  { %2222 = vmatpush.msra.mxu0 %v7024_v58  ;;  %2340 = vmatpush.msra.mxu3 %v7571_v42  ;;  %9782 = vst [vmem:[#allocation29_spill] sm:$0xff] %v7606_v1  ;;  %v7613_v58 = vld [vmem:[%s8870_s12 + $0x2a0] sm:$0xff] }
 0x470   :  { %2262 = vmatpush.msra.mxu1 %v7031_v63  ;;  %2380 = vmatpush.msrb.mxu2 %v7578_v24  ;;  %9783 = vst [vmem:[#allocation30_spill] sm:$0xff] %v7613_v58  ;;  %v7620_v63 = vld [vmem:[%s8870_s12 + $0x2a8] sm:$0xff] }
 0x471   :  { %2223 = vmatpush.msra.mxu0 %v7038_v52  ;;  %2341 = vmatpush.msra.mxu3 %v7585_v18  ;;  %9784 = vst [vmem:[#allocation31_spill] sm:$0xff] %v7620_v63  ;;  %v7627_v52 = vld [vmem:[%s8870_s12 + $0x280] sm:$0xff] }
 0x472   :  { %2263 = vmatpush.msra.mxu1 %v7045_v55  ;;  %2381 = vmatpush.msrb.mxu2 %v7592_v15  ;;  %9785 = vst [vmem:[#allocation32_spill] sm:$0xff] %v7627_v52  ;;  %v7636_v55 = vld [vmem:[%s8870_s12 + $0x288] sm:$0xff] }
 0x473   :  { %2224 = vmatpush.msra.mxu0 %v7052_v34  ;;  %2342 = vmatpush.msra.mxu3 %v7599_v43  ;;  %9786 = vst [vmem:[#allocation34_spill] sm:$0xff] %v7636_v55  ;;  %v7642_v34 = vld [vmem:[%s8870_s12 + $0x260] sm:$0xff] }
 0x474   :  { %2264 = vmatpush.msra.mxu1 %v7059_v54  ;;  %2382 = vmatpush.msrb.mxu2 %v7606_v1  ;;  %9787 = vst [vmem:[#allocation35_spill] sm:$0xff] %v7642_v34  ;;  %v7648_v54 = vld [vmem:[%s8870_s12 + $0x1e0] sm:$0xff] }
 0x475   :  { %2225 = vmatpush.msra.mxu0 %v7066_v7  ;;  %2343 = vmatpush.msra.mxu3 %v7613_v58  ;;  %9788 = vst [vmem:[#allocation36_spill] sm:$0xff] %v7648_v54  ;;  %v7654_v7 = vld [vmem:[%s8870_s12 + $0x268] sm:$0xff] }
 0x476   :  { %2265 = vmatpush.msra.mxu1 %v7073_v6  ;;  %2383 = vmatpush.msrb.mxu2 %v7620_v63  ;;  %9789 = vst [vmem:[#allocation37_spill] sm:$0xff] %v7654_v7  ;;  %v7660_v6 = vld [vmem:[%s8870_s12 + $0x1e8] sm:$0xff] }
 0x477   :  { %2226 = vmatpush.msra.mxu0 %v7080_v26  ;;  %2344 = vmatpush.msra.mxu3 %v7627_v52  ;;  %9790 = vst [vmem:[#allocation38_spill] sm:$0xff] %v7660_v6  ;;  %v7666_v26 = vld [vmem:[%s8870_s12 + $0x240] sm:$0xff] }
 0x478   :  { %2266 = vmatpush.msra.mxu1 %v7087_v53  ;;  %2227 = vmatmul.f32.vlgmr.msra.gmra.mxu0 %v7417_v51  ;;  %9791 = vst [vmem:[#allocation39_spill] sm:$0xff] %v7666_v26  ;;  %v7672_v53 = vld [vmem:[%s8870_s12 + $0x1c0] sm:$0xff] }
 0x479   :  { %2267 = vmatmul.f32.vlgmr.msra.gmra.mxu1 %v7417_v51  ;;  %2384 = vmatpush.msrb.mxu2 %v7636_v55  ;;  %9792 = vst [vmem:[#allocation41_spill] sm:$0xff] %v7672_v53  ;;  %v7678_v51 = vld [vmem:[%s8870_s12 + $0x248] sm:$0xff] }
 0x47a   :  { %2345 = vmatpush.msra.mxu3 %v7642_v34  ;;  %2313 = vmatpush.msrb.mxu0 %v7648_v54  ;;  %9793 = vst [vmem:[#allocation42_spill] sm:$0xff] %v7678_v51 }
 0x47b   :  { %2385 = vmatpush.msrb.mxu2 %v7654_v7  ;;  %2353 = vmatpush.msrb.mxu1 %v7660_v6  ;;  %v7684_v6 = vld [vmem:[%s8870_s12 + $0x1c8] sm:$0xff] }
 0x47c   :  { %2346 = vmatpush.msra.mxu3 %v7666_v26  ;;  %2314 = vmatpush.msrb.mxu0 %v7672_v53  ;;  %9794 = vst [vmem:[#allocation43_spill] sm:$0xff] %v7684_v6  ;;  %v7690_v26 = vld [vmem:[%s8870_s12 + $0x220] sm:$0xff] }
 0x47d   :  { %2386 = vmatpush.msrb.mxu2 %v7678_v51  ;;  %2354 = vmatpush.msrb.mxu1 %v7684_v6  ;;  %9795 = vst [vmem:[#allocation44_spill] sm:$0xff] %v7690_v26  ;;  %v7696_v53 = vld [vmem:[%s8870_s12 + $0x1a0] sm:$0xff]  ;;  %v7702_v51 = vld [vmem:[%s8870_s12 + $0x228] sm:$0xff] }
 0x47e   :  { %2347 = vmatpush.msra.mxu3 %v7690_v26  ;;  %9796 = vst [vmem:[#allocation47_spill] sm:$0xff] %v7696_v53  ;;  %2315 = vmatpush.msrb.mxu0 %v7696_v53  ;;  %v7708_v6 = vld [vmem:[%s8870_s12 + $0x1a8] sm:$0xff]  ;;  %v7714_v26 = vld [vmem:[%s8870_s12 + $0x200] sm:$0xff] }
 0x47f   :  { %9797 = vst [vmem:[#allocation48_spill] sm:$0xff] %v7702_v51  ;;  %2387 = vmatpush.msrb.mxu2 %v7702_v51  ;;  %2355 = vmatpush.msrb.mxu1 %v7708_v6  ;;  %v7720_v53 = vld [vmem:[%s8870_s12 + $0x180] sm:$0xff]  ;;  %v7726_v51 = vld [vmem:[%s8870_s12 + $0x208] sm:$0xff] }
 0x480   :  { %9798 = vst [vmem:[#allocation51_spill] sm:$0xff] %v7708_v6  ;;  %2348 = vmatpush.msra.mxu3 %v7714_v26  ;;  %2316 = vmatpush.msrb.mxu0 %v7720_v53  ;;  %v7732_v6 = vld [vmem:[%s8870_s12 + $0x3f0] sm:$0xff] }
 0x481   :  { %9799 = vst [vmem:[#allocation52_spill] sm:$0xff] %v7714_v26  ;;  %2388 = vmatpush.msrb.mxu2 %v7726_v51  ;;  %v7738_v26 = vld [vmem:[%s8870_s12 + $0x3f8] sm:$0xff] }
 0x482   :  { %9800 = vst [vmem:[#allocation55_spill] sm:$0xff] %v7720_v53  ;;  %2413 = vmatpush.msrb.mxu3 %v7732_v6  ;;  %v7744_v53 = vld [vmem:[%s8870_s12 + $0x188] sm:$0xff] }
 0x483   :  { %9801 = vst [vmem:[#allocation56_spill] sm:$0xff] %v7726_v51  ;;  %2453 = vmatpush.msra.mxu2 %v7738_v26  ;;  %2356 = vmatpush.msrb.mxu1 %v7744_v53  ;;  %v7750_v51 = vld [vmem:[%s8870_s12 + $0x3d0] sm:$0xff] }
 0x484   :  { %9802 = vst [vmem:[#allocation59_spill] sm:$0xff] %v7732_v6  ;;  %2414 = vmatpush.msrb.mxu3 %v7750_v51  ;;  %v7756_v6 = vld [vmem:[%s8870_s12 + $0x160] sm:$0xff] }
 0x485   :  { %9803 = vst [vmem:[#allocation60_spill] sm:$0xff] %v7738_v26  ;;  %2317 = vmatpush.msrb.mxu0 %v7756_v6  ;;  %v7762_v26 = vld [vmem:[%s8870_s12 + $0x3d8] sm:$0xff] }
 0x486   :  { %9804 = vst [vmem:[#allocation63_spill] sm:$0xff] %v7744_v53  ;;  %2454 = vmatpush.msra.mxu2 %v7762_v26  ;;  %v7768_v53 = vld [vmem:[%s8870_s12 + $0x168] sm:$0xff] }
 0x487   :  { %9805 = vst [vmem:[#allocation64_spill] sm:$0xff] %v7750_v51  ;;  %2357 = vmatpush.msrb.mxu1 %v7768_v53  ;;  %v7774_v51 = vld [vmem:[%s8870_s12 + $0x3b0] sm:$0xff] }
 0x488   :  { %9806 = vst [vmem:[#allocation67_spill] sm:$0xff] %v7756_v6  ;;  %2415 = vmatpush.msrb.mxu3 %v7774_v51  ;;  %v7780_v6 = vld [vmem:[%s8870_s12 + $0x140] sm:$0xff] }
 0x489   :  { %9807 = vst [vmem:[#allocation68_spill] sm:$0xff] %v7762_v26  ;;  %2318 = vmatpush.msrb.mxu0 %v7780_v6  ;;  %v7786_v26 = vld [vmem:[%s8870_s12 + $0x3b8] sm:$0xff] }
 0x48a   :  { %9808 = vst [vmem:[#allocation71_spill] sm:$0xff] %v7768_v53  ;;  %2455 = vmatpush.msra.mxu2 %v7786_v26  ;;  %v7792_v53 = vld [vmem:[%s8870_s12 + $0x148] sm:$0xff] }
 0x48b   :  { %9809 = vst [vmem:[#allocation72_spill] sm:$0xff] %v7774_v51  ;;  %2358 = vmatpush.msrb.mxu1 %v7792_v53  ;;  %v7798_v51 = vld [vmem:[%s8870_s12 + $0x390] sm:$0xff] }
 0x48c   :  { %9810 = vst [vmem:[#allocation75_spill] sm:$0xff] %v7780_v6  ;;  %2416 = vmatpush.msrb.mxu3 %v7798_v51  ;;  %v7804_v6 = vld [vmem:[%s8870_s12 + $0x120] sm:$0xff] }
 0x48d   :  { %9811 = vst [vmem:[#allocation76_spill] sm:$0xff] %v7786_v26  ;;  %2319 = vmatpush.msrb.mxu0 %v7804_v6  ;;  %v7810_v26 = vld [vmem:[%s8870_s12 + $0x398] sm:$0xff] }
 0x48e   :  { %9812 = vst [vmem:[#allocation79_spill] sm:$0xff] %v7792_v53  ;;  %2456 = vmatpush.msra.mxu2 %v7810_v26  ;;  %v7816_v53 = vld [vmem:[%s8870_s12 + $0x128] sm:$0xff] }
 0x48f   :  { %9813 = vst [vmem:[#allocation80_spill] sm:$0xff] %v7798_v51  ;;  %2359 = vmatpush.msrb.mxu1 %v7816_v53  ;;  %v7822_v51 = vld [vmem:[%s8870_s12 + $0x370] sm:$0xff] }
 0x490   :  { %9814 = vst [vmem:[#allocation83_spill] sm:$0xff] %v7804_v6  ;;  %2417 = vmatpush.msrb.mxu3 %v7822_v51  ;;  %v7828_v6 = vld [vmem:[%s8870_s12 + $0x100] sm:$0xff] }
 0x491   :  { %9815 = vst [vmem:[#allocation84_spill] sm:$0xff] %v7810_v26  ;;  %2320 = vmatpush.msrb.mxu0 %v7828_v6  ;;  %v7834_v26 = vld [vmem:[%s8870_s12 + $0x378] sm:$0xff] }
 0x492   :  { %9816 = vst [vmem:[#allocation87_spill] sm:$0xff] %v7816_v53  ;;  %2457 = vmatpush.msra.mxu2 %v7834_v26  ;;  %v7840_v53 = vld [vmem:[%s8870_s12 + $0x108] sm:$0xff] }
 0x493   :  { %9817 = vst [vmem:[#allocation88_spill] sm:$0xff] %v7822_v51  ;;  %2360 = vmatpush.msrb.mxu1 %v7840_v53  ;;  %v7846_v51 = vld [vmem:[%s8870_s12 + $0x350] sm:$0xff] }
 0x494   :  { %9818 = vst [vmem:[#allocation91_spill] sm:$0xff] %v7828_v6  ;;  %2418 = vmatpush.msrb.mxu3 %v7846_v51  ;;  %v7852_v6 = vld [vmem:[%s8870_s12 + $0xe0] sm:$0xff] }
 0x495   :  { %9819 = vst [vmem:[#allocation45_spill] sm:$0xff] %v7834_v26  ;;  %2321 = vmatpush.msrb.mxu0 %v7852_v6  ;;  %v7858_v26 = vld [vmem:[%s8870_s12 + $0x358] sm:$0xff] }
 0x496   :  { %9820 = vst [vmem:[#allocation46_spill] sm:$0xff] %v7840_v53  ;;  %2458 = vmatpush.msra.mxu2 %v7858_v26  ;;  %v7864_v53 = vld [vmem:[%s8870_s12 + $0xe8] sm:$0xff] }
 0x497   :  { %9821 = vst [vmem:[#allocation92_spill] sm:$0xff] %v7846_v51  ;;  %2361 = vmatpush.msrb.mxu1 %v7864_v53  ;;  %v7870_v51 = vld [vmem:[%s8870_s12 + $0x330] sm:$0xff] }
 0x498   :  { %9822 = vst [vmem:[#allocation49_spill] sm:$0xff] %v7852_v6  ;;  %2419 = vmatpush.msrb.mxu3 %v7870_v51  ;;  %v7876_v6 = vld [vmem:[%s8870_s12 + $0xc0] sm:$0xff] }
 0x499   :  { %9823 = vst [vmem:[#allocation95_spill] sm:$0xff] %v7858_v26  ;;  %2322 = vmatpush.msrb.mxu0 %v7876_v6  ;;  %v7882_v26 = vld [vmem:[%s8870_s12 + $0x338] sm:$0xff] }
 0x49a   :  { %9824 = vst [vmem:[#allocation50_spill] sm:$0xff] %v7864_v53  ;;  %2459 = vmatpush.msra.mxu2 %v7882_v26  ;;  %v7888_v53 = vld [vmem:[%s8870_s12 + $0xc8] sm:$0xff] }
 0x49b   :  { %9825 = vst [vmem:[#allocation96_spill] sm:$0xff] %v7870_v51  ;;  %2362 = vmatpush.msrb.mxu1 %v7888_v53  ;;  %v7894_v51 = vld [vmem:[%s8870_s12 + $0x310] sm:$0xff] }
 0x49c   :  { %9826 = vst [vmem:[#allocation53_spill] sm:$0xff] %v7876_v6  ;;  %2420 = vmatpush.msrb.mxu3 %v7894_v51  ;;  %v7900_v6 = vld [vmem:[%s8870_s12 + $0xa0] sm:$0xff] }
 0x49d   :  { %9827 = vst [vmem:[#allocation99_spill] sm:$0xff] %v7882_v26  ;;  %2323 = vmatpush.msrb.mxu0 %v7900_v6  ;;  %v7906_v26 = vld [vmem:[%s8870_s12 + $0x318] sm:$0xff] }
 0x49e   :  { %9828 = vst [vmem:[#allocation54_spill] sm:$0xff] %v7888_v53  ;;  %2460 = vmatpush.msra.mxu2 %v7906_v26  ;;  %v7912_v53 = vld [vmem:[%s8870_s12 + $0xa8] sm:$0xff] }
 0x49f   :  { %9829 = vst [vmem:[#allocation100_spill] sm:$0xff] %v7894_v51  ;;  %2363 = vmatpush.msrb.mxu1 %v7912_v53  ;;  %v7918_v51 = vld [vmem:[%s8870_s12 + $0x2f0] sm:$0xff] }
 0x4a0   :  { %9830 = vst [vmem:[#allocation57_spill] sm:$0xff] %v7900_v6  ;;  %2421 = vmatpush.msrb.mxu3 %v7918_v51  ;;  %v7924_v6 = vld [vmem:[%s8870_s12 + $0x80] sm:$0xff] }
 0x4a1   :  { %9831 = vst [vmem:[#allocation103_spill] sm:$0xff] %v7906_v26  ;;  %2324 = vmatpush.msrb.mxu0 %v7924_v6  ;;  %v7930_v26 = vld [vmem:[%s8870_s12 + $0x2f8] sm:$0xff] }
 0x4a2   :  { %9832 = vst [vmem:[#allocation58_spill] sm:$0xff] %v7912_v53  ;;  %2461 = vmatpush.msra.mxu2 %v7930_v26  ;;  %v7936_v53 = vld [vmem:[%s8870_s12 + $0x88] sm:$0xff] }
 0x4a3   :  { %9833 = vst [vmem:[#allocation104_spill] sm:$0xff] %v7918_v51  ;;  %2364 = vmatpush.msrb.mxu1 %v7936_v53  ;;  %v7942_v51 = vld [vmem:[%s8870_s12 + $0x2d0] sm:$0xff] }
 0x4a4   :  { %9834 = vst [vmem:[#allocation61_spill] sm:$0xff] %v7924_v6  ;;  %2422 = vmatpush.msrb.mxu3 %v7942_v51  ;;  %v7948_v6 = vld [vmem:[%s8870_s12 + $0x60] sm:$0xff] }
 0x4a5   :  { %9835 = vst [vmem:[#allocation107_spill] sm:$0xff] %v7930_v26  ;;  %2325 = vmatpush.msrb.mxu0 %v7948_v6  ;;  %v7954_v26 = vld [vmem:[%s8870_s12 + $0x2d8] sm:$0xff] }
 0x4a6   :  { %9836 = vst [vmem:[#allocation62_spill] sm:$0xff] %v7936_v53  ;;  %2462 = vmatpush.msra.mxu2 %v7954_v26  ;;  %v7960_v53 = vld [vmem:[%s8870_s12 + $0x68] sm:$0xff] }
 0x4a7   :  { %9837 = vst [vmem:[#allocation108_spill] sm:$0xff] %v7942_v51  ;;  %2365 = vmatpush.msrb.mxu1 %v7960_v53  ;;  %v7966_v51 = vld [vmem:[%s8870_s12 + $0x2b0] sm:$0xff] }
 0x4a8   :  { %9838 = vst [vmem:[#allocation65_spill] sm:$0xff] %v7948_v6  ;;  %2423 = vmatpush.msrb.mxu3 %v7966_v51  ;;  %v7972_v6 = vld [vmem:[%s8870_s12 + $0x40] sm:$0xff] }
 0x4a9   :  { %9839 = vst [vmem:[#allocation66_spill] sm:$0xff] %v7954_v26  ;;  %2326 = vmatpush.msrb.mxu0 %v7972_v6  ;;  %v7978_v26 = vld [vmem:[%s8870_s12 + $0x2b8] sm:$0xff] }
 0x4aa   :  { %9840 = vst [vmem:[#allocation69_spill] sm:$0xff] %v7960_v53  ;;  %2463 = vmatpush.msra.mxu2 %v7978_v26  ;;  %v7984_v53 = vld [vmem:[%s8870_s12 + $0x48] sm:$0xff] }
 0x4ab   :  { %9841 = vst [vmem:[#allocation70_spill] sm:$0xff] %v7966_v51  ;;  %2366 = vmatpush.msrb.mxu1 %v7984_v53  ;;  %v7990_v51 = vld [vmem:[%s8870_s12 + $0x290] sm:$0xff] }
 0x4ac   :  { %9842 = vst [vmem:[#allocation73_spill] sm:$0xff] %v7972_v6  ;;  %2424 = vmatpush.msrb.mxu3 %v7990_v51  ;;  %v7996_v6 = vld [vmem:[%s8870_s12 + $0x20] sm:$0xff] }
 0x4ad   :  { %9843 = vst [vmem:[#allocation74_spill] sm:$0xff] %v7978_v26  ;;  %2327 = vmatpush.msrb.mxu0 %v7996_v6  ;;  %v8002_v26 = vld [vmem:[%s8870_s12 + $0x298] sm:$0xff] }
 0x4ae   :  { %9844 = vst [vmem:[#allocation77_spill] sm:$0xff] %v7984_v53  ;;  %2464 = vmatpush.msra.mxu2 %v8002_v26  ;;  %v8008_v53 = vld [vmem:[%s8870_s12 + $0x28] sm:$0xff] }
 0x4af   :  { %9845 = vst [vmem:[#allocation78_spill] sm:$0xff] %v7990_v51  ;;  %2367 = vmatpush.msrb.mxu1 %v8008_v53  ;;  %v8014_v51 = vld [vmem:[%s8870_s12 + $0x270] sm:$0xff] }
 0x4b0   :  { %9846 = vst [vmem:[#allocation81_spill] sm:$0xff] %v7996_v6  ;;  %2425 = vmatpush.msrb.mxu3 %v8014_v51  ;;  %v8020_v6 = vld [vmem:[%s8870_s12] sm:$0xff] }
 0x4b1   :  { %9847 = vst [vmem:[#allocation82_spill] sm:$0xff] %v8002_v26  ;;  %2328 = vmatpush.msrb.mxu0 %v8020_v6  ;;  %v8026_v26 = vld [vmem:[%s8870_s12 + $0x278] sm:$0xff] }
 0x4b2   :  { %9848 = vst [vmem:[#allocation85_spill] sm:$0xff] %v8008_v53  ;;  %2465 = vmatpush.msra.mxu2 %v8026_v26  ;;  %v8032_v53 = vld [vmem:[%s8870_s12 + $0x8] sm:$0xff] }
 0x4b3   :  { %9849 = vst [vmem:[#allocation86_spill] sm:$0xff] %v8014_v51  ;;  %2368 = vmatpush.msrb.mxu1 %v8032_v53  ;;  %v8038_v51 = vld [vmem:[%s8870_s12 + $0x250] sm:$0xff] }
 0x4b4   :  { %9850 = vst [vmem:[#allocation89_spill] sm:$0xff] %v8020_v6  ;;  %2426 = vmatpush.msrb.mxu3 %v8038_v51  ;;  %v8044_v6 = vld [vmem:[%s8870_s12 + $0x1f0] sm:$0xff] }
 0x4b5   :  { %9851 = vst [vmem:[#allocation90_spill] sm:$0xff] %v8026_v26  ;;  %2393 = vmatpush.msra.mxu0 %v8044_v6  ;;  %v8050_v26 = vld [vmem:[%s8870_s12 + $0x258] sm:$0xff] }
 0x4b6   :  { %9852 = vst [vmem:[#allocation93_spill] sm:$0xff] %v8032_v53  ;;  %2466 = vmatpush.msra.mxu2 %v8050_v26  ;;  %v8056_v53 = vld [vmem:[%s8870_s12 + $0x1f8] sm:$0xff] }
 0x4b7   :  { %9853 = vst [vmem:[#allocation94_spill] sm:$0xff] %v8038_v51  ;;  %2433 = vmatpush.msra.mxu1 %v8056_v53  ;;  %v8062_v51 = vld [vmem:[%s8870_s12 + $0x230] sm:$0xff] }
 0x4b8   :  { %9854 = vst [vmem:[#allocation97_spill] sm:$0xff] %v8044_v6  ;;  %2427 = vmatpush.msrb.mxu3 %v8062_v51  ;;  %v8068_v6 = vld [vmem:[%s8870_s12 + $0x1d0] sm:$0xff] }
 0x4b9   :  { %9855 = vst [vmem:[#allocation98_spill] sm:$0xff] %v8050_v26  ;;  %2394 = vmatpush.msra.mxu0 %v8068_v6  ;;  %v8074_v26 = vld [vmem:[%s8870_s12 + $0x238] sm:$0xff] }
 0x4ba   :  { %9856 = vst [vmem:[#allocation101_spill] sm:$0xff] %v8056_v53  ;;  %2467 = vmatpush.msra.mxu2 %v8074_v26  ;;  %v8080_v53 = vld [vmem:[%s8870_s12 + $0x1d8] sm:$0xff] }
 0x4bb   :  { %9857 = vst [vmem:[#allocation102_spill] sm:$0xff] %v8062_v51  ;;  %2434 = vmatpush.msra.mxu1 %v8080_v53  ;;  %v8086_v51 = vld [vmem:[%s8870_s12 + $0x210] sm:$0xff] }
 0x4bc   :  { %9858 = vst [vmem:[#allocation105_spill] sm:$0xff] %v8068_v6  ;;  %2428 = vmatpush.msrb.mxu3 %v8086_v51  ;;  %v8092_v6 = vld [vmem:[%s8870_s12 + $0x1b0] sm:$0xff] }
 0x4bd   :  { %9859 = vst [vmem:[#allocation106_spill] sm:$0xff] %v8074_v26  ;;  %2395 = vmatpush.msra.mxu0 %v8092_v6  ;;  %v8098_v26 = vld [vmem:[%s8870_s12 + $0x218] sm:$0xff] }
 0x4be   :  { %9860 = vst [vmem:[#allocation109_spill] sm:$0xff] %v8080_v53  ;;  %2468 = vmatpush.msra.mxu2 %v8098_v26  ;;  %v8104_v53 = vld [vmem:[%s8870_s12 + $0x1b8] sm:$0xff] }
 0x4bf   :  { %9861 = vst [vmem:[#allocation110_spill] sm:$0xff] %v8086_v51  ;;  %2435 = vmatpush.msra.mxu1 %v8104_v53  ;;  %v8110_v51 = vld [vmem:[%s8870_s12 + $0x190] sm:$0xff] }
 0x4c0   :  { %9862 = vst [vmem:[#allocation111_spill] sm:$0xff] %v8092_v6  ;;  %2396 = vmatpush.msra.mxu0 %v8110_v51  ;;  %v8116_v6 = vld [vmem:[%s8870_s12 + $0x198] sm:$0xff] }
 0x4c1   :  { %9863 = vst [vmem:[#allocation112_spill] sm:$0xff] %v8098_v26  ;;  %2436 = vmatpush.msra.mxu1 %v8116_v6  ;;  %v8122_v26 = vld [vmem:[%s8870_s12 + $0x170] sm:$0xff] }
 0x4c2   :  { %9864 = vst [vmem:[#allocation3_spill] sm:$0xff] %v8104_v53  ;;  %2397 = vmatpush.msra.mxu0 %v8122_v26  ;;  %v8128_v53 = vld [vmem:[%s8870_s12 + $0x178] sm:$0xff] }
 0x4c3   :  { %9865 = vst [vmem:[#allocation7_spill] sm:$0xff] %v8110_v51  ;;  %2437 = vmatpush.msra.mxu1 %v8128_v53  ;;  %v8134_v51 = vld [vmem:[%s8870_s12 + $0x150] sm:$0xff] }
 0x4c4   :  { %9866 = vst [vmem:[#allocation4_spill] sm:$0xff] %v8116_v6  ;;  %2398 = vmatpush.msra.mxu0 %v8134_v51  ;;  %v8140_v6 = vld [vmem:[%s8870_s12 + $0x158] sm:$0xff] }
 0x4c5   :  { %9867 = vst [vmem:[#allocation8_spill] sm:$0xff] %v8122_v26  ;;  %2438 = vmatpush.msra.mxu1 %v8140_v6  ;;  %v8146_v26 = vld [vmem:[%s8870_s12 + $0x130] sm:$0xff] }
 0x4c6   :  { %9868 = vst [vmem:[#allocation5_spill] sm:$0xff] %v8128_v53  ;;  %2399 = vmatpush.msra.mxu0 %v8146_v26  ;;  %v8152_v53 = vld [vmem:[%s8870_s12 + $0x138] sm:$0xff] }
 0x4c7   :  { %9869 = vst [vmem:[#allocation9_spill] sm:$0xff] %v8134_v51  ;;  %2439 = vmatpush.msra.mxu1 %v8152_v53  ;;  %v8158_v51 = vld [vmem:[%s8870_s12 + $0x110] sm:$0xff] }
 0x4c8   :  { %9870 = vst [vmem:[#allocation6_spill] sm:$0xff] %v8140_v6  ;;  %2400 = vmatpush.msra.mxu0 %v8158_v51  ;;  %v8164_v6 = vld [vmem:[%s8870_s12 + $0x118] sm:$0xff] }
 0x4c9   :  { %9871 = vst [vmem:[#allocation10_spill] sm:$0xff] %v8146_v26  ;;  %2440 = vmatpush.msra.mxu1 %v8164_v6  ;;  %v8170_v26 = vld [vmem:[%s8870_s12 + $0xf0] sm:$0xff] }
 0x4ca   :  { %9872 = vst [vmem:[#allocation40_spill] sm:$0xff] %v8152_v53  ;;  %2401 = vmatpush.msra.mxu0 %v8170_v26  ;;  %v8176_v53 = vld [vmem:[%s8870_s12 + $0xf8] sm:$0xff] }
 0x4cb   :  { %9873 = vst [vmem:[#allocation11_spill] sm:$0xff] %v8158_v51  ;;  %2441 = vmatpush.msra.mxu1 %v8176_v53  ;;  %v8182_v51 = vld [vmem:[%s8870_s12 + $0xd0] sm:$0xff] }
 0x4cc   :  { %9874 = vst [vmem:[#allocation12_spill] sm:$0xff] %v8164_v6  ;;  %2402 = vmatpush.msra.mxu0 %v8182_v51  ;;  %v8188_v6 = vld [vmem:[%s8870_s12 + $0xd8] sm:$0xff] }
 0x4cd   :  { %9875 = vst [vmem:[#allocation13_spill] sm:$0xff] %v8170_v26  ;;  %2442 = vmatpush.msra.mxu1 %v8188_v6  ;;  %v8194_v26 = vld [vmem:[%s8870_s12 + $0xb0] sm:$0xff] }
 0x4ce   :  { %9876 = vst [vmem:[#allocation14_spill] sm:$0xff] %v8176_v53  ;;  %2403 = vmatpush.msra.mxu0 %v8194_v26  ;;  %v8200_v53 = vld [vmem:[%s8870_s12 + $0xb8] sm:$0xff] }
 0x4cf   :  { %9877 = vst [vmem:[#allocation129_spill] sm:$0xff] %v8182_v51  ;;  %2443 = vmatpush.msra.mxu1 %v8200_v53  ;;  %v8206_v51 = vld [vmem:[%s8870_s12 + $0x90] sm:$0xff] }
 0x4d0   :  { %9878 = vst [vmem:[#allocation130_spill] sm:$0xff] %v8188_v6  ;;  %2404 = vmatpush.msra.mxu0 %v8206_v51  ;;  %v8212_v6 = vld [vmem:[%s8870_s12 + $0x98] sm:$0xff] }
 0x4d1   :  { %9879 = vst [vmem:[#allocation131_spill] sm:$0xff] %v8194_v26  ;;  %2444 = vmatpush.msra.mxu1 %v8212_v6  ;;  %v2049_v26 = vpop.f32.mrf.mxu3 }
 0x4d2   :  { %9880 = vst [vmem:[#allocation132_spill] sm:$0xff] %v8200_v53  ;;  %2405 = vmatpush.msra.mxu0 %v7192_v60  ;;  %v9884_v53 = vld [vmem:[#allocation118_spill] sm:$0xff] }
 0x4d3   :  { %9881 = vst [vmem:[#allocation133_spill] sm:$0xff] %v8206_v51  ;;  %2445 = vmatpush.msra.mxu1 %v7198_v4  ;;  %v9883_v51 = vld [vmem:[#allocation113_spill] sm:$0xff] }
 0x4d4   :  { %9882 = vst [vmem:[#allocation134_spill] sm:$0xff] %v8212_v6  ;;  %2406 = vmatpush.msra.mxu0 %v7204_v14  ;;  %v2089_v6 = vpop.f32.mrf.mxu2 }
 0x4d5   :  { %2446 = vmatpush.msra.mxu1 %v7210_v16  ;;  %v2029_v7 = vpop.f32.mrf.mxu0  ;;  %v2069_v54 = vpop.f32.mrf.mxu1 }
 0x4d6   :  { %2407 = vmatpush.msra.mxu0 %v7216_v22  ;;  %v2030_v60 = vadd.f32 %v2029_v7, %v5812_v29  ;;  %v2070_v4 = vadd.f32 %v2069_v54, %v5814_v45 }
 0x4d7   :  { %2447 = vmatpush.msra.mxu1 %v7222_v48  ;;  %v9885_v48 = vld [vmem:[#allocation15_spill] sm:$0xff] }
 0x4d8   :  { %2408 = vmatpush.msra.mxu0 %v9883_v51  ;;  %v2050_v34 = vadd.f32 %v2049_v26, %v2030_v60  ;;  %v2090_v14 = vadd.f32 %v2089_v6, %v2070_v4 }
 0x4d9   :  { %2448 = vmatpush.msra.mxu1 %v9884_v53  ;;  %v2129_v63 = vpop.f32.mrf.mxu3 }
 0x4da   :  { %v2172_v55 = vmul.f32 0.5, %v2050_v34  ;;  %v2176_v16 = vmul.f32 0.5, %v2090_v14 }
 0x4dc   :  { %3295 = vtanh.f32 %v2172_v55  ;;  %v2169_v58 = vpop.f32.mrf.mxu2 }
 0x4dd   :  { %3297 = vtanh.f32 %v2176_v16  ;;  %v2109_v22 = vpop.f32.mrf.mxu0 }
 0x4de   :  { %v2110_v52 = vadd.f32 %v2109_v22, %v9885_v48  ;;  %v2149_v51 = vpop.f32.mrf.mxu1 }
 0x4df   :  { %v2150_v53 = vadd.f32 %v2149_v51, %v5820_v3  ;;  %v9886_v51 = vld [vmem:[#allocation123_spill] sm:$0xff] }
 0x4e0   :  { %v2130_v1 = vadd.f32 %v2129_v63, %v2110_v52 }
 0x4e1   :  { %v2170_v43 = vadd.f32 %v2169_v58, %v2150_v53  ;;  %v2248_v16 = vpop.f32.mrf.mxu3 }
 0x4e2   :  { %v3296_v15 = vpop.eup %3295  ;;  %3299 = vtanh.f32 %v2130_v1  ;;  %v2292_v63 = vadd.f32 %v2248_v16, %v9886_v51 }
 0x4e3   :  { %v3298_v7 = vpop.eup %3297  ;;  %v2174_v54 = vadd.f32 1.0, %v3296_v15  ;;  %v2181_v26 = vmul.f32 0.5, %v2170_v43 }
 0x4e4   :  { %v2178_v6 = vadd.f32 1.0, %v3298_v7  ;;  %v2299_v58 = vmul.f32 0.5, %v2292_v63  ;;  %v2288_v7 = vpop.f32.mrf.mxu2 }
 0x4e5   :  { %3301 = vtanh.f32 %v2181_v26  ;;  %v2175_v55 = vmul.f32 0.5, %v2174_v54  ;;  %v9887_v54 = vld [vmem:[#allocation115_spill] sm:$0xff] }
 0x4e6   :  { %v2179_v34 = vmul.f32 0.5, %v2178_v6 }
 0x4e8   :  { %v3300_v60 = vpop.eup %3299  ;;  %v2185_v4 = vmul.f32 %v2179_v34, %v7242_v28 }
 0x4e9   :  { %v2186_v14 = vmul.f32 %v3300_v60, %v2175_v55  ;;  %v9888_v55 = vld [vmem:[#allocation124_spill] sm:$0xff] }
 0x4ea   :  { %v2294_v60 = vadd.f32 %v2288_v7, %v9888_v55  ;;  %v9898_v7 = vld [vmem:[#allocation24_spill] sm:$0xff]  ;;  %v3758_v55 = vld [vmem:[%s8866_s10 + $0x150] sm:$0xff] }
 0x4eb   :  { %v3302_v22 = vpop.eup %3301  ;;  %v8228_v48 = vadd.f32 %v2186_v14, %v2185_v4  ;;  %v9889_v14 = vld [vmem:[#allocation125_spill] sm:$0xff] }
 0x4ec   :  { %v2183_v1 = vadd.f32 1.0, %v3302_v22 }
 0x4ed   :  { %3303 = vtanh.f32 %v8228_v48 }
 0x4ee   :  { %v2184_v15 = vmul.f32 0.5, %v2183_v1  ;;  %3305 = vtanh.f32 %v2299_v58  ;;  %v9893_v58 = vld [vmem:[#allocation19_spill] sm:$0xff] }
 0x4f3   :  { %v3304_v43 = vpop.eup %3303 }
 0x4f4   :  { %v8232_v52 = vmul.f32 %v3304_v43, %v2184_v15  ;;  %v3306_v4 = vpop.eup %3305  ;;  %v9895_v15 = vld [vmem:[#allocation21_spill] sm:$0xff]  ;;  %v9896_v43 = vld [vmem:[#allocation22_spill] sm:$0xff] }
 0x4f5   :  { %v2228_v53 = vpop.f32.mrf.mxu0  ;;  %v2301_v22 = vadd.f32 1.0, %v3306_v4  ;;  %v3773_v4 = vld [vmem:[%s8866_s10 + $0x40] sm:$0xff] }
 0x4f6   :  { %v2291_v28 = vadd.f32 %v2228_v53, %v9887_v54  ;;  %2349 = vmatmul.f32.vlgmr.msra.gmra.mxu3 %v8232_v52  ;;  %2389 = vmatmul.f32.vlgmr.msrb.gmra.mxu2 %v8232_v52  ;;  %v2190_v26 = vmul.f32 %v5834_v31, %v8232_v52  ;;  %v2268_v6 = vpop.f32.mrf.mxu1 }
 0x4f7   :  { %2532 = vmatpush.msra.mxu3 %v7256_v2  ;;  %2572 = vmatpush.msrb.mxu2 %v7262_v38  ;;  %v2293_v16 = vadd.f32 %v2268_v6, %v9889_v14  ;;  %v2304_v2 = vmul.f32 0.5, %v2294_v60  ;;  %v3748_v6 = vld [vmem:[%s8866_s10 + $0x1f0] sm:$0xff]  ;;  %v3759_v60 = vld [vmem:[%s8866_s10 + $0x120] sm:$0xff] }
 0x4f8   :  { %v2295_v34 = vmul.f32 0.5, %v2291_v28  ;;  %2191 = vadd.xlane.f32.xlu2 %v2190_v26  ;;  %v9900_v28 = vld [vmem:[#allocation26_spill] sm:$0xff]  ;;  %v3774_v14 = vld [vmem:[%s8866_s10 + $0x50] sm:$0xff] }
 0x4f9   :  { %2533 = vmatpush.msra.mxu3 %v7269_v36  ;;  %2573 = vmatpush.msrb.mxu2 %v7275_v49  ;;  %v2302_v36 = vmul.f32 0.5, %v2301_v22  ;;  %v9904_v22 = vld [vmem:[#allocation30_spill] sm:$0xff] }
 0x4fa   :  { %3307 = vtanh.f32 %v2295_v34  ;;  %v3756_v34 = vld [vmem:[%s8866_s10 + $0x170] sm:$0xff] }
 0x4fb   :  { %2534 = vmatpush.msra.mxu3 %v7282_v33  ;;  %2574 = vmatpush.msrb.mxu2 %v7288_v30  ;;  %3309 = vtanh.f32 %v2293_v16  ;;  %v9890_v33 = vld [vmem:[#allocation17_spill] sm:$0xff]  ;;  %v2308_v63 = vmul.f32 %v2302_v36, %v7354_v9  ;;  %v9897_v9 = vld [vmem:[#allocation23_spill] sm:$0xff] }
 0x4fc   :  { %3311 = vtanh.f32 %v2304_v2  ;;  %v3775_v16 = vld [vmem:[%s8866_s10 + $0x20] sm:$0xff]  ;;  %v3776_v2 = vld [vmem:[%s8866_s10 + $0x30] sm:$0xff] }
 0x4fd   :  { %2535 = vmatpush.msra.mxu3 %v7294_v59  ;;  %2575 = vmatpush.msrb.mxu2 %v7300_v57  ;;  %v9891_v59 = vld [vmem:[#allocation18_spill] sm:$0xff]  ;;  %v9892_v57 = vld [vmem:[#allocation33_spill] sm:$0xff]  ;;  %v3777_v36 = vld [vmem:[%s8866_s10] sm:$0xff] }
 0x4fe   :  { %2429 = vmatmul.f32.vlgmr.msrb.gmra.mxu3 %v8232_v52  ;;  %2469 = vmatmul.f32.vlgmr.msra.gmra.mxu2 %v8232_v52 }
 0x4ff   :  { %2536 = vmatpush.msra.mxu3 %v7308_v50  ;;  %2576 = vmatpush.msrb.mxu2 %v7314_v44 }
 0x500   :  { %v3308_v38 = vpop.eup %3307 }
 0x501   :  { %v2297_v49 = vadd.f32 1.0, %v3308_v38  ;;  %2537 = vmatpush.msra.mxu3 %v7320_v5  ;;  %2577 = vmatpush.msrb.mxu2 %v9890_v33  ;;  %v3310_v51 = vpop.eup %3309  ;;  %v9894_v5 = vld [vmem:[#allocation20_spill] sm:$0xff]  ;;  %v9905_v38 = vld [vmem:[#allocation31_spill] sm:$0xff]  ;;  %v3778_v33 = vld [vmem:[%s8866_s10 + $0x10] sm:$0xff] }
 0x502   :  { %v3312_v50 = vpop.eup %3311 }
 0x503   :  { %v2298_v30 = vmul.f32 0.5, %v2297_v49  ;;  %2538 = vmatpush.msra.mxu3 %v9891_v59  ;;  %2578 = vmatpush.msrb.mxu2 %v9892_v57  ;;  %v2306_v53 = vadd.f32 1.0, %v3312_v50  ;;  %v9906_v49 = vld [vmem:[#allocation32_spill] sm:$0xff]  ;;  %v9908_v59 = vld [vmem:[#allocation35_spill] sm:$0xff]  ;;  %v9913_v50 = vld [vmem:[#allocation41_spill] sm:$0xff] }
 0x504   :  { %v9909_v57 = vld [vmem:[#allocation36_spill] sm:$0xff] }
 0x505   :  { %v2309_v1 = vmul.f32 %v3310_v51, %v2298_v30  ;;  %2539 = vmatpush.msra.mxu3 %v7345_v39  ;;  %2579 = vmatpush.msrb.mxu2 %v7351_v8  ;;  %v9899_v39 = vld [vmem:[#allocation25_spill] sm:$0xff]  ;;  %v2307_v8 = vmul.f32 0.5, %v2306_v53  ;;  %v9907_v30 = vld [vmem:[#allocation34_spill] sm:$0xff]  ;;  %v9918_v53 = vld [vmem:[#allocation48_spill] sm:$0xff] }
 0x506   :  { %v9910_v51 = vld [vmem:[#allocation37_spill] sm:$0xff] }
 0x507   :  { %v8260_v44 = vadd.f32 %v2309_v1, %v2308_v63  ;;  %2540 = vmatpush.msra.mxu3 %v9893_v58  ;;  %2580 = vmatpush.msrb.mxu2 %v9894_v5  ;;  %v9911_v63 = vld [vmem:[#allocation38_spill] sm:$0xff]  ;;  %v9912_v1 = vld [vmem:[#allocation39_spill] sm:$0xff] }
 0x508   :  { %v9914_v58 = vld [vmem:[#allocation42_spill] sm:$0xff]  ;;  %v9915_v5 = vld [vmem:[#allocation43_spill] sm:$0xff] }
 0x509   :  { %3313 = vtanh.f32 %v8260_v44  ;;  %2541 = vmatpush.msra.mxu3 %v9895_v15  ;;  %2581 = vmatpush.msrb.mxu2 %v9896_v43  ;;  %v9916_v15 = vld [vmem:[#allocation44_spill] sm:$0xff]  ;;  %v9917_v43 = vld [vmem:[#allocation47_spill] sm:$0xff] }
 0x50b   :  { %2542 = vmatpush.msra.mxu3 %v9897_v9  ;;  %2582 = vmatpush.msrb.mxu2 %v9898_v7  ;;  %v9919_v9 = vld [vmem:[#allocation51_spill] sm:$0xff]  ;;  %v9920_v7 = vld [vmem:[#allocation52_spill] sm:$0xff] }
 0x50d   :  { %2543 = vmatpush.msra.mxu3 %v9899_v39  ;;  %2583 = vmatpush.msrb.mxu2 %v7402_v41  ;;  %v3747_v41 = vld [vmem:[%s8866_s10 + $0x1e0] sm:$0xff] }
 0x50e   :  { %v9921_v39 = vld [vmem:[#allocation55_spill] sm:$0xff] }
 0x50f   :  { %v3314_v54 = vpop.eup %3313  ;;  %2544 = vmatpush.msra.mxu3 %v9900_v28  ;;  %2584 = vmatpush.msrb.mxu2 %v7414_v19  ;;  %v3750_v19 = vld [vmem:[%s8866_s10 + $0x1d0] sm:$0xff]  ;;  %v9924_v28 = vld [vmem:[#allocation60_spill] sm:$0xff] }
 0x510   :  { %v8273_v26 = vmul.f32 %v3314_v54, %v2307_v8  ;;  %v9922_v8 = vld [vmem:[#allocation56_spill] sm:$0xff]  ;;  %v9923_v54 = vld [vmem:[#allocation59_spill] sm:$0xff] }
 0x511   :  { %2545 = vmatpush.msra.mxu3 %v7422_v21  ;;  %2585 = vmatpush.msrb.mxu2 %v7428_v46  ;;  %v3749_v46 = vld [vmem:[%s8866_s10 + $0x1c0] sm:$0xff] }
 0x512   :  { %2329 = vmatmul.f32.vlgmr.msrb.gmra.mxu0 %v8273_v26  ;;  %2369 = vmatmul.f32.vlgmr.msrb.gmra.mxu1 %v8273_v26  ;;  %v3751_v21 = vld [vmem:[%s8866_s10 + $0x1a0] sm:$0xff] }
 0x513   :  { %2512 = vmatpush.msrb.mxu0 %v3747_v41  ;;  %2552 = vmatpush.msrb.mxu1 %v3748_v6  ;;  %v9926_v41 = vld [vmem:[#allocation64_spill] sm:$0xff]  ;;  %v9927_v6 = vld [vmem:[#allocation67_spill] sm:$0xff] }
 0x514   :  { %2546 = vmatpush.msra.mxu3 %v7438_v13  ;;  %2586 = vmatpush.msrb.mxu2 %v7444_v35  ;;  %v3752_v13 = vld [vmem:[%s8866_s10 + $0x1b0] sm:$0xff]  ;;  %v3753_v35 = vld [vmem:[%s8866_s10 + $0x180] sm:$0xff] }
 0x515   :  { %2513 = vmatpush.msrb.mxu0 %v3749_v46  ;;  %2553 = vmatpush.msrb.mxu1 %v3750_v19  ;;  %v9928_v46 = vld [vmem:[#allocation68_spill] sm:$0xff]  ;;  %v9929_v19 = vld [vmem:[#allocation71_spill] sm:$0xff] }
 0x516   :  { %2547 = vmatpush.msra.mxu3 %v7452_v27  ;;  %2587 = vmatpush.msrb.mxu2 %v7458_v32  ;;  %v3754_v27 = vld [vmem:[%s8866_s10 + $0x190] sm:$0xff]  ;;  %v3755_v32 = vld [vmem:[%s8866_s10 + $0x160] sm:$0xff] }
 0x517   :  { %2514 = vmatpush.msrb.mxu0 %v3751_v21  ;;  %2548 = vmatmul.f32.vlgmr.msra.gmra.mxu3 %v8273_v26  ;;  %v9930_v21 = vld [vmem:[#allocation72_spill] sm:$0xff] }
 0x518   :  { %2554 = vmatpush.msrb.mxu1 %v3752_v13  ;;  %2588 = vmatmul.f32.vlgmr.msrb.gmra.mxu2 %v8273_v26  ;;  %v9931_v13 = vld [vmem:[#allocation75_spill] sm:$0xff] }
 0x519   :  { %2515 = vmatpush.msrb.mxu0 %v3753_v35  ;;  %2634 = vmatpush.msrb.mxu3 %v7469_v10  ;;  %v3757_v10 = vld [vmem:[%s8866_s10 + $0x140] sm:$0xff]  ;;  %v9932_v35 = vld [vmem:[#allocation76_spill] sm:$0xff] }
 0x51a   :  { %2555 = vmatpush.msrb.mxu1 %v3754_v27  ;;  %2409 = vmatmul.f32.vlgmr.msra.gmra.mxu0 %v8273_v26  ;;  %v9933_v27 = vld [vmem:[#allocation79_spill] sm:$0xff] }
 0x51b   :  { %2449 = vmatmul.f32.vlgmr.msra.gmra.mxu1 %v8273_v26  ;;  %2516 = vmatpush.msrb.mxu0 %v3755_v32  ;;  %v9934_v32 = vld [vmem:[#allocation80_spill] sm:$0xff] }
 0x51c   :  { %2556 = vmatpush.msrb.mxu1 %v3756_v34  ;;  %2674 = vmatpush.msra.mxu2 %v7480_v37  ;;  %v3760_v37 = vld [vmem:[%s8866_s10 + $0x130] sm:$0xff]  ;;  %v9935_v34 = vld [vmem:[#allocation83_spill] sm:$0xff] }
 0x51d   :  { %2517 = vmatpush.msrb.mxu0 %v3757_v10  ;;  %2635 = vmatpush.msrb.mxu3 %v7487_v20  ;;  %v3761_v20 = vld [vmem:[%s8866_s10 + $0x100] sm:$0xff]  ;;  %v9936_v10 = vld [vmem:[#allocation84_spill] sm:$0xff] }
 0x51e   :  { %2557 = vmatpush.msrb.mxu1 %v3758_v55  ;;  %2675 = vmatpush.msra.mxu2 %v7494_v17  ;;  %v3762_v17 = vld [vmem:[%s8866_s10 + $0x110] sm:$0xff]  ;;  %v9937_v55 = vld [vmem:[#allocation87_spill] sm:$0xff] }
 0x51f   :  { %2518 = vmatpush.msrb.mxu0 %v3759_v60  ;;  %2636 = vmatpush.msrb.mxu3 %v7501_v0  ;;  %v3763_v0 = vld [vmem:[%s8866_s10 + $0xe0] sm:$0xff]  ;;  %v9938_v60 = vld [vmem:[#allocation88_spill] sm:$0xff] }
 0x520   :  { %2558 = vmatpush.msrb.mxu1 %v3760_v37  ;;  %2676 = vmatpush.msra.mxu2 %v7508_v61  ;;  %v3764_v61 = vld [vmem:[%s8866_s10 + $0xf0] sm:$0xff]  ;;  %v9939_v37 = vld [vmem:[#allocation91_spill] sm:$0xff] }
 0x521   :  { %2519 = vmatpush.msrb.mxu0 %v3761_v20  ;;  %2637 = vmatpush.msrb.mxu3 %v7515_v56  ;;  %v3765_v56 = vld [vmem:[%s8866_s10 + $0xc0] sm:$0xff]  ;;  %v9940_v20 = vld [vmem:[#allocation45_spill] sm:$0xff] }
 0x522   :  { %2559 = vmatpush.msrb.mxu1 %v3762_v17  ;;  %2677 = vmatpush.msra.mxu2 %v7522_v25  ;;  %v3766_v25 = vld [vmem:[%s8866_s10 + $0xd0] sm:$0xff]  ;;  %v9941_v17 = vld [vmem:[#allocation46_spill] sm:$0xff] }
 0x523   :  { %2520 = vmatpush.msrb.mxu0 %v3763_v0  ;;  %2638 = vmatpush.msrb.mxu3 %v7529_v11  ;;  %v3767_v11 = vld [vmem:[%s8866_s10 + $0xa0] sm:$0xff]  ;;  %v9942_v0 = vld [vmem:[#allocation92_spill] sm:$0xff] }
 0x524   :  { %2560 = vmatpush.msrb.mxu1 %v3764_v61  ;;  %2678 = vmatpush.msra.mxu2 %v7536_v12  ;;  %v3768_v12 = vld [vmem:[%s8866_s10 + $0xb0] sm:$0xff] }
 0x525   :  { %2521 = vmatpush.msrb.mxu0 %v3765_v56  ;;  %2639 = vmatpush.msrb.mxu3 %v7543_v40  ;;  %v3769_v40 = vld [vmem:[%s8866_s10 + $0x80] sm:$0xff]  ;;  %v9943_v61 = vld [vmem:[#allocation49_spill] sm:$0xff] }
 0x526   :  { %2561 = vmatpush.msrb.mxu1 %v3766_v25  ;;  %2679 = vmatpush.msra.mxu2 %v7550_v23  ;;  %v3770_v23 = vld [vmem:[%s8866_s10 + $0x90] sm:$0xff]  ;;  %v9944_v56 = vld [vmem:[#allocation95_spill] sm:$0xff]  ;;  %v9945_v25 = vld [vmem:[#allocation50_spill] sm:$0xff] }
 0x527   :  { %2522 = vmatpush.msrb.mxu0 %v3767_v11  ;;  %2640 = vmatpush.msrb.mxu3 %v7557_v47  ;;  %v3771_v47 = vld [vmem:[%s8866_s10 + $0x60] sm:$0xff]  ;;  %v9946_v11 = vld [vmem:[#allocation96_spill] sm:$0xff] }
 0x528   :  { %2562 = vmatpush.msrb.mxu1 %v3768_v12  ;;  %2680 = vmatpush.msra.mxu2 %v7564_v62  ;;  %v3772_v62 = vld [vmem:[%s8866_s10 + $0x70] sm:$0xff] }
 0x529   :  { %2523 = vmatpush.msrb.mxu0 %v3769_v40  ;;  %2641 = vmatpush.msrb.mxu3 %v7571_v42  ;;  %v9901_v42 = vld [vmem:[#allocation27_spill] sm:$0xff]  ;;  %v9947_v12 = vld [vmem:[#allocation53_spill] sm:$0xff] }
 0x52a   :  { %2563 = vmatpush.msrb.mxu1 %v3770_v23  ;;  %2681 = vmatpush.msra.mxu2 %v7578_v24  ;;  %v9902_v24 = vld [vmem:[#allocation28_spill] sm:$0xff]  ;;  %v9948_v40 = vld [vmem:[#allocation99_spill] sm:$0xff]  ;;  %v9949_v23 = vld [vmem:[#allocation54_spill] sm:$0xff] }
 0x52b   :  { %2524 = vmatpush.msrb.mxu0 %v3771_v47  ;;  %2642 = vmatpush.msrb.mxu3 %v7585_v18  ;;  %v9903_v18 = vld [vmem:[#allocation29_spill] sm:$0xff]  ;;  %v9950_v47 = vld [vmem:[#allocation100_spill] sm:$0xff] }
 0x52c   :  { %2564 = vmatpush.msrb.mxu1 %v3772_v62  ;;  %2682 = vmatpush.msra.mxu2 %v9901_v42  ;;  %v9951_v62 = vld [vmem:[#allocation57_spill] sm:$0xff]  ;;  %v9952_v42 = vld [vmem:[#allocation103_spill] sm:$0xff] }
 0x52d   :  { %2525 = vmatpush.msrb.mxu0 %v3773_v4  ;;  %2643 = vmatpush.msrb.mxu3 %v9902_v24  ;;  %v9953_v4 = vld [vmem:[#allocation58_spill] sm:$0xff]  ;;  %v9954_v24 = vld [vmem:[#allocation104_spill] sm:$0xff] }
 0x52e   :  { %2565 = vmatpush.msrb.mxu1 %v3774_v14  ;;  %2683 = vmatpush.msra.mxu2 %v9903_v18  ;;  %v9955_v14 = vld [vmem:[#allocation61_spill] sm:$0xff]  ;;  %v9956_v18 = vld [vmem:[#allocation107_spill] sm:$0xff] }
 0x52f   :  { %2526 = vmatpush.msrb.mxu0 %v3775_v16  ;;  %2644 = vmatpush.msrb.mxu3 %v9904_v22  ;;  %v9957_v16 = vld [vmem:[#allocation62_spill] sm:$0xff]  ;;  %v9958_v22 = vld [vmem:[#allocation108_spill] sm:$0xff] }
 0x530   :  { %2566 = vmatpush.msrb.mxu1 %v3776_v2  ;;  %2684 = vmatpush.msra.mxu2 %v9905_v38  ;;  %v9959_v2 = vld [vmem:[#allocation65_spill] sm:$0xff]  ;;  %v9960_v38 = vld [vmem:[#allocation66_spill] sm:$0xff] }
 0x531   :  { %2527 = vmatpush.msrb.mxu0 %v3777_v36  ;;  %2645 = vmatpush.msrb.mxu3 %v9906_v49  ;;  %v9961_v36 = vld [vmem:[#allocation69_spill] sm:$0xff]  ;;  %v9962_v49 = vld [vmem:[#allocation70_spill] sm:$0xff] }
 0x532   :  { %2567 = vmatpush.msrb.mxu1 %v3778_v33  ;;  %2528 = vmatmul.f32.vlgmr.msrb.gmra.mxu0 %v8273_v26  ;;  %v9963_v33 = vld [vmem:[#allocation73_spill] sm:$0xff] }
 0x533   :  { %2568 = vmatmul.f32.vlgmr.msrb.gmra.mxu1 %v8273_v26  ;;  %2685 = vmatpush.msra.mxu2 %v9907_v30  ;;  %v9925_v26 = vld [vmem:[#allocation63_spill] sm:$0xff]  ;;  %v9964_v30 = vld [vmem:[#allocation74_spill] sm:$0xff] }
 0x534   :  { %2646 = vmatpush.msrb.mxu3 %v9908_v59  ;;  %2614 = vmatpush.msra.mxu0 %v9909_v57  ;;  %v9965_v59 = vld [vmem:[#allocation77_spill] sm:$0xff]  ;;  %v9966_v57 = vld [vmem:[#allocation78_spill] sm:$0xff] }
 0x535   :  { %2686 = vmatpush.msra.mxu2 %v9910_v51  ;;  %2654 = vmatpush.msra.mxu1 %v9911_v63  ;;  %v9967_v51 = vld [vmem:[#allocation81_spill] sm:$0xff]  ;;  %v9968_v63 = vld [vmem:[#allocation82_spill] sm:$0xff] }
 0x536   :  { %2647 = vmatpush.msrb.mxu3 %v9912_v1  ;;  %2615 = vmatpush.msra.mxu0 %v9913_v50  ;;  %v9969_v1 = vld [vmem:[#allocation85_spill] sm:$0xff]  ;;  %v9970_v50 = vld [vmem:[#allocation86_spill] sm:$0xff] }
 0x537   :  { %2687 = vmatpush.msra.mxu2 %v9914_v58  ;;  %2655 = vmatpush.msra.mxu1 %v9915_v5  ;;  %v9971_v58 = vld [vmem:[#allocation89_spill] sm:$0xff]  ;;  %v9972_v5 = vld [vmem:[#allocation90_spill] sm:$0xff] }
 0x538   :  { %2648 = vmatpush.msrb.mxu3 %v9916_v15  ;;  %2616 = vmatpush.msra.mxu0 %v9917_v43  ;;  %v9973_v15 = vld [vmem:[#allocation93_spill] sm:$0xff]  ;;  %v9974_v43 = vld [vmem:[#allocation94_spill] sm:$0xff] }
 0x539   :  { %2688 = vmatpush.msra.mxu2 %v9918_v53  ;;  %2656 = vmatpush.msra.mxu1 %v9919_v9  ;;  %v9975_v53 = vld [vmem:[#allocation97_spill] sm:$0xff]  ;;  %v9976_v9 = vld [vmem:[#allocation98_spill] sm:$0xff] }
 0x53a   :  { %2649 = vmatpush.msrb.mxu3 %v9920_v7  ;;  %2617 = vmatpush.msra.mxu0 %v9921_v39  ;;  %v9977_v7 = vld [vmem:[#allocation101_spill] sm:$0xff]  ;;  %v9978_v39 = vld [vmem:[#allocation102_spill] sm:$0xff] }
 0x53b   :  { %2689 = vmatpush.msra.mxu2 %v9922_v8  ;;  %2657 = vmatpush.msra.mxu1 %v9925_v26  ;;  %v9979_v8 = vld [vmem:[#allocation105_spill] sm:$0xff]  ;;  %v9982_v26 = vld [vmem:[#allocation110_spill] sm:$0xff] }
 0x53c   :  { %2714 = vmatpush.msra.mxu3 %v9923_v54  ;;  %2618 = vmatpush.msra.mxu0 %v9927_v6  ;;  %v9980_v54 = vld [vmem:[#allocation106_spill] sm:$0xff]  ;;  %v9984_v6 = vld [vmem:[#allocation112_spill] sm:$0xff] }
 0x53d   :  { %2754 = vmatpush.msrb.mxu2 %v9924_v28  ;;  %2658 = vmatpush.msra.mxu1 %v9929_v19  ;;  %v9981_v28 = vld [vmem:[#allocation109_spill] sm:$0xff]  ;;  %v9986_v19 = vld [vmem:[#allocation7_spill] sm:$0xff] }
 0x53e   :  { %2715 = vmatpush.msra.mxu3 %v9926_v41  ;;  %2619 = vmatpush.msra.mxu0 %v9931_v13  ;;  %v9983_v41 = vld [vmem:[#allocation111_spill] sm:$0xff]  ;;  %v9988_v13 = vld [vmem:[#allocation8_spill] sm:$0xff] }
 0x53f   :  { %2755 = vmatpush.msrb.mxu2 %v9928_v46  ;;  %2659 = vmatpush.msra.mxu1 %v9933_v27  ;;  %v9985_v46 = vld [vmem:[#allocation3_spill] sm:$0xff]  ;;  %v9990_v27 = vld [vmem:[#allocation9_spill] sm:$0xff] }
 0x540   :  { %2716 = vmatpush.msra.mxu3 %v9930_v21  ;;  %2620 = vmatpush.msra.mxu0 %v9935_v34  ;;  %v9987_v21 = vld [vmem:[#allocation4_spill] sm:$0xff]  ;;  %v9992_v34 = vld [vmem:[#allocation10_spill] sm:$0xff] }
 0x541   :  { %2756 = vmatpush.msrb.mxu2 %v9932_v35  ;;  %2660 = vmatpush.msra.mxu1 %v9937_v55  ;;  %v9989_v35 = vld [vmem:[#allocation5_spill] sm:$0xff]  ;;  %v9994_v55 = vld [vmem:[#allocation11_spill] sm:$0xff] }
 0x542   :  { %2717 = vmatpush.msra.mxu3 %v9934_v32  ;;  %2621 = vmatpush.msra.mxu0 %v9939_v37  ;;  %v9991_v32 = vld [vmem:[#allocation6_spill] sm:$0xff]  ;;  %v9996_v37 = vld [vmem:[#allocation13_spill] sm:$0xff] }
 0x543   :  { %2757 = vmatpush.msrb.mxu2 %v9936_v10  ;;  %2661 = vmatpush.msra.mxu1 %v9941_v17  ;;  %v9993_v10 = vld [vmem:[#allocation40_spill] sm:$0xff]  ;;  %v9998_v17 = vld [vmem:[#allocation129_spill] sm:$0xff] }
 0x544   :  { %2718 = vmatpush.msra.mxu3 %v9938_v60  ;;  %2622 = vmatpush.msra.mxu0 %v9943_v61  ;;  %v9995_v60 = vld [vmem:[#allocation12_spill] sm:$0xff]  ;;  %v10000_v61 = vld [vmem:[#allocation131_spill] sm:$0xff] }
 0x545   :  { %2758 = vmatpush.msrb.mxu2 %v9940_v20  ;;  %2662 = vmatpush.msra.mxu1 %v9945_v25  ;;  %v9997_v20 = vld [vmem:[#allocation14_spill] sm:$0xff]  ;;  %v10002_v25 = vld [vmem:[#allocation133_spill] sm:$0xff] }
 0x546   :  { %2719 = vmatpush.msra.mxu3 %v9942_v0  ;;  %2623 = vmatpush.msra.mxu0 %v9947_v12  ;;  %v9999_v0 = vld [vmem:[#allocation130_spill] sm:$0xff]  ;;  %v3779_v12 = vld [vmem:[%s8870_s12 + $0x70] sm:$0xff] }
 0x547   :  { %2759 = vmatpush.msrb.mxu2 %v9944_v56  ;;  %2663 = vmatpush.msra.mxu1 %v9949_v23  ;;  %v10001_v56 = vld [vmem:[#allocation132_spill] sm:$0xff]  ;;  %v3781_v23 = vld [vmem:[%s8870_s12 + $0x50] sm:$0xff] }
 0x548   :  { %2720 = vmatpush.msra.mxu3 %v9946_v11  ;;  %2624 = vmatpush.msra.mxu0 %v9951_v62  ;;  %v10003_v11 = vld [vmem:[#allocation134_spill] sm:$0xff]  ;;  %v3783_v62 = vld [vmem:[%s8870_s12 + $0x30] sm:$0xff] }
 0x549   :  { %2760 = vmatpush.msrb.mxu2 %v9948_v40  ;;  %2664 = vmatpush.msra.mxu1 %v9953_v4  ;;  %v3780_v40 = vld [vmem:[%s8870_s12 + $0x78] sm:$0xff]  ;;  %v3785_v4 = vld [vmem:[%s8870_s12 + $0x10] sm:$0xff] }
 0x54a   :  { %2721 = vmatpush.msra.mxu3 %v9950_v47  ;;  %2625 = vmatpush.msra.mxu0 %v9955_v14  ;;  %v3782_v47 = vld [vmem:[%s8870_s12 + $0x58] sm:$0xff] }
 0x54b   :  { %2761 = vmatpush.msrb.mxu2 %v9952_v42  ;;  %2665 = vmatpush.msra.mxu1 %v9957_v16  ;;  %v3784_v42 = vld [vmem:[%s8870_s12 + $0x38] sm:$0xff] }
 0x54c   :  { %2722 = vmatpush.msra.mxu3 %v9954_v24  ;;  %2626 = vmatpush.msra.mxu0 %v9959_v2  ;;  %v3786_v24 = vld [vmem:[%s8870_s12 + $0x18] sm:$0xff] }
 0x54d   :  { %2762 = vmatpush.msrb.mxu2 %v9956_v18  ;;  %2666 = vmatpush.msra.mxu1 %v9961_v36 }
 0x54e   :  { %2723 = vmatpush.msra.mxu3 %v9958_v22  ;;  %2627 = vmatpush.msra.mxu0 %v9963_v33 }
 0x54f   :  { %2763 = vmatpush.msrb.mxu2 %v9960_v38  ;;  %2667 = vmatpush.msra.mxu1 %v9965_v59 }
 0x550   :  { %2724 = vmatpush.msra.mxu3 %v9962_v49  ;;  %2628 = vmatpush.msra.mxu0 %v9967_v51 }
 0x551   :  { %2764 = vmatpush.msrb.mxu2 %v9964_v30  ;;  %2668 = vmatpush.msra.mxu1 %v9969_v1 }
 0x552   :  { %2725 = vmatpush.msra.mxu3 %v9966_v57  ;;  %2629 = vmatpush.msra.mxu0 %v9971_v58  ;;  %v10004_v57 = vld [vmem:[#allocation15_spill] sm:$0xff] }
 0x553   :  { %2765 = vmatpush.msrb.mxu2 %v9968_v63  ;;  %2669 = vmatpush.msra.mxu1 %v9973_v15 }
 0x554   :  { %2726 = vmatpush.msra.mxu3 %v9970_v50  ;;  %2694 = vmatpush.msrb.mxu0 %v9975_v53 }
 0x555   :  { %2766 = vmatpush.msrb.mxu2 %v9972_v5  ;;  %2734 = vmatpush.msrb.mxu1 %v9977_v7 }
 0x556   :  { %2727 = vmatpush.msra.mxu3 %v9974_v43  ;;  %2695 = vmatpush.msrb.mxu0 %v9979_v8 }
 0x557   :  { %2767 = vmatpush.msrb.mxu2 %v9976_v9  ;;  %2735 = vmatpush.msrb.mxu1 %v9981_v28 }
 0x558   :  { %2728 = vmatpush.msra.mxu3 %v9978_v39  ;;  %2696 = vmatpush.msrb.mxu0 %v9983_v41 }
 0x559   :  { %2768 = vmatpush.msrb.mxu2 %v9980_v54  ;;  %2736 = vmatpush.msrb.mxu1 %v9985_v46 }
 0x55a   :  { %2729 = vmatpush.msra.mxu3 %v9982_v26  ;;  %2697 = vmatpush.msrb.mxu0 %v9986_v19 }
 0x55b   :  { %2769 = vmatpush.msrb.mxu2 %v9984_v6  ;;  %2737 = vmatpush.msrb.mxu1 %v9987_v21  ;;  %v10005_v21 = vld [vmem:[#allocation126_spill] sm:$0xff] }
 0x55c   :  { %2698 = vmatpush.msrb.mxu0 %v9988_v13 }
 0x55d   :  { %2738 = vmatpush.msrb.mxu1 %v9989_v35 }
 0x55e   :  { %2699 = vmatpush.msrb.mxu0 %v9990_v27 }
 0x55f   :  { %2739 = vmatpush.msrb.mxu1 %v9991_v32 }
 0x560   :  { %2700 = vmatpush.msrb.mxu0 %v9992_v34 }
 0x561   :  { %2740 = vmatpush.msrb.mxu1 %v9993_v10 }
 0x562   :  { %2701 = vmatpush.msrb.mxu0 %v9994_v55 }
 0x563   :  { %2741 = vmatpush.msrb.mxu1 %v9995_v60 }
 0x564   :  { %2702 = vmatpush.msrb.mxu0 %v9996_v37  ;;  %v10006_v37 = vld [vmem:[#allocation116_spill] sm:$0xff] }
 0x565   :  { %2742 = vmatpush.msrb.mxu1 %v9997_v20 }
 0x566   :  { %2703 = vmatpush.msrb.mxu0 %v9998_v17 }
 0x567   :  { %2743 = vmatpush.msrb.mxu1 %v9999_v0 }
 0x568   :  { %2704 = vmatpush.msrb.mxu0 %v10000_v61  ;;  %v10007_v61 = vld [vmem:[#allocation127_spill] sm:$0xff] }
 0x569   :  { %2744 = vmatpush.msrb.mxu1 %v10001_v56 }
 0x56a   :  { %2705 = vmatpush.msrb.mxu0 %v10002_v25 }
 0x56b   :  { %2745 = vmatpush.msrb.mxu1 %v10003_v11  ;;  %v10008_v11 = vld [vmem:[#allocation128_spill] sm:$0xff] }
 0x56c   :  { %2706 = vmatpush.msrb.mxu0 %v3779_v12 }
 0x56d   :  { %2746 = vmatpush.msrb.mxu1 %v3780_v40 }
 0x56e   :  { %2707 = vmatpush.msrb.mxu0 %v3781_v23 }
 0x56f   :  { %2747 = vmatpush.msrb.mxu1 %v3782_v47 }
 0x570   :  { %2708 = vmatpush.msrb.mxu0 %v3783_v62 }
 0x571   :  { %2748 = vmatpush.msrb.mxu1 %v3784_v42 }
 0x572   :  { %2709 = vmatpush.msrb.mxu0 %v3785_v4 }
 0x573   :  { %2749 = vmatpush.msrb.mxu1 %v3786_v24 }
 0x579   :  { %v2350_v14 = vpop.f32.mrf.mxu3  ;;  %v2390_v22 = vpop.f32.mrf.mxu2 }
 0x581   :  { %v2430_v1 = vpop.f32.mrf.mxu3  ;;  %v2470_v58 = vpop.f32.mrf.mxu2 }
 0x58f   :  { %v2330_v18 = vpop.f32.mrf.mxu0  ;;  %v2370_v16 = vpop.f32.mrf.mxu1 }
 0x590   :  { %v2331_v2 = vadd.f32 %v2330_v18, %v5812_v29  ;;  %v2371_v38 = vadd.f32 %v2370_v16, %v5814_v45 }
 0x592   :  { %v2351_v36 = vadd.f32 %v2350_v14, %v2331_v2  ;;  %v2391_v49 = vadd.f32 %v2390_v22, %v2371_v38 }
 0x594   :  { %v2473_v33 = vmul.f32 0.5, %v2351_v36  ;;  %v2477_v30 = vmul.f32 0.5, %v2391_v49 }
 0x596   :  { %3315 = vtanh.f32 %v2473_v33 }
 0x597   :  { %3317 = vtanh.f32 %v2477_v30  ;;  %v2410_v59 = vpop.f32.mrf.mxu0 }
 0x598   :  { %v2411_v51 = vadd.f32 %v2410_v59, %v10004_v57  ;;  %v2450_v63 = vpop.f32.mrf.mxu1 }
 0x599   :  { %v2451_v50 = vadd.f32 %v2450_v63, %v5820_v3 }
 0x59a   :  { %v2431_v5 = vadd.f32 %v2430_v1, %v2411_v51  ;;  %v2549_v6 = vpop.f32.mrf.mxu3 }
 0x59b   :  { %v2471_v15 = vadd.f32 %v2470_v58, %v2451_v50  ;;  %v2593_v13 = vadd.f32 %v2549_v6, %v10005_v21  ;;  %v2589_v60 = vpop.f32.mrf.mxu2 }
 0x59c   :  { %v3316_v43 = vpop.eup %3315  ;;  %3319 = vtanh.f32 %v2431_v5  ;;  %v2595_v56 = vadd.f32 %v2589_v60, %v10007_v61 }
 0x59d   :  { %v3318_v53 = vpop.eup %3317  ;;  %v2475_v9 = vadd.f32 1.0, %v3316_v43  ;;  %v2482_v7 = vmul.f32 0.5, %v2471_v15  ;;  %v2600_v27 = vmul.f32 0.5, %v2593_v13 }
 0x59e   :  { %v2479_v39 = vadd.f32 1.0, %v3318_v53  ;;  %v2605_v23 = vmul.f32 0.5, %v2595_v56 }
 0x59f   :  { %3321 = vtanh.f32 %v2482_v7  ;;  %v2476_v54 = vmul.f32 0.5, %v2475_v9 }
 0x5a0   :  { %v2480_v8 = vmul.f32 0.5, %v2479_v39 }
 0x5a2   :  { %v3320_v28 = vpop.eup %3319  ;;  %v2486_v26 = vmul.f32 %v2480_v8, %v8228_v48 }
 0x5a3   :  { %v2487_v41 = vmul.f32 %v3320_v28, %v2476_v54 }
 0x5a5   :  { %v3322_v46 = vpop.eup %3321  ;;  %v8534_v19 = vadd.f32 %v2487_v41, %v2486_v26 }
 0x5a6   :  { %v2484_v35 = vadd.f32 1.0, %v3322_v46 }
 0x5a7   :  { %3323 = vtanh.f32 %v8534_v19 }
 0x5a8   :  { %v2485_v32 = vmul.f32 0.5, %v2484_v35  ;;  %3325 = vtanh.f32 %v2600_v27 }
 0x5ad   :  { %v3324_v34 = vpop.eup %3323 }
 0x5ae   :  { %v8538_v10 = vmul.f32 %v3324_v34, %v2485_v32  ;;  %v3326_v25 = vpop.eup %3325 }
 0x5af   :  { %v2529_v55 = vpop.f32.mrf.mxu0  ;;  %v2602_v40 = vadd.f32 1.0, %v3326_v25 }
 0x5b0   :  { %v2592_v48 = vadd.f32 %v2529_v55, %v10006_v37  ;;  %2650 = vmatmul.f32.vlgmr.msrb.gmra.mxu3 %v8538_v10  ;;  %2690 = vmatmul.f32.vlgmr.msra.gmra.mxu2 %v8538_v10  ;;  %v2491_v20 = vmul.f32 %v5834_v31, %v8538_v10  ;;  %v2569_v17 = vpop.f32.mrf.mxu1  ;;  %v1291_v37 = vpop.xlane.xlu0 %1290 }
 0x5b1   :  { %v2594_v12 = vadd.f32 %v2569_v17, %v10008_v11  ;;  %v2603_v62 = vmul.f32 0.5, %v2602_v40 }
 0x5b2   :  { %v2596_v0 = vmul.f32 0.5, %v2592_v48  ;;  %2492 = vadd.xlane.f32.xlu0 %v2491_v20  ;;  %v1590_v48 = vpop.xlane.xlu1 %1589  ;;  %v1292_v20 = vsub.f32 0.0, %v1291_v37  ;;  %v10009_v37 = vld [vmem:[#allocation16_spill] sm:$0xff] }
 0x5b3   :  { %v2609_v14 = vmul.f32 %v2603_v62, %v8260_v44  ;;  %v1591_v17 = vsub.f32 0.0, %v1590_v48 }
 0x5b4   :  { %3327 = vtanh.f32 %v2596_v0  ;;  %v1891_v0 = vpop.xlane.xlu2 %1890  ;;  %v1293_v61 = vsub.f32 -inf, %v1292_v20  ;;  %v1296_v11 = vsub.f32 %v1292_v20, %v1292_v20 }
 0x5b5   :  { %3329 = vtanh.f32 %v2594_v12  ;;  %v1892_v25 = vsub.f32 0.0, %v1891_v0 }
 0x5b6   :  { %3331 = vtanh.f32 %v2605_v23  ;;  %v1294_v56 = vmul.f32 1.442695, %v1293_v61  ;;  %v2829_v61 = vld [vmem:[%s8874_s17 + $0x10] sm:$0xff] }
 0x5b8   :  { %2730 = vmatmul.f32.vlgmr.msra.gmra.mxu3 %v8538_v10  ;;  %2770 = vmatmul.f32.vlgmr.msrb.gmra.mxu2 %v8538_v10 }
 0x5ba   :  { %v3328_v47 = vpop.eup %3327 }
 0x5bb   :  { %v2598_v42 = vadd.f32 1.0, %v3328_v47  ;;  %v3330_v24 = vpop.eup %3329  ;;  %v2842_v47 = vld [vmem:[%s8874_s17 + $0x78] sm:$0xff] }
 0x5bc   :  { %v3332_v16 = vpop.eup %3331  ;;  %v2192_v40 = vpop.xlane.xlu2 %2191 }
 0x5bd   :  { %v2599_v4 = vmul.f32 0.5, %v2598_v42  ;;  %v2607_v2 = vadd.f32 1.0, %v3332_v16  ;;  %v2193_v42 = vsub.f32 0.0, %v2192_v40 }
 0x5bf   :  { %v2610_v18 = vmul.f32 %v3330_v24, %v2599_v4  ;;  %v2608_v38 = vmul.f32 0.5, %v2607_v2  ;;  %v2841_v4 = vld [vmem:[%s8874_s17 + $0x70] sm:$0xff] }
 0x5c1   :  { %v2611_v22 = vadd.f32 %v2610_v18, %v2609_v14  ;;  %v2840_v18 = vld [vmem:[%s8874_s17 + $0x68] sm:$0xff] }
 0x5c3   :  { %3333 = vtanh.f32 %v2611_v22 }
 0x5c9   :  { %v3334_v36 = vpop.eup %3333 }
 0x5ca   :  { %v2613_v49 = vmul.f32 %v3334_v36, %v2608_v38  ;;  %v2839_v38 = vld [vmem:[%s8874_s17 + $0x60] sm:$0xff] }
 0x5cc   :  { %2630 = vmatmul.f32.vlgmr.msra.gmra.mxu0 %v2613_v49  ;;  %2670 = vmatmul.f32.vlgmr.msra.gmra.mxu1 %v2613_v49 }
 0x5cd   :  { %2843 = vmatpush.msra.mxu0 %v2842_v47 }
 0x5cf   :  { %2844 = vmatpush.msra.mxu0 %v2841_v4 }
 0x5d1   :  { %2845 = vmatpush.msra.mxu0 %v2840_v18 }
 0x5d3   :  { %2846 = vmatpush.msra.mxu0 %v2839_v38  ;;  %v2908_v38 = vld [vmem:[%s8876_s19 + $0x70] sm:$0xff] }
 0x5d4   :  { %2710 = vmatmul.f32.vlgmr.msrb.gmra.mxu0 %v2613_v49  ;;  %2750 = vmatmul.f32.vlgmr.msrb.gmra.mxu1 %v2613_v49 }
 0x625   :  { %v2493_v16 = vpop.xlane.xlu0 %2492 }
 0x633   :  { %v2651_v33 = vpop.f32.mrf.mxu3  ;;  %v2691_v30 = vpop.f32.mrf.mxu2 }
 0x63b   :  { %v2731_v7 = vpop.f32.mrf.mxu3  ;;  %v2771_v39 = vpop.f32.mrf.mxu2 }
 0x649   :  { %v2631_v59 = vpop.f32.mrf.mxu0  ;;  %v2671_v51 = vpop.f32.mrf.mxu1 }
 0x64a   :  { %v2632_v63 = vadd.f32 %v2631_v59, %v5812_v29  ;;  %v2672_v44 = vadd.f32 %v2671_v51, %v5814_v45 }
 0x64c   :  { %v2652_v1 = vadd.f32 %v2651_v33, %v2632_v63  ;;  %v2692_v50 = vadd.f32 %v2691_v30, %v2672_v44  ;;  %v2494_v33 = vsub.f32 0.0, %v2493_v16  ;;  %v2838_v30 = vld [vmem:[%s8874_s17 + $0x58] sm:$0xff]  ;;  %v2837_v44 = vld [vmem:[%s8874_s17 + $0x50] sm:$0xff] }
 0x64d   :  { %2847 = vmatpush.msra.mxu0 %v2838_v30 }
 0x64e   :  { %v2774_v58 = vmul.f32 0.5, %v2652_v1  ;;  %v2778_v5 = vmul.f32 0.5, %v2692_v50 }
 0x64f   :  { %2848 = vmatpush.msra.mxu0 %v2837_v44 }
 0x650   :  { %3335 = vtanh.f32 %v2774_v58 }
 0x651   :  { %3337 = vtanh.f32 %v2778_v5  ;;  %v2711_v15 = vpop.f32.mrf.mxu0  ;;  %v2751_v43 = vpop.f32.mrf.mxu1  ;;  %v2836_v5 = vld [vmem:[%s8874_s17 + $0x48] sm:$0xff] }
 0x652   :  { %v2712_v53 = vadd.f32 %v2711_v15, %v10004_v57  ;;  %v2752_v9 = vadd.f32 %v2751_v43, %v5820_v3  ;;  %2849 = vmatpush.msra.mxu0 %v2836_v5 }
 0x654   :  { %v2732_v8 = vadd.f32 %v2731_v7, %v2712_v53  ;;  %v2772_v54 = vadd.f32 %v2771_v39, %v2752_v9  ;;  %v2835_v9 = vld [vmem:[%s8874_s17 + $0x40] sm:$0xff] }
 0x655   :  { %2850 = vmatpush.msra.mxu0 %v2835_v9 }
 0x656   :  { %v3336_v28 = vpop.eup %3335  ;;  %3339 = vtanh.f32 %v2732_v8  ;;  %v2783_v29 = vmul.f32 0.5, %v2772_v54  ;;  %v2834_v54 = vld [vmem:[%s8874_s17 + $0x38] sm:$0xff] }
 0x657   :  { %v3338_v45 = vpop.eup %3337  ;;  %v2776_v26 = vadd.f32 1.0, %v3336_v28  ;;  %2851 = vmatpush.msra.mxu0 %v2834_v54 }
 0x658   :  { %v2780_v41 = vadd.f32 1.0, %v3338_v45  ;;  %3341 = vtanh.f32 %v2783_v29  ;;  %v2826_v45 = vld [vmem:[%s8875_s16 + $0x18] sm:$0xf] }
 0x659   :  { %v2777_v46 = vmul.f32 0.5, %v2776_v26  ;;  %v2833_v26 = vld [vmem:[%s8874_s17 + $0x30] sm:$0xff]  ;;  %3146 = vmatpush.msk.msrb.mxu3 %vm113_vm0, %v2826_v45 }
 0x65a   :  { %v2781_v6 = vmul.f32 0.5, %v2780_v41  ;;  %2852 = vmatpush.msra.mxu0 %v2833_v26  ;;  %v2900_v26 = vld [vmem:[%s8876_s19 + $0x30] sm:$0xff] }
 0x65c   :  { %v3340_v21 = vpop.eup %3339  ;;  %v2787_v13 = vmul.f32 %v2781_v6, %v8534_v19  ;;  %v1592_v19 = vmax.f32 %v1292_v20, %v1591_v17 }
 0x65d   :  { %v2788_v35 = vmul.f32 %v3340_v21, %v2777_v46  ;;  %v2825_v21 = vld [vmem:[%s8875_s16 + $0x10] sm:$0xff] }
 0x65e   :  { %v3342_v57 = vpop.eup %3341  ;;  %v1593_v12 = vsub.f32 %v1292_v20, %v1592_v19  ;;  %v1893_v23 = vmax.f32 %v1592_v19, %v1892_v25  ;;  %v1596_v24 = vsub.f32 %v1591_v17, %v1592_v19  ;;  %2879 = vmatpush.msrb.mxu3 %v2825_v21 }
 0x65f   :  { %v2789_v27 = vadd.f32 %v2788_v35, %v2787_v13  ;;  %v2785_v3 = vadd.f32 1.0, %v3342_v57  ;;  %v2832_v13 = vld [vmem:[%s8874_s17 + $0x28] sm:$0xff] }
 0x660   :  { %v1594_v62 = vmul.f32 1.442695, %v1593_v12  ;;  %v1894_v14 = vsub.f32 %v1592_v19, %v1893_v23  ;;  %v2194_v2 = vmax.f32 %v1893_v23, %v2193_v42  ;;  %v1597_v36 = vmul.f32 1.442695, %v1596_v24  ;;  %v2824_v35 = vld [vmem:[%s8875_s16 + $0x8] sm:$0xff]  ;;  %2853 = vmatpush.msra.mxu0 %v2832_v13  ;;  %v10010_v24 = vld [vmem:[#allocation117_spill] sm:$0xff] }
 0x661   :  { %3343 = vtanh.f32 %v2789_v27  ;;  %v2786_v32 = vmul.f32 0.5, %v2785_v3  ;;  %v1897_v51 = vsub.f32 %v1892_v25, %v1893_v23  ;;  %v2831_v27 = vld [vmem:[%s8874_s17 + $0x20] sm:$0xff]  ;;  %2880 = vmatpush.msrb.mxu3 %v2824_v35  ;;  %v2828_v12 = vld [vmem:[%s8874_s17 + $0x8] sm:$0xff] }
 0x662   :  { %3345 = vpow2.f32 %v1294_v56  ;;  %v1895_v49 = vmul.f32 1.442695, %v1894_v14  ;;  %v2195_v63 = vsub.f32 %v1893_v23, %v2194_v2  ;;  %v8581_v58 = vmax.f32 %v2194_v2, %v2494_v33  ;;  %2854 = vmatpush.msra.mxu0 %v2831_v27  ;;  %v2898_v13 = vld [vmem:[%s8876_s19 + $0x20] sm:$0xff] }
 0x663   :  { %v1898_v43 = vmul.f32 1.442695, %v1897_v51  ;;  %v2198_v39 = vsub.f32 %v2193_v42, %v2194_v2 }
 0x664   :  { %v2196_v53 = vmul.f32 1.442695, %v2195_v63  ;;  %v2496_v8 = vsub.f32 %v2194_v2, %v8581_v58  ;;  %v2499_v3 = vsub.f32 %v2494_v33, %v8581_v58  ;;  %v2909_v2 = vld [vmem:[%s8876_s19 + $0x78] sm:$0xff]  ;;  %v10011_v63 = vld [vmem:[#allocation119_spill] sm:$0xff] }
 0x665   :  { %v2199_v6 = vmul.f32 1.442695, %v2198_v39  ;;  %2914 = vmatpush.msra.mxu1 %v2909_v2 }
 0x666   :  { %v2497_v46 = vmul.f32 1.442695, %v2496_v8  ;;  %v2500_v56 = vmul.f32 1.442695, %v2499_v3 }
 0x667   :  { %v3344_v34 = vpop.eup %3343  ;;  %2915 = vmatpush.msra.mxu1 %v2908_v38 }
 0x668   :  { %v8555_v55 = vmul.f32 %v3344_v34, %v2786_v32  ;;  %v3346_v22 = vpop.eup %3345  ;;  %v2823_v32 = vld [vmem:[%s8875_s16] sm:$0xff]  ;;  %v2830_v34 = vld [vmem:[%s8874_s17 + $0x18] sm:$0xff] }
 0x669   :  { %v8574_v59 = vmul.f32 0.0, %v3346_v22  ;;  %2881 = vmatpush.msrb.mxu3 %v2823_v32  ;;  %2855 = vmatpush.msra.mxu0 %v2830_v34 }
 0x66a   :  { %v2792_v60 = vmul.f32 %v5834_v31, %v8555_v55  ;;  %v1297_v31 = vmul.f32 1.442695, %v1296_v11  ;;  %v3787_v11 = vld [vmem:[%s8868_s2] sm:$0xff] }
 0x66b   :  { %3147 = vmatmul.msk.f32.vlgmr.msrb.gmra.mxu3 %vm627_vm10, %v3787_v11  ;;  %2856 = vmatpush.msra.mxu0 %v2829_v61  ;;  %v2897_v61 = vld [vmem:[%s8876_s19 + $0x18] sm:$0xff]  ;;  %v3162_v11 = vld [vmem:[%s8876_s19 + $0xf0] sm:$0xff] }
 0x66c   :  { %2793 = vadd.xlane.f32.xlu1 %v2792_v60  ;;  %3347 = vpow2.f32 %v1297_v31 }
 0x66d   :  { %3349 = vpow2.f32 %v1594_v62  ;;  %v2827_v62 = vld [vmem:[%s8874_s17] sm:$0xff]  ;;  %2857 = vmatpush.msra.mxu0 %v2828_v12  ;;  %v3161_v12 = vld [vmem:[%s8876_s19 + $0xe8] sm:$0xff] }
 0x66e   :  { %3351 = vpow2.f32 %v1597_v36 }
 0x66f   :  { %3353 = vpow2.f32 %v1895_v49  ;;  %2858 = vmatpush.msra.mxu0 %v2827_v62  ;;  %v2907_v49 = vld [vmem:[%s8876_s19 + $0x68] sm:$0xff]  ;;  %v3156_v62 = vld [vmem:[%s8876_s19 + $0xc0] sm:$0xff] }
 0x670   :  { %3355 = vpow2.f32 %v1898_v43  ;;  %2916 = vmatpush.msra.mxu1 %v2907_v49 }
 0x671   :  { %3357 = vpow2.f32 %v2196_v53 }
 0x672   :  { %v3348_v1 = vpop.eup %3347  ;;  %3359 = vpow2.f32 %v2199_v6  ;;  %v2899_v6 = vld [vmem:[%s8876_s19 + $0x28] sm:$0xff] }
 0x673   :  { %v8579_v50 = vpop.eup %3349  ;;  %v1300_v15 = vadd.f32 %v3348_v1, %v8574_v59  ;;  %v1301_v48 = vmul.f32 %v3348_v1, %v10009_v37  ;;  %3361 = vpow2.f32 %v2497_v46 }
 0x674   :  { %v3352_v28 = vpop.eup %3351  ;;  %3363 = vpow2.f32 %v2500_v56  ;;  %v2894_v56 = vld [vmem:[%s8876_s19] sm:$0xff] }
 0x675   :  { %v1599_v7 = vmul.f32 %v8579_v50, %v1300_v15  ;;  %v8595_v29 = vpop.eup %3353  ;;  %v1302_v40 = vadd.f32 %v1301_v48, %v8574_v59  ;;  %v1602_v14 = vmul.f32 %v3352_v28, %v10010_v24  ;;  %v2906_v59 = vld [vmem:[%s8876_s19 + $0x60] sm:$0xff]  ;;  %v2904_v15 = vld [vmem:[%s8876_s19 + $0x50] sm:$0xff]  ;;  %v3153_v24 = vld [vmem:[%s8876_s19 + $0xa8] sm:$0xff] }
 0x676   :  { %v3356_v60 = vpop.eup %3355  ;;  %2917 = vmatpush.msra.mxu1 %v2906_v59  ;;  %v3149_v59 = vld [vmem:[%s8876_s19 + $0x88] sm:$0xff] }
 0x677   :  { %v1600_v41 = vadd.f32 %v3352_v28, %v1599_v7  ;;  %v3358_v17 = vpop.eup %3357  ;;  %v1601_v4 = vmul.f32 %v8579_v50, %v1302_v40  ;;  %v1903_v44 = vmul.f32 %v3356_v60, %v10011_v63  ;;  %v2905_v50 = vld [vmem:[%s8876_s19 + $0x58] sm:$0xff]  ;;  %v2903_v7 = vld [vmem:[%s8876_s19 + $0x48] sm:$0xff]  ;;  %v2902_v28 = vld [vmem:[%s8876_s19 + $0x40] sm:$0xff] }
 0x678   :  { %v3360_v42 = vpop.eup %3359  ;;  %2918 = vmatpush.msra.mxu1 %v2905_v50  ;;  %v3160_v40 = vld [vmem:[%s8876_s19 + $0xe0] sm:$0xff]  ;;  %v3180_v63 = vld [vmem:[%s8876_s19 + $0x178] sm:$0xff] }
 0x679   :  { %v1900_v57 = vmul.f32 %v8595_v29, %v1600_v41  ;;  %v3362_v18 = vpop.eup %3361  ;;  %v1603_v33 = vadd.f32 %v1602_v14, %v1601_v4  ;;  %v2204_v8 = vmul.f32 %v3360_v42, %v8232_v52  ;;  %v3154_v4 = vld [vmem:[%s8876_s19 + $0xb0] sm:$0xff]  ;;  %v3152_v14 = vld [vmem:[%s8876_s19 + $0xa0] sm:$0xff]  ;;  %3006 = vmatpush.msra.mxu3 %v3180_v63 }
 0x67a   :  { %v3364_v1 = vpop.eup %3363  ;;  %2919 = vmatpush.msra.mxu1 %v2904_v15  ;;  %v3177_v50 = vld [vmem:[%s8876_s19 + $0x160] sm:$0xff]  ;;  %v3174_v15 = vld [vmem:[%s8876_s19 + $0x148] sm:$0xff] }
 0x67b   :  { %v1901_v19 = vadd.f32 %v3356_v60, %v1900_v57  ;;  %v1902_v51 = vmul.f32 %v8595_v29, %v1603_v33  ;;  %v2901_v29 = vld [vmem:[%s8876_s19 + $0x38] sm:$0xff]  ;;  %v2505_v52 = vmul.f32 %v3364_v1, %v8538_v10 }
 0x67c   :  { %2920 = vmatpush.msra.mxu1 %v2903_v7  ;;  %v3151_v33 = vld [vmem:[%s8876_s19 + $0x98] sm:$0xff]  ;;  %v3170_v7 = vld [vmem:[%s8876_s19 + $0x128] sm:$0xff] }
 0x67d   :  { %v2201_v23 = vmul.f32 %v3358_v17, %v1901_v19  ;;  %v1904_v43 = vadd.f32 %v1903_v44, %v1902_v51  ;;  %v2895_v19 = vld [vmem:[%s8876_s19 + $0x8] sm:$0xff]  ;;  %v3148_v51 = vld [vmem:[%s8876_s19 + $0x80] sm:$0xff]  ;;  %v3179_v44 = vld [vmem:[%s8876_s19 + $0x170] sm:$0xff] }
 0x67e   :  { %2921 = vmatpush.msra.mxu1 %v2902_v28  ;;  %3007 = vmatpush.msra.mxu3 %v3179_v44 }
 0x67f   :  { %v2202_v36 = vadd.f32 %v3360_v42, %v2201_v23  ;;  %v2203_v39 = vmul.f32 %v3358_v17, %v1904_v43  ;;  %v3159_v23 = vld [vmem:[%s8876_s19 + $0xd8] sm:$0xff]  ;;  %v3173_v43 = vld [vmem:[%s8876_s19 + $0x140] sm:$0xff] }
 0x680   :  { %2922 = vmatpush.msra.mxu1 %v2901_v29  ;;  %v3155_v42 = vld [vmem:[%s8876_s19 + $0xb8] sm:$0xff] }
 0x681   :  { %v2502_v30 = vmul.f32 %v3362_v18, %v2202_v36  ;;  %v2205_v45 = vadd.f32 %v2204_v8, %v2203_v39  ;;  %v3169_v39 = vld [vmem:[%s8876_s19 + $0x120] sm:$0xff] }
 0x682   :  { %2923 = vmatpush.msra.mxu1 %v2900_v26  ;;  %v3191_v8 = vld [vmem:[%s8878_s20] ss:$0 sm:$0xff] }
 0x683   :  { %v2504_v41 = vmul.f32 %v3362_v18, %v2205_v45 }
 0x684   :  { %2924 = vmatpush.msra.mxu1 %v2899_v6  ;;  %v3166_v6 = vld [vmem:[%s8876_s19 + $0x108] sm:$0xff] }
 0x685   :  { %v2506_v35 = vadd.f32 %v2505_v52, %v2504_v41  ;;  %v3168_v41 = vld [vmem:[%s8876_s19 + $0x118] sm:$0xff]  ;;  %v3167_v52 = vld [vmem:[%s8876_s19 + $0x110] sm:$0xff] }
 0x686   :  { %2925 = vmatpush.msra.mxu1 %v2898_v13  ;;  %v3044_v13 = vld [vmem:[%s8879_s21 + $0x70] sm:$0xff] }
 0x688   :  { %2926 = vmatpush.msra.mxu1 %v2897_v61 }
 0x6df   :  { %v2794_v20 = vpop.xlane.xlu1 %2793 }
 0x6e0   :  { %v2795_v0 = vsub.f32 0.0, %v2794_v20 }
 0x6e2   :  { %v2796_v25 = vmax.f32 %v8581_v58, %v2795_v0 }
 0x6e4   :  { %v2797_v47 = vsub.f32 %v8581_v58, %v2796_v25  ;;  %v2800_v31 = vsub.f32 %v2795_v0, %v2796_v25  ;;  %v2503_v58 = vadd.f32 %v3364_v1, %v2502_v30  ;;  %v3163_v25 = vld [vmem:[%s8876_s19 + $0xf8] sm:$0xff]  ;;  %v3150_v30 = vld [vmem:[%s8876_s19 + $0x90] sm:$0xff]  ;;  %v3178_v1 = vld [vmem:[%s8876_s19 + $0x168] sm:$0xff] }
 0x6e5   :  { %2960 = vmatpush.msra.mxu2 %v3163_v25  ;;  %3008 = vmatpush.msra.mxu3 %v3178_v1  ;;  %v3032_v25 = vld [vmem:[%s8879_s21 + $0x10] sm:$0xff] }
 0x6e6   :  { %v2798_v16 = vmul.f32 1.442695, %v2797_v47  ;;  %v2801_v22 = vmul.f32 1.442695, %v2800_v31  ;;  %v3158_v47 = vld [vmem:[%s8876_s19 + $0xd0] sm:$0xff]  ;;  %v3157_v31 = vld [vmem:[%s8876_s19 + $0xc8] sm:$0xff] }
 0x6e7   :  { %2961 = vmatpush.msra.mxu2 %v3162_v11  ;;  %3009 = vmatpush.msra.mxu3 %v3177_v50  ;;  %v3031_v11 = vld [vmem:[%s8879_s21 + $0x8] sm:$0xff] }
 0x6e8   :  { %3365 = vpow2.f32 %v2798_v16  ;;  %v3190_v16 = vld [vmem:[%s8877_s18] ss:$0 sm:$0xff] }
 0x6e9   :  { %3367 = vpow2.f32 %v2801_v22  ;;  %2962 = vmatpush.msra.mxu2 %v3161_v12  ;;  %v3030_v12 = vld [vmem:[%s8879_s21] sm:$0xff] }
 0x6eb   :  { %2963 = vmatpush.msra.mxu2 %v3160_v40  ;;  %v3193_v40 = vld [vmem:[%s8878_s20 + $0x2] ss:$0 sm:$0xff] }
 0x6ed   :  { %2964 = vmatpush.msra.mxu2 %v3159_v23 }
 0x6ee   :  { %v3366_v5 = vpop.eup %3365  ;;  %v2883_v18 = vpop.f32.mrf.mxu3 }
 0x6ef   :  { %v2803_v53 = vmul.f32 %v3366_v5, %v2503_v58  ;;  %v3368_v9 = vpop.eup %3367  ;;  %v2805_v27 = vmul.f32 %v3366_v5, %v2506_v35  ;;  %2965 = vmatpush.msra.mxu2 %v3158_v47  ;;  %v3176_v58 = vld [vmem:[%s8876_s19 + $0x158] sm:$0xff]  ;;  %v3175_v5 = vld [vmem:[%s8876_s19 + $0x150] sm:$0xff]  ;;  %v3043_v35 = vld [vmem:[%s8879_s21 + $0x68] sm:$0xff] }
 0x6f0   :  { %v2806_v10 = vmul.f32 %v3368_v9, %v8555_v55  ;;  %v2896_v55 = vld [vmem:[%s8876_s19 + $0x10] sm:$0xff]  ;;  %3010 = vmatpush.msra.mxu3 %v3176_v58 }
 0x6f1   :  { %v2804_v54 = vadd.f32 %v3368_v9, %v2803_v53  ;;  %2927 = vmatpush.msra.mxu1 %v2896_v55  ;;  %2966 = vmatpush.msra.mxu2 %v3157_v31  ;;  %v3172_v53 = vld [vmem:[%s8876_s19 + $0x138] sm:$0xff]  ;;  %v3171_v9 = vld [vmem:[%s8876_s19 + $0x130] sm:$0xff] }
 0x6f2   :  { %v2807_v48 = vadd.f32 %v2806_v10, %v2805_v27  ;;  %3011 = vmatpush.msra.mxu3 %v3175_v5  ;;  %v3041_v27 = vld [vmem:[%s8879_s21 + $0x58] sm:$0xff]  ;;  %v3039_v10 = vld [vmem:[%s8879_s21 + $0x48] sm:$0xff] }
 0x6f3   :  { %3369 = vrcp.f32 %v2804_v54  ;;  %v2819_v3 = vand.u32 2147483648, %v2804_v54  ;;  %v2817_v34 = vand.u32 2147483647, %v2804_v54  ;;  %vm2813_vm12 = vweird.f32 %v2804_v54  ;;  %2928 = vmatpush.msra.mxu1 %v2895_v19  ;;  %2967 = vmatpush.msra.mxu2 %v3156_v62 }
 0x6f4   :  { %3012 = vmatpush.msra.mxu3 %v3174_v15 }
 0x6f5   :  { %v2820_v37 = vor.u32 1.1754944e-38, %v2819_v3  ;;  %vm2818_vm14 = vcmp.eq.f32.partialorder %v2817_v34, 8.507059e+37  ;;  %2929 = vmatpush.msra.mxu1 %v2894_v56  ;;  %2968 = vmatpush.msra.mxu2 %v3155_v42  ;;  %v3040_v3 = vld [vmem:[%s8879_s21 + $0x50] sm:$0xff]  ;;  %v3037_v34 = vld [vmem:[%s8879_s21 + $0x38] sm:$0xff] }
 0x6f6   :  { %3013 = vmatpush.msra.mxu3 %v3173_v43  ;;  %v3033_v56 = vld [vmem:[%s8879_s21 + $0x18] sm:$0xff] }
 0x6f7   :  { %2969 = vmatpush.msra.mxu2 %v3154_v4  ;;  %v3194_v4 = vld [vmem:[%s8880_s22] ss:$0 sm:$0xff] }
 0x6f8   :  { %3014 = vmatpush.msra.mxu3 %v3172_v53 }
 0x6f9   :  { %v3370_v46 = vpop.eup %3369  ;;  %2970 = vmatpush.msra.mxu2 %v3153_v24 }
 0x6fa   :  { %v2809_v21 = vmul.f32 %v3370_v46, %v2804_v54  ;;  %vm2814_vm11 = vweird.f32 %v3370_v46  ;;  %3015 = vmatpush.msra.mxu3 %v3171_v9 }
 0x6fb   :  { %vm2815_vm13 = vmor %vm2813_vm12, %vm2814_vm11  ;;  %2971 = vmatpush.msra.mxu2 %v3152_v14 }
 0x6fc   :  { %v2810_v57 = vsub.f32 1.0, %v2809_v21  ;;  %3016 = vmatpush.msra.mxu3 %v3170_v7  ;;  %v3045_v21 = vld [vmem:[%s8879_s21 + $0x78] sm:$0xff] }
 0x6fd   :  { %2972 = vmatpush.msra.mxu2 %v3151_v33  ;;  %3050 = vmatpush.msrb.mxu0 %v3045_v21 }
 0x6fe   :  { %v2811_v32 = vmul.f32 %v3370_v46, %v2810_v57  ;;  %3017 = vmatpush.msra.mxu3 %v3169_v39  ;;  %v3042_v57 = vld [vmem:[%s8879_s21 + $0x60] sm:$0xff] }
 0x6ff   :  { %2973 = vmatpush.msra.mxu2 %v3150_v30  ;;  %3051 = vmatpush.msrb.mxu0 %v3044_v13 }
 0x700   :  { %v2812_v60 = vadd.f32 %v3370_v46, %v2811_v32  ;;  %3018 = vmatpush.msra.mxu3 %v3168_v41  ;;  %v3038_v32 = vld [vmem:[%s8879_s21 + $0x40] sm:$0xff] }
 0x701   :  { %2974 = vmatpush.msra.mxu2 %v3149_v59  ;;  %3052 = vmatpush.msrb.mxu0 %v3043_v35 }
 0x702   :  { %v2816_v20 = vsel %vm2815_vm13, %v3370_v46, %v2812_v60  ;;  %3019 = vmatpush.msra.mxu3 %v3167_v52  ;;  %v3165_v46 = vld [vmem:[%s8876_s19 + $0x100] sm:$0xff]  ;;  %v3036_v60 = vld [vmem:[%s8879_s21 + $0x30] sm:$0xff] }
 0x703   :  { %v2821_v17 = vsel %vm2818_vm14, %v2820_v37, %v2816_v20  ;;  %2975 = vmatpush.msra.mxu2 %v3148_v51  ;;  %3053 = vmatpush.msrb.mxu0 %v3042_v57  ;;  %v3035_v37 = vld [vmem:[%s8879_s21 + $0x28] sm:$0xff]  ;;  %v3192_v20 = vld [vmem:[%s8878_s20 + $0x1] ss:$0 sm:$0xff] }
 0x704   :  { %v2822_v0 = vmul.f32 %v2821_v17, %v2807_v48  ;;  %3020 = vmatpush.msra.mxu3 %v3166_v6  ;;  %v3034_v48 = vld [vmem:[%s8879_s21 + $0x20] sm:$0xff] }
 0x705   :  { %3054 = vmatpush.msrb.mxu0 %v3041_v27 }
 0x706   :  { %2859 = vmatmul.f32.vlgmr.msra.gmra.mxu0 %v2822_v0  ;;  %3021 = vmatpush.msra.mxu3 %v3165_v46 }
 0x707   :  { %3055 = vmatpush.msrb.mxu0 %v3040_v3 }
 0x709   :  { %3056 = vmatpush.msrb.mxu0 %v3039_v10 }
 0x70b   :  { %3057 = vmatpush.msrb.mxu0 %v3038_v32 }
 0x70d   :  { %3058 = vmatpush.msrb.mxu0 %v3037_v34 }
 0x70f   :  { %3059 = vmatpush.msrb.mxu0 %v3036_v60 }
 0x711   :  { %3060 = vmatpush.msrb.mxu0 %v3035_v37 }
 0x713   :  { %3061 = vmatpush.msrb.mxu0 %v3034_v48 }
 0x715   :  { %3062 = vmatpush.msrb.mxu0 %v3033_v56 }
 0x717   :  { %3063 = vmatpush.msrb.mxu0 %v3032_v25 }
 0x719   :  { %3064 = vmatpush.msrb.mxu0 %v3031_v11 }
 0x71b   :  { %3065 = vmatpush.msrb.mxu0 %v3030_v12 }
 0x783   :  { %v2860_v22 = vpop.f32.mrf.mxu0 }
 0x784   :  { %v2884_v2 = vadd.f32 %v2883_v18, %v2860_v22 }
 0x786   :  { %v2890_v38 = vadd.f32 %v3190_v16, %v2884_v2 }
 0x788   :  { %vm2891_vm15 = vcmp.gt.f32.partialorder %v2890_v38, 0.0  ;;  %v2892_v36 = vmul.f32 0.01, %v2890_v38 }
 0x78a   :  { %v2893_v49 = vsel %vm2891_vm15, %v2890_v38, %v2892_v36 }
 0x78b   :  { %2930 = vmatmul.f32.vlgmr.msra.gmra.mxu1 %v2893_v49 }
 0x808   :  { %v2931_v54 = vpop.f32.mrf.mxu1 }
 0x809   :  { %v2932_v28 = vadd.f32 %v3191_v8, %v2931_v54 }
 0x80b   :  { %vm2934_vm0 = vcmp.gt.f32.partialorder %v2932_v28, 0.0  ;;  %v2935_v29 = vmul.f32 0.01, %v2932_v28 }
 0x80d   :  { %v2936_v45 = vsel %vm2934_vm0, %v2932_v28, %v2935_v29 }
 0x80e   :  { %v2937_v26 = vadd.f32 %v2936_v45, %v2893_v49 }
 0x810   :  { %2976 = vmatmul.f32.vlgmr.msra.gmra.mxu2 %v2937_v26 }
 0x893   :  { %v2977_v17 = vpop.f32.mrf.mxu2 }
 0x894   :  { %v2978_v0 = vadd.f32 %v3192_v20, %v2977_v17 }
 0x896   :  { %vm2980_vm1 = vcmp.gt.f32.partialorder %v2978_v0, 0.0  ;;  %v2981_v61 = vmul.f32 0.01, %v2978_v0 }
 0x898   :  { %v2982_v55 = vsel %vm2980_vm1, %v2978_v0, %v2981_v61 }
 0x899   :  { %v2983_v19 = vadd.f32 %v2982_v55, %v2937_v26 }
 0x89b   :  { %3022 = vmatmul.f32.vlgmr.msra.gmra.mxu3 %v2983_v19 }
 0x91e   :  { %v3023_v23 = vpop.f32.mrf.mxu3 }
 0x91f   :  { %v3024_v47 = vadd.f32 %v3193_v40, %v3023_v23 }
 0x921   :  { %vm3026_vm2 = vcmp.gt.f32.partialorder %v3024_v47, 0.0  ;;  %v3027_v31 = vmul.f32 0.01, %v3024_v47 }
 0x923   :  { %v3028_v62 = vsel %vm3026_vm2, %v3024_v47, %v3027_v31 }
 0x924   :  { %v3029_v42 = vadd.f32 %v3028_v62, %v2983_v19 }
 0x926   :  { %3066 = vmatmul.f32.vlgmr.msrb.gmra.mxu0 %v3029_v42 }
 0x9a3   :  { %v3067_v24 = vpop.f32.mrf.mxu0 }
 0x9a4   :  { %v3068_v14 = vadd.f32 %v3194_v4, %v3067_v24 }
 0x9a6   :  { %3070 = vst [vmem:[%s8881_s23] sm:$0xff] %v3068_v14 }

</bundles_post_ra>
